<compile_context>
chip_gen: v7x
topology: tpu7x:2x2x1
jax: 0.10.0
libtpu: 0.0.40
codegen_flags: <defaults>
</compile_context>

<pallas_src>
import numpy as np
import jax
import jax.numpy as jnp
from jax import lax
from jax.experimental import pallas as pl
from jax.experimental.pallas import tpu as pltpu

BF16 = jnp.bfloat16
F32 = jnp.float32


# ---------------------------------------------------------------------------
# Host-side constant spatial operators (all values exactly representable in bf16)
# ---------------------------------------------------------------------------

def _shift_matrix(H, W, dh, dw):
    """S with (act @ S)[:, h*W+w] = act[:, (h+dh)*W+(w+dw)], zero outside."""
    S = np.zeros((H * W, H * W), np.float32)
    for h in range(H):
        for w in range(W):
            hs, ws = h + dh, w + dw
            if 0 <= hs < H and 0 <= ws < W:
                S[hs * W + ws, h * W + w] = 1.0
    return S


def _pool_matrix(H, W):
    """P with act @ P == 2x2 average pooling, stride 2."""
    P = np.zeros((H * W, (H // 2) * (W // 2)), np.float32)
    for h in range(H):
        for w in range(W):
            P[h * W + w, (h // 2) * (W // 2) + w // 2] = 0.25
    return P


def _upsample_matrix(H, W):
    """U with act @ U == nearest-neighbour x2 upsampling."""
    U = np.zeros((H * W, (2 * H) * (2 * W)), np.float32)
    for h in range(2 * H):
        for w in range(2 * W):
            U[(h // 2) * W + (w // 2), h * (2 * W) + w] = 1.0
    return U


def _left_tap_mats(H, W):
    """(9, HW, HW/4): per-tap zero-padded shift fused with the 2x2 avg-pool."""
    P = _pool_matrix(H, W)
    return np.stack([_shift_matrix(H, W, kh - 1, kw - 1) @ P
                     for kh in range(3) for kw in range(3)], axis=0)


def _right_tap_mats(H, W):
    """(9, HW, 4*HW): nearest x2 upsample fused with per-tap zero-padded shift."""
    U = _upsample_matrix(H, W)
    return np.stack([U @ _shift_matrix(2 * H, 2 * W, kh - 1, kw - 1)
                     for kh in range(3) for kw in range(3)], axis=0)


def _shift_masks(H, W):
    """(9, 1, HW) 0/1 masks: validity of tap (kh,kw) at every output pixel."""
    m = np.zeros((9, 1, H * W), np.float32)
    t = 0
    for kh in range(3):
        for kw in range(3):
            dh, dw = kh - 1, kw - 1
            for h in range(H):
                for w in range(W):
                    if 0 <= h + dh < H and 0 <= w + dw < W:
                        m[t, 0, h * W + w] = 1.0
            t += 1
    return m


# ---------------------------------------------------------------------------
# Pallas kernel (one invocation covers the whole U-net and the whole batch)
# ---------------------------------------------------------------------------

def _hourglass_kernel(
        x_ref,
        w0_ref, b0_ref, pool0_ref, m16_ref,
        wl1_ref, bl1_ref, tl1_ref,
        wl2_ref, bl2_ref, tl2_ref,
        wl3_ref, bl3_ref, tl3_ref,
        wu_ref, bu_ref,
        w1y_ref, w1s_ref, br1_ref, tr1_ref,
        w2y_ref, w2s_ref, br2_ref, tr2_ref,
        w3y_ref, w3s_ref, br3_ref, up3_ref,
        o_ref):
    B = x_ref.shape[0]
    HW = x_ref.shape[2]                                         # 256 (16x16)
    OFFS = [(kh - 1, kw - 1) for kh in range(3) for kw in range(3)]

    def wmm(w_ref_, act):
        """bf16 channel-mixing matmul (native MXU rate), f32 accumulation.
        w_ref_: (9*Cout, Cin) bf16; act: (Cin, hw) f32 -> (9*Cout, hw) f32."""
        return jnp.dot(w_ref_[...], act.astype(BF16), preferred_element_type=F32)

    def conv16(p, b_ref_):
        """Sum the 9 zero-padded 3x3 taps at 16x16 via lane rolls + 0/1 masks.
        p: (9*Cout, 256) f32 per-tap partial conv results (rows grouped per tap)."""
        cout = b_ref_.shape[0]
        acc = jnp.broadcast_to(b_ref_[...], (cout, HW))          # bias folded in
        for t, (dh, dw) in enumerate(OFFS):
            sl = p[t * cout:(t + 1) * cout]                      # (cout, 256)
            d = dh * 16 + dw                                     # row-major 16x16
            r = sl if d == 0 else pltpu.roll(sl, shift=(-d) % HW, axis=1)
            acc = acc + r * m16_ref[t]                           # (1,256) mask bcast
        return acc

    def conv_taps(p, b_ref_, t_ref_):
        """Sum the 9 taps via the small fused shift(+pool/+upsample) matrices.
        p: (9*Cout, hw_in) f32; t_ref_: (9, hw_in, hw_out) bf16 (exact values)."""
        cout = b_ref_.shape[0]
        hw_out = t_ref_.shape[2]
        acc = jnp.broadcast_to(b_ref_[...], (cout, hw_out))
        for t in range(9):
            acc = acc + jnp.dot(p[t * cout:(t + 1) * cout],
                                t_ref_[t].astype(F32),
                                preferred_element_type=F32)
        return acc

    relu = lambda v: jnp.maximum(v, 0.0)                         # f32 VPU (v5e-safe)

    for b in range(B):                                           # both samples, one launch
        x_b = x_ref[b].astype(F32)                               # (8, 256)   16x16

        # ---- left (downsampling) path; skips stay resident ----------------
        f0 = jnp.dot(conv16(wmm(w0_ref, relu(x_b)), b0_ref),
                     pool0_ref[...].astype(F32),
                     preferred_element_type=F32)                 # (8, 64)    8x8
        f1 = conv_taps(wmm(wl1_ref, relu(f0)), bl1_ref, tl1_ref)  # (16, 16)  4x4
        f2 = conv_taps(wmm(wl2_ref, relu(f1)), bl2_ref, tl2_ref)  # (32, 4)   2x2
        f3 = conv_taps(wmm(wl3_ref, relu(f2)), bl3_ref, tl3_ref)  # (32, 1)   1x1

        # ---- rights[0]: Upsample1x1 (ReLU -> 1x1 conv -> view(B, C/4, 2, 2)) ----
        a = relu(f3)                                             # (32, 1)
        col = lax.broadcasted_iota(jnp.int32, (1, 4), 1)
        u_cols = jnp.concatenate(
            [a * (col == q).astype(F32) for q in range(4)], axis=0)    # (128, 4)
        y = jnp.dot(wu_ref[...], u_cols.astype(BF16),
                    preferred_element_type=F32) + bu_ref[...]    # (32, 4)    2x2

        # ---- rights[1..3]: cat([right, skip]) -> ReLU -> x2 up -> conv3x3 ----
        p = wmm(w1y_ref, relu(y)) + wmm(w1s_ref, relu(f2))
        y = conv_taps(p, br1_ref, tr1_ref)                       # (16, 16)   4x4

        p = wmm(w2y_ref, relu(y)) + wmm(w2s_ref, relu(f1))
        y = conv_taps(p, br2_ref, tr2_ref)                       # (8, 64)    8x8

        p8 = wmm(w3y_ref, relu(y)) + wmm(w3s_ref, relu(f0))      # (72, 64)
        p = jnp.dot(p8, up3_ref[...].astype(F32),
                    preferred_element_type=F32)                  # (72, 256)  16x16
        y = conv16(p, br3_ref)                                   # (8, 256)   Cout padded

        o_ref[b] = y.astype(o_ref.dtype)                         # dense, unmasked store


# ---------------------------------------------------------------------------
# Wrapper
# ---------------------------------------------------------------------------

def hourglass_forward(x, p):
    """x: (B, C_in, H, W) float32 (NCHW). Returns (B, C_in, H, W)."""
    B, C_in, H, W = x.shape
    HW = H * W
    x_pad = jnp.pad(x.reshape(B, C_in, HW), ((0, 0), (0, 8 - C_in), (0, 0)))

    operands = [
        x_pad,
        p["w0"], p["b0"], p["pool0"], p["m16"],
        p["wl1"], p["bl1"], p["tl1"],
        p["wl2"], p["bl2"], p["tl2"],
        p["wl3"], p["bl3"], p["tl3"],
        p["wu"], p["bu"],
        p["w1y"], p["w1s"], p["br1"], p["tr1"],
        p["w2y"], p["w2s"], p["br2"], p["tr2"],
        p["w3y"], p["w3s"], p["br3"], p["up3"],
    ]

    def full(a):
        n = a.ndim
        return pl.BlockSpec(a.shape, lambda i: (0,) * n)

    out = pl.pallas_call(
        _hourglass_kernel,
        grid=(1,),
        in_specs=[full(op) for op in operands],
        out_specs=pl.BlockSpec((B, 8, HW), lambda i: (0, 0, 0)),
        out_shape=jax.ShapeDtypeStruct((B, 8, HW), x.dtype),
        compiler_params=pltpu.CompilerParams(
            dimension_semantics=("arbitrary",),
            vmem_limit_bytes=16 * 1024 * 1024,                  # ~0.5 MB actually used
        ),
    )(*operands)

    return out[:, :C_in, :].reshape(B, C_in, H, W)


# ---------------------------------------------------------------------------
# Parameter construction (PyTorch layout) and packing to kernel layout
# ---------------------------------------------------------------------------

def build_params(key, C_in=4, C_max=32, size=16, n_downs=4):
    cs = [C_in]
    for _ in range(n_downs):
        cs.append(min(cs[-1] * 2, C_max))                       # [4, 8, 16, 32, 32]

    keys = iter(jax.random.split(key, 2 * (2 * n_downs - 1) + 2))

    def conv3(c_out, c_in):
        w = jax.random.normal(next(keys), (c_out, c_in, 3, 3), jnp.float32)
        w = w * (2.0 / (9 * c_in)) ** 0.5
        b = 0.1 * jax.random.normal(next(keys), (c_out,), jnp.float32)
        return w, b

    tp = {"lefts": [], "rights": []}
    for i in range(n_downs):
        tp["lefts"].append(conv3(cs[i + 1], cs[i]))

    up_cout, up_cin = cs[n_downs - 1], cs[n_downs]              # Upsample1x1(32 -> 32)
    wu = jax.random.normal(next(keys), (4 * up_cout, up_cin, 1, 1), jnp.float32)
    wu = wu * (2.0 / up_cin) ** 0.5
    bu = 0.1 * jax.random.normal(next(keys), (4 * up_cout,), jnp.float32)
    tp["up"] = (wu, bu)

    for i in range(1, n_downs):                                 # rights[1..]
        c_out = cs[n_downs - 1 - i]
        ch_in = 2 * cs[n_downs - i]
        tp["rights"].append(conv3(c_out, ch_in))
    return tp


def pack_kernel_params(tp, C_in=4, size=16):
    def pack_w(w):
        """(Cout, Cin, 3, 3) OIHW -> (9*Cout, Cin) bf16, rows grouped per tap
        ((kh,kw)-major), matching the kernel's per-tap row slices."""
        co, ci = w.shape[:2]
        return jnp.transpose(w, (2, 3, 0, 1)).reshape(9 * co, ci).astype(BF16)

    p = {}

    # lefts[0]: roll-based conv at 16x16 (input channels zero-padded 4 -> 8)
    w, b = tp["lefts"][0]
    w = jnp.pad(w, ((0, 0), (0, 8 - w.shape[1]), (0, 0), (0, 0)))
    p["w0"] = pack_w(w)
    p["b0"] = b.reshape(-1, 1).astype(F32)
    p["pool0"] = jnp.asarray(_pool_matrix(size, size), BF16)     # exact in bf16
    p["m16"] = jnp.asarray(_shift_masks(size, size))             # (9, 1, 256) f32 0/1

    # lefts[1..3]: fused shift+pool tap matrices (small, exact in bf16)
    for i in range(1, 4):
        w, b = tp["lefts"][i]
        s = size >> i
        p[f"wl{i}"] = pack_w(w)
        p[f"bl{i}"] = b.reshape(-1, 1).astype(F32)
        p[f"tl{i}"] = jnp.asarray(_left_tap_mats(s, s), BF16)

    # rights[0]: Upsample1x1 ;  wu_arr[c, q*Cin + k] = wu[4c+q, k]
    wu, bu = tp["up"]
    cu = wu.shape[0] // 4
    p["wu"] = wu.reshape(cu, 4 * wu.shape[1]).astype(BF16)
    p["bu"] = bu.reshape(cu, 4).astype(F32)

    # rights[1..2]: weights split into (right-feature, skip) halves of cat(x, lf)
    for i in (1, 2):
        w, b = tp["rights"][i - 1]
        half = w.shape[1] // 2
        s = 1 << i                                               # input spatial size
        p[f"w{i}y"] = pack_w(w[:, :half])
        p[f"w{i}s"] = pack_w(w[:, half:])
        p[f"br{i}"] = b.reshape(-1, 1).astype(F32)
        p[f"tr{i}"] = jnp.asarray(_right_tap_mats(s, s), BF16)

    # rights[3]: roll-based conv at 16x16; Cout zero-padded 4 -> 8 (dense store)
    w, b = tp["rights"][2]
    w = jnp.pad(w, ((0, 8 - w.shape[0]), (0, 0), (0, 0), (0, 0)))
    b = jnp.pad(b, ((0, 8 - b.shape[0]),))
    half = w.shape[1] // 2
    p["w3y"] = pack_w(w[:, :half])
    p["w3s"] = pack_w(w[:, half:])
    p["br3"] = b.reshape(-1, 1).astype(F32)
    p["up3"] = jnp.asarray(_upsample_matrix(size // 2, size // 2), BF16)
    return p


# ---------------------------------------------------------------------------
# Pure-JAX f32 reference (PyTorch NCHW / OIHW semantics)
# ---------------------------------------------------------------------------

def ref_forward(x, tp):
    prec = lax.Precision.HIGHEST

    def conv(h, w, pad):
        return lax.conv_general_dilated(
            h, w, (1, 1), ((pad, pad), (pad, pad)),
            dimension_numbers=("NCHW", "OIHW", "NCHW"), precision=prec)

    feats = []
    h = x
    for w, b in tp["lefts"]:
        h = jax.nn.relu(h)
        h = conv(h, w, 1) + b[None, :, None, None]
        h = lax.reduce_window(h, 0.0, lax.add, (1, 1, 2, 2), (1, 1, 2, 2),
                              "VALID") * 0.25
        feats.append(h)

    wu, bu = tp["up"]
    y = jax.nn.relu(h)
    y = conv(y, wu, 0) + bu[None, :, None, None]
    y = y.reshape(x.shape[0], y.shape[1] // 4, 2, 2)

    for i, (w, b) in enumerate(tp["rights"]):
        y = jnp.concatenate([y, feats[-2 - i]], axis=1)          # cat([x, lf], dim=1)
        y = jax.nn.relu(y)
        y = jnp.repeat(jnp.repeat(y, 2, axis=2), 2, axis=3)      # nearest x2
        y = conv(y, w, 1) + b[None, :, None, None]
    return y


if __name__ == "__main__":
    B, C_in, C_max, size, n_downs = 2, 4, 32, 16, 4              # size == n_downs**2

    key = jax.random.PRNGKey(0)
    kp, kx = jax.random.split(key)
    torch_params = build_params(kp, C_in=C_in, C_max=C_max, size=size, n_downs=n_downs)
    x = jax.random.normal(kx, (B, C_in, size, size), jnp.float32)

    kparams = pack_kernel_params(torch_params, C_in=C_in, size=size)

    out = jax.block_until_ready(hourglass_forward(x, kparams))
    ref = jax.block_until_ready(ref_forward(x, torch_params))

    assert out.shape == (B, C_in, size, size) and out.dtype == jnp.float32
    max_err = float(jnp.max(jnp.abs(out - ref)))
    # bf16 weights / bf16 matmul operands vs the f32 reference -> loosened tolerance.
    assert jnp.allclose(out, ref, atol=5e-2, rtol=5e-2), f"max_err={max_err}"
    print("KERNEL_OK")
</pallas_src>

<mosaic_0001>
module attributes {stable_mosaic.version = 11 : i64} {
  func.func @_hourglass_kernel(%arg0: i32, %arg1: memref<2x8x256xf32, #tpu.memory_space<vmem>>, %arg2: memref<72x8xbf16, #tpu.memory_space<vmem>>, %arg3: memref<8x1xf32, #tpu.memory_space<vmem>>, %arg4: memref<256x64xbf16, #tpu.memory_space<vmem>>, %arg5: memref<9x1x256xf32, #tpu.memory_space<vmem>>, %arg6: memref<144x8xbf16, #tpu.memory_space<vmem>>, %arg7: memref<16x1xf32, #tpu.memory_space<vmem>>, %arg8: memref<9x64x16xbf16, #tpu.memory_space<vmem>>, %arg9: memref<288x16xbf16, #tpu.memory_space<vmem>>, %arg10: memref<32x1xf32, #tpu.memory_space<vmem>>, %arg11: memref<9x16x4xbf16, #tpu.memory_space<vmem>>, %arg12: memref<288x32xbf16, #tpu.memory_space<vmem>>, %arg13: memref<32x1xf32, #tpu.memory_space<vmem>>, %arg14: memref<9x4x1xbf16, #tpu.memory_space<vmem>>, %arg15: memref<32x128xbf16, #tpu.memory_space<vmem>>, %arg16: memref<32x4xf32, #tpu.memory_space<vmem>>, %arg17: memref<144x32xbf16, #tpu.memory_space<vmem>>, %arg18: memref<144x32xbf16, #tpu.memory_space<vmem>>, %arg19: memref<16x1xf32, #tpu.memory_space<vmem>>, %arg20: memref<9x4x16xbf16, #tpu.memory_space<vmem>>, %arg21: memref<72x16xbf16, #tpu.memory_space<vmem>>, %arg22: memref<72x16xbf16, #tpu.memory_space<vmem>>, %arg23: memref<8x1xf32, #tpu.memory_space<vmem>>, %arg24: memref<9x16x64xbf16, #tpu.memory_space<vmem>>, %arg25: memref<72x8xbf16, #tpu.memory_space<vmem>>, %arg26: memref<72x8xbf16, #tpu.memory_space<vmem>>, %arg27: memref<8x1xf32, #tpu.memory_space<vmem>>, %arg28: memref<64x256xbf16, #tpu.memory_space<vmem>>, %arg29: memref<2x8x256xf32, #tpu.memory_space<vmem>>) attributes {dimension_semantics = [#tpu.dimension_semantics<arbitrary>], iteration_bounds = array<i64: 1>, scalar_prefetch = 0 : i64, scratch_operands = 0 : i64, tpu.core_type = #tpu.core_type<tc>, window_params = [{pipeline_mode = #tpu.pipeline_mode<synchronous>, transform_indices = @transform_0, window_bounds = array<i64: 2, 8, 256>}, {pipeline_mode = #tpu.pipeline_mode<synchronous>, transform_indices = @transform_1, window_bounds = array<i64: 72, 8>}, {pipeline_mode = #tpu.pipeline_mode<synchronous>, transform_indices = @transform_2, window_bounds = array<i64: 8, 1>}, {pipeline_mode = #tpu.pipeline_mode<synchronous>, transform_indices = @transform_3, window_bounds = array<i64: 256, 64>}, {pipeline_mode = #tpu.pipeline_mode<synchronous>, transform_indices = @transform_4, window_bounds = array<i64: 9, 1, 256>}, {pipeline_mode = #tpu.pipeline_mode<synchronous>, transform_indices = @transform_5, window_bounds = array<i64: 144, 8>}, {pipeline_mode = #tpu.pipeline_mode<synchronous>, transform_indices = @transform_6, window_bounds = array<i64: 16, 1>}, {pipeline_mode = #tpu.pipeline_mode<synchronous>, transform_indices = @transform_7, window_bounds = array<i64: 9, 64, 16>}, {pipeline_mode = #tpu.pipeline_mode<synchronous>, transform_indices = @transform_8, window_bounds = array<i64: 288, 16>}, {pipeline_mode = #tpu.pipeline_mode<synchronous>, transform_indices = @transform_9, window_bounds = array<i64: 32, 1>}, {pipeline_mode = #tpu.pipeline_mode<synchronous>, transform_indices = @transform_10, window_bounds = array<i64: 9, 16, 4>}, {pipeline_mode = #tpu.pipeline_mode<synchronous>, transform_indices = @transform_11, window_bounds = array<i64: 288, 32>}, {pipeline_mode = #tpu.pipeline_mode<synchronous>, transform_indices = @transform_12, window_bounds = array<i64: 32, 1>}, {pipeline_mode = #tpu.pipeline_mode<synchronous>, transform_indices = @transform_13, window_bounds = array<i64: 9, 4, 1>}, {pipeline_mode = #tpu.pipeline_mode<synchronous>, transform_indices = @transform_14, window_bounds = array<i64: 32, 128>}, {pipeline_mode = #tpu.pipeline_mode<synchronous>, transform_indices = @transform_15, window_bounds = array<i64: 32, 4>}, {pipeline_mode = #tpu.pipeline_mode<synchronous>, transform_indices = @transform_16, window_bounds = array<i64: 144, 32>}, {pipeline_mode = #tpu.pipeline_mode<synchronous>, transform_indices = @transform_17, window_bounds = array<i64: 144, 32>}, {pipeline_mode = #tpu.pipeline_mode<synchronous>, transform_indices = @transform_18, window_bounds = array<i64: 16, 1>}, {pipeline_mode = #tpu.pipeline_mode<synchronous>, transform_indices = @transform_19, window_bounds = array<i64: 9, 4, 16>}, {pipeline_mode = #tpu.pipeline_mode<synchronous>, transform_indices = @transform_20, window_bounds = array<i64: 72, 16>}, {pipeline_mode = #tpu.pipeline_mode<synchronous>, transform_indices = @transform_21, window_bounds = array<i64: 72, 16>}, {pipeline_mode = #tpu.pipeline_mode<synchronous>, transform_indices = @transform_22, window_bounds = array<i64: 8, 1>}, {pipeline_mode = #tpu.pipeline_mode<synchronous>, transform_indices = @transform_23, window_bounds = array<i64: 9, 16, 64>}, {pipeline_mode = #tpu.pipeline_mode<synchronous>, transform_indices = @transform_24, window_bounds = array<i64: 72, 8>}, {pipeline_mode = #tpu.pipeline_mode<synchronous>, transform_indices = @transform_25, window_bounds = array<i64: 72, 8>}, {pipeline_mode = #tpu.pipeline_mode<synchronous>, transform_indices = @transform_26, window_bounds = array<i64: 8, 1>}, {pipeline_mode = #tpu.pipeline_mode<synchronous>, transform_indices = @transform_27, window_bounds = array<i64: 64, 256>}, {pipeline_mode = #tpu.pipeline_mode<synchronous>, transform_indices = @transform_28, window_bounds = array<i64: 2, 8, 256>}]} {
    %c0 = arith.constant 0 : index
    %c0_0 = arith.constant 0 : index
    %c0_1 = arith.constant 0 : index
    %0 = vector.load %arg1[%c0, %c0_0, %c0_1] : memref<2x8x256xf32, #tpu.memory_space<vmem>>, vector<1x8x256xf32>
    %1 = vector.shape_cast %0 : vector<1x8x256xf32> to vector<8x256xf32>
    %cst = arith.constant 0.000000e+00 : f32
    %2 = vector.broadcast %cst : f32 to vector<8x256xf32>
    %3 = arith.maximumf %1, %2 : vector<8x256xf32>
    %c0_2 = arith.constant 0 : index
    %c0_3 = arith.constant 0 : index
    %4 = vector.load %arg2[%c0_2, %c0_3] : memref<72x8xbf16, #tpu.memory_space<vmem>>, vector<72x8xbf16>
    %5 = arith.truncf %3 : vector<8x256xf32> to vector<8x256xbf16>
    %cst_4 = arith.constant dense<0.000000e+00> : vector<72x256xf32>
    %6 = tpu.matmul %4, %5, %cst_4 {dimension_numbers = #tpu.dot_dimension_numbers<[1], [0], [0], [1], [0, 0, 1, 1], [], []>} : vector<72x8xbf16>, vector<8x256xbf16>, vector<72x256xf32> -> vector<72x256xf32>
    %c0_5 = arith.constant 0 : index
    %c0_6 = arith.constant 0 : index
    %7 = vector.load %arg3[%c0_5, %c0_6] : memref<8x1xf32, #tpu.memory_space<vmem>>, vector<8x1xf32>
    %8 = vector.shape_cast %7 : vector<8x1xf32> to vector<8x1xf32>
    %9 = vector.broadcast %8 : vector<8x1xf32> to vector<8x256xf32>
    %10 = vector.extract_strided_slice %6 {offsets = [0, 0], sizes = [8, 256], strides = [1, 1]} : vector<72x256xf32> to vector<8x256xf32>
    %c17_i32 = arith.constant 17 : i32
    %11 = tpu.dynamic_rotate %10 by %c17_i32 dim 1 : vector<8x256xf32>, i32 -> vector<8x256xf32>
    %c0_7 = arith.constant 0 : index
    %c0_8 = arith.constant 0 : index
    %c0_9 = arith.constant 0 : index
    %12 = vector.load %arg5[%c0_7, %c0_8, %c0_9] : memref<9x1x256xf32, #tpu.memory_space<vmem>>, vector<1x1x256xf32>
    %13 = vector.shape_cast %12 : vector<1x1x256xf32> to vector<1x256xf32>
    %14 = vector.broadcast %13 : vector<1x256xf32> to vector<8x256xf32>
    %15 = arith.mulf %11, %14 : vector<8x256xf32>
    %16 = arith.addf %9, %15 : vector<8x256xf32>
    %17 = vector.extract_strided_slice %6 {offsets = [8, 0], sizes = [8, 256], strides = [1, 1]} : vector<72x256xf32> to vector<8x256xf32>
    %c16_i32 = arith.constant 16 : i32
    %18 = tpu.dynamic_rotate %17 by %c16_i32 dim 1 : vector<8x256xf32>, i32 -> vector<8x256xf32>
    %c1 = arith.constant 1 : index
    %c0_10 = arith.constant 0 : index
    %c0_11 = arith.constant 0 : index
    %19 = vector.load %arg5[%c1, %c0_10, %c0_11] : memref<9x1x256xf32, #tpu.memory_space<vmem>>, vector<1x1x256xf32>
    %20 = vector.shape_cast %19 : vector<1x1x256xf32> to vector<1x256xf32>
    %21 = vector.broadcast %20 : vector<1x256xf32> to vector<8x256xf32>
    %22 = arith.mulf %18, %21 : vector<8x256xf32>
    %23 = arith.addf %16, %22 : vector<8x256xf32>
    %24 = vector.extract_strided_slice %6 {offsets = [16, 0], sizes = [8, 256], strides = [1, 1]} : vector<72x256xf32> to vector<8x256xf32>
    %c15_i32 = arith.constant 15 : i32
    %25 = tpu.dynamic_rotate %24 by %c15_i32 dim 1 : vector<8x256xf32>, i32 -> vector<8x256xf32>
    %c2 = arith.constant 2 : index
    %c0_12 = arith.constant 0 : index
    %c0_13 = arith.constant 0 : index
    %26 = vector.load %arg5[%c2, %c0_12, %c0_13] : memref<9x1x256xf32, #tpu.memory_space<vmem>>, vector<1x1x256xf32>
    %27 = vector.shape_cast %26 : vector<1x1x256xf32> to vector<1x256xf32>
    %28 = vector.broadcast %27 : vector<1x256xf32> to vector<8x256xf32>
    %29 = arith.mulf %25, %28 : vector<8x256xf32>
    %30 = arith.addf %23, %29 : vector<8x256xf32>
    %31 = vector.extract_strided_slice %6 {offsets = [24, 0], sizes = [8, 256], strides = [1, 1]} : vector<72x256xf32> to vector<8x256xf32>
    %c1_i32 = arith.constant 1 : i32
    %32 = tpu.dynamic_rotate %31 by %c1_i32 dim 1 : vector<8x256xf32>, i32 -> vector<8x256xf32>
    %c3 = arith.constant 3 : index
    %c0_14 = arith.constant 0 : index
    %c0_15 = arith.constant 0 : index
    %33 = vector.load %arg5[%c3, %c0_14, %c0_15] : memref<9x1x256xf32, #tpu.memory_space<vmem>>, vector<1x1x256xf32>
    %34 = vector.shape_cast %33 : vector<1x1x256xf32> to vector<1x256xf32>
    %35 = vector.broadcast %34 : vector<1x256xf32> to vector<8x256xf32>
    %36 = arith.mulf %32, %35 : vector<8x256xf32>
    %37 = arith.addf %30, %36 : vector<8x256xf32>
    %38 = vector.extract_strided_slice %6 {offsets = [32, 0], sizes = [8, 256], strides = [1, 1]} : vector<72x256xf32> to vector<8x256xf32>
    %c4 = arith.constant 4 : index
    %c0_16 = arith.constant 0 : index
    %c0_17 = arith.constant 0 : index
    %39 = vector.load %arg5[%c4, %c0_16, %c0_17] : memref<9x1x256xf32, #tpu.memory_space<vmem>>, vector<1x1x256xf32>
    %40 = vector.shape_cast %39 : vector<1x1x256xf32> to vector<1x256xf32>
    %41 = vector.broadcast %40 : vector<1x256xf32> to vector<8x256xf32>
    %42 = arith.mulf %38, %41 : vector<8x256xf32>
    %43 = arith.addf %37, %42 : vector<8x256xf32>
    %44 = vector.extract_strided_slice %6 {offsets = [40, 0], sizes = [8, 256], strides = [1, 1]} : vector<72x256xf32> to vector<8x256xf32>
    %c255_i32 = arith.constant 255 : i32
    %45 = tpu.dynamic_rotate %44 by %c255_i32 dim 1 : vector<8x256xf32>, i32 -> vector<8x256xf32>
    %c5 = arith.constant 5 : index
    %c0_18 = arith.constant 0 : index
    %c0_19 = arith.constant 0 : index
    %46 = vector.load %arg5[%c5, %c0_18, %c0_19] : memref<9x1x256xf32, #tpu.memory_space<vmem>>, vector<1x1x256xf32>
    %47 = vector.shape_cast %46 : vector<1x1x256xf32> to vector<1x256xf32>
    %48 = vector.broadcast %47 : vector<1x256xf32> to vector<8x256xf32>
    %49 = arith.mulf %45, %48 : vector<8x256xf32>
    %50 = arith.addf %43, %49 : vector<8x256xf32>
    %51 = vector.extract_strided_slice %6 {offsets = [48, 0], sizes = [8, 256], strides = [1, 1]} : vector<72x256xf32> to vector<8x256xf32>
    %c241_i32 = arith.constant 241 : i32
    %52 = tpu.dynamic_rotate %51 by %c241_i32 dim 1 : vector<8x256xf32>, i32 -> vector<8x256xf32>
    %c6 = arith.constant 6 : index
    %c0_20 = arith.constant 0 : index
    %c0_21 = arith.constant 0 : index
    %53 = vector.load %arg5[%c6, %c0_20, %c0_21] : memref<9x1x256xf32, #tpu.memory_space<vmem>>, vector<1x1x256xf32>
    %54 = vector.shape_cast %53 : vector<1x1x256xf32> to vector<1x256xf32>
    %55 = vector.broadcast %54 : vector<1x256xf32> to vector<8x256xf32>
    %56 = arith.mulf %52, %55 : vector<8x256xf32>
    %57 = arith.addf %50, %56 : vector<8x256xf32>
    %58 = vector.extract_strided_slice %6 {offsets = [56, 0], sizes = [8, 256], strides = [1, 1]} : vector<72x256xf32> to vector<8x256xf32>
    %c240_i32 = arith.constant 240 : i32
    %59 = tpu.dynamic_rotate %58 by %c240_i32 dim 1 : vector<8x256xf32>, i32 -> vector<8x256xf32>
    %c7 = arith.constant 7 : index
    %c0_22 = arith.constant 0 : index
    %c0_23 = arith.constant 0 : index
    %60 = vector.load %arg5[%c7, %c0_22, %c0_23] : memref<9x1x256xf32, #tpu.memory_space<vmem>>, vector<1x1x256xf32>
    %61 = vector.shape_cast %60 : vector<1x1x256xf32> to vector<1x256xf32>
    %62 = vector.broadcast %61 : vector<1x256xf32> to vector<8x256xf32>
    %63 = arith.mulf %59, %62 : vector<8x256xf32>
    %64 = arith.addf %57, %63 : vector<8x256xf32>
    %65 = vector.extract_strided_slice %6 {offsets = [64, 0], sizes = [8, 256], strides = [1, 1]} : vector<72x256xf32> to vector<8x256xf32>
    %c239_i32 = arith.constant 239 : i32
    %66 = tpu.dynamic_rotate %65 by %c239_i32 dim 1 : vector<8x256xf32>, i32 -> vector<8x256xf32>
    %c8 = arith.constant 8 : index
    %c0_24 = arith.constant 0 : index
    %c0_25 = arith.constant 0 : index
    %67 = vector.load %arg5[%c8, %c0_24, %c0_25] : memref<9x1x256xf32, #tpu.memory_space<vmem>>, vector<1x1x256xf32>
    %68 = vector.shape_cast %67 : vector<1x1x256xf32> to vector<1x256xf32>
    %69 = vector.broadcast %68 : vector<1x256xf32> to vector<8x256xf32>
    %70 = arith.mulf %66, %69 : vector<8x256xf32>
    %71 = arith.addf %64, %70 : vector<8x256xf32>
    %c0_26 = arith.constant 0 : index
    %c0_27 = arith.constant 0 : index
    %72 = vector.load %arg4[%c0_26, %c0_27] : memref<256x64xbf16, #tpu.memory_space<vmem>>, vector<256x64xbf16>
    %73 = arith.extf %72 : vector<256x64xbf16> to vector<256x64xf32>
    %cst_28 = arith.constant dense<0.000000e+00> : vector<8x64xf32>
    %74 = tpu.matmul %71, %73, %cst_28 {dimension_numbers = #tpu.dot_dimension_numbers<[1], [0], [0], [1], [0, 0, 1, 1], [], []>} : vector<8x256xf32>, vector<256x64xf32>, vector<8x64xf32> -> vector<8x64xf32>
    %cst_29 = arith.constant 0.000000e+00 : f32
    %75 = vector.broadcast %cst_29 : f32 to vector<8x64xf32>
    %76 = arith.maximumf %74, %75 : vector<8x64xf32>
    %c0_30 = arith.constant 0 : index
    %c0_31 = arith.constant 0 : index
    %77 = vector.load %arg6[%c0_30, %c0_31] : memref<144x8xbf16, #tpu.memory_space<vmem>>, vector<144x8xbf16>
    %78 = arith.truncf %76 : vector<8x64xf32> to vector<8x64xbf16>
    %cst_32 = arith.constant dense<0.000000e+00> : vector<144x64xf32>
    %79 = tpu.matmul %77, %78, %cst_32 {dimension_numbers = #tpu.dot_dimension_numbers<[1], [0], [0], [1], [0, 0, 1, 1], [], []>} : vector<144x8xbf16>, vector<8x64xbf16>, vector<144x64xf32> -> vector<144x64xf32>
    %c0_33 = arith.constant 0 : index
    %c0_34 = arith.constant 0 : index
    %80 = vector.load %arg7[%c0_33, %c0_34] : memref<16x1xf32, #tpu.memory_space<vmem>>, vector<16x1xf32>
    %81 = vector.shape_cast %80 : vector<16x1xf32> to vector<16x1xf32>
    %82 = vector.broadcast %81 : vector<16x1xf32> to vector<16x16xf32>
    %83 = vector.extract_strided_slice %79 {offsets = [0, 0], sizes = [16, 64], strides = [1, 1]} : vector<144x64xf32> to vector<16x64xf32>
    %c0_35 = arith.constant 0 : index
    %c0_36 = arith.constant 0 : index
    %c0_37 = arith.constant 0 : index
    %84 = vector.load %arg8[%c0_35, %c0_36, %c0_37] : memref<9x64x16xbf16, #tpu.memory_space<vmem>>, vector<1x64x16xbf16>
    %85 = vector.shape_cast %84 : vector<1x64x16xbf16> to vector<64x16xbf16>
    %86 = arith.extf %85 : vector<64x16xbf16> to vector<64x16xf32>
    %cst_38 = arith.constant dense<0.000000e+00> : vector<16x16xf32>
    %87 = tpu.matmul %83, %86, %cst_38 {dimension_numbers = #tpu.dot_dimension_numbers<[1], [0], [0], [1], [0, 0, 1, 1], [], []>} : vector<16x64xf32>, vector<64x16xf32>, vector<16x16xf32> -> vector<16x16xf32>
    %88 = arith.addf %82, %87 : vector<16x16xf32>
    %89 = vector.extract_strided_slice %79 {offsets = [16, 0], sizes = [16, 64], strides = [1, 1]} : vector<144x64xf32> to vector<16x64xf32>
    %c1_39 = arith.constant 1 : index
    %c0_40 = arith.constant 0 : index
    %c0_41 = arith.constant 0 : index
    %90 = vector.load %arg8[%c1_39, %c0_40, %c0_41] : memref<9x64x16xbf16, #tpu.memory_space<vmem>>, vector<1x64x16xbf16>
    %91 = vector.shape_cast %90 : vector<1x64x16xbf16> to vector<64x16xbf16>
    %92 = arith.extf %91 : vector<64x16xbf16> to vector<64x16xf32>
    %cst_42 = arith.constant dense<0.000000e+00> : vector<16x16xf32>
    %93 = tpu.matmul %89, %92, %cst_42 {dimension_numbers = #tpu.dot_dimension_numbers<[1], [0], [0], [1], [0, 0, 1, 1], [], []>} : vector<16x64xf32>, vector<64x16xf32>, vector<16x16xf32> -> vector<16x16xf32>
    %94 = arith.addf %88, %93 : vector<16x16xf32>
    %95 = vector.extract_strided_slice %79 {offsets = [32, 0], sizes = [16, 64], strides = [1, 1]} : vector<144x64xf32> to vector<16x64xf32>
    %c2_43 = arith.constant 2 : index
    %c0_44 = arith.constant 0 : index
    %c0_45 = arith.constant 0 : index
    %96 = vector.load %arg8[%c2_43, %c0_44, %c0_45] : memref<9x64x16xbf16, #tpu.memory_space<vmem>>, vector<1x64x16xbf16>
    %97 = vector.shape_cast %96 : vector<1x64x16xbf16> to vector<64x16xbf16>
    %98 = arith.extf %97 : vector<64x16xbf16> to vector<64x16xf32>
    %cst_46 = arith.constant dense<0.000000e+00> : vector<16x16xf32>
    %99 = tpu.matmul %95, %98, %cst_46 {dimension_numbers = #tpu.dot_dimension_numbers<[1], [0], [0], [1], [0, 0, 1, 1], [], []>} : vector<16x64xf32>, vector<64x16xf32>, vector<16x16xf32> -> vector<16x16xf32>
    %100 = arith.addf %94, %99 : vector<16x16xf32>
    %101 = vector.extract_strided_slice %79 {offsets = [48, 0], sizes = [16, 64], strides = [1, 1]} : vector<144x64xf32> to vector<16x64xf32>
    %c3_47 = arith.constant 3 : index
    %c0_48 = arith.constant 0 : index
    %c0_49 = arith.constant 0 : index
    %102 = vector.load %arg8[%c3_47, %c0_48, %c0_49] : memref<9x64x16xbf16, #tpu.memory_space<vmem>>, vector<1x64x16xbf16>
    %103 = vector.shape_cast %102 : vector<1x64x16xbf16> to vector<64x16xbf16>
    %104 = arith.extf %103 : vector<64x16xbf16> to vector<64x16xf32>
    %cst_50 = arith.constant dense<0.000000e+00> : vector<16x16xf32>
    %105 = tpu.matmul %101, %104, %cst_50 {dimension_numbers = #tpu.dot_dimension_numbers<[1], [0], [0], [1], [0, 0, 1, 1], [], []>} : vector<16x64xf32>, vector<64x16xf32>, vector<16x16xf32> -> vector<16x16xf32>
    %106 = arith.addf %100, %105 : vector<16x16xf32>
    %107 = vector.extract_strided_slice %79 {offsets = [64, 0], sizes = [16, 64], strides = [1, 1]} : vector<144x64xf32> to vector<16x64xf32>
    %c4_51 = arith.constant 4 : index
    %c0_52 = arith.constant 0 : index
    %c0_53 = arith.constant 0 : index
    %108 = vector.load %arg8[%c4_51, %c0_52, %c0_53] : memref<9x64x16xbf16, #tpu.memory_space<vmem>>, vector<1x64x16xbf16>
    %109 = vector.shape_cast %108 : vector<1x64x16xbf16> to vector<64x16xbf16>
    %110 = arith.extf %109 : vector<64x16xbf16> to vector<64x16xf32>
    %cst_54 = arith.constant dense<0.000000e+00> : vector<16x16xf32>
    %111 = tpu.matmul %107, %110, %cst_54 {dimension_numbers = #tpu.dot_dimension_numbers<[1], [0], [0], [1], [0, 0, 1, 1], [], []>} : vector<16x64xf32>, vector<64x16xf32>, vector<16x16xf32> -> vector<16x16xf32>
    %112 = arith.addf %106, %111 : vector<16x16xf32>
    %113 = vector.extract_strided_slice %79 {offsets = [80, 0], sizes = [16, 64], strides = [1, 1]} : vector<144x64xf32> to vector<16x64xf32>
    %c5_55 = arith.constant 5 : index
    %c0_56 = arith.constant 0 : index
    %c0_57 = arith.constant 0 : index
    %114 = vector.load %arg8[%c5_55, %c0_56, %c0_57] : memref<9x64x16xbf16, #tpu.memory_space<vmem>>, vector<1x64x16xbf16>
    %115 = vector.shape_cast %114 : vector<1x64x16xbf16> to vector<64x16xbf16>
    %116 = arith.extf %115 : vector<64x16xbf16> to vector<64x16xf32>
    %cst_58 = arith.constant dense<0.000000e+00> : vector<16x16xf32>
    %117 = tpu.matmul %113, %116, %cst_58 {dimension_numbers = #tpu.dot_dimension_numbers<[1], [0], [0], [1], [0, 0, 1, 1], [], []>} : vector<16x64xf32>, vector<64x16xf32>, vector<16x16xf32> -> vector<16x16xf32>
    %118 = arith.addf %112, %117 : vector<16x16xf32>
    %119 = vector.extract_strided_slice %79 {offsets = [96, 0], sizes = [16, 64], strides = [1, 1]} : vector<144x64xf32> to vector<16x64xf32>
    %c6_59 = arith.constant 6 : index
    %c0_60 = arith.constant 0 : index
    %c0_61 = arith.constant 0 : index
    %120 = vector.load %arg8[%c6_59, %c0_60, %c0_61] : memref<9x64x16xbf16, #tpu.memory_space<vmem>>, vector<1x64x16xbf16>
    %121 = vector.shape_cast %120 : vector<1x64x16xbf16> to vector<64x16xbf16>
    %122 = arith.extf %121 : vector<64x16xbf16> to vector<64x16xf32>
    %cst_62 = arith.constant dense<0.000000e+00> : vector<16x16xf32>
    %123 = tpu.matmul %119, %122, %cst_62 {dimension_numbers = #tpu.dot_dimension_numbers<[1], [0], [0], [1], [0, 0, 1, 1], [], []>} : vector<16x64xf32>, vector<64x16xf32>, vector<16x16xf32> -> vector<16x16xf32>
    %124 = arith.addf %118, %123 : vector<16x16xf32>
    %125 = vector.extract_strided_slice %79 {offsets = [112, 0], sizes = [16, 64], strides = [1, 1]} : vector<144x64xf32> to vector<16x64xf32>
    %c7_63 = arith.constant 7 : index
    %c0_64 = arith.constant 0 : index
    %c0_65 = arith.constant 0 : index
    %126 = vector.load %arg8[%c7_63, %c0_64, %c0_65] : memref<9x64x16xbf16, #tpu.memory_space<vmem>>, vector<1x64x16xbf16>
    %127 = vector.shape_cast %126 : vector<1x64x16xbf16> to vector<64x16xbf16>
    %128 = arith.extf %127 : vector<64x16xbf16> to vector<64x16xf32>
    %cst_66 = arith.constant dense<0.000000e+00> : vector<16x16xf32>
    %129 = tpu.matmul %125, %128, %cst_66 {dimension_numbers = #tpu.dot_dimension_numbers<[1], [0], [0], [1], [0, 0, 1, 1], [], []>} : vector<16x64xf32>, vector<64x16xf32>, vector<16x16xf32> -> vector<16x16xf32>
    %130 = arith.addf %124, %129 : vector<16x16xf32>
    %131 = vector.extract_strided_slice %79 {offsets = [128, 0], sizes = [16, 64], strides = [1, 1]} : vector<144x64xf32> to vector<16x64xf32>
    %c8_67 = arith.constant 8 : index
    %c0_68 = arith.constant 0 : index
    %c0_69 = arith.constant 0 : index
    %132 = vector.load %arg8[%c8_67, %c0_68, %c0_69] : memref<9x64x16xbf16, #tpu.memory_space<vmem>>, vector<1x64x16xbf16>
    %133 = vector.shape_cast %132 : vector<1x64x16xbf16> to vector<64x16xbf16>
    %134 = arith.extf %133 : vector<64x16xbf16> to vector<64x16xf32>
    %cst_70 = arith.constant dense<0.000000e+00> : vector<16x16xf32>
    %135 = tpu.matmul %131, %134, %cst_70 {dimension_numbers = #tpu.dot_dimension_numbers<[1], [0], [0], [1], [0, 0, 1, 1], [], []>} : vector<16x64xf32>, vector<64x16xf32>, vector<16x16xf32> -> vector<16x16xf32>
    %136 = arith.addf %130, %135 : vector<16x16xf32>
    %cst_71 = arith.constant 0.000000e+00 : f32
    %137 = vector.broadcast %cst_71 : f32 to vector<16x16xf32>
    %138 = arith.maximumf %136, %137 : vector<16x16xf32>
    %c0_72 = arith.constant 0 : index
    %c0_73 = arith.constant 0 : index
    %139 = vector.load %arg9[%c0_72, %c0_73] : memref<288x16xbf16, #tpu.memory_space<vmem>>, vector<288x16xbf16>
    %140 = arith.truncf %138 : vector<16x16xf32> to vector<16x16xbf16>
    %cst_74 = arith.constant dense<0.000000e+00> : vector<288x16xf32>
    %141 = tpu.matmul %139, %140, %cst_74 {dimension_numbers = #tpu.dot_dimension_numbers<[1], [0], [0], [1], [0, 0, 1, 1], [], []>} : vector<288x16xbf16>, vector<16x16xbf16>, vector<288x16xf32> -> vector<288x16xf32>
    %c0_75 = arith.constant 0 : index
    %c0_76 = arith.constant 0 : index
    %142 = vector.load %arg10[%c0_75, %c0_76] : memref<32x1xf32, #tpu.memory_space<vmem>>, vector<32x1xf32>
    %143 = vector.shape_cast %142 : vector<32x1xf32> to vector<32x1xf32>
    %144 = vector.broadcast %143 : vector<32x1xf32> to vector<32x4xf32>
    %145 = vector.extract_strided_slice %141 {offsets = [0, 0], sizes = [32, 16], strides = [1, 1]} : vector<288x16xf32> to vector<32x16xf32>
    %c0_77 = arith.constant 0 : index
    %c0_78 = arith.constant 0 : index
    %c0_79 = arith.constant 0 : index
    %146 = vector.load %arg11[%c0_77, %c0_78, %c0_79] : memref<9x16x4xbf16, #tpu.memory_space<vmem>>, vector<1x16x4xbf16>
    %147 = vector.shape_cast %146 : vector<1x16x4xbf16> to vector<16x4xbf16>
    %148 = arith.extf %147 : vector<16x4xbf16> to vector<16x4xf32>
    %cst_80 = arith.constant dense<0.000000e+00> : vector<32x4xf32>
    %149 = tpu.matmul %145, %148, %cst_80 {dimension_numbers = #tpu.dot_dimension_numbers<[1], [0], [0], [1], [0, 0, 1, 1], [], []>} : vector<32x16xf32>, vector<16x4xf32>, vector<32x4xf32> -> vector<32x4xf32>
    %150 = arith.addf %144, %149 : vector<32x4xf32>
    %151 = vector.extract_strided_slice %141 {offsets = [32, 0], sizes = [32, 16], strides = [1, 1]} : vector<288x16xf32> to vector<32x16xf32>
    %c1_81 = arith.constant 1 : index
    %c0_82 = arith.constant 0 : index
    %c0_83 = arith.constant 0 : index
    %152 = vector.load %arg11[%c1_81, %c0_82, %c0_83] : memref<9x16x4xbf16, #tpu.memory_space<vmem>>, vector<1x16x4xbf16>
    %153 = vector.shape_cast %152 : vector<1x16x4xbf16> to vector<16x4xbf16>
    %154 = arith.extf %153 : vector<16x4xbf16> to vector<16x4xf32>
    %cst_84 = arith.constant dense<0.000000e+00> : vector<32x4xf32>
    %155 = tpu.matmul %151, %154, %cst_84 {dimension_numbers = #tpu.dot_dimension_numbers<[1], [0], [0], [1], [0, 0, 1, 1], [], []>} : vector<32x16xf32>, vector<16x4xf32>, vector<32x4xf32> -> vector<32x4xf32>
    %156 = arith.addf %150, %155 : vector<32x4xf32>
    %157 = vector.extract_strided_slice %141 {offsets = [64, 0], sizes = [32, 16], strides = [1, 1]} : vector<288x16xf32> to vector<32x16xf32>
    %c2_85 = arith.constant 2 : index
    %c0_86 = arith.constant 0 : index
    %c0_87 = arith.constant 0 : index
    %158 = vector.load %arg11[%c2_85, %c0_86, %c0_87] : memref<9x16x4xbf16, #tpu.memory_space<vmem>>, vector<1x16x4xbf16>
    %159 = vector.shape_cast %158 : vector<1x16x4xbf16> to vector<16x4xbf16>
    %160 = arith.extf %159 : vector<16x4xbf16> to vector<16x4xf32>
    %cst_88 = arith.constant dense<0.000000e+00> : vector<32x4xf32>
    %161 = tpu.matmul %157, %160, %cst_88 {dimension_numbers = #tpu.dot_dimension_numbers<[1], [0], [0], [1], [0, 0, 1, 1], [], []>} : vector<32x16xf32>, vector<16x4xf32>, vector<32x4xf32> -> vector<32x4xf32>
    %162 = arith.addf %156, %161 : vector<32x4xf32>
    %163 = vector.extract_strided_slice %141 {offsets = [96, 0], sizes = [32, 16], strides = [1, 1]} : vector<288x16xf32> to vector<32x16xf32>
    %c3_89 = arith.constant 3 : index
    %c0_90 = arith.constant 0 : index
    %c0_91 = arith.constant 0 : index
    %164 = vector.load %arg11[%c3_89, %c0_90, %c0_91] : memref<9x16x4xbf16, #tpu.memory_space<vmem>>, vector<1x16x4xbf16>
    %165 = vector.shape_cast %164 : vector<1x16x4xbf16> to vector<16x4xbf16>
    %166 = arith.extf %165 : vector<16x4xbf16> to vector<16x4xf32>
    %cst_92 = arith.constant dense<0.000000e+00> : vector<32x4xf32>
    %167 = tpu.matmul %163, %166, %cst_92 {dimension_numbers = #tpu.dot_dimension_numbers<[1], [0], [0], [1], [0, 0, 1, 1], [], []>} : vector<32x16xf32>, vector<16x4xf32>, vector<32x4xf32> -> vector<32x4xf32>
    %168 = arith.addf %162, %167 : vector<32x4xf32>
    %169 = vector.extract_strided_slice %141 {offsets = [128, 0], sizes = [32, 16], strides = [1, 1]} : vector<288x16xf32> to vector<32x16xf32>
    %c4_93 = arith.constant 4 : index
    %c0_94 = arith.constant 0 : index
    %c0_95 = arith.constant 0 : index
    %170 = vector.load %arg11[%c4_93, %c0_94, %c0_95] : memref<9x16x4xbf16, #tpu.memory_space<vmem>>, vector<1x16x4xbf16>
    %171 = vector.shape_cast %170 : vector<1x16x4xbf16> to vector<16x4xbf16>
    %172 = arith.extf %171 : vector<16x4xbf16> to vector<16x4xf32>
    %cst_96 = arith.constant dense<0.000000e+00> : vector<32x4xf32>
    %173 = tpu.matmul %169, %172, %cst_96 {dimension_numbers = #tpu.dot_dimension_numbers<[1], [0], [0], [1], [0, 0, 1, 1], [], []>} : vector<32x16xf32>, vector<16x4xf32>, vector<32x4xf32> -> vector<32x4xf32>
    %174 = arith.addf %168, %173 : vector<32x4xf32>
    %175 = vector.extract_strided_slice %141 {offsets = [160, 0], sizes = [32, 16], strides = [1, 1]} : vector<288x16xf32> to vector<32x16xf32>
    %c5_97 = arith.constant 5 : index
    %c0_98 = arith.constant 0 : index
    %c0_99 = arith.constant 0 : index
    %176 = vector.load %arg11[%c5_97, %c0_98, %c0_99] : memref<9x16x4xbf16, #tpu.memory_space<vmem>>, vector<1x16x4xbf16>
    %177 = vector.shape_cast %176 : vector<1x16x4xbf16> to vector<16x4xbf16>
    %178 = arith.extf %177 : vector<16x4xbf16> to vector<16x4xf32>
    %cst_100 = arith.constant dense<0.000000e+00> : vector<32x4xf32>
    %179 = tpu.matmul %175, %178, %cst_100 {dimension_numbers = #tpu.dot_dimension_numbers<[1], [0], [0], [1], [0, 0, 1, 1], [], []>} : vector<32x16xf32>, vector<16x4xf32>, vector<32x4xf32> -> vector<32x4xf32>
    %180 = arith.addf %174, %179 : vector<32x4xf32>
    %181 = vector.extract_strided_slice %141 {offsets = [192, 0], sizes = [32, 16], strides = [1, 1]} : vector<288x16xf32> to vector<32x16xf32>
    %c6_101 = arith.constant 6 : index
    %c0_102 = arith.constant 0 : index
    %c0_103 = arith.constant 0 : index
    %182 = vector.load %arg11[%c6_101, %c0_102, %c0_103] : memref<9x16x4xbf16, #tpu.memory_space<vmem>>, vector<1x16x4xbf16>
    %183 = vector.shape_cast %182 : vector<1x16x4xbf16> to vector<16x4xbf16>
    %184 = arith.extf %183 : vector<16x4xbf16> to vector<16x4xf32>
    %cst_104 = arith.constant dense<0.000000e+00> : vector<32x4xf32>
    %185 = tpu.matmul %181, %184, %cst_104 {dimension_numbers = #tpu.dot_dimension_numbers<[1], [0], [0], [1], [0, 0, 1, 1], [], []>} : vector<32x16xf32>, vector<16x4xf32>, vector<32x4xf32> -> vector<32x4xf32>
    %186 = arith.addf %180, %185 : vector<32x4xf32>
    %187 = vector.extract_strided_slice %141 {offsets = [224, 0], sizes = [32, 16], strides = [1, 1]} : vector<288x16xf32> to vector<32x16xf32>
    %c7_105 = arith.constant 7 : index
    %c0_106 = arith.constant 0 : index
    %c0_107 = arith.constant 0 : index
    %188 = vector.load %arg11[%c7_105, %c0_106, %c0_107] : memref<9x16x4xbf16, #tpu.memory_space<vmem>>, vector<1x16x4xbf16>
    %189 = vector.shape_cast %188 : vector<1x16x4xbf16> to vector<16x4xbf16>
    %190 = arith.extf %189 : vector<16x4xbf16> to vector<16x4xf32>
    %cst_108 = arith.constant dense<0.000000e+00> : vector<32x4xf32>
    %191 = tpu.matmul %187, %190, %cst_108 {dimension_numbers = #tpu.dot_dimension_numbers<[1], [0], [0], [1], [0, 0, 1, 1], [], []>} : vector<32x16xf32>, vector<16x4xf32>, vector<32x4xf32> -> vector<32x4xf32>
    %192 = arith.addf %186, %191 : vector<32x4xf32>
    %193 = vector.extract_strided_slice %141 {offsets = [256, 0], sizes = [32, 16], strides = [1, 1]} : vector<288x16xf32> to vector<32x16xf32>
    %c8_109 = arith.constant 8 : index
    %c0_110 = arith.constant 0 : index
    %c0_111 = arith.constant 0 : index
    %194 = vector.load %arg11[%c8_109, %c0_110, %c0_111] : memref<9x16x4xbf16, #tpu.memory_space<vmem>>, vector<1x16x4xbf16>
    %195 = vector.shape_cast %194 : vector<1x16x4xbf16> to vector<16x4xbf16>
    %196 = arith.extf %195 : vector<16x4xbf16> to vector<16x4xf32>
    %cst_112 = arith.constant dense<0.000000e+00> : vector<32x4xf32>
    %197 = tpu.matmul %193, %196, %cst_112 {dimension_numbers = #tpu.dot_dimension_numbers<[1], [0], [0], [1], [0, 0, 1, 1], [], []>} : vector<32x16xf32>, vector<16x4xf32>, vector<32x4xf32> -> vector<32x4xf32>
    %198 = arith.addf %192, %197 : vector<32x4xf32>
    %cst_113 = arith.constant 0.000000e+00 : f32
    %199 = vector.broadcast %cst_113 : f32 to vector<32x4xf32>
    %200 = arith.maximumf %198, %199 : vector<32x4xf32>
    %c0_114 = arith.constant 0 : index
    %c0_115 = arith.constant 0 : index
    %201 = vector.load %arg12[%c0_114, %c0_115] : memref<288x32xbf16, #tpu.memory_space<vmem>>, vector<288x32xbf16>
    %202 = arith.truncf %200 : vector<32x4xf32> to vector<32x4xbf16>
    %cst_116 = arith.constant dense<0.000000e+00> : vector<288x4xf32>
    %203 = tpu.matmul %201, %202, %cst_116 {dimension_numbers = #tpu.dot_dimension_numbers<[1], [0], [0], [1], [0, 0, 1, 1], [], []>} : vector<288x32xbf16>, vector<32x4xbf16>, vector<288x4xf32> -> vector<288x4xf32>
    %c0_117 = arith.constant 0 : index
    %c0_118 = arith.constant 0 : index
    %204 = vector.load %arg13[%c0_117, %c0_118] : memref<32x1xf32, #tpu.memory_space<vmem>>, vector<32x1xf32>
    %205 = vector.extract_strided_slice %203 {offsets = [0, 0], sizes = [32, 4], strides = [1, 1]} : vector<288x4xf32> to vector<32x4xf32>
    %c0_119 = arith.constant 0 : index
    %c0_120 = arith.constant 0 : index
    %c0_121 = arith.constant 0 : index
    %206 = vector.load %arg14[%c0_119, %c0_120, %c0_121] : memref<9x4x1xbf16, #tpu.memory_space<vmem>>, vector<1x4x1xbf16>
    %207 = vector.shape_cast %206 : vector<1x4x1xbf16> to vector<4x1xbf16>
    %208 = arith.extf %207 : vector<4x1xbf16> to vector<4x1xf32>
    %cst_122 = arith.constant dense<0.000000e+00> : vector<32x1xf32>
    %209 = tpu.matmul %205, %208, %cst_122 {dimension_numbers = #tpu.dot_dimension_numbers<[1], [0], [0], [1], [0, 0, 1, 1], [], []>} : vector<32x4xf32>, vector<4x1xf32>, vector<32x1xf32> -> vector<32x1xf32>
    %210 = arith.addf %204, %209 : vector<32x1xf32>
    %211 = vector.extract_strided_slice %203 {offsets = [32, 0], sizes = [32, 4], strides = [1, 1]} : vector<288x4xf32> to vector<32x4xf32>
    %c1_123 = arith.constant 1 : index
    %c0_124 = arith.constant 0 : index
    %c0_125 = arith.constant 0 : index
    %212 = vector.load %arg14[%c1_123, %c0_124, %c0_125] : memref<9x4x1xbf16, #tpu.memory_space<vmem>>, vector<1x4x1xbf16>
    %213 = vector.shape_cast %212 : vector<1x4x1xbf16> to vector<4x1xbf16>
    %214 = arith.extf %213 : vector<4x1xbf16> to vector<4x1xf32>
    %cst_126 = arith.constant dense<0.000000e+00> : vector<32x1xf32>
    %215 = tpu.matmul %211, %214, %cst_126 {dimension_numbers = #tpu.dot_dimension_numbers<[1], [0], [0], [1], [0, 0, 1, 1], [], []>} : vector<32x4xf32>, vector<4x1xf32>, vector<32x1xf32> -> vector<32x1xf32>
    %216 = arith.addf %210, %215 : vector<32x1xf32>
    %217 = vector.extract_strided_slice %203 {offsets = [64, 0], sizes = [32, 4], strides = [1, 1]} : vector<288x4xf32> to vector<32x4xf32>
    %c2_127 = arith.constant 2 : index
    %c0_128 = arith.constant 0 : index
    %c0_129 = arith.constant 0 : index
    %218 = vector.load %arg14[%c2_127, %c0_128, %c0_129] : memref<9x4x1xbf16, #tpu.memory_space<vmem>>, vector<1x4x1xbf16>
    %219 = vector.shape_cast %218 : vector<1x4x1xbf16> to vector<4x1xbf16>
    %220 = arith.extf %219 : vector<4x1xbf16> to vector<4x1xf32>
    %cst_130 = arith.constant dense<0.000000e+00> : vector<32x1xf32>
    %221 = tpu.matmul %217, %220, %cst_130 {dimension_numbers = #tpu.dot_dimension_numbers<[1], [0], [0], [1], [0, 0, 1, 1], [], []>} : vector<32x4xf32>, vector<4x1xf32>, vector<32x1xf32> -> vector<32x1xf32>
    %222 = arith.addf %216, %221 : vector<32x1xf32>
    %223 = vector.extract_strided_slice %203 {offsets = [96, 0], sizes = [32, 4], strides = [1, 1]} : vector<288x4xf32> to vector<32x4xf32>
    %c3_131 = arith.constant 3 : index
    %c0_132 = arith.constant 0 : index
    %c0_133 = arith.constant 0 : index
    %224 = vector.load %arg14[%c3_131, %c0_132, %c0_133] : memref<9x4x1xbf16, #tpu.memory_space<vmem>>, vector<1x4x1xbf16>
    %225 = vector.shape_cast %224 : vector<1x4x1xbf16> to vector<4x1xbf16>
    %226 = arith.extf %225 : vector<4x1xbf16> to vector<4x1xf32>
    %cst_134 = arith.constant dense<0.000000e+00> : vector<32x1xf32>
    %227 = tpu.matmul %223, %226, %cst_134 {dimension_numbers = #tpu.dot_dimension_numbers<[1], [0], [0], [1], [0, 0, 1, 1], [], []>} : vector<32x4xf32>, vector<4x1xf32>, vector<32x1xf32> -> vector<32x1xf32>
    %228 = arith.addf %222, %227 : vector<32x1xf32>
    %229 = vector.extract_strided_slice %203 {offsets = [128, 0], sizes = [32, 4], strides = [1, 1]} : vector<288x4xf32> to vector<32x4xf32>
    %c4_135 = arith.constant 4 : index
    %c0_136 = arith.constant 0 : index
    %c0_137 = arith.constant 0 : index
    %230 = vector.load %arg14[%c4_135, %c0_136, %c0_137] : memref<9x4x1xbf16, #tpu.memory_space<vmem>>, vector<1x4x1xbf16>
    %231 = vector.shape_cast %230 : vector<1x4x1xbf16> to vector<4x1xbf16>
    %232 = arith.extf %231 : vector<4x1xbf16> to vector<4x1xf32>
    %cst_138 = arith.constant dense<0.000000e+00> : vector<32x1xf32>
    %233 = tpu.matmul %229, %232, %cst_138 {dimension_numbers = #tpu.dot_dimension_numbers<[1], [0], [0], [1], [0, 0, 1, 1], [], []>} : vector<32x4xf32>, vector<4x1xf32>, vector<32x1xf32> -> vector<32x1xf32>
    %234 = arith.addf %228, %233 : vector<32x1xf32>
    %235 = vector.extract_strided_slice %203 {offsets = [160, 0], sizes = [32, 4], strides = [1, 1]} : vector<288x4xf32> to vector<32x4xf32>
    %c5_139 = arith.constant 5 : index
    %c0_140 = arith.constant 0 : index
    %c0_141 = arith.constant 0 : index
    %236 = vector.load %arg14[%c5_139, %c0_140, %c0_141] : memref<9x4x1xbf16, #tpu.memory_space<vmem>>, vector<1x4x1xbf16>
    %237 = vector.shape_cast %236 : vector<1x4x1xbf16> to vector<4x1xbf16>
    %238 = arith.extf %237 : vector<4x1xbf16> to vector<4x1xf32>
    %cst_142 = arith.constant dense<0.000000e+00> : vector<32x1xf32>
    %239 = tpu.matmul %235, %238, %cst_142 {dimension_numbers = #tpu.dot_dimension_numbers<[1], [0], [0], [1], [0, 0, 1, 1], [], []>} : vector<32x4xf32>, vector<4x1xf32>, vector<32x1xf32> -> vector<32x1xf32>
    %240 = arith.addf %234, %239 : vector<32x1xf32>
    %241 = vector.extract_strided_slice %203 {offsets = [192, 0], sizes = [32, 4], strides = [1, 1]} : vector<288x4xf32> to vector<32x4xf32>
    %c6_143 = arith.constant 6 : index
    %c0_144 = arith.constant 0 : index
    %c0_145 = arith.constant 0 : index
    %242 = vector.load %arg14[%c6_143, %c0_144, %c0_145] : memref<9x4x1xbf16, #tpu.memory_space<vmem>>, vector<1x4x1xbf16>
    %243 = vector.shape_cast %242 : vector<1x4x1xbf16> to vector<4x1xbf16>
    %244 = arith.extf %243 : vector<4x1xbf16> to vector<4x1xf32>
    %cst_146 = arith.constant dense<0.000000e+00> : vector<32x1xf32>
    %245 = tpu.matmul %241, %244, %cst_146 {dimension_numbers = #tpu.dot_dimension_numbers<[1], [0], [0], [1], [0, 0, 1, 1], [], []>} : vector<32x4xf32>, vector<4x1xf32>, vector<32x1xf32> -> vector<32x1xf32>
    %246 = arith.addf %240, %245 : vector<32x1xf32>
    %247 = vector.extract_strided_slice %203 {offsets = [224, 0], sizes = [32, 4], strides = [1, 1]} : vector<288x4xf32> to vector<32x4xf32>
    %c7_147 = arith.constant 7 : index
    %c0_148 = arith.constant 0 : index
    %c0_149 = arith.constant 0 : index
    %248 = vector.load %arg14[%c7_147, %c0_148, %c0_149] : memref<9x4x1xbf16, #tpu.memory_space<vmem>>, vector<1x4x1xbf16>
    %249 = vector.shape_cast %248 : vector<1x4x1xbf16> to vector<4x1xbf16>
    %250 = arith.extf %249 : vector<4x1xbf16> to vector<4x1xf32>
    %cst_150 = arith.constant dense<0.000000e+00> : vector<32x1xf32>
    %251 = tpu.matmul %247, %250, %cst_150 {dimension_numbers = #tpu.dot_dimension_numbers<[1], [0], [0], [1], [0, 0, 1, 1], [], []>} : vector<32x4xf32>, vector<4x1xf32>, vector<32x1xf32> -> vector<32x1xf32>
    %252 = arith.addf %246, %251 : vector<32x1xf32>
    %253 = vector.extract_strided_slice %203 {offsets = [256, 0], sizes = [32, 4], strides = [1, 1]} : vector<288x4xf32> to vector<32x4xf32>
    %c8_151 = arith.constant 8 : index
    %c0_152 = arith.constant 0 : index
    %c0_153 = arith.constant 0 : index
    %254 = vector.load %arg14[%c8_151, %c0_152, %c0_153] : memref<9x4x1xbf16, #tpu.memory_space<vmem>>, vector<1x4x1xbf16>
    %255 = vector.shape_cast %254 : vector<1x4x1xbf16> to vector<4x1xbf16>
    %256 = arith.extf %255 : vector<4x1xbf16> to vector<4x1xf32>
    %cst_154 = arith.constant dense<0.000000e+00> : vector<32x1xf32>
    %257 = tpu.matmul %253, %256, %cst_154 {dimension_numbers = #tpu.dot_dimension_numbers<[1], [0], [0], [1], [0, 0, 1, 1], [], []>} : vector<32x4xf32>, vector<4x1xf32>, vector<32x1xf32> -> vector<32x1xf32>
    %258 = arith.addf %252, %257 : vector<32x1xf32>
    %cst_155 = arith.constant 0.000000e+00 : f32
    %259 = vector.broadcast %cst_155 : f32 to vector<32x1xf32>
    %260 = arith.maximumf %258, %259 : vector<32x1xf32>
    %261 = tpu.iota {dimensions = array<i32: 1>} : vector<1x4xi32>
    %c0_i32 = arith.constant 0 : i32
    %262 = vector.broadcast %c0_i32 : i32 to vector<1x4xi32>
    %263 = arith.cmpi eq, %261, %262 : vector<1x4xi32>
    %264 = arith.extui %263 : vector<1x4xi1> to vector<1x4xi32>
    %265 = arith.sitofp %264 : vector<1x4xi32> to vector<1x4xf32>
    %266 = vector.broadcast %260 : vector<32x1xf32> to vector<32x4xf32>
    %267 = vector.broadcast %265 : vector<1x4xf32> to vector<32x4xf32>
    %268 = arith.mulf %266, %267 : vector<32x4xf32>
    %c1_i32_156 = arith.constant 1 : i32
    %269 = vector.broadcast %c1_i32_156 : i32 to vector<1x4xi32>
    %270 = arith.cmpi eq, %261, %269 : vector<1x4xi32>
    %271 = arith.extui %270 : vector<1x4xi1> to vector<1x4xi32>
    %272 = arith.sitofp %271 : vector<1x4xi32> to vector<1x4xf32>
    %273 = vector.broadcast %260 : vector<32x1xf32> to vector<32x4xf32>
    %274 = vector.broadcast %272 : vector<1x4xf32> to vector<32x4xf32>
    %275 = arith.mulf %273, %274 : vector<32x4xf32>
    %c2_i32 = arith.constant 2 : i32
    %276 = vector.broadcast %c2_i32 : i32 to vector<1x4xi32>
    %277 = arith.cmpi eq, %261, %276 : vector<1x4xi32>
    %278 = arith.extui %277 : vector<1x4xi1> to vector<1x4xi32>
    %279 = arith.sitofp %278 : vector<1x4xi32> to vector<1x4xf32>
    %280 = vector.broadcast %260 : vector<32x1xf32> to vector<32x4xf32>
    %281 = vector.broadcast %279 : vector<1x4xf32> to vector<32x4xf32>
    %282 = arith.mulf %280, %281 : vector<32x4xf32>
    %c3_i32 = arith.constant 3 : i32
    %283 = vector.broadcast %c3_i32 : i32 to vector<1x4xi32>
    %284 = arith.cmpi eq, %261, %283 : vector<1x4xi32>
    %285 = arith.extui %284 : vector<1x4xi1> to vector<1x4xi32>
    %286 = arith.sitofp %285 : vector<1x4xi32> to vector<1x4xf32>
    %287 = vector.broadcast %260 : vector<32x1xf32> to vector<32x4xf32>
    %288 = vector.broadcast %286 : vector<1x4xf32> to vector<32x4xf32>
    %289 = arith.mulf %287, %288 : vector<32x4xf32>
    %290 = tpu.concatenate %268, %275, %282, %289 in 0 : vector<32x4xf32>, vector<32x4xf32>, vector<32x4xf32>, vector<32x4xf32> -> vector<128x4xf32>
    %c0_157 = arith.constant 0 : index
    %c0_158 = arith.constant 0 : index
    %291 = vector.load %arg15[%c0_157, %c0_158] : memref<32x128xbf16, #tpu.memory_space<vmem>>, vector<32x128xbf16>
    %292 = arith.truncf %290 : vector<128x4xf32> to vector<128x4xbf16>
    %cst_159 = arith.constant dense<0.000000e+00> : vector<32x4xf32>
    %293 = tpu.matmul %291, %292, %cst_159 {dimension_numbers = #tpu.dot_dimension_numbers<[1], [0], [0], [1], [0, 0, 1, 1], [], []>} : vector<32x128xbf16>, vector<128x4xbf16>, vector<32x4xf32> -> vector<32x4xf32>
    %c0_160 = arith.constant 0 : index
    %c0_161 = arith.constant 0 : index
    %294 = vector.load %arg16[%c0_160, %c0_161] : memref<32x4xf32, #tpu.memory_space<vmem>>, vector<32x4xf32>
    %295 = arith.addf %293, %294 : vector<32x4xf32>
    %cst_162 = arith.constant 0.000000e+00 : f32
    %296 = vector.broadcast %cst_162 : f32 to vector<32x4xf32>
    %297 = arith.maximumf %295, %296 : vector<32x4xf32>
    %c0_163 = arith.constant 0 : index
    %c0_164 = arith.constant 0 : index
    %298 = vector.load %arg17[%c0_163, %c0_164] : memref<144x32xbf16, #tpu.memory_space<vmem>>, vector<144x32xbf16>
    %299 = arith.truncf %297 : vector<32x4xf32> to vector<32x4xbf16>
    %cst_165 = arith.constant dense<0.000000e+00> : vector<144x4xf32>
    %300 = tpu.matmul %298, %299, %cst_165 {dimension_numbers = #tpu.dot_dimension_numbers<[1], [0], [0], [1], [0, 0, 1, 1], [], []>} : vector<144x32xbf16>, vector<32x4xbf16>, vector<144x4xf32> -> vector<144x4xf32>
    %cst_166 = arith.constant 0.000000e+00 : f32
    %301 = vector.broadcast %cst_166 : f32 to vector<32x4xf32>
    %302 = arith.maximumf %198, %301 : vector<32x4xf32>
    %c0_167 = arith.constant 0 : index
    %c0_168 = arith.constant 0 : index
    %303 = vector.load %arg18[%c0_167, %c0_168] : memref<144x32xbf16, #tpu.memory_space<vmem>>, vector<144x32xbf16>
    %304 = arith.truncf %302 : vector<32x4xf32> to vector<32x4xbf16>
    %cst_169 = arith.constant dense<0.000000e+00> : vector<144x4xf32>
    %305 = tpu.matmul %303, %304, %cst_169 {dimension_numbers = #tpu.dot_dimension_numbers<[1], [0], [0], [1], [0, 0, 1, 1], [], []>} : vector<144x32xbf16>, vector<32x4xbf16>, vector<144x4xf32> -> vector<144x4xf32>
    %306 = arith.addf %300, %305 : vector<144x4xf32>
    %c0_170 = arith.constant 0 : index
    %c0_171 = arith.constant 0 : index
    %307 = vector.load %arg19[%c0_170, %c0_171] : memref<16x1xf32, #tpu.memory_space<vmem>>, vector<16x1xf32>
    %308 = vector.shape_cast %307 : vector<16x1xf32> to vector<16x1xf32>
    %309 = vector.broadcast %308 : vector<16x1xf32> to vector<16x16xf32>
    %310 = vector.extract_strided_slice %306 {offsets = [0, 0], sizes = [16, 4], strides = [1, 1]} : vector<144x4xf32> to vector<16x4xf32>
    %c0_172 = arith.constant 0 : index
    %c0_173 = arith.constant 0 : index
    %c0_174 = arith.constant 0 : index
    %311 = vector.load %arg20[%c0_172, %c0_173, %c0_174] : memref<9x4x16xbf16, #tpu.memory_space<vmem>>, vector<1x4x16xbf16>
    %312 = vector.shape_cast %311 : vector<1x4x16xbf16> to vector<4x16xbf16>
    %313 = arith.extf %312 : vector<4x16xbf16> to vector<4x16xf32>
    %cst_175 = arith.constant dense<0.000000e+00> : vector<16x16xf32>
    %314 = tpu.matmul %310, %313, %cst_175 {dimension_numbers = #tpu.dot_dimension_numbers<[1], [0], [0], [1], [0, 0, 1, 1], [], []>} : vector<16x4xf32>, vector<4x16xf32>, vector<16x16xf32> -> vector<16x16xf32>
    %315 = arith.addf %309, %314 : vector<16x16xf32>
    %316 = vector.extract_strided_slice %306 {offsets = [16, 0], sizes = [16, 4], strides = [1, 1]} : vector<144x4xf32> to vector<16x4xf32>
    %c1_176 = arith.constant 1 : index
    %c0_177 = arith.constant 0 : index
    %c0_178 = arith.constant 0 : index
    %317 = vector.load %arg20[%c1_176, %c0_177, %c0_178] : memref<9x4x16xbf16, #tpu.memory_space<vmem>>, vector<1x4x16xbf16>
    %318 = vector.shape_cast %317 : vector<1x4x16xbf16> to vector<4x16xbf16>
    %319 = arith.extf %318 : vector<4x16xbf16> to vector<4x16xf32>
    %cst_179 = arith.constant dense<0.000000e+00> : vector<16x16xf32>
    %320 = tpu.matmul %316, %319, %cst_179 {dimension_numbers = #tpu.dot_dimension_numbers<[1], [0], [0], [1], [0, 0, 1, 1], [], []>} : vector<16x4xf32>, vector<4x16xf32>, vector<16x16xf32> -> vector<16x16xf32>
    %321 = arith.addf %315, %320 : vector<16x16xf32>
    %322 = vector.extract_strided_slice %306 {offsets = [32, 0], sizes = [16, 4], strides = [1, 1]} : vector<144x4xf32> to vector<16x4xf32>
    %c2_180 = arith.constant 2 : index
    %c0_181 = arith.constant 0 : index
    %c0_182 = arith.constant 0 : index
    %323 = vector.load %arg20[%c2_180, %c0_181, %c0_182] : memref<9x4x16xbf16, #tpu.memory_space<vmem>>, vector<1x4x16xbf16>
    %324 = vector.shape_cast %323 : vector<1x4x16xbf16> to vector<4x16xbf16>
    %325 = arith.extf %324 : vector<4x16xbf16> to vector<4x16xf32>
    %cst_183 = arith.constant dense<0.000000e+00> : vector<16x16xf32>
    %326 = tpu.matmul %322, %325, %cst_183 {dimension_numbers = #tpu.dot_dimension_numbers<[1], [0], [0], [1], [0, 0, 1, 1], [], []>} : vector<16x4xf32>, vector<4x16xf32>, vector<16x16xf32> -> vector<16x16xf32>
    %327 = arith.addf %321, %326 : vector<16x16xf32>
    %328 = vector.extract_strided_slice %306 {offsets = [48, 0], sizes = [16, 4], strides = [1, 1]} : vector<144x4xf32> to vector<16x4xf32>
    %c3_184 = arith.constant 3 : index
    %c0_185 = arith.constant 0 : index
    %c0_186 = arith.constant 0 : index
    %329 = vector.load %arg20[%c3_184, %c0_185, %c0_186] : memref<9x4x16xbf16, #tpu.memory_space<vmem>>, vector<1x4x16xbf16>
    %330 = vector.shape_cast %329 : vector<1x4x16xbf16> to vector<4x16xbf16>
    %331 = arith.extf %330 : vector<4x16xbf16> to vector<4x16xf32>
    %cst_187 = arith.constant dense<0.000000e+00> : vector<16x16xf32>
    %332 = tpu.matmul %328, %331, %cst_187 {dimension_numbers = #tpu.dot_dimension_numbers<[1], [0], [0], [1], [0, 0, 1, 1], [], []>} : vector<16x4xf32>, vector<4x16xf32>, vector<16x16xf32> -> vector<16x16xf32>
    %333 = arith.addf %327, %332 : vector<16x16xf32>
    %334 = vector.extract_strided_slice %306 {offsets = [64, 0], sizes = [16, 4], strides = [1, 1]} : vector<144x4xf32> to vector<16x4xf32>
    %c4_188 = arith.constant 4 : index
    %c0_189 = arith.constant 0 : index
    %c0_190 = arith.constant 0 : index
    %335 = vector.load %arg20[%c4_188, %c0_189, %c0_190] : memref<9x4x16xbf16, #tpu.memory_space<vmem>>, vector<1x4x16xbf16>
    %336 = vector.shape_cast %335 : vector<1x4x16xbf16> to vector<4x16xbf16>
    %337 = arith.extf %336 : vector<4x16xbf16> to vector<4x16xf32>
    %cst_191 = arith.constant dense<0.000000e+00> : vector<16x16xf32>
    %338 = tpu.matmul %334, %337, %cst_191 {dimension_numbers = #tpu.dot_dimension_numbers<[1], [0], [0], [1], [0, 0, 1, 1], [], []>} : vector<16x4xf32>, vector<4x16xf32>, vector<16x16xf32> -> vector<16x16xf32>
    %339 = arith.addf %333, %338 : vector<16x16xf32>
    %340 = vector.extract_strided_slice %306 {offsets = [80, 0], sizes = [16, 4], strides = [1, 1]} : vector<144x4xf32> to vector<16x4xf32>
    %c5_192 = arith.constant 5 : index
    %c0_193 = arith.constant 0 : index
    %c0_194 = arith.constant 0 : index
    %341 = vector.load %arg20[%c5_192, %c0_193, %c0_194] : memref<9x4x16xbf16, #tpu.memory_space<vmem>>, vector<1x4x16xbf16>
    %342 = vector.shape_cast %341 : vector<1x4x16xbf16> to vector<4x16xbf16>
    %343 = arith.extf %342 : vector<4x16xbf16> to vector<4x16xf32>
    %cst_195 = arith.constant dense<0.000000e+00> : vector<16x16xf32>
    %344 = tpu.matmul %340, %343, %cst_195 {dimension_numbers = #tpu.dot_dimension_numbers<[1], [0], [0], [1], [0, 0, 1, 1], [], []>} : vector<16x4xf32>, vector<4x16xf32>, vector<16x16xf32> -> vector<16x16xf32>
    %345 = arith.addf %339, %344 : vector<16x16xf32>
    %346 = vector.extract_strided_slice %306 {offsets = [96, 0], sizes = [16, 4], strides = [1, 1]} : vector<144x4xf32> to vector<16x4xf32>
    %c6_196 = arith.constant 6 : index
    %c0_197 = arith.constant 0 : index
    %c0_198 = arith.constant 0 : index
    %347 = vector.load %arg20[%c6_196, %c0_197, %c0_198] : memref<9x4x16xbf16, #tpu.memory_space<vmem>>, vector<1x4x16xbf16>
    %348 = vector.shape_cast %347 : vector<1x4x16xbf16> to vector<4x16xbf16>
    %349 = arith.extf %348 : vector<4x16xbf16> to vector<4x16xf32>
    %cst_199 = arith.constant dense<0.000000e+00> : vector<16x16xf32>
    %350 = tpu.matmul %346, %349, %cst_199 {dimension_numbers = #tpu.dot_dimension_numbers<[1], [0], [0], [1], [0, 0, 1, 1], [], []>} : vector<16x4xf32>, vector<4x16xf32>, vector<16x16xf32> -> vector<16x16xf32>
    %351 = arith.addf %345, %350 : vector<16x16xf32>
    %352 = vector.extract_strided_slice %306 {offsets = [112, 0], sizes = [16, 4], strides = [1, 1]} : vector<144x4xf32> to vector<16x4xf32>
    %c7_200 = arith.constant 7 : index
    %c0_201 = arith.constant 0 : index
    %c0_202 = arith.constant 0 : index
    %353 = vector.load %arg20[%c7_200, %c0_201, %c0_202] : memref<9x4x16xbf16, #tpu.memory_space<vmem>>, vector<1x4x16xbf16>
    %354 = vector.shape_cast %353 : vector<1x4x16xbf16> to vector<4x16xbf16>
    %355 = arith.extf %354 : vector<4x16xbf16> to vector<4x16xf32>
    %cst_203 = arith.constant dense<0.000000e+00> : vector<16x16xf32>
    %356 = tpu.matmul %352, %355, %cst_203 {dimension_numbers = #tpu.dot_dimension_numbers<[1], [0], [0], [1], [0, 0, 1, 1], [], []>} : vector<16x4xf32>, vector<4x16xf32>, vector<16x16xf32> -> vector<16x16xf32>
    %357 = arith.addf %351, %356 : vector<16x16xf32>
    %358 = vector.extract_strided_slice %306 {offsets = [128, 0], sizes = [16, 4], strides = [1, 1]} : vector<144x4xf32> to vector<16x4xf32>
    %c8_204 = arith.constant 8 : index
    %c0_205 = arith.constant 0 : index
    %c0_206 = arith.constant 0 : index
    %359 = vector.load %arg20[%c8_204, %c0_205, %c0_206] : memref<9x4x16xbf16, #tpu.memory_space<vmem>>, vector<1x4x16xbf16>
    %360 = vector.shape_cast %359 : vector<1x4x16xbf16> to vector<4x16xbf16>
    %361 = arith.extf %360 : vector<4x16xbf16> to vector<4x16xf32>
    %cst_207 = arith.constant dense<0.000000e+00> : vector<16x16xf32>
    %362 = tpu.matmul %358, %361, %cst_207 {dimension_numbers = #tpu.dot_dimension_numbers<[1], [0], [0], [1], [0, 0, 1, 1], [], []>} : vector<16x4xf32>, vector<4x16xf32>, vector<16x16xf32> -> vector<16x16xf32>
    %363 = arith.addf %357, %362 : vector<16x16xf32>
    %cst_208 = arith.constant 0.000000e+00 : f32
    %364 = vector.broadcast %cst_208 : f32 to vector<16x16xf32>
    %365 = arith.maximumf %363, %364 : vector<16x16xf32>
    %c0_209 = arith.constant 0 : index
    %c0_210 = arith.constant 0 : index
    %366 = vector.load %arg21[%c0_209, %c0_210] : memref<72x16xbf16, #tpu.memory_space<vmem>>, vector<72x16xbf16>
    %367 = arith.truncf %365 : vector<16x16xf32> to vector<16x16xbf16>
    %cst_211 = arith.constant dense<0.000000e+00> : vector<72x16xf32>
    %368 = tpu.matmul %366, %367, %cst_211 {dimension_numbers = #tpu.dot_dimension_numbers<[1], [0], [0], [1], [0, 0, 1, 1], [], []>} : vector<72x16xbf16>, vector<16x16xbf16>, vector<72x16xf32> -> vector<72x16xf32>
    %cst_212 = arith.constant 0.000000e+00 : f32
    %369 = vector.broadcast %cst_212 : f32 to vector<16x16xf32>
    %370 = arith.maximumf %136, %369 : vector<16x16xf32>
    %c0_213 = arith.constant 0 : index
    %c0_214 = arith.constant 0 : index
    %371 = vector.load %arg22[%c0_213, %c0_214] : memref<72x16xbf16, #tpu.memory_space<vmem>>, vector<72x16xbf16>
    %372 = arith.truncf %370 : vector<16x16xf32> to vector<16x16xbf16>
    %cst_215 = arith.constant dense<0.000000e+00> : vector<72x16xf32>
    %373 = tpu.matmul %371, %372, %cst_215 {dimension_numbers = #tpu.dot_dimension_numbers<[1], [0], [0], [1], [0, 0, 1, 1], [], []>} : vector<72x16xbf16>, vector<16x16xbf16>, vector<72x16xf32> -> vector<72x16xf32>
    %374 = arith.addf %368, %373 : vector<72x16xf32>
    %c0_216 = arith.constant 0 : index
    %c0_217 = arith.constant 0 : index
    %375 = vector.load %arg23[%c0_216, %c0_217] : memref<8x1xf32, #tpu.memory_space<vmem>>, vector<8x1xf32>
    %376 = vector.shape_cast %375 : vector<8x1xf32> to vector<8x1xf32>
    %377 = vector.broadcast %376 : vector<8x1xf32> to vector<8x64xf32>
    %378 = vector.extract_strided_slice %374 {offsets = [0, 0], sizes = [8, 16], strides = [1, 1]} : vector<72x16xf32> to vector<8x16xf32>
    %c0_218 = arith.constant 0 : index
    %c0_219 = arith.constant 0 : index
    %c0_220 = arith.constant 0 : index
    %379 = vector.load %arg24[%c0_218, %c0_219, %c0_220] : memref<9x16x64xbf16, #tpu.memory_space<vmem>>, vector<1x16x64xbf16>
    %380 = vector.shape_cast %379 : vector<1x16x64xbf16> to vector<16x64xbf16>
    %381 = arith.extf %380 : vector<16x64xbf16> to vector<16x64xf32>
    %cst_221 = arith.constant dense<0.000000e+00> : vector<8x64xf32>
    %382 = tpu.matmul %378, %381, %cst_221 {dimension_numbers = #tpu.dot_dimension_numbers<[1], [0], [0], [1], [0, 0, 1, 1], [], []>} : vector<8x16xf32>, vector<16x64xf32>, vector<8x64xf32> -> vector<8x64xf32>
    %383 = arith.addf %377, %382 : vector<8x64xf32>
    %384 = vector.extract_strided_slice %374 {offsets = [8, 0], sizes = [8, 16], strides = [1, 1]} : vector<72x16xf32> to vector<8x16xf32>
    %c1_222 = arith.constant 1 : index
    %c0_223 = arith.constant 0 : index
    %c0_224 = arith.constant 0 : index
    %385 = vector.load %arg24[%c1_222, %c0_223, %c0_224] : memref<9x16x64xbf16, #tpu.memory_space<vmem>>, vector<1x16x64xbf16>
    %386 = vector.shape_cast %385 : vector<1x16x64xbf16> to vector<16x64xbf16>
    %387 = arith.extf %386 : vector<16x64xbf16> to vector<16x64xf32>
    %cst_225 = arith.constant dense<0.000000e+00> : vector<8x64xf32>
    %388 = tpu.matmul %384, %387, %cst_225 {dimension_numbers = #tpu.dot_dimension_numbers<[1], [0], [0], [1], [0, 0, 1, 1], [], []>} : vector<8x16xf32>, vector<16x64xf32>, vector<8x64xf32> -> vector<8x64xf32>
    %389 = arith.addf %383, %388 : vector<8x64xf32>
    %390 = vector.extract_strided_slice %374 {offsets = [16, 0], sizes = [8, 16], strides = [1, 1]} : vector<72x16xf32> to vector<8x16xf32>
    %c2_226 = arith.constant 2 : index
    %c0_227 = arith.constant 0 : index
    %c0_228 = arith.constant 0 : index
    %391 = vector.load %arg24[%c2_226, %c0_227, %c0_228] : memref<9x16x64xbf16, #tpu.memory_space<vmem>>, vector<1x16x64xbf16>
    %392 = vector.shape_cast %391 : vector<1x16x64xbf16> to vector<16x64xbf16>
    %393 = arith.extf %392 : vector<16x64xbf16> to vector<16x64xf32>
    %cst_229 = arith.constant dense<0.000000e+00> : vector<8x64xf32>
    %394 = tpu.matmul %390, %393, %cst_229 {dimension_numbers = #tpu.dot_dimension_numbers<[1], [0], [0], [1], [0, 0, 1, 1], [], []>} : vector<8x16xf32>, vector<16x64xf32>, vector<8x64xf32> -> vector<8x64xf32>
    %395 = arith.addf %389, %394 : vector<8x64xf32>
    %396 = vector.extract_strided_slice %374 {offsets = [24, 0], sizes = [8, 16], strides = [1, 1]} : vector<72x16xf32> to vector<8x16xf32>
    %c3_230 = arith.constant 3 : index
    %c0_231 = arith.constant 0 : index
    %c0_232 = arith.constant 0 : index
    %397 = vector.load %arg24[%c3_230, %c0_231, %c0_232] : memref<9x16x64xbf16, #tpu.memory_space<vmem>>, vector<1x16x64xbf16>
    %398 = vector.shape_cast %397 : vector<1x16x64xbf16> to vector<16x64xbf16>
    %399 = arith.extf %398 : vector<16x64xbf16> to vector<16x64xf32>
    %cst_233 = arith.constant dense<0.000000e+00> : vector<8x64xf32>
    %400 = tpu.matmul %396, %399, %cst_233 {dimension_numbers = #tpu.dot_dimension_numbers<[1], [0], [0], [1], [0, 0, 1, 1], [], []>} : vector<8x16xf32>, vector<16x64xf32>, vector<8x64xf32> -> vector<8x64xf32>
    %401 = arith.addf %395, %400 : vector<8x64xf32>
    %402 = vector.extract_strided_slice %374 {offsets = [32, 0], sizes = [8, 16], strides = [1, 1]} : vector<72x16xf32> to vector<8x16xf32>
    %c4_234 = arith.constant 4 : index
    %c0_235 = arith.constant 0 : index
    %c0_236 = arith.constant 0 : index
    %403 = vector.load %arg24[%c4_234, %c0_235, %c0_236] : memref<9x16x64xbf16, #tpu.memory_space<vmem>>, vector<1x16x64xbf16>
    %404 = vector.shape_cast %403 : vector<1x16x64xbf16> to vector<16x64xbf16>
    %405 = arith.extf %404 : vector<16x64xbf16> to vector<16x64xf32>
    %cst_237 = arith.constant dense<0.000000e+00> : vector<8x64xf32>
    %406 = tpu.matmul %402, %405, %cst_237 {dimension_numbers = #tpu.dot_dimension_numbers<[1], [0], [0], [1], [0, 0, 1, 1], [], []>} : vector<8x16xf32>, vector<16x64xf32>, vector<8x64xf32> -> vector<8x64xf32>
    %407 = arith.addf %401, %406 : vector<8x64xf32>
    %408 = vector.extract_strided_slice %374 {offsets = [40, 0], sizes = [8, 16], strides = [1, 1]} : vector<72x16xf32> to vector<8x16xf32>
    %c5_238 = arith.constant 5 : index
    %c0_239 = arith.constant 0 : index
    %c0_240 = arith.constant 0 : index
    %409 = vector.load %arg24[%c5_238, %c0_239, %c0_240] : memref<9x16x64xbf16, #tpu.memory_space<vmem>>, vector<1x16x64xbf16>
    %410 = vector.shape_cast %409 : vector<1x16x64xbf16> to vector<16x64xbf16>
    %411 = arith.extf %410 : vector<16x64xbf16> to vector<16x64xf32>
    %cst_241 = arith.constant dense<0.000000e+00> : vector<8x64xf32>
    %412 = tpu.matmul %408, %411, %cst_241 {dimension_numbers = #tpu.dot_dimension_numbers<[1], [0], [0], [1], [0, 0, 1, 1], [], []>} : vector<8x16xf32>, vector<16x64xf32>, vector<8x64xf32> -> vector<8x64xf32>
    %413 = arith.addf %407, %412 : vector<8x64xf32>
    %414 = vector.extract_strided_slice %374 {offsets = [48, 0], sizes = [8, 16], strides = [1, 1]} : vector<72x16xf32> to vector<8x16xf32>
    %c6_242 = arith.constant 6 : index
    %c0_243 = arith.constant 0 : index
    %c0_244 = arith.constant 0 : index
    %415 = vector.load %arg24[%c6_242, %c0_243, %c0_244] : memref<9x16x64xbf16, #tpu.memory_space<vmem>>, vector<1x16x64xbf16>
    %416 = vector.shape_cast %415 : vector<1x16x64xbf16> to vector<16x64xbf16>
    %417 = arith.extf %416 : vector<16x64xbf16> to vector<16x64xf32>
    %cst_245 = arith.constant dense<0.000000e+00> : vector<8x64xf32>
    %418 = tpu.matmul %414, %417, %cst_245 {dimension_numbers = #tpu.dot_dimension_numbers<[1], [0], [0], [1], [0, 0, 1, 1], [], []>} : vector<8x16xf32>, vector<16x64xf32>, vector<8x64xf32> -> vector<8x64xf32>
    %419 = arith.addf %413, %418 : vector<8x64xf32>
    %420 = vector.extract_strided_slice %374 {offsets = [56, 0], sizes = [8, 16], strides = [1, 1]} : vector<72x16xf32> to vector<8x16xf32>
    %c7_246 = arith.constant 7 : index
    %c0_247 = arith.constant 0 : index
    %c0_248 = arith.constant 0 : index
    %421 = vector.load %arg24[%c7_246, %c0_247, %c0_248] : memref<9x16x64xbf16, #tpu.memory_space<vmem>>, vector<1x16x64xbf16>
    %422 = vector.shape_cast %421 : vector<1x16x64xbf16> to vector<16x64xbf16>
    %423 = arith.extf %422 : vector<16x64xbf16> to vector<16x64xf32>
    %cst_249 = arith.constant dense<0.000000e+00> : vector<8x64xf32>
    %424 = tpu.matmul %420, %423, %cst_249 {dimension_numbers = #tpu.dot_dimension_numbers<[1], [0], [0], [1], [0, 0, 1, 1], [], []>} : vector<8x16xf32>, vector<16x64xf32>, vector<8x64xf32> -> vector<8x64xf32>
    %425 = arith.addf %419, %424 : vector<8x64xf32>
    %426 = vector.extract_strided_slice %374 {offsets = [64, 0], sizes = [8, 16], strides = [1, 1]} : vector<72x16xf32> to vector<8x16xf32>
    %c8_250 = arith.constant 8 : index
    %c0_251 = arith.constant 0 : index
    %c0_252 = arith.constant 0 : index
    %427 = vector.load %arg24[%c8_250, %c0_251, %c0_252] : memref<9x16x64xbf16, #tpu.memory_space<vmem>>, vector<1x16x64xbf16>
    %428 = vector.shape_cast %427 : vector<1x16x64xbf16> to vector<16x64xbf16>
    %429 = arith.extf %428 : vector<16x64xbf16> to vector<16x64xf32>
    %cst_253 = arith.constant dense<0.000000e+00> : vector<8x64xf32>
    %430 = tpu.matmul %426, %429, %cst_253 {dimension_numbers = #tpu.dot_dimension_numbers<[1], [0], [0], [1], [0, 0, 1, 1], [], []>} : vector<8x16xf32>, vector<16x64xf32>, vector<8x64xf32> -> vector<8x64xf32>
    %431 = arith.addf %425, %430 : vector<8x64xf32>
    %cst_254 = arith.constant 0.000000e+00 : f32
    %432 = vector.broadcast %cst_254 : f32 to vector<8x64xf32>
    %433 = arith.maximumf %431, %432 : vector<8x64xf32>
    %c0_255 = arith.constant 0 : index
    %c0_256 = arith.constant 0 : index
    %434 = vector.load %arg25[%c0_255, %c0_256] : memref<72x8xbf16, #tpu.memory_space<vmem>>, vector<72x8xbf16>
    %435 = arith.truncf %433 : vector<8x64xf32> to vector<8x64xbf16>
    %cst_257 = arith.constant dense<0.000000e+00> : vector<72x64xf32>
    %436 = tpu.matmul %434, %435, %cst_257 {dimension_numbers = #tpu.dot_dimension_numbers<[1], [0], [0], [1], [0, 0, 1, 1], [], []>} : vector<72x8xbf16>, vector<8x64xbf16>, vector<72x64xf32> -> vector<72x64xf32>
    %cst_258 = arith.constant 0.000000e+00 : f32
    %437 = vector.broadcast %cst_258 : f32 to vector<8x64xf32>
    %438 = arith.maximumf %74, %437 : vector<8x64xf32>
    %c0_259 = arith.constant 0 : index
    %c0_260 = arith.constant 0 : index
    %439 = vector.load %arg26[%c0_259, %c0_260] : memref<72x8xbf16, #tpu.memory_space<vmem>>, vector<72x8xbf16>
    %440 = arith.truncf %438 : vector<8x64xf32> to vector<8x64xbf16>
    %cst_261 = arith.constant dense<0.000000e+00> : vector<72x64xf32>
    %441 = tpu.matmul %439, %440, %cst_261 {dimension_numbers = #tpu.dot_dimension_numbers<[1], [0], [0], [1], [0, 0, 1, 1], [], []>} : vector<72x8xbf16>, vector<8x64xbf16>, vector<72x64xf32> -> vector<72x64xf32>
    %442 = arith.addf %436, %441 : vector<72x64xf32>
    %c0_262 = arith.constant 0 : index
    %c0_263 = arith.constant 0 : index
    %443 = vector.load %arg28[%c0_262, %c0_263] : memref<64x256xbf16, #tpu.memory_space<vmem>>, vector<64x256xbf16>
    %444 = arith.extf %443 : vector<64x256xbf16> to vector<64x256xf32>
    %cst_264 = arith.constant dense<0.000000e+00> : vector<72x256xf32>
    %445 = tpu.matmul %442, %444, %cst_264 {dimension_numbers = #tpu.dot_dimension_numbers<[1], [0], [0], [1], [0, 0, 1, 1], [], []>} : vector<72x64xf32>, vector<64x256xf32>, vector<72x256xf32> -> vector<72x256xf32>
    %c0_265 = arith.constant 0 : index
    %c0_266 = arith.constant 0 : index
    %446 = vector.load %arg27[%c0_265, %c0_266] : memref<8x1xf32, #tpu.memory_space<vmem>>, vector<8x1xf32>
    %447 = vector.shape_cast %446 : vector<8x1xf32> to vector<8x1xf32>
    %448 = vector.broadcast %447 : vector<8x1xf32> to vector<8x256xf32>
    %449 = vector.extract_strided_slice %445 {offsets = [0, 0], sizes = [8, 256], strides = [1, 1]} : vector<72x256xf32> to vector<8x256xf32>
    %c17_i32_267 = arith.constant 17 : i32
    %450 = tpu.dynamic_rotate %449 by %c17_i32_267 dim 1 : vector<8x256xf32>, i32 -> vector<8x256xf32>
    %c0_268 = arith.constant 0 : index
    %c0_269 = arith.constant 0 : index
    %c0_270 = arith.constant 0 : index
    %451 = vector.load %arg5[%c0_268, %c0_269, %c0_270] : memref<9x1x256xf32, #tpu.memory_space<vmem>>, vector<1x1x256xf32>
    %452 = vector.shape_cast %451 : vector<1x1x256xf32> to vector<1x256xf32>
    %453 = vector.broadcast %452 : vector<1x256xf32> to vector<8x256xf32>
    %454 = arith.mulf %450, %453 : vector<8x256xf32>
    %455 = arith.addf %448, %454 : vector<8x256xf32>
    %456 = vector.extract_strided_slice %445 {offsets = [8, 0], sizes = [8, 256], strides = [1, 1]} : vector<72x256xf32> to vector<8x256xf32>
    %c16_i32_271 = arith.constant 16 : i32
    %457 = tpu.dynamic_rotate %456 by %c16_i32_271 dim 1 : vector<8x256xf32>, i32 -> vector<8x256xf32>
    %c1_272 = arith.constant 1 : index
    %c0_273 = arith.constant 0 : index
    %c0_274 = arith.constant 0 : index
    %458 = vector.load %arg5[%c1_272, %c0_273, %c0_274] : memref<9x1x256xf32, #tpu.memory_space<vmem>>, vector<1x1x256xf32>
    %459 = vector.shape_cast %458 : vector<1x1x256xf32> to vector<1x256xf32>
    %460 = vector.broadcast %459 : vector<1x256xf32> to vector<8x256xf32>
    %461 = arith.mulf %457, %460 : vector<8x256xf32>
    %462 = arith.addf %455, %461 : vector<8x256xf32>
    %463 = vector.extract_strided_slice %445 {offsets = [16, 0], sizes = [8, 256], strides = [1, 1]} : vector<72x256xf32> to vector<8x256xf32>
    %c15_i32_275 = arith.constant 15 : i32
    %464 = tpu.dynamic_rotate %463 by %c15_i32_275 dim 1 : vector<8x256xf32>, i32 -> vector<8x256xf32>
    %c2_276 = arith.constant 2 : index
    %c0_277 = arith.constant 0 : index
    %c0_278 = arith.constant 0 : index
    %465 = vector.load %arg5[%c2_276, %c0_277, %c0_278] : memref<9x1x256xf32, #tpu.memory_space<vmem>>, vector<1x1x256xf32>
    %466 = vector.shape_cast %465 : vector<1x1x256xf32> to vector<1x256xf32>
    %467 = vector.broadcast %466 : vector<1x256xf32> to vector<8x256xf32>
    %468 = arith.mulf %464, %467 : vector<8x256xf32>
    %469 = arith.addf %462, %468 : vector<8x256xf32>
    %470 = vector.extract_strided_slice %445 {offsets = [24, 0], sizes = [8, 256], strides = [1, 1]} : vector<72x256xf32> to vector<8x256xf32>
    %c1_i32_279 = arith.constant 1 : i32
    %471 = tpu.dynamic_rotate %470 by %c1_i32_279 dim 1 : vector<8x256xf32>, i32 -> vector<8x256xf32>
    %c3_280 = arith.constant 3 : index
    %c0_281 = arith.constant 0 : index
    %c0_282 = arith.constant 0 : index
    %472 = vector.load %arg5[%c3_280, %c0_281, %c0_282] : memref<9x1x256xf32, #tpu.memory_space<vmem>>, vector<1x1x256xf32>
    %473 = vector.shape_cast %472 : vector<1x1x256xf32> to vector<1x256xf32>
    %474 = vector.broadcast %473 : vector<1x256xf32> to vector<8x256xf32>
    %475 = arith.mulf %471, %474 : vector<8x256xf32>
    %476 = arith.addf %469, %475 : vector<8x256xf32>
    %477 = vector.extract_strided_slice %445 {offsets = [32, 0], sizes = [8, 256], strides = [1, 1]} : vector<72x256xf32> to vector<8x256xf32>
    %c4_283 = arith.constant 4 : index
    %c0_284 = arith.constant 0 : index
    %c0_285 = arith.constant 0 : index
    %478 = vector.load %arg5[%c4_283, %c0_284, %c0_285] : memref<9x1x256xf32, #tpu.memory_space<vmem>>, vector<1x1x256xf32>
    %479 = vector.shape_cast %478 : vector<1x1x256xf32> to vector<1x256xf32>
    %480 = vector.broadcast %479 : vector<1x256xf32> to vector<8x256xf32>
    %481 = arith.mulf %477, %480 : vector<8x256xf32>
    %482 = arith.addf %476, %481 : vector<8x256xf32>
    %483 = vector.extract_strided_slice %445 {offsets = [40, 0], sizes = [8, 256], strides = [1, 1]} : vector<72x256xf32> to vector<8x256xf32>
    %c255_i32_286 = arith.constant 255 : i32
    %484 = tpu.dynamic_rotate %483 by %c255_i32_286 dim 1 : vector<8x256xf32>, i32 -> vector<8x256xf32>
    %c5_287 = arith.constant 5 : index
    %c0_288 = arith.constant 0 : index
    %c0_289 = arith.constant 0 : index
    %485 = vector.load %arg5[%c5_287, %c0_288, %c0_289] : memref<9x1x256xf32, #tpu.memory_space<vmem>>, vector<1x1x256xf32>
    %486 = vector.shape_cast %485 : vector<1x1x256xf32> to vector<1x256xf32>
    %487 = vector.broadcast %486 : vector<1x256xf32> to vector<8x256xf32>
    %488 = arith.mulf %484, %487 : vector<8x256xf32>
    %489 = arith.addf %482, %488 : vector<8x256xf32>
    %490 = vector.extract_strided_slice %445 {offsets = [48, 0], sizes = [8, 256], strides = [1, 1]} : vector<72x256xf32> to vector<8x256xf32>
    %c241_i32_290 = arith.constant 241 : i32
    %491 = tpu.dynamic_rotate %490 by %c241_i32_290 dim 1 : vector<8x256xf32>, i32 -> vector<8x256xf32>
    %c6_291 = arith.constant 6 : index
    %c0_292 = arith.constant 0 : index
    %c0_293 = arith.constant 0 : index
    %492 = vector.load %arg5[%c6_291, %c0_292, %c0_293] : memref<9x1x256xf32, #tpu.memory_space<vmem>>, vector<1x1x256xf32>
    %493 = vector.shape_cast %492 : vector<1x1x256xf32> to vector<1x256xf32>
    %494 = vector.broadcast %493 : vector<1x256xf32> to vector<8x256xf32>
    %495 = arith.mulf %491, %494 : vector<8x256xf32>
    %496 = arith.addf %489, %495 : vector<8x256xf32>
    %497 = vector.extract_strided_slice %445 {offsets = [56, 0], sizes = [8, 256], strides = [1, 1]} : vector<72x256xf32> to vector<8x256xf32>
    %c240_i32_294 = arith.constant 240 : i32
    %498 = tpu.dynamic_rotate %497 by %c240_i32_294 dim 1 : vector<8x256xf32>, i32 -> vector<8x256xf32>
    %c7_295 = arith.constant 7 : index
    %c0_296 = arith.constant 0 : index
    %c0_297 = arith.constant 0 : index
    %499 = vector.load %arg5[%c7_295, %c0_296, %c0_297] : memref<9x1x256xf32, #tpu.memory_space<vmem>>, vector<1x1x256xf32>
    %500 = vector.shape_cast %499 : vector<1x1x256xf32> to vector<1x256xf32>
    %501 = vector.broadcast %500 : vector<1x256xf32> to vector<8x256xf32>
    %502 = arith.mulf %498, %501 : vector<8x256xf32>
    %503 = arith.addf %496, %502 : vector<8x256xf32>
    %504 = vector.extract_strided_slice %445 {offsets = [64, 0], sizes = [8, 256], strides = [1, 1]} : vector<72x256xf32> to vector<8x256xf32>
    %c239_i32_298 = arith.constant 239 : i32
    %505 = tpu.dynamic_rotate %504 by %c239_i32_298 dim 1 : vector<8x256xf32>, i32 -> vector<8x256xf32>
    %c8_299 = arith.constant 8 : index
    %c0_300 = arith.constant 0 : index
    %c0_301 = arith.constant 0 : index
    %506 = vector.load %arg5[%c8_299, %c0_300, %c0_301] : memref<9x1x256xf32, #tpu.memory_space<vmem>>, vector<1x1x256xf32>
    %507 = vector.shape_cast %506 : vector<1x1x256xf32> to vector<1x256xf32>
    %508 = vector.broadcast %507 : vector<1x256xf32> to vector<8x256xf32>
    %509 = arith.mulf %505, %508 : vector<8x256xf32>
    %510 = arith.addf %503, %509 : vector<8x256xf32>
    %c0_302 = arith.constant 0 : index
    %c0_303 = arith.constant 0 : index
    %c0_304 = arith.constant 0 : index
    %511 = vector.load %arg29[%c0_302, %c0_303, %c0_304] : memref<2x8x256xf32, #tpu.memory_space<vmem>>, vector<1x8x256xf32>
    %512 = vector.shape_cast %511 : vector<1x8x256xf32> to vector<8x256xf32>
    %513 = vector.shape_cast %510 : vector<8x256xf32> to vector<1x8x256xf32>
    tpu.vector_store %arg29[%c0_302, %c0_303, %c0_304], %513 {strides = array<i32>} : memref<2x8x256xf32, #tpu.memory_space<vmem>>, vector<1x8x256xf32>,
    %c1_305 = arith.constant 1 : index
    %c0_306 = arith.constant 0 : index
    %c0_307 = arith.constant 0 : index
    %514 = vector.load %arg1[%c1_305, %c0_306, %c0_307] : memref<2x8x256xf32, #tpu.memory_space<vmem>>, vector<1x8x256xf32>
    %515 = vector.shape_cast %514 : vector<1x8x256xf32> to vector<8x256xf32>
    %cst_308 = arith.constant 0.000000e+00 : f32
    %516 = vector.broadcast %cst_308 : f32 to vector<8x256xf32>
    %517 = arith.maximumf %515, %516 : vector<8x256xf32>
    %c0_309 = arith.constant 0 : index
    %c0_310 = arith.constant 0 : index
    %518 = vector.load %arg2[%c0_309, %c0_310] : memref<72x8xbf16, #tpu.memory_space<vmem>>, vector<72x8xbf16>
    %519 = arith.truncf %517 : vector<8x256xf32> to vector<8x256xbf16>
    %cst_311 = arith.constant dense<0.000000e+00> : vector<72x256xf32>
    %520 = tpu.matmul %518, %519, %cst_311 {dimension_numbers = #tpu.dot_dimension_numbers<[1], [0], [0], [1], [0, 0, 1, 1], [], []>} : vector<72x8xbf16>, vector<8x256xbf16>, vector<72x256xf32> -> vector<72x256xf32>
    %c0_312 = arith.constant 0 : index
    %c0_313 = arith.constant 0 : index
    %521 = vector.load %arg3[%c0_312, %c0_313] : memref<8x1xf32, #tpu.memory_space<vmem>>, vector<8x1xf32>
    %522 = vector.shape_cast %521 : vector<8x1xf32> to vector<8x1xf32>
    %523 = vector.broadcast %522 : vector<8x1xf32> to vector<8x256xf32>
    %524 = vector.extract_strided_slice %520 {offsets = [0, 0], sizes = [8, 256], strides = [1, 1]} : vector<72x256xf32> to vector<8x256xf32>
    %c17_i32_314 = arith.constant 17 : i32
    %525 = tpu.dynamic_rotate %524 by %c17_i32_314 dim 1 : vector<8x256xf32>, i32 -> vector<8x256xf32>
    %c0_315 = arith.constant 0 : index
    %c0_316 = arith.constant 0 : index
    %c0_317 = arith.constant 0 : index
    %526 = vector.load %arg5[%c0_315, %c0_316, %c0_317] : memref<9x1x256xf32, #tpu.memory_space<vmem>>, vector<1x1x256xf32>
    %527 = vector.shape_cast %526 : vector<1x1x256xf32> to vector<1x256xf32>
    %528 = vector.broadcast %527 : vector<1x256xf32> to vector<8x256xf32>
    %529 = arith.mulf %525, %528 : vector<8x256xf32>
    %530 = arith.addf %523, %529 : vector<8x256xf32>
    %531 = vector.extract_strided_slice %520 {offsets = [8, 0], sizes = [8, 256], strides = [1, 1]} : vector<72x256xf32> to vector<8x256xf32>
    %c16_i32_318 = arith.constant 16 : i32
    %532 = tpu.dynamic_rotate %531 by %c16_i32_318 dim 1 : vector<8x256xf32>, i32 -> vector<8x256xf32>
    %c1_319 = arith.constant 1 : index
    %c0_320 = arith.constant 0 : index
    %c0_321 = arith.constant 0 : index
    %533 = vector.load %arg5[%c1_319, %c0_320, %c0_321] : memref<9x1x256xf32, #tpu.memory_space<vmem>>, vector<1x1x256xf32>
    %534 = vector.shape_cast %533 : vector<1x1x256xf32> to vector<1x256xf32>
    %535 = vector.broadcast %534 : vector<1x256xf32> to vector<8x256xf32>
    %536 = arith.mulf %532, %535 : vector<8x256xf32>
    %537 = arith.addf %530, %536 : vector<8x256xf32>
    %538 = vector.extract_strided_slice %520 {offsets = [16, 0], sizes = [8, 256], strides = [1, 1]} : vector<72x256xf32> to vector<8x256xf32>
    %c15_i32_322 = arith.constant 15 : i32
    %539 = tpu.dynamic_rotate %538 by %c15_i32_322 dim 1 : vector<8x256xf32>, i32 -> vector<8x256xf32>
    %c2_323 = arith.constant 2 : index
    %c0_324 = arith.constant 0 : index
    %c0_325 = arith.constant 0 : index
    %540 = vector.load %arg5[%c2_323, %c0_324, %c0_325] : memref<9x1x256xf32, #tpu.memory_space<vmem>>, vector<1x1x256xf32>
    %541 = vector.shape_cast %540 : vector<1x1x256xf32> to vector<1x256xf32>
    %542 = vector.broadcast %541 : vector<1x256xf32> to vector<8x256xf32>
    %543 = arith.mulf %539, %542 : vector<8x256xf32>
    %544 = arith.addf %537, %543 : vector<8x256xf32>
    %545 = vector.extract_strided_slice %520 {offsets = [24, 0], sizes = [8, 256], strides = [1, 1]} : vector<72x256xf32> to vector<8x256xf32>
    %c1_i32_326 = arith.constant 1 : i32
    %546 = tpu.dynamic_rotate %545 by %c1_i32_326 dim 1 : vector<8x256xf32>, i32 -> vector<8x256xf32>
    %c3_327 = arith.constant 3 : index
    %c0_328 = arith.constant 0 : index
    %c0_329 = arith.constant 0 : index
    %547 = vector.load %arg5[%c3_327, %c0_328, %c0_329] : memref<9x1x256xf32, #tpu.memory_space<vmem>>, vector<1x1x256xf32>
    %548 = vector.shape_cast %547 : vector<1x1x256xf32> to vector<1x256xf32>
    %549 = vector.broadcast %548 : vector<1x256xf32> to vector<8x256xf32>
    %550 = arith.mulf %546, %549 : vector<8x256xf32>
    %551 = arith.addf %544, %550 : vector<8x256xf32>
    %552 = vector.extract_strided_slice %520 {offsets = [32, 0], sizes = [8, 256], strides = [1, 1]} : vector<72x256xf32> to vector<8x256xf32>
    %c4_330 = arith.constant 4 : index
    %c0_331 = arith.constant 0 : index
    %c0_332 = arith.constant 0 : index
    %553 = vector.load %arg5[%c4_330, %c0_331, %c0_332] : memref<9x1x256xf32, #tpu.memory_space<vmem>>, vector<1x1x256xf32>
    %554 = vector.shape_cast %553 : vector<1x1x256xf32> to vector<1x256xf32>
    %555 = vector.broadcast %554 : vector<1x256xf32> to vector<8x256xf32>
    %556 = arith.mulf %552, %555 : vector<8x256xf32>
    %557 = arith.addf %551, %556 : vector<8x256xf32>
    %558 = vector.extract_strided_slice %520 {offsets = [40, 0], sizes = [8, 256], strides = [1, 1]} : vector<72x256xf32> to vector<8x256xf32>
    %c255_i32_333 = arith.constant 255 : i32
    %559 = tpu.dynamic_rotate %558 by %c255_i32_333 dim 1 : vector<8x256xf32>, i32 -> vector<8x256xf32>
    %c5_334 = arith.constant 5 : index
    %c0_335 = arith.constant 0 : index
    %c0_336 = arith.constant 0 : index
    %560 = vector.load %arg5[%c5_334, %c0_335, %c0_336] : memref<9x1x256xf32, #tpu.memory_space<vmem>>, vector<1x1x256xf32>
    %561 = vector.shape_cast %560 : vector<1x1x256xf32> to vector<1x256xf32>
    %562 = vector.broadcast %561 : vector<1x256xf32> to vector<8x256xf32>
    %563 = arith.mulf %559, %562 : vector<8x256xf32>
    %564 = arith.addf %557, %563 : vector<8x256xf32>
    %565 = vector.extract_strided_slice %520 {offsets = [48, 0], sizes = [8, 256], strides = [1, 1]} : vector<72x256xf32> to vector<8x256xf32>
    %c241_i32_337 = arith.constant 241 : i32
    %566 = tpu.dynamic_rotate %565 by %c241_i32_337 dim 1 : vector<8x256xf32>, i32 -> vector<8x256xf32>
    %c6_338 = arith.constant 6 : index
    %c0_339 = arith.constant 0 : index
    %c0_340 = arith.constant 0 : index
    %567 = vector.load %arg5[%c6_338, %c0_339, %c0_340] : memref<9x1x256xf32, #tpu.memory_space<vmem>>, vector<1x1x256xf32>
    %568 = vector.shape_cast %567 : vector<1x1x256xf32> to vector<1x256xf32>
    %569 = vector.broadcast %568 : vector<1x256xf32> to vector<8x256xf32>
    %570 = arith.mulf %566, %569 : vector<8x256xf32>
    %571 = arith.addf %564, %570 : vector<8x256xf32>
    %572 = vector.extract_strided_slice %520 {offsets = [56, 0], sizes = [8, 256], strides = [1, 1]} : vector<72x256xf32> to vector<8x256xf32>
    %c240_i32_341 = arith.constant 240 : i32
    %573 = tpu.dynamic_rotate %572 by %c240_i32_341 dim 1 : vector<8x256xf32>, i32 -> vector<8x256xf32>
    %c7_342 = arith.constant 7 : index
    %c0_343 = arith.constant 0 : index
    %c0_344 = arith.constant 0 : index
    %574 = vector.load %arg5[%c7_342, %c0_343, %c0_344] : memref<9x1x256xf32, #tpu.memory_space<vmem>>, vector<1x1x256xf32>
    %575 = vector.shape_cast %574 : vector<1x1x256xf32> to vector<1x256xf32>
    %576 = vector.broadcast %575 : vector<1x256xf32> to vector<8x256xf32>
    %577 = arith.mulf %573, %576 : vector<8x256xf32>
    %578 = arith.addf %571, %577 : vector<8x256xf32>
    %579 = vector.extract_strided_slice %520 {offsets = [64, 0], sizes = [8, 256], strides = [1, 1]} : vector<72x256xf32> to vector<8x256xf32>
    %c239_i32_345 = arith.constant 239 : i32
    %580 = tpu.dynamic_rotate %579 by %c239_i32_345 dim 1 : vector<8x256xf32>, i32 -> vector<8x256xf32>
    %c8_346 = arith.constant 8 : index
    %c0_347 = arith.constant 0 : index
    %c0_348 = arith.constant 0 : index
    %581 = vector.load %arg5[%c8_346, %c0_347, %c0_348] : memref<9x1x256xf32, #tpu.memory_space<vmem>>, vector<1x1x256xf32>
    %582 = vector.shape_cast %581 : vector<1x1x256xf32> to vector<1x256xf32>
    %583 = vector.broadcast %582 : vector<1x256xf32> to vector<8x256xf32>
    %584 = arith.mulf %580, %583 : vector<8x256xf32>
    %585 = arith.addf %578, %584 : vector<8x256xf32>
    %c0_349 = arith.constant 0 : index
    %c0_350 = arith.constant 0 : index
    %586 = vector.load %arg4[%c0_349, %c0_350] : memref<256x64xbf16, #tpu.memory_space<vmem>>, vector<256x64xbf16>
    %587 = arith.extf %586 : vector<256x64xbf16> to vector<256x64xf32>
    %cst_351 = arith.constant dense<0.000000e+00> : vector<8x64xf32>
    %588 = tpu.matmul %585, %587, %cst_351 {dimension_numbers = #tpu.dot_dimension_numbers<[1], [0], [0], [1], [0, 0, 1, 1], [], []>} : vector<8x256xf32>, vector<256x64xf32>, vector<8x64xf32> -> vector<8x64xf32>
    %cst_352 = arith.constant 0.000000e+00 : f32
    %589 = vector.broadcast %cst_352 : f32 to vector<8x64xf32>
    %590 = arith.maximumf %588, %589 : vector<8x64xf32>
    %c0_353 = arith.constant 0 : index
    %c0_354 = arith.constant 0 : index
    %591 = vector.load %arg6[%c0_353, %c0_354] : memref<144x8xbf16, #tpu.memory_space<vmem>>, vector<144x8xbf16>
    %592 = arith.truncf %590 : vector<8x64xf32> to vector<8x64xbf16>
    %cst_355 = arith.constant dense<0.000000e+00> : vector<144x64xf32>
    %593 = tpu.matmul %591, %592, %cst_355 {dimension_numbers = #tpu.dot_dimension_numbers<[1], [0], [0], [1], [0, 0, 1, 1], [], []>} : vector<144x8xbf16>, vector<8x64xbf16>, vector<144x64xf32> -> vector<144x64xf32>
    %c0_356 = arith.constant 0 : index
    %c0_357 = arith.constant 0 : index
    %594 = vector.load %arg7[%c0_356, %c0_357] : memref<16x1xf32, #tpu.memory_space<vmem>>, vector<16x1xf32>
    %595 = vector.shape_cast %594 : vector<16x1xf32> to vector<16x1xf32>
    %596 = vector.broadcast %595 : vector<16x1xf32> to vector<16x16xf32>
    %597 = vector.extract_strided_slice %593 {offsets = [0, 0], sizes = [16, 64], strides = [1, 1]} : vector<144x64xf32> to vector<16x64xf32>
    %c0_358 = arith.constant 0 : index
    %c0_359 = arith.constant 0 : index
    %c0_360 = arith.constant 0 : index
    %598 = vector.load %arg8[%c0_358, %c0_359, %c0_360] : memref<9x64x16xbf16, #tpu.memory_space<vmem>>, vector<1x64x16xbf16>
    %599 = vector.shape_cast %598 : vector<1x64x16xbf16> to vector<64x16xbf16>
    %600 = arith.extf %599 : vector<64x16xbf16> to vector<64x16xf32>
    %cst_361 = arith.constant dense<0.000000e+00> : vector<16x16xf32>
    %601 = tpu.matmul %597, %600, %cst_361 {dimension_numbers = #tpu.dot_dimension_numbers<[1], [0], [0], [1], [0, 0, 1, 1], [], []>} : vector<16x64xf32>, vector<64x16xf32>, vector<16x16xf32> -> vector<16x16xf32>
    %602 = arith.addf %596, %601 : vector<16x16xf32>
    %603 = vector.extract_strided_slice %593 {offsets = [16, 0], sizes = [16, 64], strides = [1, 1]} : vector<144x64xf32> to vector<16x64xf32>
    %c1_362 = arith.constant 1 : index
    %c0_363 = arith.constant 0 : index
    %c0_364 = arith.constant 0 : index
    %604 = vector.load %arg8[%c1_362, %c0_363, %c0_364] : memref<9x64x16xbf16, #tpu.memory_space<vmem>>, vector<1x64x16xbf16>
    %605 = vector.shape_cast %604 : vector<1x64x16xbf16> to vector<64x16xbf16>
    %606 = arith.extf %605 : vector<64x16xbf16> to vector<64x16xf32>
    %cst_365 = arith.constant dense<0.000000e+00> : vector<16x16xf32>
    %607 = tpu.matmul %603, %606, %cst_365 {dimension_numbers = #tpu.dot_dimension_numbers<[1], [0], [0], [1], [0, 0, 1, 1], [], []>} : vector<16x64xf32>, vector<64x16xf32>, vector<16x16xf32> -> vector<16x16xf32>
    %608 = arith.addf %602, %607 : vector<16x16xf32>
    %609 = vector.extract_strided_slice %593 {offsets = [32, 0], sizes = [16, 64], strides = [1, 1]} : vector<144x64xf32> to vector<16x64xf32>
    %c2_366 = arith.constant 2 : index
    %c0_367 = arith.constant 0 : index
    %c0_368 = arith.constant 0 : index
    %610 = vector.load %arg8[%c2_366, %c0_367, %c0_368] : memref<9x64x16xbf16, #tpu.memory_space<vmem>>, vector<1x64x16xbf16>
    %611 = vector.shape_cast %610 : vector<1x64x16xbf16> to vector<64x16xbf16>
    %612 = arith.extf %611 : vector<64x16xbf16> to vector<64x16xf32>
    %cst_369 = arith.constant dense<0.000000e+00> : vector<16x16xf32>
    %613 = tpu.matmul %609, %612, %cst_369 {dimension_numbers = #tpu.dot_dimension_numbers<[1], [0], [0], [1], [0, 0, 1, 1], [], []>} : vector<16x64xf32>, vector<64x16xf32>, vector<16x16xf32> -> vector<16x16xf32>
    %614 = arith.addf %608, %613 : vector<16x16xf32>
    %615 = vector.extract_strided_slice %593 {offsets = [48, 0], sizes = [16, 64], strides = [1, 1]} : vector<144x64xf32> to vector<16x64xf32>
    %c3_370 = arith.constant 3 : index
    %c0_371 = arith.constant 0 : index
    %c0_372 = arith.constant 0 : index
    %616 = vector.load %arg8[%c3_370, %c0_371, %c0_372] : memref<9x64x16xbf16, #tpu.memory_space<vmem>>, vector<1x64x16xbf16>
    %617 = vector.shape_cast %616 : vector<1x64x16xbf16> to vector<64x16xbf16>
    %618 = arith.extf %617 : vector<64x16xbf16> to vector<64x16xf32>
    %cst_373 = arith.constant dense<0.000000e+00> : vector<16x16xf32>
    %619 = tpu.matmul %615, %618, %cst_373 {dimension_numbers = #tpu.dot_dimension_numbers<[1], [0], [0], [1], [0, 0, 1, 1], [], []>} : vector<16x64xf32>, vector<64x16xf32>, vector<16x16xf32> -> vector<16x16xf32>
    %620 = arith.addf %614, %619 : vector<16x16xf32>
    %621 = vector.extract_strided_slice %593 {offsets = [64, 0], sizes = [16, 64], strides = [1, 1]} : vector<144x64xf32> to vector<16x64xf32>
    %c4_374 = arith.constant 4 : index
    %c0_375 = arith.constant 0 : index
    %c0_376 = arith.constant 0 : index
    %622 = vector.load %arg8[%c4_374, %c0_375, %c0_376] : memref<9x64x16xbf16, #tpu.memory_space<vmem>>, vector<1x64x16xbf16>
    %623 = vector.shape_cast %622 : vector<1x64x16xbf16> to vector<64x16xbf16>
    %624 = arith.extf %623 : vector<64x16xbf16> to vector<64x16xf32>
    %cst_377 = arith.constant dense<0.000000e+00> : vector<16x16xf32>
    %625 = tpu.matmul %621, %624, %cst_377 {dimension_numbers = #tpu.dot_dimension_numbers<[1], [0], [0], [1], [0, 0, 1, 1], [], []>} : vector<16x64xf32>, vector<64x16xf32>, vector<16x16xf32> -> vector<16x16xf32>
    %626 = arith.addf %620, %625 : vector<16x16xf32>
    %627 = vector.extract_strided_slice %593 {offsets = [80, 0], sizes = [16, 64], strides = [1, 1]} : vector<144x64xf32> to vector<16x64xf32>
    %c5_378 = arith.constant 5 : index
    %c0_379 = arith.constant 0 : index
    %c0_380 = arith.constant 0 : index
    %628 = vector.load %arg8[%c5_378, %c0_379, %c0_380] : memref<9x64x16xbf16, #tpu.memory_space<vmem>>, vector<1x64x16xbf16>
    %629 = vector.shape_cast %628 : vector<1x64x16xbf16> to vector<64x16xbf16>
    %630 = arith.extf %629 : vector<64x16xbf16> to vector<64x16xf32>
    %cst_381 = arith.constant dense<0.000000e+00> : vector<16x16xf32>
    %631 = tpu.matmul %627, %630, %cst_381 {dimension_numbers = #tpu.dot_dimension_numbers<[1], [0], [0], [1], [0, 0, 1, 1], [], []>} : vector<16x64xf32>, vector<64x16xf32>, vector<16x16xf32> -> vector<16x16xf32>
    %632 = arith.addf %626, %631 : vector<16x16xf32>
    %633 = vector.extract_strided_slice %593 {offsets = [96, 0], sizes = [16, 64], strides = [1, 1]} : vector<144x64xf32> to vector<16x64xf32>
    %c6_382 = arith.constant 6 : index
    %c0_383 = arith.constant 0 : index
    %c0_384 = arith.constant 0 : index
    %634 = vector.load %arg8[%c6_382, %c0_383, %c0_384] : memref<9x64x16xbf16, #tpu.memory_space<vmem>>, vector<1x64x16xbf16>
    %635 = vector.shape_cast %634 : vector<1x64x16xbf16> to vector<64x16xbf16>
    %636 = arith.extf %635 : vector<64x16xbf16> to vector<64x16xf32>
    %cst_385 = arith.constant dense<0.000000e+00> : vector<16x16xf32>
    %637 = tpu.matmul %633, %636, %cst_385 {dimension_numbers = #tpu.dot_dimension_numbers<[1], [0], [0], [1], [0, 0, 1, 1], [], []>} : vector<16x64xf32>, vector<64x16xf32>, vector<16x16xf32> -> vector<16x16xf32>
    %638 = arith.addf %632, %637 : vector<16x16xf32>
    %639 = vector.extract_strided_slice %593 {offsets = [112, 0], sizes = [16, 64], strides = [1, 1]} : vector<144x64xf32> to vector<16x64xf32>
    %c7_386 = arith.constant 7 : index
    %c0_387 = arith.constant 0 : index
    %c0_388 = arith.constant 0 : index
    %640 = vector.load %arg8[%c7_386, %c0_387, %c0_388] : memref<9x64x16xbf16, #tpu.memory_space<vmem>>, vector<1x64x16xbf16>
    %641 = vector.shape_cast %640 : vector<1x64x16xbf16> to vector<64x16xbf16>
    %642 = arith.extf %641 : vector<64x16xbf16> to vector<64x16xf32>
    %cst_389 = arith.constant dense<0.000000e+00> : vector<16x16xf32>
    %643 = tpu.matmul %639, %642, %cst_389 {dimension_numbers = #tpu.dot_dimension_numbers<[1], [0], [0], [1], [0, 0, 1, 1], [], []>} : vector<16x64xf32>, vector<64x16xf32>, vector<16x16xf32> -> vector<16x16xf32>
    %644 = arith.addf %638, %643 : vector<16x16xf32>
    %645 = vector.extract_strided_slice %593 {offsets = [128, 0], sizes = [16, 64], strides = [1, 1]} : vector<144x64xf32> to vector<16x64xf32>
    %c8_390 = arith.constant 8 : index
    %c0_391 = arith.constant 0 : index
    %c0_392 = arith.constant 0 : index
    %646 = vector.load %arg8[%c8_390, %c0_391, %c0_392] : memref<9x64x16xbf16, #tpu.memory_space<vmem>>, vector<1x64x16xbf16>
    %647 = vector.shape_cast %646 : vector<1x64x16xbf16> to vector<64x16xbf16>
    %648 = arith.extf %647 : vector<64x16xbf16> to vector<64x16xf32>
    %cst_393 = arith.constant dense<0.000000e+00> : vector<16x16xf32>
    %649 = tpu.matmul %645, %648, %cst_393 {dimension_numbers = #tpu.dot_dimension_numbers<[1], [0], [0], [1], [0, 0, 1, 1], [], []>} : vector<16x64xf32>, vector<64x16xf32>, vector<16x16xf32> -> vector<16x16xf32>
    %650 = arith.addf %644, %649 : vector<16x16xf32>
    %cst_394 = arith.constant 0.000000e+00 : f32
    %651 = vector.broadcast %cst_394 : f32 to vector<16x16xf32>
    %652 = arith.maximumf %650, %651 : vector<16x16xf32>
    %c0_395 = arith.constant 0 : index
    %c0_396 = arith.constant 0 : index
    %653 = vector.load %arg9[%c0_395, %c0_396] : memref<288x16xbf16, #tpu.memory_space<vmem>>, vector<288x16xbf16>
    %654 = arith.truncf %652 : vector<16x16xf32> to vector<16x16xbf16>
    %cst_397 = arith.constant dense<0.000000e+00> : vector<288x16xf32>
    %655 = tpu.matmul %653, %654, %cst_397 {dimension_numbers = #tpu.dot_dimension_numbers<[1], [0], [0], [1], [0, 0, 1, 1], [], []>} : vector<288x16xbf16>, vector<16x16xbf16>, vector<288x16xf32> -> vector<288x16xf32>
    %c0_398 = arith.constant 0 : index
    %c0_399 = arith.constant 0 : index
    %656 = vector.load %arg10[%c0_398, %c0_399] : memref<32x1xf32, #tpu.memory_space<vmem>>, vector<32x1xf32>
    %657 = vector.shape_cast %656 : vector<32x1xf32> to vector<32x1xf32>
    %658 = vector.broadcast %657 : vector<32x1xf32> to vector<32x4xf32>
    %659 = vector.extract_strided_slice %655 {offsets = [0, 0], sizes = [32, 16], strides = [1, 1]} : vector<288x16xf32> to vector<32x16xf32>
    %c0_400 = arith.constant 0 : index
    %c0_401 = arith.constant 0 : index
    %c0_402 = arith.constant 0 : index
    %660 = vector.load %arg11[%c0_400, %c0_401, %c0_402] : memref<9x16x4xbf16, #tpu.memory_space<vmem>>, vector<1x16x4xbf16>
    %661 = vector.shape_cast %660 : vector<1x16x4xbf16> to vector<16x4xbf16>
    %662 = arith.extf %661 : vector<16x4xbf16> to vector<16x4xf32>
    %cst_403 = arith.constant dense<0.000000e+00> : vector<32x4xf32>
    %663 = tpu.matmul %659, %662, %cst_403 {dimension_numbers = #tpu.dot_dimension_numbers<[1], [0], [0], [1], [0, 0, 1, 1], [], []>} : vector<32x16xf32>, vector<16x4xf32>, vector<32x4xf32> -> vector<32x4xf32>
    %664 = arith.addf %658, %663 : vector<32x4xf32>
    %665 = vector.extract_strided_slice %655 {offsets = [32, 0], sizes = [32, 16], strides = [1, 1]} : vector<288x16xf32> to vector<32x16xf32>
    %c1_404 = arith.constant 1 : index
    %c0_405 = arith.constant 0 : index
    %c0_406 = arith.constant 0 : index
    %666 = vector.load %arg11[%c1_404, %c0_405, %c0_406] : memref<9x16x4xbf16, #tpu.memory_space<vmem>>, vector<1x16x4xbf16>
    %667 = vector.shape_cast %666 : vector<1x16x4xbf16> to vector<16x4xbf16>
    %668 = arith.extf %667 : vector<16x4xbf16> to vector<16x4xf32>
    %cst_407 = arith.constant dense<0.000000e+00> : vector<32x4xf32>
    %669 = tpu.matmul %665, %668, %cst_407 {dimension_numbers = #tpu.dot_dimension_numbers<[1], [0], [0], [1], [0, 0, 1, 1], [], []>} : vector<32x16xf32>, vector<16x4xf32>, vector<32x4xf32> -> vector<32x4xf32>
    %670 = arith.addf %664, %669 : vector<32x4xf32>
    %671 = vector.extract_strided_slice %655 {offsets = [64, 0], sizes = [32, 16], strides = [1, 1]} : vector<288x16xf32> to vector<32x16xf32>
    %c2_408 = arith.constant 2 : index
    %c0_409 = arith.constant 0 : index
    %c0_410 = arith.constant 0 : index
    %672 = vector.load %arg11[%c2_408, %c0_409, %c0_410] : memref<9x16x4xbf16, #tpu.memory_space<vmem>>, vector<1x16x4xbf16>
    %673 = vector.shape_cast %672 : vector<1x16x4xbf16> to vector<16x4xbf16>
    %674 = arith.extf %673 : vector<16x4xbf16> to vector<16x4xf32>
    %cst_411 = arith.constant dense<0.000000e+00> : vector<32x4xf32>
    %675 = tpu.matmul %671, %674, %cst_411 {dimension_numbers = #tpu.dot_dimension_numbers<[1], [0], [0], [1], [0, 0, 1, 1], [], []>} : vector<32x16xf32>, vector<16x4xf32>, vector<32x4xf32> -> vector<32x4xf32>
    %676 = arith.addf %670, %675 : vector<32x4xf32>
    %677 = vector.extract_strided_slice %655 {offsets = [96, 0], sizes = [32, 16], strides = [1, 1]} : vector<288x16xf32> to vector<32x16xf32>
    %c3_412 = arith.constant 3 : index
    %c0_413 = arith.constant 0 : index
    %c0_414 = arith.constant 0 : index
    %678 = vector.load %arg11[%c3_412, %c0_413, %c0_414] : memref<9x16x4xbf16, #tpu.memory_space<vmem>>, vector<1x16x4xbf16>
    %679 = vector.shape_cast %678 : vector<1x16x4xbf16> to vector<16x4xbf16>
    %680 = arith.extf %679 : vector<16x4xbf16> to vector<16x4xf32>
    %cst_415 = arith.constant dense<0.000000e+00> : vector<32x4xf32>
    %681 = tpu.matmul %677, %680, %cst_415 {dimension_numbers = #tpu.dot_dimension_numbers<[1], [0], [0], [1], [0, 0, 1, 1], [], []>} : vector<32x16xf32>, vector<16x4xf32>, vector<32x4xf32> -> vector<32x4xf32>
    %682 = arith.addf %676, %681 : vector<32x4xf32>
    %683 = vector.extract_strided_slice %655 {offsets = [128, 0], sizes = [32, 16], strides = [1, 1]} : vector<288x16xf32> to vector<32x16xf32>
    %c4_416 = arith.constant 4 : index
    %c0_417 = arith.constant 0 : index
    %c0_418 = arith.constant 0 : index
    %684 = vector.load %arg11[%c4_416, %c0_417, %c0_418] : memref<9x16x4xbf16, #tpu.memory_space<vmem>>, vector<1x16x4xbf16>
    %685 = vector.shape_cast %684 : vector<1x16x4xbf16> to vector<16x4xbf16>
    %686 = arith.extf %685 : vector<16x4xbf16> to vector<16x4xf32>
    %cst_419 = arith.constant dense<0.000000e+00> : vector<32x4xf32>
    %687 = tpu.matmul %683, %686, %cst_419 {dimension_numbers = #tpu.dot_dimension_numbers<[1], [0], [0], [1], [0, 0, 1, 1], [], []>} : vector<32x16xf32>, vector<16x4xf32>, vector<32x4xf32> -> vector<32x4xf32>
    %688 = arith.addf %682, %687 : vector<32x4xf32>
    %689 = vector.extract_strided_slice %655 {offsets = [160, 0], sizes = [32, 16], strides = [1, 1]} : vector<288x16xf32> to vector<32x16xf32>
    %c5_420 = arith.constant 5 : index
    %c0_421 = arith.constant 0 : index
    %c0_422 = arith.constant 0 : index
    %690 = vector.load %arg11[%c5_420, %c0_421, %c0_422] : memref<9x16x4xbf16, #tpu.memory_space<vmem>>, vector<1x16x4xbf16>
    %691 = vector.shape_cast %690 : vector<1x16x4xbf16> to vector<16x4xbf16>
    %692 = arith.extf %691 : vector<16x4xbf16> to vector<16x4xf32>
    %cst_423 = arith.constant dense<0.000000e+00> : vector<32x4xf32>
    %693 = tpu.matmul %689, %692, %cst_423 {dimension_numbers = #tpu.dot_dimension_numbers<[1], [0], [0], [1], [0, 0, 1, 1], [], []>} : vector<32x16xf32>, vector<16x4xf32>, vector<32x4xf32> -> vector<32x4xf32>
    %694 = arith.addf %688, %693 : vector<32x4xf32>
    %695 = vector.extract_strided_slice %655 {offsets = [192, 0], sizes = [32, 16], strides = [1, 1]} : vector<288x16xf32> to vector<32x16xf32>
    %c6_424 = arith.constant 6 : index
    %c0_425 = arith.constant 0 : index
    %c0_426 = arith.constant 0 : index
    %696 = vector.load %arg11[%c6_424, %c0_425, %c0_426] : memref<9x16x4xbf16, #tpu.memory_space<vmem>>, vector<1x16x4xbf16>
    %697 = vector.shape_cast %696 : vector<1x16x4xbf16> to vector<16x4xbf16>
    %698 = arith.extf %697 : vector<16x4xbf16> to vector<16x4xf32>
    %cst_427 = arith.constant dense<0.000000e+00> : vector<32x4xf32>
    %699 = tpu.matmul %695, %698, %cst_427 {dimension_numbers = #tpu.dot_dimension_numbers<[1], [0], [0], [1], [0, 0, 1, 1], [], []>} : vector<32x16xf32>, vector<16x4xf32>, vector<32x4xf32> -> vector<32x4xf32>
    %700 = arith.addf %694, %699 : vector<32x4xf32>
    %701 = vector.extract_strided_slice %655 {offsets = [224, 0], sizes = [32, 16], strides = [1, 1]} : vector<288x16xf32> to vector<32x16xf32>
    %c7_428 = arith.constant 7 : index
    %c0_429 = arith.constant 0 : index
    %c0_430 = arith.constant 0 : index
    %702 = vector.load %arg11[%c7_428, %c0_429, %c0_430] : memref<9x16x4xbf16, #tpu.memory_space<vmem>>, vector<1x16x4xbf16>
    %703 = vector.shape_cast %702 : vector<1x16x4xbf16> to vector<16x4xbf16>
    %704 = arith.extf %703 : vector<16x4xbf16> to vector<16x4xf32>
    %cst_431 = arith.constant dense<0.000000e+00> : vector<32x4xf32>
    %705 = tpu.matmul %701, %704, %cst_431 {dimension_numbers = #tpu.dot_dimension_numbers<[1], [0], [0], [1], [0, 0, 1, 1], [], []>} : vector<32x16xf32>, vector<16x4xf32>, vector<32x4xf32> -> vector<32x4xf32>
    %706 = arith.addf %700, %705 : vector<32x4xf32>
    %707 = vector.extract_strided_slice %655 {offsets = [256, 0], sizes = [32, 16], strides = [1, 1]} : vector<288x16xf32> to vector<32x16xf32>
    %c8_432 = arith.constant 8 : index
    %c0_433 = arith.constant 0 : index
    %c0_434 = arith.constant 0 : index
    %708 = vector.load %arg11[%c8_432, %c0_433, %c0_434] : memref<9x16x4xbf16, #tpu.memory_space<vmem>>, vector<1x16x4xbf16>
    %709 = vector.shape_cast %708 : vector<1x16x4xbf16> to vector<16x4xbf16>
    %710 = arith.extf %709 : vector<16x4xbf16> to vector<16x4xf32>
    %cst_435 = arith.constant dense<0.000000e+00> : vector<32x4xf32>
    %711 = tpu.matmul %707, %710, %cst_435 {dimension_numbers = #tpu.dot_dimension_numbers<[1], [0], [0], [1], [0, 0, 1, 1], [], []>} : vector<32x16xf32>, vector<16x4xf32>, vector<32x4xf32> -> vector<32x4xf32>
    %712 = arith.addf %706, %711 : vector<32x4xf32>
    %cst_436 = arith.constant 0.000000e+00 : f32
    %713 = vector.broadcast %cst_436 : f32 to vector<32x4xf32>
    %714 = arith.maximumf %712, %713 : vector<32x4xf32>
    %c0_437 = arith.constant 0 : index
    %c0_438 = arith.constant 0 : index
    %715 = vector.load %arg12[%c0_437, %c0_438] : memref<288x32xbf16, #tpu.memory_space<vmem>>, vector<288x32xbf16>
    %716 = arith.truncf %714 : vector<32x4xf32> to vector<32x4xbf16>
    %cst_439 = arith.constant dense<0.000000e+00> : vector<288x4xf32>
    %717 = tpu.matmul %715, %716, %cst_439 {dimension_numbers = #tpu.dot_dimension_numbers<[1], [0], [0], [1], [0, 0, 1, 1], [], []>} : vector<288x32xbf16>, vector<32x4xbf16>, vector<288x4xf32> -> vector<288x4xf32>
    %c0_440 = arith.constant 0 : index
    %c0_441 = arith.constant 0 : index
    %718 = vector.load %arg13[%c0_440, %c0_441] : memref<32x1xf32, #tpu.memory_space<vmem>>, vector<32x1xf32>
    %719 = vector.extract_strided_slice %717 {offsets = [0, 0], sizes = [32, 4], strides = [1, 1]} : vector<288x4xf32> to vector<32x4xf32>
    %c0_442 = arith.constant 0 : index
    %c0_443 = arith.constant 0 : index
    %c0_444 = arith.constant 0 : index
    %720 = vector.load %arg14[%c0_442, %c0_443, %c0_444] : memref<9x4x1xbf16, #tpu.memory_space<vmem>>, vector<1x4x1xbf16>
    %721 = vector.shape_cast %720 : vector<1x4x1xbf16> to vector<4x1xbf16>
    %722 = arith.extf %721 : vector<4x1xbf16> to vector<4x1xf32>
    %cst_445 = arith.constant dense<0.000000e+00> : vector<32x1xf32>
    %723 = tpu.matmul %719, %722, %cst_445 {dimension_numbers = #tpu.dot_dimension_numbers<[1], [0], [0], [1], [0, 0, 1, 1], [], []>} : vector<32x4xf32>, vector<4x1xf32>, vector<32x1xf32> -> vector<32x1xf32>
    %724 = arith.addf %718, %723 : vector<32x1xf32>
    %725 = vector.extract_strided_slice %717 {offsets = [32, 0], sizes = [32, 4], strides = [1, 1]} : vector<288x4xf32> to vector<32x4xf32>
    %c1_446 = arith.constant 1 : index
    %c0_447 = arith.constant 0 : index
    %c0_448 = arith.constant 0 : index
    %726 = vector.load %arg14[%c1_446, %c0_447, %c0_448] : memref<9x4x1xbf16, #tpu.memory_space<vmem>>, vector<1x4x1xbf16>
    %727 = vector.shape_cast %726 : vector<1x4x1xbf16> to vector<4x1xbf16>
    %728 = arith.extf %727 : vector<4x1xbf16> to vector<4x1xf32>
    %cst_449 = arith.constant dense<0.000000e+00> : vector<32x1xf32>
    %729 = tpu.matmul %725, %728, %cst_449 {dimension_numbers = #tpu.dot_dimension_numbers<[1], [0], [0], [1], [0, 0, 1, 1], [], []>} : vector<32x4xf32>, vector<4x1xf32>, vector<32x1xf32> -> vector<32x1xf32>
    %730 = arith.addf %724, %729 : vector<32x1xf32>
    %731 = vector.extract_strided_slice %717 {offsets = [64, 0], sizes = [32, 4], strides = [1, 1]} : vector<288x4xf32> to vector<32x4xf32>
    %c2_450 = arith.constant 2 : index
    %c0_451 = arith.constant 0 : index
    %c0_452 = arith.constant 0 : index
    %732 = vector.load %arg14[%c2_450, %c0_451, %c0_452] : memref<9x4x1xbf16, #tpu.memory_space<vmem>>, vector<1x4x1xbf16>
    %733 = vector.shape_cast %732 : vector<1x4x1xbf16> to vector<4x1xbf16>
    %734 = arith.extf %733 : vector<4x1xbf16> to vector<4x1xf32>
    %cst_453 = arith.constant dense<0.000000e+00> : vector<32x1xf32>
    %735 = tpu.matmul %731, %734, %cst_453 {dimension_numbers = #tpu.dot_dimension_numbers<[1], [0], [0], [1], [0, 0, 1, 1], [], []>} : vector<32x4xf32>, vector<4x1xf32>, vector<32x1xf32> -> vector<32x1xf32>
    %736 = arith.addf %730, %735 : vector<32x1xf32>
    %737 = vector.extract_strided_slice %717 {offsets = [96, 0], sizes = [32, 4], strides = [1, 1]} : vector<288x4xf32> to vector<32x4xf32>
    %c3_454 = arith.constant 3 : index
    %c0_455 = arith.constant 0 : index
    %c0_456 = arith.constant 0 : index
    %738 = vector.load %arg14[%c3_454, %c0_455, %c0_456] : memref<9x4x1xbf16, #tpu.memory_space<vmem>>, vector<1x4x1xbf16>
    %739 = vector.shape_cast %738 : vector<1x4x1xbf16> to vector<4x1xbf16>
    %740 = arith.extf %739 : vector<4x1xbf16> to vector<4x1xf32>
    %cst_457 = arith.constant dense<0.000000e+00> : vector<32x1xf32>
    %741 = tpu.matmul %737, %740, %cst_457 {dimension_numbers = #tpu.dot_dimension_numbers<[1], [0], [0], [1], [0, 0, 1, 1], [], []>} : vector<32x4xf32>, vector<4x1xf32>, vector<32x1xf32> -> vector<32x1xf32>
    %742 = arith.addf %736, %741 : vector<32x1xf32>
    %743 = vector.extract_strided_slice %717 {offsets = [128, 0], sizes = [32, 4], strides = [1, 1]} : vector<288x4xf32> to vector<32x4xf32>
    %c4_458 = arith.constant 4 : index
    %c0_459 = arith.constant 0 : index
    %c0_460 = arith.constant 0 : index
    %744 = vector.load %arg14[%c4_458, %c0_459, %c0_460] : memref<9x4x1xbf16, #tpu.memory_space<vmem>>, vector<1x4x1xbf16>
    %745 = vector.shape_cast %744 : vector<1x4x1xbf16> to vector<4x1xbf16>
    %746 = arith.extf %745 : vector<4x1xbf16> to vector<4x1xf32>
    %cst_461 = arith.constant dense<0.000000e+00> : vector<32x1xf32>
    %747 = tpu.matmul %743, %746, %cst_461 {dimension_numbers = #tpu.dot_dimension_numbers<[1], [0], [0], [1], [0, 0, 1, 1], [], []>} : vector<32x4xf32>, vector<4x1xf32>, vector<32x1xf32> -> vector<32x1xf32>
    %748 = arith.addf %742, %747 : vector<32x1xf32>
    %749 = vector.extract_strided_slice %717 {offsets = [160, 0], sizes = [32, 4], strides = [1, 1]} : vector<288x4xf32> to vector<32x4xf32>
    %c5_462 = arith.constant 5 : index
    %c0_463 = arith.constant 0 : index
    %c0_464 = arith.constant 0 : index
    %750 = vector.load %arg14[%c5_462, %c0_463, %c0_464] : memref<9x4x1xbf16, #tpu.memory_space<vmem>>, vector<1x4x1xbf16>
    %751 = vector.shape_cast %750 : vector<1x4x1xbf16> to vector<4x1xbf16>
    %752 = arith.extf %751 : vector<4x1xbf16> to vector<4x1xf32>
    %cst_465 = arith.constant dense<0.000000e+00> : vector<32x1xf32>
    %753 = tpu.matmul %749, %752, %cst_465 {dimension_numbers = #tpu.dot_dimension_numbers<[1], [0], [0], [1], [0, 0, 1, 1], [], []>} : vector<32x4xf32>, vector<4x1xf32>, vector<32x1xf32> -> vector<32x1xf32>
    %754 = arith.addf %748, %753 : vector<32x1xf32>
    %755 = vector.extract_strided_slice %717 {offsets = [192, 0], sizes = [32, 4], strides = [1, 1]} : vector<288x4xf32> to vector<32x4xf32>
    %c6_466 = arith.constant 6 : index
    %c0_467 = arith.constant 0 : index
    %c0_468 = arith.constant 0 : index
    %756 = vector.load %arg14[%c6_466, %c0_467, %c0_468] : memref<9x4x1xbf16, #tpu.memory_space<vmem>>, vector<1x4x1xbf16>
    %757 = vector.shape_cast %756 : vector<1x4x1xbf16> to vector<4x1xbf16>
    %758 = arith.extf %757 : vector<4x1xbf16> to vector<4x1xf32>
    %cst_469 = arith.constant dense<0.000000e+00> : vector<32x1xf32>
    %759 = tpu.matmul %755, %758, %cst_469 {dimension_numbers = #tpu.dot_dimension_numbers<[1], [0], [0], [1], [0, 0, 1, 1], [], []>} : vector<32x4xf32>, vector<4x1xf32>, vector<32x1xf32> -> vector<32x1xf32>
    %760 = arith.addf %754, %759 : vector<32x1xf32>
    %761 = vector.extract_strided_slice %717 {offsets = [224, 0], sizes = [32, 4], strides = [1, 1]} : vector<288x4xf32> to vector<32x4xf32>
    %c7_470 = arith.constant 7 : index
    %c0_471 = arith.constant 0 : index
    %c0_472 = arith.constant 0 : index
    %762 = vector.load %arg14[%c7_470, %c0_471, %c0_472] : memref<9x4x1xbf16, #tpu.memory_space<vmem>>, vector<1x4x1xbf16>
    %763 = vector.shape_cast %762 : vector<1x4x1xbf16> to vector<4x1xbf16>
    %764 = arith.extf %763 : vector<4x1xbf16> to vector<4x1xf32>
    %cst_473 = arith.constant dense<0.000000e+00> : vector<32x1xf32>
    %765 = tpu.matmul %761, %764, %cst_473 {dimension_numbers = #tpu.dot_dimension_numbers<[1], [0], [0], [1], [0, 0, 1, 1], [], []>} : vector<32x4xf32>, vector<4x1xf32>, vector<32x1xf32> -> vector<32x1xf32>
    %766 = arith.addf %760, %765 : vector<32x1xf32>
    %767 = vector.extract_strided_slice %717 {offsets = [256, 0], sizes = [32, 4], strides = [1, 1]} : vector<288x4xf32> to vector<32x4xf32>
    %c8_474 = arith.constant 8 : index
    %c0_475 = arith.constant 0 : index
    %c0_476 = arith.constant 0 : index
    %768 = vector.load %arg14[%c8_474, %c0_475, %c0_476] : memref<9x4x1xbf16, #tpu.memory_space<vmem>>, vector<1x4x1xbf16>
    %769 = vector.shape_cast %768 : vector<1x4x1xbf16> to vector<4x1xbf16>
    %770 = arith.extf %769 : vector<4x1xbf16> to vector<4x1xf32>
    %cst_477 = arith.constant dense<0.000000e+00> : vector<32x1xf32>
    %771 = tpu.matmul %767, %770, %cst_477 {dimension_numbers = #tpu.dot_dimension_numbers<[1], [0], [0], [1], [0, 0, 1, 1], [], []>} : vector<32x4xf32>, vector<4x1xf32>, vector<32x1xf32> -> vector<32x1xf32>
    %772 = arith.addf %766, %771 : vector<32x1xf32>
    %cst_478 = arith.constant 0.000000e+00 : f32
    %773 = vector.broadcast %cst_478 : f32 to vector<32x1xf32>
    %774 = arith.maximumf %772, %773 : vector<32x1xf32>
    %775 = tpu.iota {dimensions = array<i32: 1>} : vector<1x4xi32>
    %c0_i32_479 = arith.constant 0 : i32
    %776 = vector.broadcast %c0_i32_479 : i32 to vector<1x4xi32>
    %777 = arith.cmpi eq, %775, %776 : vector<1x4xi32>
    %778 = arith.extui %777 : vector<1x4xi1> to vector<1x4xi32>
    %779 = arith.sitofp %778 : vector<1x4xi32> to vector<1x4xf32>
    %780 = vector.broadcast %774 : vector<32x1xf32> to vector<32x4xf32>
    %781 = vector.broadcast %779 : vector<1x4xf32> to vector<32x4xf32>
    %782 = arith.mulf %780, %781 : vector<32x4xf32>
    %c1_i32_480 = arith.constant 1 : i32
    %783 = vector.broadcast %c1_i32_480 : i32 to vector<1x4xi32>
    %784 = arith.cmpi eq, %775, %783 : vector<1x4xi32>
    %785 = arith.extui %784 : vector<1x4xi1> to vector<1x4xi32>
    %786 = arith.sitofp %785 : vector<1x4xi32> to vector<1x4xf32>
    %787 = vector.broadcast %774 : vector<32x1xf32> to vector<32x4xf32>
    %788 = vector.broadcast %786 : vector<1x4xf32> to vector<32x4xf32>
    %789 = arith.mulf %787, %788 : vector<32x4xf32>
    %c2_i32_481 = arith.constant 2 : i32
    %790 = vector.broadcast %c2_i32_481 : i32 to vector<1x4xi32>
    %791 = arith.cmpi eq, %775, %790 : vector<1x4xi32>
    %792 = arith.extui %791 : vector<1x4xi1> to vector<1x4xi32>
    %793 = arith.sitofp %792 : vector<1x4xi32> to vector<1x4xf32>
    %794 = vector.broadcast %774 : vector<32x1xf32> to vector<32x4xf32>
    %795 = vector.broadcast %793 : vector<1x4xf32> to vector<32x4xf32>
    %796 = arith.mulf %794, %795 : vector<32x4xf32>
    %c3_i32_482 = arith.constant 3 : i32
    %797 = vector.broadcast %c3_i32_482 : i32 to vector<1x4xi32>
    %798 = arith.cmpi eq, %775, %797 : vector<1x4xi32>
    %799 = arith.extui %798 : vector<1x4xi1> to vector<1x4xi32>
    %800 = arith.sitofp %799 : vector<1x4xi32> to vector<1x4xf32>
    %801 = vector.broadcast %774 : vector<32x1xf32> to vector<32x4xf32>
    %802 = vector.broadcast %800 : vector<1x4xf32> to vector<32x4xf32>
    %803 = arith.mulf %801, %802 : vector<32x4xf32>
    %804 = tpu.concatenate %782, %789, %796, %803 in 0 : vector<32x4xf32>, vector<32x4xf32>, vector<32x4xf32>, vector<32x4xf32> -> vector<128x4xf32>
    %c0_483 = arith.constant 0 : index
    %c0_484 = arith.constant 0 : index
    %805 = vector.load %arg15[%c0_483, %c0_484] : memref<32x128xbf16, #tpu.memory_space<vmem>>, vector<32x128xbf16>
    %806 = arith.truncf %804 : vector<128x4xf32> to vector<128x4xbf16>
    %cst_485 = arith.constant dense<0.000000e+00> : vector<32x4xf32>
    %807 = tpu.matmul %805, %806, %cst_485 {dimension_numbers = #tpu.dot_dimension_numbers<[1], [0], [0], [1], [0, 0, 1, 1], [], []>} : vector<32x128xbf16>, vector<128x4xbf16>, vector<32x4xf32> -> vector<32x4xf32>
    %c0_486 = arith.constant 0 : index
    %c0_487 = arith.constant 0 : index
    %808 = vector.load %arg16[%c0_486, %c0_487] : memref<32x4xf32, #tpu.memory_space<vmem>>, vector<32x4xf32>
    %809 = arith.addf %807, %808 : vector<32x4xf32>
    %cst_488 = arith.constant 0.000000e+00 : f32
    %810 = vector.broadcast %cst_488 : f32 to vector<32x4xf32>
    %811 = arith.maximumf %809, %810 : vector<32x4xf32>
    %c0_489 = arith.constant 0 : index
    %c0_490 = arith.constant 0 : index
    %812 = vector.load %arg17[%c0_489, %c0_490] : memref<144x32xbf16, #tpu.memory_space<vmem>>, vector<144x32xbf16>
    %813 = arith.truncf %811 : vector<32x4xf32> to vector<32x4xbf16>
    %cst_491 = arith.constant dense<0.000000e+00> : vector<144x4xf32>
    %814 = tpu.matmul %812, %813, %cst_491 {dimension_numbers = #tpu.dot_dimension_numbers<[1], [0], [0], [1], [0, 0, 1, 1], [], []>} : vector<144x32xbf16>, vector<32x4xbf16>, vector<144x4xf32> -> vector<144x4xf32>
    %cst_492 = arith.constant 0.000000e+00 : f32
    %815 = vector.broadcast %cst_492 : f32 to vector<32x4xf32>
    %816 = arith.maximumf %712, %815 : vector<32x4xf32>
    %c0_493 = arith.constant 0 : index
    %c0_494 = arith.constant 0 : index
    %817 = vector.load %arg18[%c0_493, %c0_494] : memref<144x32xbf16, #tpu.memory_space<vmem>>, vector<144x32xbf16>
    %818 = arith.truncf %816 : vector<32x4xf32> to vector<32x4xbf16>
    %cst_495 = arith.constant dense<0.000000e+00> : vector<144x4xf32>
    %819 = tpu.matmul %817, %818, %cst_495 {dimension_numbers = #tpu.dot_dimension_numbers<[1], [0], [0], [1], [0, 0, 1, 1], [], []>} : vector<144x32xbf16>, vector<32x4xbf16>, vector<144x4xf32> -> vector<144x4xf32>
    %820 = arith.addf %814, %819 : vector<144x4xf32>
    %c0_496 = arith.constant 0 : index
    %c0_497 = arith.constant 0 : index
    %821 = vector.load %arg19[%c0_496, %c0_497] : memref<16x1xf32, #tpu.memory_space<vmem>>, vector<16x1xf32>
    %822 = vector.shape_cast %821 : vector<16x1xf32> to vector<16x1xf32>
    %823 = vector.broadcast %822 : vector<16x1xf32> to vector<16x16xf32>
    %824 = vector.extract_strided_slice %820 {offsets = [0, 0], sizes = [16, 4], strides = [1, 1]} : vector<144x4xf32> to vector<16x4xf32>
    %c0_498 = arith.constant 0 : index
    %c0_499 = arith.constant 0 : index
    %c0_500 = arith.constant 0 : index
    %825 = vector.load %arg20[%c0_498, %c0_499, %c0_500] : memref<9x4x16xbf16, #tpu.memory_space<vmem>>, vector<1x4x16xbf16>
    %826 = vector.shape_cast %825 : vector<1x4x16xbf16> to vector<4x16xbf16>
    %827 = arith.extf %826 : vector<4x16xbf16> to vector<4x16xf32>
    %cst_501 = arith.constant dense<0.000000e+00> : vector<16x16xf32>
    %828 = tpu.matmul %824, %827, %cst_501 {dimension_numbers = #tpu.dot_dimension_numbers<[1], [0], [0], [1], [0, 0, 1, 1], [], []>} : vector<16x4xf32>, vector<4x16xf32>, vector<16x16xf32> -> vector<16x16xf32>
    %829 = arith.addf %823, %828 : vector<16x16xf32>
    %830 = vector.extract_strided_slice %820 {offsets = [16, 0], sizes = [16, 4], strides = [1, 1]} : vector<144x4xf32> to vector<16x4xf32>
    %c1_502 = arith.constant 1 : index
    %c0_503 = arith.constant 0 : index
    %c0_504 = arith.constant 0 : index
    %831 = vector.load %arg20[%c1_502, %c0_503, %c0_504] : memref<9x4x16xbf16, #tpu.memory_space<vmem>>, vector<1x4x16xbf16>
    %832 = vector.shape_cast %831 : vector<1x4x16xbf16> to vector<4x16xbf16>
    %833 = arith.extf %832 : vector<4x16xbf16> to vector<4x16xf32>
    %cst_505 = arith.constant dense<0.000000e+00> : vector<16x16xf32>
    %834 = tpu.matmul %830, %833, %cst_505 {dimension_numbers = #tpu.dot_dimension_numbers<[1], [0], [0], [1], [0, 0, 1, 1], [], []>} : vector<16x4xf32>, vector<4x16xf32>, vector<16x16xf32> -> vector<16x16xf32>
    %835 = arith.addf %829, %834 : vector<16x16xf32>
    %836 = vector.extract_strided_slice %820 {offsets = [32, 0], sizes = [16, 4], strides = [1, 1]} : vector<144x4xf32> to vector<16x4xf32>
    %c2_506 = arith.constant 2 : index
    %c0_507 = arith.constant 0 : index
    %c0_508 = arith.constant 0 : index
    %837 = vector.load %arg20[%c2_506, %c0_507, %c0_508] : memref<9x4x16xbf16, #tpu.memory_space<vmem>>, vector<1x4x16xbf16>
    %838 = vector.shape_cast %837 : vector<1x4x16xbf16> to vector<4x16xbf16>
    %839 = arith.extf %838 : vector<4x16xbf16> to vector<4x16xf32>
    %cst_509 = arith.constant dense<0.000000e+00> : vector<16x16xf32>
    %840 = tpu.matmul %836, %839, %cst_509 {dimension_numbers = #tpu.dot_dimension_numbers<[1], [0], [0], [1], [0, 0, 1, 1], [], []>} : vector<16x4xf32>, vector<4x16xf32>, vector<16x16xf32> -> vector<16x16xf32>
    %841 = arith.addf %835, %840 : vector<16x16xf32>
    %842 = vector.extract_strided_slice %820 {offsets = [48, 0], sizes = [16, 4], strides = [1, 1]} : vector<144x4xf32> to vector<16x4xf32>
    %c3_510 = arith.constant 3 : index
    %c0_511 = arith.constant 0 : index
    %c0_512 = arith.constant 0 : index
    %843 = vector.load %arg20[%c3_510, %c0_511, %c0_512] : memref<9x4x16xbf16, #tpu.memory_space<vmem>>, vector<1x4x16xbf16>
    %844 = vector.shape_cast %843 : vector<1x4x16xbf16> to vector<4x16xbf16>
    %845 = arith.extf %844 : vector<4x16xbf16> to vector<4x16xf32>
    %cst_513 = arith.constant dense<0.000000e+00> : vector<16x16xf32>
    %846 = tpu.matmul %842, %845, %cst_513 {dimension_numbers = #tpu.dot_dimension_numbers<[1], [0], [0], [1], [0, 0, 1, 1], [], []>} : vector<16x4xf32>, vector<4x16xf32>, vector<16x16xf32> -> vector<16x16xf32>
    %847 = arith.addf %841, %846 : vector<16x16xf32>
    %848 = vector.extract_strided_slice %820 {offsets = [64, 0], sizes = [16, 4], strides = [1, 1]} : vector<144x4xf32> to vector<16x4xf32>
    %c4_514 = arith.constant 4 : index
    %c0_515 = arith.constant 0 : index
    %c0_516 = arith.constant 0 : index
    %849 = vector.load %arg20[%c4_514, %c0_515, %c0_516] : memref<9x4x16xbf16, #tpu.memory_space<vmem>>, vector<1x4x16xbf16>
    %850 = vector.shape_cast %849 : vector<1x4x16xbf16> to vector<4x16xbf16>
    %851 = arith.extf %850 : vector<4x16xbf16> to vector<4x16xf32>
    %cst_517 = arith.constant dense<0.000000e+00> : vector<16x16xf32>
    %852 = tpu.matmul %848, %851, %cst_517 {dimension_numbers = #tpu.dot_dimension_numbers<[1], [0], [0], [1], [0, 0, 1, 1], [], []>} : vector<16x4xf32>, vector<4x16xf32>, vector<16x16xf32> -> vector<16x16xf32>
    %853 = arith.addf %847, %852 : vector<16x16xf32>
    %854 = vector.extract_strided_slice %820 {offsets = [80, 0], sizes = [16, 4], strides = [1, 1]} : vector<144x4xf32> to vector<16x4xf32>
    %c5_518 = arith.constant 5 : index
    %c0_519 = arith.constant 0 : index
    %c0_520 = arith.constant 0 : index
    %855 = vector.load %arg20[%c5_518, %c0_519, %c0_520] : memref<9x4x16xbf16, #tpu.memory_space<vmem>>, vector<1x4x16xbf16>
    %856 = vector.shape_cast %855 : vector<1x4x16xbf16> to vector<4x16xbf16>
    %857 = arith.extf %856 : vector<4x16xbf16> to vector<4x16xf32>
    %cst_521 = arith.constant dense<0.000000e+00> : vector<16x16xf32>
    %858 = tpu.matmul %854, %857, %cst_521 {dimension_numbers = #tpu.dot_dimension_numbers<[1], [0], [0], [1], [0, 0, 1, 1], [], []>} : vector<16x4xf32>, vector<4x16xf32>, vector<16x16xf32> -> vector<16x16xf32>
    %859 = arith.addf %853, %858 : vector<16x16xf32>
    %860 = vector.extract_strided_slice %820 {offsets = [96, 0], sizes = [16, 4], strides = [1, 1]} : vector<144x4xf32> to vector<16x4xf32>
    %c6_522 = arith.constant 6 : index
    %c0_523 = arith.constant 0 : index
    %c0_524 = arith.constant 0 : index
    %861 = vector.load %arg20[%c6_522, %c0_523, %c0_524] : memref<9x4x16xbf16, #tpu.memory_space<vmem>>, vector<1x4x16xbf16>
    %862 = vector.shape_cast %861 : vector<1x4x16xbf16> to vector<4x16xbf16>
    %863 = arith.extf %862 : vector<4x16xbf16> to vector<4x16xf32>
    %cst_525 = arith.constant dense<0.000000e+00> : vector<16x16xf32>
    %864 = tpu.matmul %860, %863, %cst_525 {dimension_numbers = #tpu.dot_dimension_numbers<[1], [0], [0], [1], [0, 0, 1, 1], [], []>} : vector<16x4xf32>, vector<4x16xf32>, vector<16x16xf32> -> vector<16x16xf32>
    %865 = arith.addf %859, %864 : vector<16x16xf32>
    %866 = vector.extract_strided_slice %820 {offsets = [112, 0], sizes = [16, 4], strides = [1, 1]} : vector<144x4xf32> to vector<16x4xf32>
    %c7_526 = arith.constant 7 : index
    %c0_527 = arith.constant 0 : index
    %c0_528 = arith.constant 0 : index
    %867 = vector.load %arg20[%c7_526, %c0_527, %c0_528] : memref<9x4x16xbf16, #tpu.memory_space<vmem>>, vector<1x4x16xbf16>
    %868 = vector.shape_cast %867 : vector<1x4x16xbf16> to vector<4x16xbf16>
    %869 = arith.extf %868 : vector<4x16xbf16> to vector<4x16xf32>
    %cst_529 = arith.constant dense<0.000000e+00> : vector<16x16xf32>
    %870 = tpu.matmul %866, %869, %cst_529 {dimension_numbers = #tpu.dot_dimension_numbers<[1], [0], [0], [1], [0, 0, 1, 1], [], []>} : vector<16x4xf32>, vector<4x16xf32>, vector<16x16xf32> -> vector<16x16xf32>
    %871 = arith.addf %865, %870 : vector<16x16xf32>
    %872 = vector.extract_strided_slice %820 {offsets = [128, 0], sizes = [16, 4], strides = [1, 1]} : vector<144x4xf32> to vector<16x4xf32>
    %c8_530 = arith.constant 8 : index
    %c0_531 = arith.constant 0 : index
    %c0_532 = arith.constant 0 : index
    %873 = vector.load %arg20[%c8_530, %c0_531, %c0_532] : memref<9x4x16xbf16, #tpu.memory_space<vmem>>, vector<1x4x16xbf16>
    %874 = vector.shape_cast %873 : vector<1x4x16xbf16> to vector<4x16xbf16>
    %875 = arith.extf %874 : vector<4x16xbf16> to vector<4x16xf32>
    %cst_533 = arith.constant dense<0.000000e+00> : vector<16x16xf32>
    %876 = tpu.matmul %872, %875, %cst_533 {dimension_numbers = #tpu.dot_dimension_numbers<[1], [0], [0], [1], [0, 0, 1, 1], [], []>} : vector<16x4xf32>, vector<4x16xf32>, vector<16x16xf32> -> vector<16x16xf32>
    %877 = arith.addf %871, %876 : vector<16x16xf32>
    %cst_534 = arith.constant 0.000000e+00 : f32
    %878 = vector.broadcast %cst_534 : f32 to vector<16x16xf32>
    %879 = arith.maximumf %877, %878 : vector<16x16xf32>
    %c0_535 = arith.constant 0 : index
    %c0_536 = arith.constant 0 : index
    %880 = vector.load %arg21[%c0_535, %c0_536] : memref<72x16xbf16, #tpu.memory_space<vmem>>, vector<72x16xbf16>
    %881 = arith.truncf %879 : vector<16x16xf32> to vector<16x16xbf16>
    %cst_537 = arith.constant dense<0.000000e+00> : vector<72x16xf32>
    %882 = tpu.matmul %880, %881, %cst_537 {dimension_numbers = #tpu.dot_dimension_numbers<[1], [0], [0], [1], [0, 0, 1, 1], [], []>} : vector<72x16xbf16>, vector<16x16xbf16>, vector<72x16xf32> -> vector<72x16xf32>
    %cst_538 = arith.constant 0.000000e+00 : f32
    %883 = vector.broadcast %cst_538 : f32 to vector<16x16xf32>
    %884 = arith.maximumf %650, %883 : vector<16x16xf32>
    %c0_539 = arith.constant 0 : index
    %c0_540 = arith.constant 0 : index
    %885 = vector.load %arg22[%c0_539, %c0_540] : memref<72x16xbf16, #tpu.memory_space<vmem>>, vector<72x16xbf16>
    %886 = arith.truncf %884 : vector<16x16xf32> to vector<16x16xbf16>
    %cst_541 = arith.constant dense<0.000000e+00> : vector<72x16xf32>
    %887 = tpu.matmul %885, %886, %cst_541 {dimension_numbers = #tpu.dot_dimension_numbers<[1], [0], [0], [1], [0, 0, 1, 1], [], []>} : vector<72x16xbf16>, vector<16x16xbf16>, vector<72x16xf32> -> vector<72x16xf32>
    %888 = arith.addf %882, %887 : vector<72x16xf32>
    %c0_542 = arith.constant 0 : index
    %c0_543 = arith.constant 0 : index
    %889 = vector.load %arg23[%c0_542, %c0_543] : memref<8x1xf32, #tpu.memory_space<vmem>>, vector<8x1xf32>
    %890 = vector.shape_cast %889 : vector<8x1xf32> to vector<8x1xf32>
    %891 = vector.broadcast %890 : vector<8x1xf32> to vector<8x64xf32>
    %892 = vector.extract_strided_slice %888 {offsets = [0, 0], sizes = [8, 16], strides = [1, 1]} : vector<72x16xf32> to vector<8x16xf32>
    %c0_544 = arith.constant 0 : index
    %c0_545 = arith.constant 0 : index
    %c0_546 = arith.constant 0 : index
    %893 = vector.load %arg24[%c0_544, %c0_545, %c0_546] : memref<9x16x64xbf16, #tpu.memory_space<vmem>>, vector<1x16x64xbf16>
    %894 = vector.shape_cast %893 : vector<1x16x64xbf16> to vector<16x64xbf16>
    %895 = arith.extf %894 : vector<16x64xbf16> to vector<16x64xf32>
    %cst_547 = arith.constant dense<0.000000e+00> : vector<8x64xf32>
    %896 = tpu.matmul %892, %895, %cst_547 {dimension_numbers = #tpu.dot_dimension_numbers<[1], [0], [0], [1], [0, 0, 1, 1], [], []>} : vector<8x16xf32>, vector<16x64xf32>, vector<8x64xf32> -> vector<8x64xf32>
    %897 = arith.addf %891, %896 : vector<8x64xf32>
    %898 = vector.extract_strided_slice %888 {offsets = [8, 0], sizes = [8, 16], strides = [1, 1]} : vector<72x16xf32> to vector<8x16xf32>
    %c1_548 = arith.constant 1 : index
    %c0_549 = arith.constant 0 : index
    %c0_550 = arith.constant 0 : index
    %899 = vector.load %arg24[%c1_548, %c0_549, %c0_550] : memref<9x16x64xbf16, #tpu.memory_space<vmem>>, vector<1x16x64xbf16>
    %900 = vector.shape_cast %899 : vector<1x16x64xbf16> to vector<16x64xbf16>
    %901 = arith.extf %900 : vector<16x64xbf16> to vector<16x64xf32>
    %cst_551 = arith.constant dense<0.000000e+00> : vector<8x64xf32>
    %902 = tpu.matmul %898, %901, %cst_551 {dimension_numbers = #tpu.dot_dimension_numbers<[1], [0], [0], [1], [0, 0, 1, 1], [], []>} : vector<8x16xf32>, vector<16x64xf32>, vector<8x64xf32> -> vector<8x64xf32>
    %903 = arith.addf %897, %902 : vector<8x64xf32>
    %904 = vector.extract_strided_slice %888 {offsets = [16, 0], sizes = [8, 16], strides = [1, 1]} : vector<72x16xf32> to vector<8x16xf32>
    %c2_552 = arith.constant 2 : index
    %c0_553 = arith.constant 0 : index
    %c0_554 = arith.constant 0 : index
    %905 = vector.load %arg24[%c2_552, %c0_553, %c0_554] : memref<9x16x64xbf16, #tpu.memory_space<vmem>>, vector<1x16x64xbf16>
    %906 = vector.shape_cast %905 : vector<1x16x64xbf16> to vector<16x64xbf16>
    %907 = arith.extf %906 : vector<16x64xbf16> to vector<16x64xf32>
    %cst_555 = arith.constant dense<0.000000e+00> : vector<8x64xf32>
    %908 = tpu.matmul %904, %907, %cst_555 {dimension_numbers = #tpu.dot_dimension_numbers<[1], [0], [0], [1], [0, 0, 1, 1], [], []>} : vector<8x16xf32>, vector<16x64xf32>, vector<8x64xf32> -> vector<8x64xf32>
    %909 = arith.addf %903, %908 : vector<8x64xf32>
    %910 = vector.extract_strided_slice %888 {offsets = [24, 0], sizes = [8, 16], strides = [1, 1]} : vector<72x16xf32> to vector<8x16xf32>
    %c3_556 = arith.constant 3 : index
    %c0_557 = arith.constant 0 : index
    %c0_558 = arith.constant 0 : index
    %911 = vector.load %arg24[%c3_556, %c0_557, %c0_558] : memref<9x16x64xbf16, #tpu.memory_space<vmem>>, vector<1x16x64xbf16>
    %912 = vector.shape_cast %911 : vector<1x16x64xbf16> to vector<16x64xbf16>
    %913 = arith.extf %912 : vector<16x64xbf16> to vector<16x64xf32>
    %cst_559 = arith.constant dense<0.000000e+00> : vector<8x64xf32>
    %914 = tpu.matmul %910, %913, %cst_559 {dimension_numbers = #tpu.dot_dimension_numbers<[1], [0], [0], [1], [0, 0, 1, 1], [], []>} : vector<8x16xf32>, vector<16x64xf32>, vector<8x64xf32> -> vector<8x64xf32>
    %915 = arith.addf %909, %914 : vector<8x64xf32>
    %916 = vector.extract_strided_slice %888 {offsets = [32, 0], sizes = [8, 16], strides = [1, 1]} : vector<72x16xf32> to vector<8x16xf32>
    %c4_560 = arith.constant 4 : index
    %c0_561 = arith.constant 0 : index
    %c0_562 = arith.constant 0 : index
    %917 = vector.load %arg24[%c4_560, %c0_561, %c0_562] : memref<9x16x64xbf16, #tpu.memory_space<vmem>>, vector<1x16x64xbf16>
    %918 = vector.shape_cast %917 : vector<1x16x64xbf16> to vector<16x64xbf16>
    %919 = arith.extf %918 : vector<16x64xbf16> to vector<16x64xf32>
    %cst_563 = arith.constant dense<0.000000e+00> : vector<8x64xf32>
    %920 = tpu.matmul %916, %919, %cst_563 {dimension_numbers = #tpu.dot_dimension_numbers<[1], [0], [0], [1], [0, 0, 1, 1], [], []>} : vector<8x16xf32>, vector<16x64xf32>, vector<8x64xf32> -> vector<8x64xf32>
    %921 = arith.addf %915, %920 : vector<8x64xf32>
    %922 = vector.extract_strided_slice %888 {offsets = [40, 0], sizes = [8, 16], strides = [1, 1]} : vector<72x16xf32> to vector<8x16xf32>
    %c5_564 = arith.constant 5 : index
    %c0_565 = arith.constant 0 : index
    %c0_566 = arith.constant 0 : index
    %923 = vector.load %arg24[%c5_564, %c0_565, %c0_566] : memref<9x16x64xbf16, #tpu.memory_space<vmem>>, vector<1x16x64xbf16>
    %924 = vector.shape_cast %923 : vector<1x16x64xbf16> to vector<16x64xbf16>
    %925 = arith.extf %924 : vector<16x64xbf16> to vector<16x64xf32>
    %cst_567 = arith.constant dense<0.000000e+00> : vector<8x64xf32>
    %926 = tpu.matmul %922, %925, %cst_567 {dimension_numbers = #tpu.dot_dimension_numbers<[1], [0], [0], [1], [0, 0, 1, 1], [], []>} : vector<8x16xf32>, vector<16x64xf32>, vector<8x64xf32> -> vector<8x64xf32>
    %927 = arith.addf %921, %926 : vector<8x64xf32>
    %928 = vector.extract_strided_slice %888 {offsets = [48, 0], sizes = [8, 16], strides = [1, 1]} : vector<72x16xf32> to vector<8x16xf32>
    %c6_568 = arith.constant 6 : index
    %c0_569 = arith.constant 0 : index
    %c0_570 = arith.constant 0 : index
    %929 = vector.load %arg24[%c6_568, %c0_569, %c0_570] : memref<9x16x64xbf16, #tpu.memory_space<vmem>>, vector<1x16x64xbf16>
    %930 = vector.shape_cast %929 : vector<1x16x64xbf16> to vector<16x64xbf16>
    %931 = arith.extf %930 : vector<16x64xbf16> to vector<16x64xf32>
    %cst_571 = arith.constant dense<0.000000e+00> : vector<8x64xf32>
    %932 = tpu.matmul %928, %931, %cst_571 {dimension_numbers = #tpu.dot_dimension_numbers<[1], [0], [0], [1], [0, 0, 1, 1], [], []>} : vector<8x16xf32>, vector<16x64xf32>, vector<8x64xf32> -> vector<8x64xf32>
    %933 = arith.addf %927, %932 : vector<8x64xf32>
    %934 = vector.extract_strided_slice %888 {offsets = [56, 0], sizes = [8, 16], strides = [1, 1]} : vector<72x16xf32> to vector<8x16xf32>
    %c7_572 = arith.constant 7 : index
    %c0_573 = arith.constant 0 : index
    %c0_574 = arith.constant 0 : index
    %935 = vector.load %arg24[%c7_572, %c0_573, %c0_574] : memref<9x16x64xbf16, #tpu.memory_space<vmem>>, vector<1x16x64xbf16>
    %936 = vector.shape_cast %935 : vector<1x16x64xbf16> to vector<16x64xbf16>
    %937 = arith.extf %936 : vector<16x64xbf16> to vector<16x64xf32>
    %cst_575 = arith.constant dense<0.000000e+00> : vector<8x64xf32>
    %938 = tpu.matmul %934, %937, %cst_575 {dimension_numbers = #tpu.dot_dimension_numbers<[1], [0], [0], [1], [0, 0, 1, 1], [], []>} : vector<8x16xf32>, vector<16x64xf32>, vector<8x64xf32> -> vector<8x64xf32>
    %939 = arith.addf %933, %938 : vector<8x64xf32>
    %940 = vector.extract_strided_slice %888 {offsets = [64, 0], sizes = [8, 16], strides = [1, 1]} : vector<72x16xf32> to vector<8x16xf32>
    %c8_576 = arith.constant 8 : index
    %c0_577 = arith.constant 0 : index
    %c0_578 = arith.constant 0 : index
    %941 = vector.load %arg24[%c8_576, %c0_577, %c0_578] : memref<9x16x64xbf16, #tpu.memory_space<vmem>>, vector<1x16x64xbf16>
    %942 = vector.shape_cast %941 : vector<1x16x64xbf16> to vector<16x64xbf16>
    %943 = arith.extf %942 : vector<16x64xbf16> to vector<16x64xf32>
    %cst_579 = arith.constant dense<0.000000e+00> : vector<8x64xf32>
    %944 = tpu.matmul %940, %943, %cst_579 {dimension_numbers = #tpu.dot_dimension_numbers<[1], [0], [0], [1], [0, 0, 1, 1], [], []>} : vector<8x16xf32>, vector<16x64xf32>, vector<8x64xf32> -> vector<8x64xf32>
    %945 = arith.addf %939, %944 : vector<8x64xf32>
    %cst_580 = arith.constant 0.000000e+00 : f32
    %946 = vector.broadcast %cst_580 : f32 to vector<8x64xf32>
    %947 = arith.maximumf %945, %946 : vector<8x64xf32>
    %c0_581 = arith.constant 0 : index
    %c0_582 = arith.constant 0 : index
    %948 = vector.load %arg25[%c0_581, %c0_582] : memref<72x8xbf16, #tpu.memory_space<vmem>>, vector<72x8xbf16>
    %949 = arith.truncf %947 : vector<8x64xf32> to vector<8x64xbf16>
    %cst_583 = arith.constant dense<0.000000e+00> : vector<72x64xf32>
    %950 = tpu.matmul %948, %949, %cst_583 {dimension_numbers = #tpu.dot_dimension_numbers<[1], [0], [0], [1], [0, 0, 1, 1], [], []>} : vector<72x8xbf16>, vector<8x64xbf16>, vector<72x64xf32> -> vector<72x64xf32>
    %cst_584 = arith.constant 0.000000e+00 : f32
    %951 = vector.broadcast %cst_584 : f32 to vector<8x64xf32>
    %952 = arith.maximumf %588, %951 : vector<8x64xf32>
    %c0_585 = arith.constant 0 : index
    %c0_586 = arith.constant 0 : index
    %953 = vector.load %arg26[%c0_585, %c0_586] : memref<72x8xbf16, #tpu.memory_space<vmem>>, vector<72x8xbf16>
    %954 = arith.truncf %952 : vector<8x64xf32> to vector<8x64xbf16>
    %cst_587 = arith.constant dense<0.000000e+00> : vector<72x64xf32>
    %955 = tpu.matmul %953, %954, %cst_587 {dimension_numbers = #tpu.dot_dimension_numbers<[1], [0], [0], [1], [0, 0, 1, 1], [], []>} : vector<72x8xbf16>, vector<8x64xbf16>, vector<72x64xf32> -> vector<72x64xf32>
    %956 = arith.addf %950, %955 : vector<72x64xf32>
    %c0_588 = arith.constant 0 : index
    %c0_589 = arith.constant 0 : index
    %957 = vector.load %arg28[%c0_588, %c0_589] : memref<64x256xbf16, #tpu.memory_space<vmem>>, vector<64x256xbf16>
    %958 = arith.extf %957 : vector<64x256xbf16> to vector<64x256xf32>
    %cst_590 = arith.constant dense<0.000000e+00> : vector<72x256xf32>
    %959 = tpu.matmul %956, %958, %cst_590 {dimension_numbers = #tpu.dot_dimension_numbers<[1], [0], [0], [1], [0, 0, 1, 1], [], []>} : vector<72x64xf32>, vector<64x256xf32>, vector<72x256xf32> -> vector<72x256xf32>
    %c0_591 = arith.constant 0 : index
    %c0_592 = arith.constant 0 : index
    %960 = vector.load %arg27[%c0_591, %c0_592] : memref<8x1xf32, #tpu.memory_space<vmem>>, vector<8x1xf32>
    %961 = vector.shape_cast %960 : vector<8x1xf32> to vector<8x1xf32>
    %962 = vector.broadcast %961 : vector<8x1xf32> to vector<8x256xf32>
    %963 = vector.extract_strided_slice %959 {offsets = [0, 0], sizes = [8, 256], strides = [1, 1]} : vector<72x256xf32> to vector<8x256xf32>
    %c17_i32_593 = arith.constant 17 : i32
    %964 = tpu.dynamic_rotate %963 by %c17_i32_593 dim 1 : vector<8x256xf32>, i32 -> vector<8x256xf32>
    %c0_594 = arith.constant 0 : index
    %c0_595 = arith.constant 0 : index
    %c0_596 = arith.constant 0 : index
    %965 = vector.load %arg5[%c0_594, %c0_595, %c0_596] : memref<9x1x256xf32, #tpu.memory_space<vmem>>, vector<1x1x256xf32>
    %966 = vector.shape_cast %965 : vector<1x1x256xf32> to vector<1x256xf32>
    %967 = vector.broadcast %966 : vector<1x256xf32> to vector<8x256xf32>
    %968 = arith.mulf %964, %967 : vector<8x256xf32>
    %969 = arith.addf %962, %968 : vector<8x256xf32>
    %970 = vector.extract_strided_slice %959 {offsets = [8, 0], sizes = [8, 256], strides = [1, 1]} : vector<72x256xf32> to vector<8x256xf32>
    %c16_i32_597 = arith.constant 16 : i32
    %971 = tpu.dynamic_rotate %970 by %c16_i32_597 dim 1 : vector<8x256xf32>, i32 -> vector<8x256xf32>
    %c1_598 = arith.constant 1 : index
    %c0_599 = arith.constant 0 : index
    %c0_600 = arith.constant 0 : index
    %972 = vector.load %arg5[%c1_598, %c0_599, %c0_600] : memref<9x1x256xf32, #tpu.memory_space<vmem>>, vector<1x1x256xf32>
    %973 = vector.shape_cast %972 : vector<1x1x256xf32> to vector<1x256xf32>
    %974 = vector.broadcast %973 : vector<1x256xf32> to vector<8x256xf32>
    %975 = arith.mulf %971, %974 : vector<8x256xf32>
    %976 = arith.addf %969, %975 : vector<8x256xf32>
    %977 = vector.extract_strided_slice %959 {offsets = [16, 0], sizes = [8, 256], strides = [1, 1]} : vector<72x256xf32> to vector<8x256xf32>
    %c15_i32_601 = arith.constant 15 : i32
    %978 = tpu.dynamic_rotate %977 by %c15_i32_601 dim 1 : vector<8x256xf32>, i32 -> vector<8x256xf32>
    %c2_602 = arith.constant 2 : index
    %c0_603 = arith.constant 0 : index
    %c0_604 = arith.constant 0 : index
    %979 = vector.load %arg5[%c2_602, %c0_603, %c0_604] : memref<9x1x256xf32, #tpu.memory_space<vmem>>, vector<1x1x256xf32>
    %980 = vector.shape_cast %979 : vector<1x1x256xf32> to vector<1x256xf32>
    %981 = vector.broadcast %980 : vector<1x256xf32> to vector<8x256xf32>
    %982 = arith.mulf %978, %981 : vector<8x256xf32>
    %983 = arith.addf %976, %982 : vector<8x256xf32>
    %984 = vector.extract_strided_slice %959 {offsets = [24, 0], sizes = [8, 256], strides = [1, 1]} : vector<72x256xf32> to vector<8x256xf32>
    %c1_i32_605 = arith.constant 1 : i32
    %985 = tpu.dynamic_rotate %984 by %c1_i32_605 dim 1 : vector<8x256xf32>, i32 -> vector<8x256xf32>
    %c3_606 = arith.constant 3 : index
    %c0_607 = arith.constant 0 : index
    %c0_608 = arith.constant 0 : index
    %986 = vector.load %arg5[%c3_606, %c0_607, %c0_608] : memref<9x1x256xf32, #tpu.memory_space<vmem>>, vector<1x1x256xf32>
    %987 = vector.shape_cast %986 : vector<1x1x256xf32> to vector<1x256xf32>
    %988 = vector.broadcast %987 : vector<1x256xf32> to vector<8x256xf32>
    %989 = arith.mulf %985, %988 : vector<8x256xf32>
    %990 = arith.addf %983, %989 : vector<8x256xf32>
    %991 = vector.extract_strided_slice %959 {offsets = [32, 0], sizes = [8, 256], strides = [1, 1]} : vector<72x256xf32> to vector<8x256xf32>
    %c4_609 = arith.constant 4 : index
    %c0_610 = arith.constant 0 : index
    %c0_611 = arith.constant 0 : index
    %992 = vector.load %arg5[%c4_609, %c0_610, %c0_611] : memref<9x1x256xf32, #tpu.memory_space<vmem>>, vector<1x1x256xf32>
    %993 = vector.shape_cast %992 : vector<1x1x256xf32> to vector<1x256xf32>
    %994 = vector.broadcast %993 : vector<1x256xf32> to vector<8x256xf32>
    %995 = arith.mulf %991, %994 : vector<8x256xf32>
    %996 = arith.addf %990, %995 : vector<8x256xf32>
    %997 = vector.extract_strided_slice %959 {offsets = [40, 0], sizes = [8, 256], strides = [1, 1]} : vector<72x256xf32> to vector<8x256xf32>
    %c255_i32_612 = arith.constant 255 : i32
    %998 = tpu.dynamic_rotate %997 by %c255_i32_612 dim 1 : vector<8x256xf32>, i32 -> vector<8x256xf32>
    %c5_613 = arith.constant 5 : index
    %c0_614 = arith.constant 0 : index
    %c0_615 = arith.constant 0 : index
    %999 = vector.load %arg5[%c5_613, %c0_614, %c0_615] : memref<9x1x256xf32, #tpu.memory_space<vmem>>, vector<1x1x256xf32>
    %1000 = vector.shape_cast %999 : vector<1x1x256xf32> to vector<1x256xf32>
    %1001 = vector.broadcast %1000 : vector<1x256xf32> to vector<8x256xf32>
    %1002 = arith.mulf %998, %1001 : vector<8x256xf32>
    %1003 = arith.addf %996, %1002 : vector<8x256xf32>
    %1004 = vector.extract_strided_slice %959 {offsets = [48, 0], sizes = [8, 256], strides = [1, 1]} : vector<72x256xf32> to vector<8x256xf32>
    %c241_i32_616 = arith.constant 241 : i32
    %1005 = tpu.dynamic_rotate %1004 by %c241_i32_616 dim 1 : vector<8x256xf32>, i32 -> vector<8x256xf32>
    %c6_617 = arith.constant 6 : index
    %c0_618 = arith.constant 0 : index
    %c0_619 = arith.constant 0 : index
    %1006 = vector.load %arg5[%c6_617, %c0_618, %c0_619] : memref<9x1x256xf32, #tpu.memory_space<vmem>>, vector<1x1x256xf32>
    %1007 = vector.shape_cast %1006 : vector<1x1x256xf32> to vector<1x256xf32>
    %1008 = vector.broadcast %1007 : vector<1x256xf32> to vector<8x256xf32>
    %1009 = arith.mulf %1005, %1008 : vector<8x256xf32>
    %1010 = arith.addf %1003, %1009 : vector<8x256xf32>
    %1011 = vector.extract_strided_slice %959 {offsets = [56, 0], sizes = [8, 256], strides = [1, 1]} : vector<72x256xf32> to vector<8x256xf32>
    %c240_i32_620 = arith.constant 240 : i32
    %1012 = tpu.dynamic_rotate %1011 by %c240_i32_620 dim 1 : vector<8x256xf32>, i32 -> vector<8x256xf32>
    %c7_621 = arith.constant 7 : index
    %c0_622 = arith.constant 0 : index
    %c0_623 = arith.constant 0 : index
    %1013 = vector.load %arg5[%c7_621, %c0_622, %c0_623] : memref<9x1x256xf32, #tpu.memory_space<vmem>>, vector<1x1x256xf32>
    %1014 = vector.shape_cast %1013 : vector<1x1x256xf32> to vector<1x256xf32>
    %1015 = vector.broadcast %1014 : vector<1x256xf32> to vector<8x256xf32>
    %1016 = arith.mulf %1012, %1015 : vector<8x256xf32>
    %1017 = arith.addf %1010, %1016 : vector<8x256xf32>
    %1018 = vector.extract_strided_slice %959 {offsets = [64, 0], sizes = [8, 256], strides = [1, 1]} : vector<72x256xf32> to vector<8x256xf32>
    %c239_i32_624 = arith.constant 239 : i32
    %1019 = tpu.dynamic_rotate %1018 by %c239_i32_624 dim 1 : vector<8x256xf32>, i32 -> vector<8x256xf32>
    %c8_625 = arith.constant 8 : index
    %c0_626 = arith.constant 0 : index
    %c0_627 = arith.constant 0 : index
    %1020 = vector.load %arg5[%c8_625, %c0_626, %c0_627] : memref<9x1x256xf32, #tpu.memory_space<vmem>>, vector<1x1x256xf32>
    %1021 = vector.shape_cast %1020 : vector<1x1x256xf32> to vector<1x256xf32>
    %1022 = vector.broadcast %1021 : vector<1x256xf32> to vector<8x256xf32>
    %1023 = arith.mulf %1019, %1022 : vector<8x256xf32>
    %1024 = arith.addf %1017, %1023 : vector<8x256xf32>
    %c1_628 = arith.constant 1 : index
    %c0_629 = arith.constant 0 : index
    %c0_630 = arith.constant 0 : index
    %1025 = vector.load %arg29[%c1_628, %c0_629, %c0_630] : memref<2x8x256xf32, #tpu.memory_space<vmem>>, vector<1x8x256xf32>
    %1026 = vector.shape_cast %1025 : vector<1x8x256xf32> to vector<8x256xf32>
    %1027 = vector.shape_cast %1024 : vector<8x256xf32> to vector<1x8x256xf32>
    tpu.vector_store %arg29[%c1_628, %c0_629, %c0_630], %1027 {strides = array<i32>} : memref<2x8x256xf32, #tpu.memory_space<vmem>>, vector<1x8x256xf32>,
    return
  }
  func.func @transform_0(%arg0: i32) -> (i32, i32, i32) {
    %c0_i32 = arith.constant 0 : i32
    %c0_i32_0 = arith.constant 0 : i32
    %c0_i32_1 = arith.constant 0 : i32
    %c0_i32_2 = arith.constant 0 : i32
    return %c0_i32, %c0_i32_0, %c0_i32_1 : i32, i32, i32
  }
  func.func @transform_1(%arg0: i32) -> (i32, i32) {
    %c0_i32 = arith.constant 0 : i32
    %c0_i32_0 = arith.constant 0 : i32
    %c0_i32_1 = arith.constant 0 : i32
    return %c0_i32, %c0_i32_0 : i32, i32
  }
  func.func @transform_2(%arg0: i32) -> (i32, i32) {
    %c0_i32 = arith.constant 0 : i32
    %c0_i32_0 = arith.constant 0 : i32
    %c0_i32_1 = arith.constant 0 : i32
    return %c0_i32, %c0_i32_0 : i32, i32
  }
  func.func @transform_3(%arg0: i32) -> (i32, i32) {
    %c0_i32 = arith.constant 0 : i32
    %c0_i32_0 = arith.constant 0 : i32
    %c0_i32_1 = arith.constant 0 : i32
    return %c0_i32, %c0_i32_0 : i32, i32
  }
  func.func @transform_4(%arg0: i32) -> (i32, i32, i32) {
    %c0_i32 = arith.constant 0 : i32
    %c0_i32_0 = arith.constant 0 : i32
    %c0_i32_1 = arith.constant 0 : i32
    %c0_i32_2 = arith.constant 0 : i32
    return %c0_i32, %c0_i32_0, %c0_i32_1 : i32, i32, i32
  }
  func.func @transform_5(%arg0: i32) -> (i32, i32) {
    %c0_i32 = arith.constant 0 : i32
    %c0_i32_0 = arith.constant 0 : i32
    %c0_i32_1 = arith.constant 0 : i32
    return %c0_i32, %c0_i32_0 : i32, i32
  }
  func.func @transform_6(%arg0: i32) -> (i32, i32) {
    %c0_i32 = arith.constant 0 : i32
    %c0_i32_0 = arith.constant 0 : i32
    %c0_i32_1 = arith.constant 0 : i32
    return %c0_i32, %c0_i32_0 : i32, i32
  }
  func.func @transform_7(%arg0: i32) -> (i32, i32, i32) {
    %c0_i32 = arith.constant 0 : i32
    %c0_i32_0 = arith.constant 0 : i32
    %c0_i32_1 = arith.constant 0 : i32
    %c0_i32_2 = arith.constant 0 : i32
    return %c0_i32, %c0_i32_0, %c0_i32_1 : i32, i32, i32
  }
  func.func @transform_8(%arg0: i32) -> (i32, i32) {
    %c0_i32 = arith.constant 0 : i32
    %c0_i32_0 = arith.constant 0 : i32
    %c0_i32_1 = arith.constant 0 : i32
    return %c0_i32, %c0_i32_0 : i32, i32
  }
  func.func @transform_9(%arg0: i32) -> (i32, i32) {
    %c0_i32 = arith.constant 0 : i32
    %c0_i32_0 = arith.constant 0 : i32
    %c0_i32_1 = arith.constant 0 : i32
    return %c0_i32, %c0_i32_0 : i32, i32
  }
  func.func @transform_10(%arg0: i32) -> (i32, i32, i32) {
    %c0_i32 = arith.constant 0 : i32
    %c0_i32_0 = arith.constant 0 : i32
    %c0_i32_1 = arith.constant 0 : i32
    %c0_i32_2 = arith.constant 0 : i32
    return %c0_i32, %c0_i32_0, %c0_i32_1 : i32, i32, i32
  }
  func.func @transform_11(%arg0: i32) -> (i32, i32) {
    %c0_i32 = arith.constant 0 : i32
    %c0_i32_0 = arith.constant 0 : i32
    %c0_i32_1 = arith.constant 0 : i32
    return %c0_i32, %c0_i32_0 : i32, i32
  }
  func.func @transform_12(%arg0: i32) -> (i32, i32) {
    %c0_i32 = arith.constant 0 : i32
    %c0_i32_0 = arith.constant 0 : i32
    %c0_i32_1 = arith.constant 0 : i32
    return %c0_i32, %c0_i32_0 : i32, i32
  }
  func.func @transform_13(%arg0: i32) -> (i32, i32, i32) {
    %c0_i32 = arith.constant 0 : i32
    %c0_i32_0 = arith.constant 0 : i32
    %c0_i32_1 = arith.constant 0 : i32
    %c0_i32_2 = arith.constant 0 : i32
    return %c0_i32, %c0_i32_0, %c0_i32_1 : i32, i32, i32
  }
  func.func @transform_14(%arg0: i32) -> (i32, i32) {
    %c0_i32 = arith.constant 0 : i32
    %c0_i32_0 = arith.constant 0 : i32
    %c0_i32_1 = arith.constant 0 : i32
    return %c0_i32, %c0_i32_0 : i32, i32
  }
  func.func @transform_15(%arg0: i32) -> (i32, i32) {
    %c0_i32 = arith.constant 0 : i32
    %c0_i32_0 = arith.constant 0 : i32
    %c0_i32_1 = arith.constant 0 : i32
    return %c0_i32, %c0_i32_0 : i32, i32
  }
  func.func @transform_16(%arg0: i32) -> (i32, i32) {
    %c0_i32 = arith.constant 0 : i32
    %c0_i32_0 = arith.constant 0 : i32
    %c0_i32_1 = arith.constant 0 : i32
    return %c0_i32, %c0_i32_0 : i32, i32
  }
  func.func @transform_17(%arg0: i32) -> (i32, i32) {
    %c0_i32 = arith.constant 0 : i32
    %c0_i32_0 = arith.constant 0 : i32
    %c0_i32_1 = arith.constant 0 : i32
    return %c0_i32, %c0_i32_0 : i32, i32
  }
  func.func @transform_18(%arg0: i32) -> (i32, i32) {
    %c0_i32 = arith.constant 0 : i32
    %c0_i32_0 = arith.constant 0 : i32
    %c0_i32_1 = arith.constant 0 : i32
    return %c0_i32, %c0_i32_0 : i32, i32
  }
  func.func @transform_19(%arg0: i32) -> (i32, i32, i32) {
    %c0_i32 = arith.constant 0 : i32
    %c0_i32_0 = arith.constant 0 : i32
    %c0_i32_1 = arith.constant 0 : i32
    %c0_i32_2 = arith.constant 0 : i32
    return %c0_i32, %c0_i32_0, %c0_i32_1 : i32, i32, i32
  }
  func.func @transform_20(%arg0: i32) -> (i32, i32) {
    %c0_i32 = arith.constant 0 : i32
    %c0_i32_0 = arith.constant 0 : i32
    %c0_i32_1 = arith.constant 0 : i32
    return %c0_i32, %c0_i32_0 : i32, i32
  }
  func.func @transform_21(%arg0: i32) -> (i32, i32) {
    %c0_i32 = arith.constant 0 : i32
    %c0_i32_0 = arith.constant 0 : i32
    %c0_i32_1 = arith.constant 0 : i32
    return %c0_i32, %c0_i32_0 : i32, i32
  }
  func.func @transform_22(%arg0: i32) -> (i32, i32) {
    %c0_i32 = arith.constant 0 : i32
    %c0_i32_0 = arith.constant 0 : i32
    %c0_i32_1 = arith.constant 0 : i32
    return %c0_i32, %c0_i32_0 : i32, i32
  }
  func.func @transform_23(%arg0: i32) -> (i32, i32, i32) {
    %c0_i32 = arith.constant 0 : i32
    %c0_i32_0 = arith.constant 0 : i32
    %c0_i32_1 = arith.constant 0 : i32
    %c0_i32_2 = arith.constant 0 : i32
    return %c0_i32, %c0_i32_0, %c0_i32_1 : i32, i32, i32
  }
  func.func @transform_24(%arg0: i32) -> (i32, i32) {
    %c0_i32 = arith.constant 0 : i32
    %c0_i32_0 = arith.constant 0 : i32
    %c0_i32_1 = arith.constant 0 : i32
    return %c0_i32, %c0_i32_0 : i32, i32
  }
  func.func @transform_25(%arg0: i32) -> (i32, i32) {
    %c0_i32 = arith.constant 0 : i32
    %c0_i32_0 = arith.constant 0 : i32
    %c0_i32_1 = arith.constant 0 : i32
    return %c0_i32, %c0_i32_0 : i32, i32
  }
  func.func @transform_26(%arg0: i32) -> (i32, i32) {
    %c0_i32 = arith.constant 0 : i32
    %c0_i32_0 = arith.constant 0 : i32
    %c0_i32_1 = arith.constant 0 : i32
    return %c0_i32, %c0_i32_0 : i32, i32
  }
  func.func @transform_27(%arg0: i32) -> (i32, i32) {
    %c0_i32 = arith.constant 0 : i32
    %c0_i32_0 = arith.constant 0 : i32
    %c0_i32_1 = arith.constant 0 : i32
    return %c0_i32, %c0_i32_0 : i32, i32
  }
  func.func @transform_28(%arg0: i32) -> (i32, i32, i32) {
    %c0_i32 = arith.constant 0 : i32
    %c0_i32_0 = arith.constant 0 : i32
    %c0_i32_1 = arith.constant 0 : i32
    %c0_i32_2 = arith.constant 0 : i32
    return %c0_i32, %c0_i32_0, %c0_i32_1 : i32, i32, i32
  }
}

</mosaic_0001>

<bundles_post_ra>
// kernel: tpu_custom_call.1
= control target key start
LH: loop header
LB: loop body
LE: loop exit
PB: predicated region body
PF: predicated region fallthrough
CT: control target
= control target key end

     0   :  { %s22002_s0 = inlined_call_operand.vmem [shape: f32[2,8,256], index: 0, kind: input, shape index: {}]   ;;  %s22003_s1 = inlined_call_operand.vmem [shape: bf16[72,8], index: 1, kind: input, shape index: {}]   ;;  %s22004_s2 = inlined_call_operand.vmem [shape: f32[8,1], index: 2, kind: input, shape index: {}]   ;;  %s22005_s3 = inlined_call_operand.vmem [shape: bf16[256,64], index: 3, kind: input, shape index: {}]   ;;  %s22006_s4 = inlined_call_operand.vmem [shape: f32[9,1,256], index: 4, kind: input, shape index: {}]   ;;  %s22007_s5 = inlined_call_operand.vmem [shape: bf16[144,8], index: 5, kind: input, shape index: {}]   ;;  %s22008_s6 = inlined_call_operand.vmem [shape: f32[16,1], index: 6, kind: input, shape index: {}]   ;;  %s22009_s7 = inlined_call_operand.vmem [shape: bf16[9,64,16], index: 7, kind: input, shape index: {}]   ;;  %s22010_s8 = inlined_call_operand.vmem [shape: bf16[288,16], index: 8, kind: input, shape index: {}]   ;;  %s22011_s9 = inlined_call_operand.vmem [shape: f32[32,1], index: 9, kind: input, shape index: {}]   ;;  %s22012_s10 = inlined_call_operand.vmem [shape: bf16[9,16,4], index: 10, kind: input, shape index: {}]   ;;  %s22013_s11 = inlined_call_operand.vmem [shape: bf16[288,32], index: 11, kind: input, shape index: {}]   ;;  %s22014_s12 = inlined_call_operand.vmem [shape: f32[32,1], index: 12, kind: input, shape index: {}]   ;;  %s22015_s13 = inlined_call_operand.vmem [shape: bf16[9,4,1], index: 13, kind: input, shape index: {}]   ;;  %s22016_s14 = inlined_call_operand.vmem [shape: bf16[32,128], index: 14, kind: input, shape index: {}]   ;;  %s22017_s15 = inlined_call_operand.vmem [shape: f32[32,4], index: 15, kind: input, shape index: {}]   ;;  %s22018_s16 = inlined_call_operand.vmem [shape: bf16[144,32], index: 16, kind: input, shape index: {}]   ;;  %s22019_s17 = inlined_call_operand.vmem [shape: bf16[144,32], index: 17, kind: input, shape index: {}]   ;;  %s22020_s18 = inlined_call_operand.vmem [shape: f32[16,1], index: 18, kind: input, shape index: {}]   ;;  %s22021_s19 = inlined_call_operand.vmem [shape: bf16[9,4,16], index: 19, kind: input, shape index: {}]   ;;  %s22022_s20 = inlined_call_operand.vmem [shape: bf16[72,16], index: 20, kind: input, shape index: {}]   ;;  %s22023_s21 = inlined_call_operand.vmem [shape: bf16[72,16], index: 21, kind: input, shape index: {}]   ;;  %s22024_s22 = inlined_call_operand.vmem [shape: f32[8,1], index: 22, kind: input, shape index: {}]   ;;  %s22025_s23 = inlined_call_operand.vmem [shape: bf16[9,16,64], index: 23, kind: input, shape index: {}]   ;;  %s22026_s24 = inlined_call_operand.vmem [shape: bf16[72,8], index: 24, kind: input, shape index: {}]   ;;  %s22027_s25 = inlined_call_operand.vmem [shape: bf16[72,8], index: 25, kind: input, shape index: {}]   ;;  %s22028_s26 = inlined_call_operand.vmem [shape: f32[8,1], index: 26, kind: input, shape index: {}]   ;;  %s22029_s27 = inlined_call_operand.vmem [shape: bf16[64,256], index: 27, kind: input, shape index: {}]   ;;  %s22030_s28 = inlined_call_operand.hbm [shape: f32[2,8,256], index: 28, kind: output, shape index: {}]  }
   0x1   :  { %22098 = sst [smem:[#allocation22_spill]] %s22002_s0 }
   0x2   :  { %22099 = sst [smem:[#allocation23_spill]] %s22003_s1 }
   0x3   :  { %22100 = sst [smem:[#allocation24_spill]] %s22004_s2 }
   0x4   :  { %22101 = sst [smem:[#allocation25_spill]] %s22005_s3 }
   0x5   :  { %22102 = sst [smem:[#allocation26_spill]] %s22006_s4 }
   0x6   :  { %22103 = sst [smem:[#allocation27_spill]] %s22007_s5 }
   0x7   :  { %22104 = sst [smem:[#allocation28_spill]] %s22008_s6 }
   0x8   :  { %22105 = sst [smem:[#allocation29_spill]] %s22009_s7 }
   0x9   :  { %22106 = sst [smem:[#allocation30_spill]] %s22010_s8 }
   0xa   :  { %22107 = sst [smem:[#allocation31_spill]] %s22011_s9 }
   0xb   :  { %22108 = sst [smem:[#allocation32_spill]] %s22012_s10 }
   0xc   :  { %22109 = sst [smem:[#allocation33_spill]] %s22013_s11 }
   0xd   :  { %22110 = sst [smem:[#allocation34_spill]] %s22014_s12 }
   0xe   :  { %22111 = sst [smem:[#allocation35_spill]] %s22015_s13 }
   0xf   :  { %22112 = sst [smem:[#allocation36_spill]] %s22022_s20 }
  0x10   :  { %22113 = sst [smem:[#allocation37_spill]] %s22026_s24 }
  0x11   :  { %22114 = sst [smem:[#allocation38_spill]] %s22027_s25 }
  0x12   :  { %22115 = sst [smem:[#allocation39_spill]] %s22028_s26 }
  0x13   :  { %22116 = sst [smem:[#allocation40_spill]] %s22029_s27 }
  0x14   :  { %22117 = sst [smem:[#allocation41_spill]] %s22030_s28 }
  0x15   :  { %s22118_s9 = sld [smem:[#allocation22_spill]]  ;;  %v19188_v4 = vmov 0   ;;  %vm145_vm0 = vcmask 1043456   ;;  %s22119_s0 = sld [smem:[#allocation23_spill]]  ;;  %vm129_vm1 = vcmask 64512  }
  0x16   :  { %184 = vmatprep.mubr.bf16.mxu0 %v19188_v4  ;;  %18958 = vset.pattern.permute.xlu0 %v19188_v4  ;;  %s22120_s2 = sld [smem:[#allocation24_spill]] }
  0x17   :  { %18959 = vset.pattern.permute.xlu1 %v19188_v4 }
  0x1b   :  { %v92_v0 = vld [vmem:[%s22118_s9 + $0x8] sm:$0xff]  ;;  %v91_v1 = vld [vmem:[%s22118_s9] sm:$0xff]  ;;  %v18962_v11 = vld [vmem:[%s22119_s0 + $0x10] sm:$0xff]  }
  0x1c   :  { %v94_v2 = vmax.f32 %v92_v0, 0.0  ;;  %v93_v3 = vmax.f32 %v91_v1, 0.0  ;;  %v18960_v8 = vld [vmem:[%s22119_s0] sm:$0xff]   ;;  %v18961_v10 = vld [vmem:[%s22119_s0 + $0x8] sm:$0xff]   ;;  %v18963_v12 = vld [vmem:[%s22119_s0 + $0x18] sm:$0xff]  }
  0x1d   :  { %v233_v9 = vld [vmem:[%s22120_s2] sm:$0xff] }
  0x1e   :  { %v105_v5 = vpack.c.bf16 %v94_v2, %v94_v2  ;;  %v104_v6 = vpack.c.bf16 %v93_v3, %v93_v3  ;;  %236 = vperm.xlu0 %18958, %v233_v9   ;;  %v18964_v13 = vld [vmem:[%s22119_s0 + $0x20] ss:$0 sps:$4 sm:$0xff]  }
  0x20   :  { %14182 = vmatprep.subr.msk.bf16.mxu0 %vm145_vm0, %v105_v5  ;;  %v147_v7 = vsel %vm145_vm0, %v104_v6, 0 }
  0x21   :  { %153 = vmatpush1.bf16.msra.mxu0 %v147_v7 }
  0x24   :  { %14183 = vmatmul.mubr.msk.bf16.vlgmr.msra.gmra.mrb[0].mxu0 %vm129_vm1, %v18960_v8 }
  0x25   :  { %194 = vmatprep.mubr.bf16.mxu0 %v19188_v4 }
  0x2c   :  { %14184 = vmatmul.mubr.msk.bf16.gmra.mrb[4].mxu0 %vm129_vm1, %v18961_v10 }
  0x2d   :  { %204 = vmatprep.mubr.bf16.mxu0 %v19188_v4 }
  0x34   :  { %14185 = vmatmul.mubr.msk.bf16.gmra.mrb[8].mxu0 %vm129_vm1, %v18962_v11 }
  0x35   :  { %214 = vmatprep.mubr.bf16.mxu0 %v19188_v4 }
  0x3c   :  { %14186 = vmatmul.mubr.msk.bf16.gmra.mrb[12].mxu0 %vm129_vm1, %v18963_v12 }
  0x3d   :  { %224 = vmatprep.mubr.bf16.mxu0 %v19188_v4 }
  0x44   :  { %14187 = vmatmul.mubr.msk.bf16.gmra.mrb[16].mxu0 %vm129_vm1, %v18964_v13 }
  0x45   :  { %33 = vsyncpa [#allocation3], 0  ;;  %s22121_s11 = sld [smem:[#allocation25_spill]]  ;;  %s22058_s5 = smov 17   ;;  %v243_v55 = vlaneseq  ;;  %vm19198_vm10 = vmmov 0   ;;  %vm811_vm11 = vcmask 523264  }
  0x46   :  { %s22056_s29 = smov 16   ;;  %s22046_s8 = smov 15   ;;  %vm1824_vm12 = vcmask 130048   ;;  %vm3165_vm13 = vcmask 261120   ;;  %vm3403_vm14 = vcmask 31744  }
  0x47   :  { %s22044_s7 = smov 1   ;;  %s22052_s10 = smov 127   ;;  %v251_v58 = vshrl.u32 %v243_v55, 7  ;;  %v19462_v59 = vand.u32 127, %v243_v55 }
  0x48   :  { %s22048_s3 = smov 113   ;;  %s22050_s6 = smov 112  }
  0x49   :  { %s22054_s12 = smov 111   ;;  %s22122_s1 = sld [smem:[#allocation28_spill]]  ;;  %v19467_v62 = vsub.s32 0, %v251_v58  ;;  %v19469_v63 = vsub.s32 1, %v251_v58  ;;  %vm245_vm2 = vcmp.lt.s32.totalorder %v19462_v59, 17  ;;  %vm268_vm3 = vcmp.lt.s32.totalorder %v19462_v59, 16 }
  0x4a   :  { %vm292_vm4 = vcmp.lt.s32.totalorder %v19462_v59, 15  ;;  %vm316_vm5 = vcmp.lt.s32.totalorder %v19462_v59, 1  ;;  %vm357_vm6 = vcmp.lt.s32.totalorder %v19462_v59, 127  ;;  %vm381_vm7 = vcmp.lt.s32.totalorder %v19462_v59, 113  ;;  %s22145_s28 = smov 111   ;;  %s22159_s4 = sld [smem:[#allocation29_spill]] }
  0x4b   :  { %v15636_v14 = vld [vmem:[%s22121_s11 + $0x40] sm:$0xff]   ;;  %v15637_v16 = vld [vmem:[%s22121_s11 + $0x48] sm:$0xff]   ;;  %v15638_v21 = vld [vmem:[%s22121_s11 + $0x50] sm:$0xff]   ;;  %vm405_vm8 = vcmp.lt.s32.totalorder %v19462_v59, 112  ;;  %vm22068_vm9 = vcmp.lt.s32.totalorder %v19462_v59, 111  ;;  %vm4368_vm15 = vcmp.eq.s32.totalorder %v19462_v59, 0 }
  0x4c   :  { %18018 = vmatprep.subr.bf16.mxu1 %v15636_v14  ;;  %v15070_v15 = vld [vmem:[%s22121_s11] sm:$0xff]   ;;  %v15629_v17 = vld [vmem:[%s22121_s11 + $0x8] sm:$0xff]   ;;  %v15630_v23 = vld [vmem:[%s22121_s11 + $0x10] sm:$0xff]  }
  0x4d   :  { %18020 = vmatpush3.bf16.msra.mxu1 %v15070_v15  ;;  %v15639_v24 = vld [vmem:[%s22121_s11 + $0x58] sm:$0xff]   ;;  %v15640_v29 = vld [vmem:[%s22121_s11 + $0x60] sm:$0xff]   ;;  %v15641_v32 = vld [vmem:[%s22121_s11 + $0x68] sm:$0xff]  }
  0x4e   :  { %18022 = vmatprep.subr.bf16.mxu1 %v15637_v16  ;;  %v15631_v25 = vld [vmem:[%s22121_s11 + $0x18] sm:$0xff]   ;;  %v15632_v31 = vld [vmem:[%s22121_s11 + $0x20] sm:$0xff]   ;;  %v15633_v33 = vld [vmem:[%s22121_s11 + $0x28] sm:$0xff]  }
  0x4f   :  { %v15642_v37 = vld [vmem:[%s22121_s11 + $0x70] sm:$0xff]   ;;  %v15643_v40 = vld [vmem:[%s22121_s11 + $0x78] sm:$0xff]   ;;  %v784_v50 = vld [vmem:[%s22122_s1 + $0x8] sm:$0xff] }
  0x50   :  { %v15634_v39 = vld [vmem:[%s22121_s11 + $0x30] sm:$0xff]   ;;  %v15635_v41 = vld [vmem:[%s22121_s11 + $0x38] sm:$0xff]  }
  0x51   :  { %18024 = vmatpush3.bf16.msra.mxu1 %v15629_v17 }
  0x52   :  { %18026 = vmatprep.subr.bf16.mxu1 %v15638_v21 }
  0x55   :  { %18028 = vmatpush3.bf16.msra.mxu1 %v15630_v23 }
  0x56   :  { %18030 = vmatprep.subr.bf16.mxu1 %v15639_v24 }
  0x59   :  { %18032 = vmatpush3.bf16.msra.mxu1 %v15631_v25 }
  0x5a   :  { %18034 = vmatprep.subr.bf16.mxu1 %v15640_v29 }
  0x5d   :  { %18036 = vmatpush3.bf16.msra.mxu1 %v15632_v31 }
  0x5e   :  { %18038 = vmatprep.subr.bf16.mxu1 %v15641_v32 }
  0x61   :  { %18040 = vmatpush3.bf16.msra.mxu1 %v15633_v33 }
  0x62   :  { %18042 = vmatprep.subr.bf16.mxu1 %v15642_v37 }
  0x65   :  { %18044 = vmatpush3.bf16.msra.mxu1 %v15634_v39 }
  0x66   :  { %18046 = vmatprep.subr.bf16.mxu1 %v15643_v40 }
  0x69   :  { %18048 = vmatpush3.bf16.msra.mxu1 %v15635_v41 }
  0x9d   :  { %v237_v53 = vpop.permute.xlu0 %236 }
  0xf7   :  { %v186_v18 = vpop.f32.mrb[0].mxu0 }
  0xf8   :  { %239 = vrot.lane.b32.xlu0 %v186_v18, %s22058_s5  ;;  %v188_v19 = vpop.f32.mrb[1].mxu0 }
  0xf9   :  { %241 = vrot.lane.b32.xlu1 %v188_v19, %s22058_s5  ;;  %v190_v20 = vpop.f32.mrb[2].mxu0  ;;  %s22141_s5 = smov 1  }
  0xfa   :  { %v192_v22 = vpop.f32.mrb[3].mxu0 }
  0xfc   :  { %266 = vrot.lane.b32.xlu0 %v192_v22, %s22056_s29 }
  0xfd   :  { %264 = vrot.lane.b32.xlu1 %v190_v20, %s22056_s29  ;;  %s22138_s29 = smov 17  }
  0xff   :  { %v196_v26 = vpop.f32.mrb[4].mxu0 }
 0x100   :  { %v198_v27 = vpop.f32.mrb[5].mxu0 }
 0x101   :  { %288 = vrot.lane.b32.xlu1 %v196_v26, %s22046_s8  ;;  %290 = vrot.lane.b32.xlu0 %v198_v27, %s22046_s8  ;;  %v200_v28 = vpop.f32.mrb[6].mxu0  ;;  %s22142_s8 = smov 127  }
 0x102   :  { %v202_v30 = vpop.f32.mrb[7].mxu0 }
 0x105   :  { %312 = vrot.lane.b32.xlu1 %v200_v28, %s22044_s7  ;;  %314 = vrot.lane.b32.xlu0 %v202_v30, %s22044_s7  ;;  %s22133_s7 = sld [smem:[#allocation27_spill]] }
 0x107   :  { %v19429_v34 = vpop.f32.mrb[8].mxu0 }
 0x108   :  { %v19431_v35 = vpop.f32.mrb[9].mxu0 }
 0x109   :  { %v210_v36 = vpop.f32.mrb[10].mxu0 }
 0x10a   :  { %353 = vrot.lane.b32.xlu1 %v210_v36, %s22052_s10  ;;  %v212_v38 = vpop.f32.mrb[11].mxu0 }
 0x10b   :  { %355 = vrot.lane.b32.xlu0 %v212_v38, %s22052_s10  ;;  %s22132_s10 = sld [smem:[#allocation29_spill]] }
 0x10f   :  { %v216_v42 = vpop.f32.mrb[12].mxu0 }
 0x110   :  { %377 = vrot.lane.b32.xlu1 %v216_v42, %s22048_s3  ;;  %v218_v43 = vpop.f32.mrb[13].mxu0 }
 0x111   :  { %379 = vrot.lane.b32.xlu0 %v218_v43, %s22048_s3  ;;  %v220_v44 = vpop.f32.mrb[14].mxu0  ;;  %s22123_s3 = sld [smem:[#allocation31_spill]] }
 0x112   :  { %v222_v45 = vpop.f32.mrb[15].mxu0 }
 0x114   :  { %401 = vrot.lane.b32.xlu1 %v220_v44, %s22050_s6 }
 0x115   :  { %403 = vrot.lane.b32.xlu0 %v222_v45, %s22050_s6  ;;  %s22134_s6 = sld [smem:[#allocation30_spill]] }
 0x117   :  { %v226_v46 = vpop.f32.mrb[16].mxu0  ;;  %v2057_v51 = vld [vmem:[%s22123_s3 + $0x8] sm:$0xff]  ;;  %v2059_v52 = vld [vmem:[%s22123_s3 + $0x18] sm:$0xff] }
 0x118   :  { %425 = vrot.lane.b32.xlu1 %v226_v46, %s22054_s12  ;;  %v228_v47 = vpop.f32.mrb[17].mxu0 }
 0x119   :  { %427 = vrot.lane.b32.xlu0 %v228_v47, %s22054_s12  ;;  %v230_v48 = vpop.f32.mrb[18].mxu0  ;;  %s22124_s12 = sld [smem:[#allocation26_spill]] }
 0x11a   :  { %v231_v49 = vpop.f32.mrb[19].mxu0 }
 0x11d   :  { %792 = vperm.xlu0 %18958, %v784_v50  }
 0x11f   :  { %v248_v61 = vld [vmem:[%s22124_s12] sm:$0x3]  ;;  %v14188_v2 = vld [vmem:[%s22124_s12 + $0x2] sm:$0x3]  ;;  %v14189_v6 = vld [vmem:[%s22124_s12 + $0x4] sm:$0x3] }
 0x120   :  { %v19476_v3 = vrot.slane %v248_v61, %v19467_v62  ;;  %v19479_v5 = vrot.slane %v248_v61, %v19469_v63  ;;  %v19490_v9 = vrot.slane %v14188_v2, %v19467_v62  ;;  %v19493_v10 = vrot.slane %v14188_v2, %v19469_v63  ;;  %v14190_v15 = vld [vmem:[%s22124_s12 + $0x6] sm:$0x3]  ;;  %v14191_v28 = vld [vmem:[%s22124_s12 + $0x8] sm:$0x3]  ;;  %v14192_v33 = vld [vmem:[%s22124_s12 + $0xa] sm:$0x3] }
 0x121   :  { %2067 = vperm.xlu0 %18958, %v2057_v51   ;;  %v19501_v13 = vrot.slane %v14189_v6, %v19467_v62  ;;  %v19509_v18 = vrot.slane %v14189_v6, %v19469_v63  ;;  %v19519_v24 = vrot.slane %v14190_v15, %v19467_v62  ;;  %v19522_v25 = vrot.slane %v14190_v15, %v19469_v63  ;;  %v14193_v42 = vld [vmem:[%s22124_s12 + $0xc] sm:$0x3]  ;;  %v14194_v49 = vld [vmem:[%s22124_s12 + $0xe] sm:$0x3] }
 0x122   :  { %v19543_v43 = vrot.slane %v14191_v28, %v19467_v62  ;;  %v19546_v44 = vrot.slane %v14191_v28, %v19469_v63  ;;  %v19549_v45 = vrot.slane %v14192_v33, %v19467_v62  ;;  %v19552_v48 = vrot.slane %v14192_v33, %v19469_v63 }
 0x123   :  { %v19574_v61 = vrot.slane %v14194_v49, %v19467_v62 }
 0x124   :  { %22125 = vst [vmem:[#allocation5_spill] sm:$0xff] %v19552_v48  ;;  %v350_v2 = vmul.f32 %v19546_v44, %v19431_v35 }
 0x125   :  { %2077 = vperm.xlu0 %18958, %v2059_v52   ;;  %22128 = vst [vmem:[#allocation8_spill] sm:$0xff] %v19574_v61 }
 0x16a   :  { %v240_v54 = vpop.permute.xlu0 %239 }
 0x16b   :  { %v242_v56 = vpop.permute.xlu1 %241 }
 0x16c   :  { %v246_v7 = vsel %vm245_vm2, %v240_v54, %v242_v56  ;;  %v247_v8 = vsel %vm245_vm2, %v242_v56, %v240_v54  ;;  %v19566_v56 = vrot.slane %v14193_v42, %v19469_v63 }
 0x16d   :  { %v260_v16 = vmul.f32 %v19476_v3, %v247_v8  ;;  %v261_v17 = vmul.f32 %v19479_v5, %v246_v7  ;;  %v14195_v8 = vld [vmem:[%s22124_s12 + $0x10] sm:$0x3] }
 0x16e   :  { %v267_v57 = vpop.permute.xlu0 %266  ;;  %22127 = vst [vmem:[#allocation7_spill] sm:$0xff] %v19566_v56 }
 0x16f   :  { %v265_v60 = vpop.permute.xlu1 %264  ;;  %v262_v29 = vadd.f32 %v260_v16, %v237_v53  ;;  %v263_v30 = vadd.f32 %v261_v17, %v237_v53  ;;  %v19563_v53 = vrot.slane %v14193_v42, %v19467_v62  ;;  %v15134_v42 = vld [vmem:[%s22132_s10] sm:$0xff]  }
 0x170   :  { %v269_v11 = vsel %vm268_vm3, %v265_v60, %v267_v57  ;;  %v270_v12 = vsel %vm268_vm3, %v267_v57, %v265_v60  ;;  %18050 = vmatprep.subr.bf16.mxu0 %v15134_v42 }
 0x171   :  { %v284_v22 = vmul.f32 %v19490_v9, %v270_v12  ;;  %v285_v23 = vmul.f32 %v19493_v10, %v269_v11  ;;  %22126 = vst [vmem:[#allocation6_spill] sm:$0xff] %v19563_v53  ;;  %18052 = vmatpush3.bf16.msra.mxu0 %v15134_v42 }
 0x173   :  { %v289_v0 = vpop.permute.xlu1 %288  ;;  %v291_v1 = vpop.permute.xlu0 %290  ;;  %v286_v37 = vadd.f32 %v284_v22, %v262_v29  ;;  %v287_v38 = vadd.f32 %v285_v23, %v263_v30 }
 0x174   :  { %v293_v20 = vsel %vm292_vm4, %v289_v0, %v291_v1  ;;  %v294_v21 = vsel %vm292_vm4, %v291_v1, %v289_v0  ;;  %v19577_v0 = vrot.slane %v14194_v49, %v19469_v63  ;;  %v349_v1 = vmul.f32 %v19543_v43, %v19429_v34  ;;  %v15646_v49 = vld [vmem:[%s22132_s10 + $0x18] sm:$0xff]  }
 0x175   :  { %v308_v31 = vmul.f32 %v19501_v13, %v294_v21  ;;  %v309_v32 = vmul.f32 %v19509_v18, %v293_v20  ;;  %v19599_v20 = vrot.slane %v14195_v8, %v19469_v63 }
 0x176   :  { %22129 = vst [vmem:[#allocation9_spill] sm:$0xff] %v19577_v0 }
 0x177   :  { %v313_v14 = vpop.permute.xlu1 %312  ;;  %v315_v19 = vpop.permute.xlu0 %314  ;;  %v310_v46 = vadd.f32 %v308_v31, %v286_v37  ;;  %v311_v47 = vadd.f32 %v309_v32, %v287_v38  ;;  %22131 = vst [vmem:[#allocation11_spill] sm:$0xff] %v19599_v20 }
 0x178   :  { %v317_v26 = vsel %vm316_vm5, %v313_v14, %v315_v19  ;;  %v318_v27 = vsel %vm316_vm5, %v315_v19, %v313_v14  ;;  %v19596_v19 = vrot.slane %v14195_v8, %v19467_v62  ;;  %v18971_v8 = vld [vmem:[%s22133_s7 + $0x30] sm:$0xff]  }
 0x179   :  { %v332_v39 = vmul.f32 %v19519_v24, %v318_v27  ;;  %v333_v40 = vmul.f32 %v19522_v25, %v317_v26 }
 0x17a   :  { %22130 = vst [vmem:[#allocation10_spill] sm:$0xff] %v19596_v19 }
 0x17b   :  { %v334_v54 = vadd.f32 %v332_v39, %v310_v46  ;;  %v335_v55 = vadd.f32 %v333_v40, %v311_v47  ;;  %v15644_v46 = vld [vmem:[%s22132_s10 + $0x8] sm:$0xff]   ;;  %v15645_v47 = vld [vmem:[%s22132_s10 + $0x10] sm:$0xff]  }
 0x17c   :  { %v354_v36 = vpop.permute.xlu1 %353  ;;  %18054 = vmatprep.subr.bf16.mxu0 %v15644_v46 }
 0x17d   :  { %v356_v41 = vpop.permute.xlu0 %355  ;;  %v351_v12 = vadd.f32 %v349_v1, %v334_v54  ;;  %v352_v14 = vadd.f32 %v350_v2, %v335_v55  ;;  %18056 = vmatpush3.bf16.msra.mxu0 %v15644_v46  ;;  %v18967_v1 = vld [vmem:[%s22133_s7 + $0x10] sm:$0xff]   ;;  %v18968_v2 = vld [vmem:[%s22133_s7 + $0x18] sm:$0xff]  }
 0x17e   :  { %v358_v50 = vsel %vm357_vm6, %v354_v36, %v356_v41  ;;  %v359_v51 = vsel %vm357_vm6, %v356_v41, %v354_v36  ;;  %v22079_v41 = vmov 0.0   ;;  %18058 = vmatprep.subr.bf16.mxu0 %v15645_v47 }
 0x17f   :  { %v373_v6 = vmul.f32 %v19549_v45, %v358_v50  ;;  %v374_v7 = vmul.f32 %v19552_v48, %v359_v51  ;;  %16527 = vmatprep.subr.bf16.mxu1 %v22079_v41 }
 0x181   :  { %v375_v21 = vadd.f32 %v373_v6, %v351_v12  ;;  %v376_v22 = vadd.f32 %v374_v7, %v352_v14  ;;  %18060 = vmatpush3.bf16.msra.mxu0 %v15645_v47  ;;  %v18969_v6 = vld [vmem:[%s22133_s7 + $0x20] sm:$0xff]   ;;  %v18970_v7 = vld [vmem:[%s22133_s7 + $0x28] sm:$0xff]   ;;  %v15654_v47 = vld [vmem:[%s22132_s10 + $0x58] sm:$0xff]  }
 0x182   :  { %v378_v52 = vpop.permute.xlu1 %377  ;;  %18062 = vmatprep.subr.bf16.mxu0 %v15646_v49  ;;  %v18973_v12 = vld [vmem:[%s22133_s7 + $0x40] sm:$0xff]  }
 0x183   :  { %v380_v57 = vpop.permute.xlu0 %379  ;;  %v15647_v14 = vld [vmem:[%s22132_s10 + $0x20] sm:$0xff]  }
 0x184   :  { %v382_v58 = vsel %vm381_vm7, %v378_v52, %v380_v57  ;;  %v383_v60 = vsel %vm381_vm7, %v380_v57, %v378_v52 }
 0x185   :  { %v397_v15 = vmul.f32 %v19563_v53, %v382_v58  ;;  %v398_v34 = vmul.f32 %v19566_v56, %v383_v60  ;;  %18064 = vmatpush3.bf16.msra.mxu0 %v15646_v49  ;;  %v18965_v58 = vld [vmem:[%s22133_s7] sm:$0xff]   ;;  %v18966_v60 = vld [vmem:[%s22133_s7 + $0x8] sm:$0xff]  }
 0x186   :  { %v402_v11 = vpop.permute.xlu1 %401  ;;  %18066 = vmatprep.subr.bf16.mxu0 %v15647_v14 }
 0x187   :  { %v404_v16 = vpop.permute.xlu0 %403  ;;  %v399_v28 = vadd.f32 %v397_v15, %v375_v21  ;;  %v400_v30 = vadd.f32 %v398_v34, %v376_v22  ;;  %v783_v21 = vld [vmem:[%s22122_s1] sm:$0xff] }
 0x188   :  { %v406_v35 = vsel %vm405_vm8, %v402_v11, %v404_v16  ;;  %v407_v17 = vsel %vm405_vm8, %v404_v16, %v402_v11  ;;  %v18972_v11 = vld [vmem:[%s22133_s7 + $0x38] sm:$0xff]   ;;  %787 = vperm.xlu1 %18959, %v783_v21   ;;  %v2056_v22 = vld [vmem:[%s22123_s3] sm:$0xff]  ;;  %s22136_s7 = sld [smem:[#allocation33_spill]] }
 0x189   :  { %v421_v23 = vmul.f32 %v19574_v61, %v406_v35  ;;  %v422_v26 = vmul.f32 %v19577_v0, %v407_v17  ;;  %v15648_v35 = vld [vmem:[%s22132_s10 + $0x28] sm:$0xff]  }
 0x18a   :  { %v426_v27 = vpop.permute.xlu1 %425 }
 0x18b   :  { %v428_v29 = vpop.permute.xlu0 %427  ;;  %v423_v33 = vadd.f32 %v421_v23, %v399_v28  ;;  %v424_v37 = vadd.f32 %v422_v26, %v400_v30  ;;  %v15649_v23 = vld [vmem:[%s22132_s10 + $0x30] sm:$0xff]  }
 0x18c   :  { %v430_v31 = vsel %vm22068_vm9, %v426_v27, %v428_v29  ;;  %v431_v32 = vsel %vm22068_vm9, %v428_v29, %v426_v27  ;;  %2062 = vperm.xlu1 %18959, %v2056_v22   ;;  %v2058_v28 = vld [vmem:[%s22123_s3 + $0x10] sm:$0xff]  ;;  %v15650_v29 = vld [vmem:[%s22132_s10 + $0x38] sm:$0xff]   ;;  %vm4395_vm9 = vcmp.eq.s32.totalorder %v19462_v59, 1 }
 0x18d   :  { %v445_v36 = vmul.f32 %v19596_v19, %v430_v31  ;;  %v446_v38 = vmul.f32 %v19599_v20, %v431_v32  ;;  %v15651_v32 = vld [vmem:[%s22132_s10 + $0x40] sm:$0xff]  }
 0x18f   :  { %v448_v39 = vadd.f32 %v446_v38, %v424_v37  ;;  %v447_v40 = vadd.f32 %v445_v36, %v423_v33  ;;  %v15652_v37 = vld [vmem:[%s22132_s10 + $0x48] sm:$0xff]  }
 0x190   :  { %2072 = vperm.xlu1 %18959, %v2058_v28   ;;  %v15663_v28 = vld [vmem:[%s22132_s10 + $0xa0] sm:$0xff]  }
 0x191   :  { %577 = vmatprep.mubr.f32.mxu1 %v448_v39 }
 0x192   :  { %578 = vmatmul.mubr.f32.vlgmr.msra.gmra.mrb[0].mxu1 %v447_v40  ;;  %v15653_v40 = vld [vmem:[%s22132_s10 + $0x50] sm:$0xff]  }
 0x193   :  { %16529 = vmatprep.mubr.msk.bf16.mxu1 %vm19198_vm10, %v22079_v41 }
 0x265   :  { %v15793_v50 = vpop.f32.mrb[0].mxu1 }
 0x266   :  { %v15794_v51 = vpop.f32.mrb[1].mxu1 }
 0x267   :  { %v15795_v52 = vadd.f32 %v15794_v51, %v15793_v50  ;;  %v15655_v51 = vld [vmem:[%s22132_s10 + $0x60] sm:$0xff]  }
 0x269   :  { %v583_v54 = vmax.f32 %v15795_v52, 0.0 }
 0x26b   :  { %v602_v55 = vpack.c.bf16 %v583_v54, %v583_v54 }
 0x26d   :  { %v19625_v57 = vsel %vm145_vm0, %v602_v55, 0  ;;  %v15656_v55 = vld [vmem:[%s22132_s10 + $0x68] sm:$0xff]  }
 0x26e   :  { %16528 = vmatpush3.bf16.msra.mxu1 %v19625_v57 }
 0x271   :  { %16530 = vmatmul.mubr.msk.bf16.vlgmr.msra.gmra.mrb[4].mxu1 %vm129_vm1, %v18965_v58 }
 0x272   :  { %16533 = vmatprep.mubr.msk.bf16.mxu1 %vm19198_vm10, %v22079_v41 }
 0x279   :  { %16534 = vmatmul.mubr.msk.bf16.gmra.mrb[8].mxu1 %vm129_vm1, %v18966_v60 }
 0x27a   :  { %16537 = vmatprep.mubr.msk.bf16.mxu1 %vm19198_vm10, %v22079_v41 }
 0x281   :  { %16538 = vmatmul.mubr.msk.bf16.gmra.mrb[12].mxu1 %vm129_vm1, %v18967_v1  ;;  %v15657_v1 = vld [vmem:[%s22132_s10 + $0x70] sm:$0xff]  }
 0x282   :  { %16541 = vmatprep.mubr.msk.bf16.mxu1 %vm19198_vm10, %v22079_v41 }
 0x289   :  { %16542 = vmatmul.mubr.msk.bf16.gmra.mrb[16].mxu1 %vm129_vm1, %v18968_v2 }
 0x28a   :  { %16545 = vmatprep.mubr.msk.bf16.mxu1 %vm19198_vm10, %v22079_v41 }
 0x291   :  { %16546 = vmatmul.mubr.msk.bf16.gmra.mrb[20].mxu1 %vm129_vm1, %v18969_v6 }
 0x292   :  { %16549 = vmatprep.mubr.msk.bf16.mxu1 %vm19198_vm10, %v22079_v41 }
 0x299   :  { %16550 = vmatmul.mubr.msk.bf16.gmra.mrb[24].mxu1 %vm129_vm1, %v18970_v7  ;;  %v15658_v7 = vld [vmem:[%s22132_s10 + $0x78] sm:$0xff]  }
 0x29a   :  { %16553 = vmatprep.mubr.msk.bf16.mxu1 %vm19198_vm10, %v22079_v41 }
 0x2a1   :  { %16554 = vmatmul.mubr.msk.bf16.gmra.mrb[28].mxu1 %vm129_vm1, %v18971_v8 }
 0x2a2   :  { %16557 = vmatprep.mubr.msk.bf16.mxu1 %vm19198_vm10, %v22079_v41 }
 0x2a9   :  { %16558 = vmatmul.mubr.msk.bf16.gmra.mrb[32].mxu1 %vm129_vm1, %v18972_v11 }
 0x2aa   :  { %16561 = vmatprep.mubr.msk.bf16.mxu1 %vm19198_vm10, %v22079_v41 }
 0x2b1   :  { %16562 = vmatmul.mubr.msk.bf16.gmra.mrb[36].mxu1 %vm129_vm1, %v18973_v12  ;;  %v15659_v12 = vld [vmem:[%s22132_s10 + $0x80] sm:$0xff]  }
 0x344   :  { %v712_v15 = vpop.f32.mrb[4].mxu1 }
 0x345   :  { %v16531_v34 = vpop.f32.mrb[5].mxu1  ;;  %16581 = vmatprep.mubr.msk.f32.mxu0 %vm811_vm11, %v712_v15 }
 0x346   :  { %v715_v16 = vpop.f32.mrb[6].mxu1  ;;  %v15660_v34 = vld [vmem:[%s22132_s10 + $0x88] sm:$0xff]  }
 0x347   :  { %v16532_v17 = vpop.f32.mrb[7].mxu1  ;;  %16582 = vmatmul.mubr.msk.f32.vlgmr.msra.gmra.mrb[20].mxu0 %vm811_vm11, %v715_v16 }
 0x348   :  { %18068 = vmatpush3.bf16.msra.mxu0 %v15647_v14  ;;  %v15661_v17 = vld [vmem:[%s22132_s10 + $0x90] sm:$0xff]  }
 0x349   :  { %18070 = vmatprep.subr.bf16.mxu0 %v15648_v35 }
 0x34c   :  { %18072 = vmatpush3.bf16.msra.mxu0 %v15648_v35  ;;  %v720_v26 = vpop.f32.mrb[8].mxu1 }
 0x34d   :  { %18074 = vmatprep.subr.bf16.mxu0 %v15649_v23  ;;  %v16535_v27 = vpop.f32.mrb[9].mxu1  ;;  %16600 = vmatprep.mubr.msk.f32.mxu0 %vm811_vm11, %v720_v26 }
 0x34e   :  { %v723_v30 = vpop.f32.mrb[10].mxu1 }
 0x34f   :  { %v16536_v31 = vpop.f32.mrb[11].mxu1 }
 0x350   :  { %18076 = vmatpush3.bf16.msra.mxu0 %v15649_v23  ;;  %v15662_v23 = vld [vmem:[%s22132_s10 + $0x98] sm:$0xff]   ;;  %v15664_v31 = vld [vmem:[%s22132_s10 + $0xa8] sm:$0xff]  }
 0x351   :  { %18078 = vmatprep.subr.bf16.mxu0 %v15650_v29 }
 0x354   :  { %18080 = vmatpush3.bf16.msra.mxu0 %v15650_v29  ;;  %v728_v33 = vpop.f32.mrb[12].mxu1 }
 0x355   :  { %18082 = vmatprep.subr.bf16.mxu0 %v15651_v32  ;;  %v16539_v36 = vpop.f32.mrb[13].mxu1 }
 0x356   :  { %v731_v38 = vpop.f32.mrb[14].mxu1  ;;  %v15665_v36 = vld [vmem:[%s22132_s10 + $0xb0] sm:$0xff]  }
 0x357   :  { %16601 = vmatmul.mubr.msk.f32.vlgmr.msra.gmra.mrb[20].mxu0 %vm811_vm11, %v723_v30  ;;  %v16540_v39 = vpop.f32.mrb[15].mxu1 }
 0x358   :  { %18084 = vmatpush3.bf16.msra.mxu0 %v15651_v32  ;;  %16619 = vmatprep.mubr.msk.f32.mxu0 %vm811_vm11, %v728_v33  ;;  %v15668_v39 = vld [vmem:[%s22132_s10 + $0xc8] sm:$0xff]  }
 0x359   :  { %18086 = vmatprep.subr.bf16.mxu0 %v15652_v37 }
 0x35c   :  { %18088 = vmatpush3.bf16.msra.mxu0 %v15652_v37  ;;  %v736_v42 = vpop.f32.mrb[16].mxu1  ;;  %v15666_v37 = vld [vmem:[%s22132_s10 + $0xb8] sm:$0xff]  }
 0x35d   :  { %18090 = vmatprep.subr.bf16.mxu0 %v15653_v40  ;;  %v16543_v46 = vpop.f32.mrb[17].mxu1 }
 0x35e   :  { %v739_v49 = vpop.f32.mrb[18].mxu1  ;;  %v15671_v46 = vld [vmem:[%s22132_s10 + $0xe0] sm:$0xff]  }
 0x35f   :  { %v16544_v50 = vpop.f32.mrb[19].mxu1 }
 0x360   :  { %18092 = vmatpush3.bf16.msra.mxu0 %v15653_v40  ;;  %v15669_v40 = vld [vmem:[%s22132_s10 + $0xd0] sm:$0xff]   ;;  %v15674_v50 = vld [vmem:[%s22132_s10 + $0xf8] sm:$0xff]  }
 0x361   :  { %18094 = vmatprep.subr.bf16.mxu0 %v15654_v47 }
 0x364   :  { %18096 = vmatpush3.bf16.msra.mxu0 %v15654_v47  ;;  %v744_v52 = vpop.f32.mrb[20].mxu1  ;;  %v15672_v47 = vld [vmem:[%s22132_s10 + $0xe8] sm:$0xff]  }
 0x365   :  { %18098 = vmatprep.subr.bf16.mxu0 %v15655_v51  ;;  %v16547_v54 = vpop.f32.mrb[21].mxu1 }
 0x366   :  { %v747_v58 = vpop.f32.mrb[22].mxu1  ;;  %v15677_v54 = vld [vmem:[%s22132_s10 + $0x110] sm:$0xff]  }
 0x367   :  { %16620 = vmatmul.mubr.msk.f32.vlgmr.msra.gmra.mrb[20].mxu0 %vm811_vm11, %v731_v38  ;;  %v16548_v60 = vpop.f32.mrb[23].mxu1  ;;  %v15667_v38 = vld [vmem:[%s22132_s10 + $0xc0] sm:$0xff]  }
 0x368   :  { %18100 = vmatpush3.bf16.msra.mxu0 %v15655_v51  ;;  %16638 = vmatprep.mubr.msk.f32.mxu0 %vm811_vm11, %v736_v42  ;;  %v15670_v42 = vld [vmem:[%s22132_s10 + $0xd8] sm:$0xff]   ;;  %v15675_v51 = vld [vmem:[%s22132_s10 + $0x100] sm:$0xff]   ;;  %v793_v60 = vpop.permute.xlu0 %792 }
 0x369   :  { %18102 = vmatprep.subr.bf16.mxu0 %v15656_v55 }
 0x36c   :  { %18104 = vmatpush3.bf16.msra.mxu0 %v15656_v55  ;;  %v752_v2 = vpop.f32.mrb[24].mxu1  ;;  %v15678_v55 = vld [vmem:[%s22132_s10 + $0x118] sm:$0xff]  }
 0x36d   :  { %18106 = vmatprep.subr.bf16.mxu0 %v15657_v1  ;;  %v16551_v6 = vpop.f32.mrb[25].mxu1 }
 0x36e   :  { %v755_v8 = vpop.f32.mrb[26].mxu1 }
 0x36f   :  { %v16552_v11 = vpop.f32.mrb[27].mxu1 }
 0x370   :  { %18108 = vmatpush3.bf16.msra.mxu0 %v15657_v1 }
 0x371   :  { %18110 = vmatprep.subr.bf16.mxu0 %v15658_v7 }
 0x374   :  { %18112 = vmatpush3.bf16.msra.mxu0 %v15658_v7  ;;  %v760_v14 = vpop.f32.mrb[28].mxu1 }
 0x375   :  { %18114 = vmatprep.subr.bf16.mxu0 %v15659_v12  ;;  %v16555_v15 = vpop.f32.mrb[29].mxu1 }
 0x376   :  { %v763_v16 = vpop.f32.mrb[30].mxu1  ;;  %v18975_v15 = vld [vmem:[%s22134_s6 + $0x8] sm:$0xff]  }
 0x377   :  { %16639 = vmatmul.mubr.msk.f32.vlgmr.msra.gmra.mrb[20].mxu0 %vm811_vm11, %v739_v49  ;;  %v16556_v35 = vpop.f32.mrb[31].mxu1  ;;  %v15673_v49 = vld [vmem:[%s22132_s10 + $0xf0] sm:$0xff]  }
 0x378   :  { %18116 = vmatpush3.bf16.msra.mxu0 %v15659_v12  ;;  %16657 = vmatprep.mubr.msk.f32.mxu0 %vm811_vm11, %v744_v52  ;;  %v15676_v52 = vld [vmem:[%s22132_s10 + $0x108] sm:$0xff]   ;;  %v18978_v35 = vld [vmem:[%s22134_s6 + $0x20] sm:$0xff]   ;;  %s22135_s10 = sld [smem:[#allocation32_spill]] }
 0x379   :  { %18118 = vmatprep.subr.bf16.mxu0 %v15660_v34 }
 0x37c   :  { %18120 = vmatpush3.bf16.msra.mxu0 %v15660_v34  ;;  %v768_v21 = vpop.f32.mrb[32].mxu1  ;;  %v18976_v34 = vld [vmem:[%s22134_s6 + $0x10] sm:$0xff]  }
 0x37d   :  { %18122 = vmatprep.subr.bf16.mxu0 %v15661_v17  ;;  %v16559_v22 = vpop.f32.mrb[33].mxu1 }
 0x37e   :  { %v771_v26 = vpop.f32.mrb[34].mxu1  ;;  %v18981_v22 = vld [vmem:[%s22134_s6 + $0x38] sm:$0xff]  }
 0x37f   :  { %v16560_v27 = vpop.f32.mrb[35].mxu1 }
 0x380   :  { %18124 = vmatpush3.bf16.msra.mxu0 %v15661_v17  ;;  %v18979_v17 = vld [vmem:[%s22134_s6 + $0x28] sm:$0xff]   ;;  %v18984_v27 = vld [vmem:[%s22134_s6 + $0x50] sm:$0xff]  }
 0x381   :  { %18126 = vmatprep.subr.bf16.mxu0 %v15662_v23 }
 0x384   :  { %18128 = vmatpush3.bf16.msra.mxu0 %v15662_v23  ;;  %v776_v29 = vpop.f32.mrb[36].mxu1  ;;  %v18982_v23 = vld [vmem:[%s22134_s6 + $0x40] sm:$0xff]  }
 0x385   :  { %18130 = vmatprep.subr.bf16.mxu0 %v15663_v28  ;;  %v16563_v30 = vpop.f32.mrb[37].mxu1 }
 0x386   :  { %v779_v32 = vpop.f32.mrb[38].mxu1  ;;  %v18987_v30 = vld [vmem:[%s22134_s6 + $0x68] sm:$0xff]  }
 0x387   :  { %16658 = vmatmul.mubr.msk.f32.vlgmr.msra.gmra.mrb[20].mxu0 %vm811_vm11, %v747_v58  ;;  %v16564_v33 = vpop.f32.mrb[39].mxu1  ;;  %v18974_v58 = vld [vmem:[%s22134_s6] sm:$0xff]  }
 0x388   :  { %18132 = vmatpush3.bf16.msra.mxu0 %v15663_v28  ;;  %16676 = vmatprep.mubr.msk.f32.mxu0 %vm811_vm11, %v752_v2  ;;  %v788_v2 = vpop.permute.xlu1 %787  ;;  %v18985_v28 = vld [vmem:[%s22134_s6 + $0x58] sm:$0xff]   ;;  %v18990_v33 = vld [vmem:[%s22134_s6 + $0x80] sm:$0xff]  }
 0x389   :  { %18134 = vmatprep.subr.bf16.mxu0 %v15664_v31  ;;  %16738 = vmatprep.mubr.msk.bf16.mxu1 %vm1824_vm12, %v18974_v58 }
 0x38c   :  { %18136 = vmatpush3.bf16.msra.mxu0 %v15664_v31  ;;  %v18988_v31 = vld [vmem:[%s22134_s6 + $0x70] sm:$0xff]  }
 0x38d   :  { %18138 = vmatprep.subr.bf16.mxu0 %v15665_v36 }
 0x390   :  { %18140 = vmatpush3.bf16.msra.mxu0 %v15665_v36  ;;  %v18991_v36 = vld [vmem:[%s22134_s6 + $0x88] sm:$0xff]  }
 0x391   :  { %18142 = vmatprep.subr.bf16.mxu0 %v15666_v37 }
 0x394   :  { %18144 = vmatpush3.bf16.msra.mxu0 %v15666_v37  ;;  %v15278_v37 = vld [vmem:[%s22135_s10] sm:$0xff]  }
 0x395   :  { %18146 = vmatprep.subr.bf16.mxu0 %v15667_v38 }
 0x397   :  { %16677 = vmatmul.mubr.msk.f32.vlgmr.msra.gmra.mrb[20].mxu0 %vm811_vm11, %v755_v8 }
 0x398   :  { %18148 = vmatpush3.bf16.msra.mxu0 %v15667_v38  ;;  %16695 = vmatprep.mubr.msk.f32.mxu0 %vm811_vm11, %v760_v14  ;;  %v15679_v38 = vld [vmem:[%s22135_s10 + $0x8] sm:$0xff]  }
 0x399   :  { %18150 = vmatprep.subr.bf16.mxu0 %v15668_v39 }
 0x39c   :  { %18152 = vmatpush3.bf16.msra.mxu0 %v15668_v39 }
 0x39d   :  { %18154 = vmatprep.subr.bf16.mxu0 %v15669_v40 }
 0x3a0   :  { %18156 = vmatpush3.bf16.msra.mxu0 %v15669_v40 }
 0x3a1   :  { %18158 = vmatprep.subr.bf16.mxu0 %v15670_v42 }
 0x3a4   :  { %18160 = vmatpush3.bf16.msra.mxu0 %v15670_v42 }
 0x3a5   :  { %18162 = vmatprep.subr.bf16.mxu0 %v15671_v46 }
 0x3a7   :  { %16696 = vmatmul.mubr.msk.f32.vlgmr.msra.gmra.mrb[20].mxu0 %vm811_vm11, %v763_v16  ;;  %v18977_v16 = vld [vmem:[%s22134_s6 + $0x18] sm:$0xff]  }
 0x3a8   :  { %18164 = vmatpush3.bf16.msra.mxu0 %v15671_v46  ;;  %16714 = vmatprep.mubr.msk.f32.mxu0 %vm811_vm11, %v768_v21  ;;  %v18980_v21 = vld [vmem:[%s22134_s6 + $0x30] sm:$0xff]  }
 0x3a9   :  { %18166 = vmatprep.subr.bf16.mxu0 %v15672_v47 }
 0x3ac   :  { %18168 = vmatpush3.bf16.msra.mxu0 %v15672_v47  ;;  %v15680_v47 = vld [vmem:[%s22135_s10 + $0x10] sm:$0xff]  }
 0x3ad   :  { %18170 = vmatprep.subr.bf16.mxu0 %v15673_v49 }
 0x3b0   :  { %18172 = vmatpush3.bf16.msra.mxu0 %v15673_v49 }
 0x3b1   :  { %18174 = vmatprep.subr.bf16.mxu0 %v15674_v50 }
 0x3b4   :  { %18176 = vmatpush3.bf16.msra.mxu0 %v15674_v50 }
 0x3b5   :  { %18178 = vmatprep.subr.bf16.mxu0 %v15675_v51 }
 0x3b7   :  { %16715 = vmatmul.mubr.msk.f32.vlgmr.msra.gmra.mrb[20].mxu0 %vm811_vm11, %v771_v26  ;;  %v18983_v26 = vld [vmem:[%s22134_s6 + $0x48] sm:$0xff]  }
 0x3b8   :  { %18180 = vmatpush3.bf16.msra.mxu0 %v15675_v51  ;;  %16733 = vmatprep.mubr.msk.f32.mxu0 %vm811_vm11, %v776_v29  ;;  %v18986_v29 = vld [vmem:[%s22134_s6 + $0x60] sm:$0xff]  }
 0x3b9   :  { %18182 = vmatprep.subr.bf16.mxu0 %v15676_v52 }
 0x3bc   :  { %18184 = vmatpush3.bf16.msra.mxu0 %v15676_v52 }
 0x3bd   :  { %18186 = vmatprep.subr.bf16.mxu0 %v15677_v54 }
 0x3c0   :  { %18188 = vmatpush3.bf16.msra.mxu0 %v15677_v54  ;;  %v15681_v54 = vld [vmem:[%s22135_s10 + $0x18] sm:$0xff]  }
 0x3c1   :  { %18190 = vmatprep.subr.bf16.mxu0 %v15678_v55 }
 0x3c4   :  { %18192 = vmatpush3.bf16.msra.mxu0 %v15678_v55 }
 0x3c5   :  { %18194 = vmatprep.subr.bf16.mxu0 %v15278_v37 }
 0x3c7   :  { %16734 = vmatmul.mubr.msk.f32.vlgmr.msra.gmra.mrb[20].mxu0 %vm811_vm11, %v779_v32  ;;  %v18989_v32 = vld [vmem:[%s22134_s6 + $0x78] sm:$0xff]  }
 0x3c8   :  { %18196 = vmatpush3.bf16.msra.mxu0 %v15278_v37 }
 0x3c9   :  { %18198 = vmatprep.subr.bf16.mxu0 %v15679_v38 }
 0x49a   :  { %v16735_v1 = vpop.f32.mrb[20].mxu0 }
 0x49b   :  { %v18527_v6 = vadd.f32 %v16735_v1, %v793_v60  ;;  %v1684_v7 = vpop.f32.mrb[21].mxu0 }
 0x49c   :  { %v18528_v8 = vadd.f32 %v1684_v7, %v788_v2  ;;  %v15682_v2 = vld [vmem:[%s22135_s10 + $0x20] sm:$0xff]  }
 0x49d   :  { %v1696_v11 = vmax.f32 %v18527_v6, 0.0 }
 0x49e   :  { %v1695_v12 = vmax.f32 %v18528_v8, 0.0 }
 0x4a0   :  { %v19807_v14 = vpack.c.bf16 %v1696_v11, %v1695_v12  ;;  %v15683_v12 = vld [vmem:[%s22135_s10 + $0x28] sm:$0xff]  }
 0x4a2   :  { %16736 = vmatprep.subr.bf16.mxu1 %v19807_v14 }
 0x4a3   :  { %16737 = vmatpush3.bf16.msra.mxu1 %v19807_v14 }
 0x4a6   :  { %16739 = vmatmul.mubr.msk.bf16.vlgmr.msra.gmra.mrb[40].mxu1 %vm1824_vm12, %v18975_v15 }
 0x4a7   :  { %16742 = vmatprep.mubr.msk.bf16.mxu1 %vm1824_vm12, %v18976_v34 }
 0x4ae   :  { %16743 = vmatmul.mubr.msk.bf16.gmra.mrb[44].mxu1 %vm1824_vm12, %v18977_v16 }
 0x4af   :  { %16746 = vmatprep.mubr.msk.bf16.mxu1 %vm1824_vm12, %v18978_v35 }
 0x4b6   :  { %16747 = vmatmul.mubr.msk.bf16.gmra.mrb[48].mxu1 %vm1824_vm12, %v18979_v17  ;;  %v15684_v17 = vld [vmem:[%s22135_s10 + $0x30] sm:$0xff]  }
 0x4b7   :  { %16750 = vmatprep.mubr.msk.bf16.mxu1 %vm1824_vm12, %v18980_v21 }
 0x4be   :  { %16751 = vmatmul.mubr.msk.bf16.gmra.mrb[52].mxu1 %vm1824_vm12, %v18981_v22 }
 0x4bf   :  { %16754 = vmatprep.mubr.msk.bf16.mxu1 %vm1824_vm12, %v18982_v23 }
 0x4c6   :  { %16755 = vmatmul.mubr.msk.bf16.gmra.mrb[56].mxu1 %vm1824_vm12, %v18983_v26 }
 0x4c7   :  { %16758 = vmatprep.mubr.msk.bf16.mxu1 %vm1824_vm12, %v18984_v27  ;;  %v15685_v27 = vld [vmem:[%s22135_s10 + $0x38] sm:$0xff]  }
 0x4ce   :  { %16759 = vmatmul.mubr.msk.bf16.gmra.mrb[60].mxu1 %vm1824_vm12, %v18985_v28 }
 0x4cf   :  { %16762 = vmatprep.mubr.msk.bf16.mxu1 %vm1824_vm12, %v18986_v29 }
 0x4d6   :  { %16763 = vmatmul.mubr.msk.bf16.gmra.mrb[64].mxu1 %vm1824_vm12, %v18987_v30 }
 0x4d7   :  { %16766 = vmatprep.mubr.msk.bf16.mxu1 %vm1824_vm12, %v18988_v31 }
 0x4de   :  { %16767 = vmatmul.mubr.msk.bf16.gmra.mrb[68].mxu1 %vm1824_vm12, %v18989_v32  ;;  %v15686_v32 = vld [vmem:[%s22135_s10 + $0x40] sm:$0xff]   ;;  %s22137_s10 = sld [smem:[#allocation34_spill]] }
 0x4df   :  { %16770 = vmatprep.mubr.msk.bf16.mxu1 %vm1824_vm12, %v18990_v33 }
 0x4e6   :  { %16771 = vmatmul.mubr.msk.bf16.gmra.mrb[72].mxu1 %vm1824_vm12, %v18991_v36 }
 0x579   :  { %v16740_v39 = vpop.f32.mrb[40].mxu1 }
 0x57a   :  { %v1913_v40 = vpop.f32.mrb[41].mxu1 }
 0x57b   :  { %v16741_v42 = vpop.f32.mrb[42].mxu1  ;;  %16778 = vmatprep.mubr.msk.f32.mxu0 %vm1824_vm12, %v1913_v40 }
 0x57c   :  { %v1916_v46 = vpop.f32.mrb[43].mxu1 }
 0x57d   :  { %16779 = vmatmul.mubr.msk.f32.vlgmr.msra.gmra.mrb[22].mxu0 %vm1824_vm12, %v1916_v46 }
 0x57e   :  { %16781 = vmatprep.mubr.msk.f32.mxu0 %vm1824_vm12, %v16740_v39  ;;  %18200 = vmatpush3.bf16.msra.mxu0 %v15679_v38 }
 0x57f   :  { %18202 = vmatprep.subr.bf16.mxu0 %v15680_v47 }
 0x581   :  { %v16744_v49 = vpop.f32.mrb[44].mxu1  ;;  %16782 = vmatmul.mubr.msk.f32.gmra.mrb[24].mxu0 %vm1824_vm12, %v16741_v42 }
 0x582   :  { %v1929_v50 = vpop.f32.mrb[45].mxu1 }
 0x583   :  { %v16745_v51 = vpop.f32.mrb[46].mxu1  ;;  %16788 = vmatprep.mubr.msk.f32.mxu0 %vm1824_vm12, %v1929_v50  ;;  %v2063_v50 = vpop.permute.xlu1 %2062 }
 0x584   :  { %v1932_v52 = vpop.f32.mrb[47].mxu1 }
 0x585   :  { %16789 = vmatmul.mubr.msk.f32.vlgmr.msra.gmra.mrb[22].mxu0 %vm1824_vm12, %v1932_v52 }
 0x586   :  { %16791 = vmatprep.mubr.msk.f32.mxu0 %vm1824_vm12, %v16744_v49  ;;  %18204 = vmatpush3.bf16.msra.mxu0 %v15680_v47  ;;  %v18992_v47 = vld [vmem:[%s22136_s7] sm:$0xff]   ;;  %v2068_v49 = vpop.permute.xlu0 %2067 }
 0x587   :  { %18206 = vmatprep.subr.bf16.mxu0 %v15681_v54  ;;  %16868 = vmatprep.mubr.msk.bf16.mxu1 %vm3165_vm13, %v18992_v47 }
 0x589   :  { %v16748_v55 = vpop.f32.mrb[48].mxu1  ;;  %16792 = vmatmul.mubr.msk.f32.gmra.mrb[24].mxu0 %vm1824_vm12, %v16745_v51 }
 0x58a   :  { %v1945_v58 = vpop.f32.mrb[49].mxu1 }
 0x58b   :  { %v16749_v60 = vpop.f32.mrb[50].mxu1  ;;  %16798 = vmatprep.mubr.msk.f32.mxu0 %vm1824_vm12, %v1945_v58 }
 0x58c   :  { %v1948_v1 = vpop.f32.mrb[51].mxu1 }
 0x58d   :  { %16799 = vmatmul.mubr.msk.f32.vlgmr.msra.gmra.mrb[22].mxu0 %vm1824_vm12, %v1948_v1 }
 0x58e   :  { %16801 = vmatprep.mubr.msk.f32.mxu0 %vm1824_vm12, %v16748_v55  ;;  %18208 = vmatpush3.bf16.msra.mxu0 %v15681_v54 }
 0x58f   :  { %18210 = vmatprep.subr.bf16.mxu0 %v15682_v2 }
 0x591   :  { %v16752_v6 = vpop.f32.mrb[52].mxu1  ;;  %16802 = vmatmul.mubr.msk.f32.gmra.mrb[24].mxu0 %vm1824_vm12, %v16749_v60  ;;  %v2078_v60 = vpop.permute.xlu0 %2077 }
 0x592   :  { %v1961_v7 = vpop.f32.mrb[53].mxu1 }
 0x593   :  { %v16753_v8 = vpop.f32.mrb[54].mxu1  ;;  %16808 = vmatprep.mubr.msk.f32.mxu0 %vm1824_vm12, %v1961_v7 }
 0x594   :  { %v1964_v11 = vpop.f32.mrb[55].mxu1 }
 0x595   :  { %16809 = vmatmul.mubr.msk.f32.vlgmr.msra.gmra.mrb[22].mxu0 %vm1824_vm12, %v1964_v11 }
 0x596   :  { %16811 = vmatprep.mubr.msk.f32.mxu0 %vm1824_vm12, %v16752_v6  ;;  %18212 = vmatpush3.bf16.msra.mxu0 %v15682_v2  ;;  %v2073_v6 = vpop.permute.xlu1 %2072 }
 0x597   :  { %18214 = vmatprep.subr.bf16.mxu0 %v15683_v12 }
 0x599   :  { %v16756_v15 = vpop.f32.mrb[56].mxu1  ;;  %16812 = vmatmul.mubr.msk.f32.gmra.mrb[24].mxu0 %vm1824_vm12, %v16753_v8 }
 0x59a   :  { %v1977_v34 = vpop.f32.mrb[57].mxu1 }
 0x59b   :  { %v16757_v16 = vpop.f32.mrb[58].mxu1  ;;  %16818 = vmatprep.mubr.msk.f32.mxu0 %vm1824_vm12, %v1977_v34 }
 0x59c   :  { %v1980_v35 = vpop.f32.mrb[59].mxu1 }
 0x59d   :  { %16819 = vmatmul.mubr.msk.f32.vlgmr.msra.gmra.mrb[22].mxu0 %vm1824_vm12, %v1980_v35  ;;  %v18993_v35 = vld [vmem:[%s22136_s7 + $0x8] sm:$0xff]  }
 0x59e   :  { %16821 = vmatprep.mubr.msk.f32.mxu0 %vm1824_vm12, %v16756_v15  ;;  %18216 = vmatpush3.bf16.msra.mxu0 %v15683_v12 }
 0x59f   :  { %18218 = vmatprep.subr.bf16.mxu0 %v15684_v17 }
 0x5a1   :  { %v16760_v21 = vpop.f32.mrb[60].mxu1  ;;  %16822 = vmatmul.mubr.msk.f32.gmra.mrb[24].mxu0 %vm1824_vm12, %v16757_v16 }
 0x5a2   :  { %v1993_v22 = vpop.f32.mrb[61].mxu1 }
 0x5a3   :  { %v16761_v23 = vpop.f32.mrb[62].mxu1  ;;  %16828 = vmatprep.mubr.msk.f32.mxu0 %vm1824_vm12, %v1993_v22  ;;  %v18996_v22 = vld [vmem:[%s22136_s7 + $0x20] sm:$0xff]  }
 0x5a4   :  { %v1996_v26 = vpop.f32.mrb[63].mxu1 }
 0x5a5   :  { %16829 = vmatmul.mubr.msk.f32.vlgmr.msra.gmra.mrb[22].mxu0 %vm1824_vm12, %v1996_v26  ;;  %v18998_v26 = vld [vmem:[%s22136_s7 + $0x30] sm:$0xff]  }
 0x5a6   :  { %16831 = vmatprep.mubr.msk.f32.mxu0 %vm1824_vm12, %v16760_v21  ;;  %18220 = vmatpush3.bf16.msra.mxu0 %v15684_v17  ;;  %v18994_v17 = vld [vmem:[%s22136_s7 + $0x10] sm:$0xff]   ;;  %v18995_v21 = vld [vmem:[%s22136_s7 + $0x18] sm:$0xff]  }
 0x5a7   :  { %18222 = vmatprep.subr.bf16.mxu0 %v15685_v27 }
 0x5a9   :  { %v16764_v28 = vpop.f32.mrb[64].mxu1  ;;  %16832 = vmatmul.mubr.msk.f32.gmra.mrb[24].mxu0 %vm1824_vm12, %v16761_v23  ;;  %v18997_v23 = vld [vmem:[%s22136_s7 + $0x28] sm:$0xff]  }
 0x5aa   :  { %v2009_v29 = vpop.f32.mrb[65].mxu1 }
 0x5ab   :  { %v16765_v30 = vpop.f32.mrb[66].mxu1  ;;  %16838 = vmatprep.mubr.msk.f32.mxu0 %vm1824_vm12, %v2009_v29  ;;  %v19001_v29 = vld [vmem:[%s22136_s7 + $0x48] sm:$0xff]  }
 0x5ac   :  { %v2012_v31 = vpop.f32.mrb[67].mxu1 }
 0x5ad   :  { %16839 = vmatmul.mubr.msk.f32.vlgmr.msra.gmra.mrb[22].mxu0 %vm1824_vm12, %v2012_v31  ;;  %v19003_v31 = vld [vmem:[%s22136_s7 + $0x58] sm:$0xff]  }
 0x5ae   :  { %16841 = vmatprep.mubr.msk.f32.mxu0 %vm1824_vm12, %v16764_v28  ;;  %18224 = vmatpush3.bf16.msra.mxu0 %v15685_v27  ;;  %v18999_v27 = vld [vmem:[%s22136_s7 + $0x38] sm:$0xff]   ;;  %v19000_v28 = vld [vmem:[%s22136_s7 + $0x40] sm:$0xff]  }
 0x5af   :  { %18226 = vmatprep.subr.bf16.mxu0 %v15686_v32 }
 0x5b1   :  { %v16768_v33 = vpop.f32.mrb[68].mxu1  ;;  %16842 = vmatmul.mubr.msk.f32.gmra.mrb[24].mxu0 %vm1824_vm12, %v16765_v30  ;;  %v19002_v30 = vld [vmem:[%s22136_s7 + $0x50] sm:$0xff]  }
 0x5b2   :  { %v2025_v36 = vpop.f32.mrb[69].mxu1 }
 0x5b3   :  { %v16769_v37 = vpop.f32.mrb[70].mxu1  ;;  %16848 = vmatprep.mubr.msk.f32.mxu0 %vm1824_vm12, %v2025_v36  ;;  %v19006_v36 = vld [vmem:[%s22136_s7 + $0x70] sm:$0xff]  }
 0x5b4   :  { %v2028_v38 = vpop.f32.mrb[71].mxu1 }
 0x5b5   :  { %16849 = vmatmul.mubr.msk.f32.vlgmr.msra.gmra.mrb[22].mxu0 %vm1824_vm12, %v2028_v38  ;;  %v19008_v38 = vld [vmem:[%s22136_s7 + $0x80] sm:$0xff]  }
 0x5b6   :  { %16851 = vmatprep.mubr.msk.f32.mxu0 %vm1824_vm12, %v16768_v33  ;;  %18228 = vmatpush3.bf16.msra.mxu0 %v15686_v32  ;;  %v19004_v32 = vld [vmem:[%s22136_s7 + $0x60] sm:$0xff]   ;;  %v19005_v33 = vld [vmem:[%s22136_s7 + $0x68] sm:$0xff]  }
 0x5b9   :  { %v16772_v39 = vpop.f32.mrb[72].mxu1  ;;  %16852 = vmatmul.mubr.msk.f32.gmra.mrb[24].mxu0 %vm1824_vm12, %v16769_v37  ;;  %v19007_v37 = vld [vmem:[%s22136_s7 + $0x78] sm:$0xff]  }
 0x5ba   :  { %v2041_v40 = vpop.f32.mrb[73].mxu1 }
 0x5bb   :  { %v16773_v42 = vpop.f32.mrb[74].mxu1  ;;  %16858 = vmatprep.mubr.msk.f32.mxu0 %vm1824_vm12, %v2041_v40  ;;  %v3401_v40 = vld [vmem:[%s22015_s13] sm:$0x3] }
 0x5bc   :  { %v2044_v46 = vpop.f32.mrb[75].mxu1 }
 0x5bd   :  { %16859 = vmatmul.mubr.msk.f32.vlgmr.msra.gmra.mrb[22].mxu0 %vm1824_vm12, %v2044_v46  ;;  %v14425_v46 = vld [vmem:[%s22015_s13 + $0x2] sm:$0x3] }
 0x5be   :  { %16861 = vmatprep.mubr.msk.f32.mxu0 %vm1824_vm12, %v16772_v39  ;;  %v19009_v39 = vld [vmem:[%s22136_s7 + $0x88] sm:$0xff]   ;;  %v3510_v47 = vunpack.c.l.bf16 %v14425_v46  ;;  %s22143_s7 = smov 113  }
 0x5c1   :  { %16862 = vmatmul.mubr.msk.f32.gmra.mrb[24].mxu0 %vm1824_vm12, %v16773_v42  ;;  %v3402_v42 = vunpack.c.l.bf16 %v3401_v40 }
 0x5c3   :  { %16904 = vmatprep.subr.msk.mxu0 %vm145_vm0, %v3402_v42 }
 0x5c4   :  { %16905 = vmatpush3.msk.msra.mxu0 %vm145_vm0, %v3402_v42 }
 0x5c5   :  { %16912 = vmatprep.subr.msk.mxu0 %vm145_vm0, %v3510_v47 }
 0x690   :  { %v16860_v51 = vpop.f32.mrb[22].mxu0 }
 0x691   :  { %v18529_v52 = vadd.f32 %v16860_v51, %v2068_v49  ;;  %v3010_v54 = vpop.f32.mrb[23].mxu0  ;;  %v14431_v49 = vld [vmem:[%s22015_s13 + $0x4] sm:$0x3] }
 0x692   :  { %v18530_v55 = vadd.f32 %v3010_v54, %v2063_v50  ;;  %v3617_v54 = vunpack.c.l.bf16 %v14431_v49 }
 0x693   :  { %v3034_v58 = vmax.f32 %v18529_v52, 0.0 }
 0x694   :  { %v3033_v1 = vmax.f32 %v18530_v55, 0.0  ;;  %v16863_v2 = vpop.f32.mrb[24].mxu0 }
 0x695   :  { %v18531_v7 = vadd.f32 %v16863_v2, %v2078_v60  ;;  %v3020_v8 = vpop.f32.mrb[25].mxu0 }
 0x696   :  { %v19946_v11 = vpack.c.bf16 %v3034_v58, %v3033_v1  ;;  %v18532_v12 = vadd.f32 %v3020_v8, %v2073_v6  ;;  %v14437_v58 = vld [vmem:[%s22015_s13 + $0x6] sm:$0x3]  ;;  %v14443_v8 = vld [vmem:[%s22015_s13 + $0x8] sm:$0x3] }
 0x697   :  { %v3036_v15 = vmax.f32 %v18531_v7, 0.0  ;;  %v3724_v6 = vunpack.c.l.bf16 %v14437_v58 }
 0x698   :  { %v3035_v34 = vmax.f32 %v18532_v12, 0.0  ;;  %16864 = vmatprep.subr.bf16.mxu1 %v19946_v11 }
 0x699   :  { %16865 = vmatpush3.bf16.msra.mxu1 %v19946_v11 }
 0x69a   :  { %v19950_v16 = vpack.c.bf16 %v3036_v15, %v3035_v34 }
 0x69c   :  { %16866 = vmatprep.subr.bf16.mxu1 %v19950_v16 }
 0x69d   :  { %16867 = vmatpush3.bf16.msra.mxu1 %v19950_v16 }
 0x6a0   :  { %16869 = vmatmul.mubr.msk.bf16.vlgmr.msra.gmra.mrb[76].mxu1 %vm3165_vm13, %v18993_v35  ;;  %v3831_v35 = vunpack.c.l.bf16 %v14443_v8 }
 0x6a1   :  { %16872 = vmatprep.mubr.msk.bf16.mxu1 %vm3165_vm13, %v18994_v17 }
 0x6a8   :  { %16873 = vmatmul.mubr.msk.bf16.gmra.mrb[80].mxu1 %vm3165_vm13, %v18995_v21  ;;  %v14449_v21 = vld [vmem:[%s22015_s13 + $0xa] sm:$0x3] }
 0x6a9   :  { %16876 = vmatprep.mubr.msk.bf16.mxu1 %vm3165_vm13, %v18996_v22 }
 0x6b0   :  { %16877 = vmatmul.mubr.msk.bf16.gmra.mrb[84].mxu1 %vm3165_vm13, %v18997_v23 }
 0x6b1   :  { %16880 = vmatprep.mubr.msk.bf16.mxu1 %vm3165_vm13, %v18998_v26 }
 0x6b8   :  { %16881 = vmatmul.mubr.msk.bf16.gmra.mrb[88].mxu1 %vm3165_vm13, %v18999_v27  ;;  %v3938_v27 = vunpack.c.l.bf16 %v14449_v21 }
 0x6b9   :  { %16884 = vmatprep.mubr.msk.bf16.mxu1 %vm3165_vm13, %v19000_v28 }
 0x6c0   :  { %16885 = vmatmul.mubr.msk.bf16.gmra.mrb[92].mxu1 %vm3165_vm13, %v19001_v29  ;;  %v14455_v29 = vld [vmem:[%s22015_s13 + $0xc] sm:$0x3] }
 0x6c1   :  { %16888 = vmatprep.mubr.msk.bf16.mxu1 %vm3165_vm13, %v19002_v30 }
 0x6c8   :  { %16889 = vmatmul.mubr.msk.bf16.gmra.mrb[96].mxu1 %vm3165_vm13, %v19003_v31 }
 0x6c9   :  { %16892 = vmatprep.mubr.msk.bf16.mxu1 %vm3165_vm13, %v19004_v32 }
 0x6d0   :  { %16893 = vmatmul.mubr.msk.bf16.gmra.mrb[100].mxu1 %vm3165_vm13, %v19005_v33  ;;  %v4045_v33 = vunpack.c.l.bf16 %v14455_v29 }
 0x6d1   :  { %16896 = vmatprep.mubr.msk.bf16.mxu1 %vm3165_vm13, %v19006_v36 }
 0x6d8   :  { %16897 = vmatmul.mubr.msk.bf16.gmra.mrb[104].mxu1 %vm3165_vm13, %v19007_v37  ;;  %v14461_v37 = vld [vmem:[%s22015_s13 + $0xe] sm:$0x3] }
 0x6d9   :  { %16900 = vmatprep.mubr.msk.bf16.mxu1 %vm3165_vm13, %v19008_v38  ;;  %v4152_v42 = vunpack.c.l.bf16 %v14461_v37  ;;  %v4889_v37 = vld [vmem:[%s22020_s18] sm:$0xff] }
 0x6e0   :  { %16901 = vmatmul.mubr.msk.bf16.gmra.mrb[108].mxu1 %vm3165_vm13, %v19009_v39 }
 0x773   :  { %v16870_v50 = vpop.f32.mrb[76].mxu1 }
 0x774   :  { %v3254_v51 = vpop.f32.mrb[77].mxu1 }
 0x775   :  { %v16871_v52 = vpop.f32.mrb[78].mxu1  ;;  %16906 = vmatprep.mubr.msk.f32.mxu0 %vm3403_vm14, %v3254_v51 }
 0x776   :  { %v3257_v55 = vpop.f32.mrb[79].mxu1 }
 0x777   :  { %16907 = vmatmul.mubr.msk.f32.vlgmr.msra.gmra.mrb[26].mxu0 %vm3403_vm14, %v3257_v55 }
 0x778   :  { %16909 = vmatprep.mubr.msk.f32.mxu0 %vm3403_vm14, %v16870_v50  ;;  %16913 = vmatpush3.msk.msra.mxu0 %vm145_vm0, %v3510_v47  ;;  %v14467_v47 = vld [vmem:[%s22015_s13 + $0x10] sm:$0x3]  ;;  %s22164_s13 = sld [smem:[#allocation34_spill]] }
 0x779   :  { %16920 = vmatprep.subr.msk.mxu0 %vm145_vm0, %v3617_v54 }
 0x77b   :  { %v16874_v60 = vpop.f32.mrb[80].mxu1  ;;  %16910 = vmatmul.mubr.msk.f32.gmra.mrb[28].mxu0 %vm3403_vm14, %v16871_v52  ;;  %v4259_v52 = vunpack.c.l.bf16 %v14467_v47 }
 0x77c   :  { %v3270_v1 = vpop.f32.mrb[81].mxu1 }
 0x77d   :  { %v16875_v2 = vpop.f32.mrb[82].mxu1  ;;  %16914 = vmatprep.mubr.msk.f32.mxu0 %vm3403_vm14, %v3270_v1 }
 0x77e   :  { %v3273_v7 = vpop.f32.mrb[83].mxu1 }
 0x77f   :  { %16915 = vmatmul.mubr.msk.f32.vlgmr.msra.gmra.mrb[26].mxu0 %vm3403_vm14, %v3273_v7 }
 0x780   :  { %16917 = vmatprep.mubr.msk.f32.mxu0 %vm3403_vm14, %v16874_v60  ;;  %16921 = vmatpush3.msk.msra.mxu0 %vm145_vm0, %v3617_v54 }
 0x781   :  { %16928 = vmatprep.subr.msk.mxu0 %vm145_vm0, %v3724_v6 }
 0x783   :  { %v16878_v12 = vpop.f32.mrb[84].mxu1  ;;  %16918 = vmatmul.mubr.msk.f32.gmra.mrb[28].mxu0 %vm3403_vm14, %v16875_v2 }
 0x784   :  { %v3286_v15 = vpop.f32.mrb[85].mxu1 }
 0x785   :  { %v16879_v34 = vpop.f32.mrb[86].mxu1  ;;  %16922 = vmatprep.mubr.msk.f32.mxu0 %vm3403_vm14, %v3286_v15  ;;  %v3397_v15 = vld [vmem:[%s22137_s10] sm:$0xff] }
 0x786   :  { %v3289_v17 = vpop.f32.mrb[87].mxu1 }
 0x787   :  { %16923 = vmatmul.mubr.msk.f32.vlgmr.msra.gmra.mrb[26].mxu0 %vm3403_vm14, %v3289_v17 }
 0x788   :  { %16925 = vmatprep.mubr.msk.f32.mxu0 %vm3403_vm14, %v16878_v12  ;;  %16929 = vmatpush3.msk.msra.mxu0 %vm145_vm0, %v3724_v6  ;;  %v3398_v12 = vld [vmem:[%s22137_s10 + $0x8] sm:$0xff] }
 0x789   :  { %16936 = vmatprep.subr.msk.mxu0 %vm145_vm0, %v3831_v35 }
 0x78b   :  { %v16882_v22 = vpop.f32.mrb[88].mxu1  ;;  %16926 = vmatmul.mubr.msk.f32.gmra.mrb[28].mxu0 %vm3403_vm14, %v16879_v34 }
 0x78c   :  { %v3302_v23 = vpop.f32.mrb[89].mxu1 }
 0x78d   :  { %v16883_v26 = vpop.f32.mrb[90].mxu1  ;;  %16930 = vmatprep.mubr.msk.f32.mxu0 %vm3403_vm14, %v3302_v23 }
 0x78e   :  { %v3305_v28 = vpop.f32.mrb[91].mxu1 }
 0x78f   :  { %16931 = vmatmul.mubr.msk.f32.vlgmr.msra.gmra.mrb[26].mxu0 %vm3403_vm14, %v3305_v28 }
 0x790   :  { %16933 = vmatprep.mubr.msk.f32.mxu0 %vm3403_vm14, %v16882_v22  ;;  %16937 = vmatpush3.msk.msra.mxu0 %vm145_vm0, %v3831_v35  ;;  %v3400_v22 = vld [vmem:[%s22137_s10 + $0x18] sm:$0xff] }
 0x791   :  { %16944 = vmatprep.subr.msk.mxu0 %vm145_vm0, %v3938_v27 }
 0x793   :  { %v16886_v30 = vpop.f32.mrb[92].mxu1  ;;  %16934 = vmatmul.mubr.msk.f32.gmra.mrb[28].mxu0 %vm3403_vm14, %v16883_v26  ;;  %v3399_v26 = vld [vmem:[%s22137_s10 + $0x10] sm:$0xff]  ;;  %s22144_s10 = smov 112  }
 0x794   :  { %v3318_v31 = vpop.f32.mrb[93].mxu1 }
 0x795   :  { %v16887_v32 = vpop.f32.mrb[94].mxu1  ;;  %16938 = vmatprep.mubr.msk.f32.mxu0 %vm3403_vm14, %v3318_v31 }
 0x796   :  { %v3321_v36 = vpop.f32.mrb[95].mxu1 }
 0x797   :  { %16939 = vmatmul.mubr.msk.f32.vlgmr.msra.gmra.mrb[26].mxu0 %vm3403_vm14, %v3321_v36  ;;  %v4890_v36 = vld [vmem:[%s22020_s18 + $0x8] sm:$0xff] }
 0x798   :  { %16941 = vmatprep.mubr.msk.f32.mxu0 %vm3403_vm14, %v16886_v30  ;;  %16945 = vmatpush3.msk.msra.mxu0 %vm145_vm0, %v3938_v27 }
 0x799   :  { %16952 = vmatprep.subr.msk.mxu0 %vm145_vm0, %v4045_v33 }
 0x79b   :  { %v16890_v38 = vpop.f32.mrb[96].mxu1  ;;  %16942 = vmatmul.mubr.msk.f32.gmra.mrb[28].mxu0 %vm3403_vm14, %v16887_v32 }
 0x79c   :  { %v3334_v39 = vpop.f32.mrb[97].mxu1 }
 0x79d   :  { %v16891_v40 = vpop.f32.mrb[98].mxu1  ;;  %16946 = vmatprep.mubr.msk.f32.mxu0 %vm3403_vm14, %v3334_v39  ;;  %v5942_v39 = vld [vmem:[%s22024_s22] sm:$0xff] }
 0x79e   :  { %v3337_v46 = vpop.f32.mrb[99].mxu1 }
 0x79f   :  { %16947 = vmatmul.mubr.msk.f32.vlgmr.msra.gmra.mrb[26].mxu0 %vm3403_vm14, %v3337_v46 }
 0x7a0   :  { %16949 = vmatprep.mubr.msk.f32.mxu0 %vm3403_vm14, %v16890_v38  ;;  %16953 = vmatpush3.msk.msra.mxu0 %vm145_vm0, %v4045_v33  ;;  %v7304_v38 = vld [vmem:[%s22120_s2] sm:$0xff]  ;;  %s22140_s2 = smov 15  }
 0x7a1   :  { %16960 = vmatprep.subr.msk.mxu0 %vm145_vm0, %v4152_v42 }
 0x7a3   :  { %v16894_v49 = vpop.f32.mrb[100].mxu1  ;;  %16950 = vmatmul.mubr.msk.f32.gmra.mrb[28].mxu0 %vm3403_vm14, %v16891_v40  ;;  %v19010_v40 = vld [vmem:[%s22016_s14] sm:$0xff]  }
 0x7a4   :  { %v3350_v50 = vpop.f32.mrb[101].mxu1  ;;  %16992 = vmatprep.mubr.bf16.mxu1 %v19010_v40  ;;  %v19017_v40 = vld [vmem:[%s22019_s17 + $0x28] sm:$0xff]  }
 0x7a5   :  { %v16895_v51 = vpop.f32.mrb[102].mxu1  ;;  %16954 = vmatprep.mubr.msk.f32.mxu0 %vm3403_vm14, %v3350_v50 }
 0x7a6   :  { %v3353_v54 = vpop.f32.mrb[103].mxu1 }
 0x7a7   :  { %16955 = vmatmul.mubr.msk.f32.vlgmr.msra.gmra.mrb[26].mxu0 %vm3403_vm14, %v3353_v54 }
 0x7a8   :  { %16957 = vmatprep.mubr.msk.f32.mxu0 %vm3403_vm14, %v16894_v49  ;;  %16961 = vmatpush3.msk.msra.mxu0 %vm145_vm0, %v4152_v42  ;;  %v20132_v42 = vsel %vm4368_vm15, 1.0, %v22079_v41  ;;  %vm4402_vm15 = vcmp.eq.s32.totalorder %v19462_v59, 2 }
 0x7a9   :  { %16968 = vmatprep.subr.msk.mxu0 %vm145_vm0, %v4259_v52 }
 0x7ab   :  { %v16898_v55 = vpop.f32.mrb[104].mxu1  ;;  %16958 = vmatmul.mubr.msk.f32.gmra.mrb[28].mxu0 %vm3403_vm14, %v16895_v51  ;;  %v20138_v51 = vsel %vm4395_vm9, 1.0, %v22079_v41  ;;  %vm4409_vm9 = vcmp.eq.s32.totalorder %v19462_v59, 3 }
 0x7ac   :  { %v3366_v58 = vpop.f32.mrb[105].mxu1 }
 0x7ad   :  { %v16899_v60 = vpop.f32.mrb[106].mxu1  ;;  %16962 = vmatprep.mubr.msk.f32.mxu0 %vm3403_vm14, %v3366_v58 }
 0x7ae   :  { %v3369_v1 = vpop.f32.mrb[107].mxu1 }
 0x7af   :  { %16963 = vmatmul.mubr.msk.f32.vlgmr.msra.gmra.mrb[26].mxu0 %vm3403_vm14, %v3369_v1 }
 0x7b0   :  { %16965 = vmatprep.mubr.msk.f32.mxu0 %vm3403_vm14, %v16898_v55  ;;  %16969 = vmatpush3.msk.msra.mxu0 %vm145_vm0, %v4259_v52 }
 0x7b3   :  { %v16902_v2 = vpop.f32.mrb[108].mxu1  ;;  %16966 = vmatmul.mubr.msk.f32.gmra.mrb[28].mxu0 %vm3403_vm14, %v16899_v60 }
 0x7b4   :  { %v3382_v6 = vpop.f32.mrb[109].mxu1 }
 0x7b5   :  { %v16903_v7 = vpop.f32.mrb[110].mxu1  ;;  %16970 = vmatprep.mubr.msk.f32.mxu0 %vm3403_vm14, %v3382_v6 }
 0x7b6   :  { %v3385_v8 = vpop.f32.mrb[111].mxu1 }
 0x7b7   :  { %16971 = vmatmul.mubr.msk.f32.vlgmr.msra.gmra.mrb[26].mxu0 %vm3403_vm14, %v3385_v8 }
 0x7b8   :  { %16973 = vmatprep.mubr.msk.f32.mxu0 %vm3403_vm14, %v16902_v2 }
 0x7bb   :  { %16974 = vmatmul.mubr.msk.f32.gmra.mrb[28].mxu0 %vm3403_vm14, %v16903_v7 }
 0x88a   :  { %v16972_v34 = vpop.f32.mrb[26].mxu0 }
 0x88b   :  { %v18533_v35 = vadd.f32 %v16972_v34, %v3398_v12  ;;  %v4341_v17 = vpop.f32.mrb[27].mxu0 }
 0x88c   :  { %v18534_v21 = vadd.f32 %v4341_v17, %v3397_v15  ;;  %v20148_v15 = vsel %vm4402_vm15, 1.0, %v22079_v41  ;;  %vm22156_vm15 = vcmp.lt.s32.totalorder %v19462_v59, 111 }
 0x88d   :  { %v4365_v23 = vmax.f32 %v18533_v35, 0.0 }
 0x88e   :  { %v4364_v27 = vmax.f32 %v18534_v21, 0.0  ;;  %v16975_v28 = vpop.f32.mrb[28].mxu0 }
 0x88f   :  { %v18535_v29 = vadd.f32 %v16975_v28, %v3400_v22  ;;  %4378 = vperm.xlu0 %18958, %v4365_v23   ;;  %v4351_v30 = vpop.f32.mrb[29].mxu0 }
 0x890   :  { %v18536_v31 = vadd.f32 %v4351_v30, %v3399_v26  ;;  %4373 = vperm.xlu1 %18959, %v4364_v27   ;;  %v20156_v26 = vsel %vm4409_vm9, 1.0, %v22079_v41  ;;  %vm22157_vm9 = vmmov %vm22156_vm15 }
 0x891   :  { %v4367_v32 = vmax.f32 %v18535_v29, 0.0 }
 0x892   :  { %v4366_v33 = vmax.f32 %v18536_v31, 0.0 }
 0x893   :  { %4388 = vperm.xlu0 %18958, %v4367_v32  }
 0x894   :  { %4383 = vperm.xlu1 %18959, %v4366_v33  }
 0x897   :  { %4898 = vperm.xlu0 %18958, %v4890_v36   ;;  %v19011_v36 = vld [vmem:[%s22016_s14 + $0x8] sm:$0xff]  }
 0x898   :  { %4893 = vperm.xlu1 %18959, %v4889_v37   ;;  %v19012_v37 = vld [vmem:[%s22019_s17] sm:$0xff]  }
 0x89b   :  { %7307 = vperm.xlu0 %18958, %v7304_v38   ;;  %v19015_v38 = vld [vmem:[%s22019_s17 + $0x18] sm:$0xff]  }
 0x89c   :  { %5945 = vperm.xlu1 %18959, %v5942_v39   ;;  %v19016_v39 = vld [vmem:[%s22019_s17 + $0x20] sm:$0xff]  }
 0x90e   :  { %v4379_v46 = vpop.permute.xlu0 %4378 }
 0x90f   :  { %v4392_v47 = vmul.f32 %v20132_v42, %v4379_v46  ;;  %v4374_v49 = vpop.permute.xlu1 %4373  ;;  %v4399_v60 = vmul.f32 %v20138_v51, %v4379_v46  ;;  %v4406_v34 = vmul.f32 %v20148_v15, %v4379_v46  ;;  %v4413_v27 = vmul.f32 %v20156_v26, %v4379_v46  ;;  %v19018_v46 = vld [vmem:[%s22019_s17 + $0x30] sm:$0xff]  }
 0x910   :  { %v4391_v50 = vmul.f32 %v20132_v42, %v4374_v49  ;;  %v4398_v1 = vmul.f32 %v20138_v51, %v4374_v49  ;;  %v4405_v35 = vmul.f32 %v20148_v15, %v4374_v49  ;;  %v4412_v28 = vmul.f32 %v20156_v26, %v4374_v49  ;;  %v19020_v49 = vld [vmem:[%s22019_s17 + $0x40] sm:$0xff]  }
 0x912   :  { %v4389_v52 = vpop.permute.xlu0 %4388  ;;  %v4420_v54 = vpack.c.bf16 %v4392_v47, %v4391_v50  ;;  %v4422_v12 = vpack.c.bf16 %v4399_v60, %v4398_v1  ;;  %v4424_v23 = vpack.c.bf16 %v4406_v34, %v4405_v35  ;;  %v4426_v32 = vpack.c.bf16 %v4413_v27, %v4412_v28  ;;  %v19019_v47 = vld [vmem:[%s22019_s17 + $0x38] sm:$0xff]   ;;  %v4430_v50 = vld [vmem:[%s22017_s15 + $0x10] sm:$0xff]  ;;  %v4429_v1 = vld [vmem:[%s22017_s15 + $0x8] sm:$0xff] }
 0x913   :  { %v4394_v55 = vmul.f32 %v20132_v42, %v4389_v52  ;;  %v4384_v58 = vpop.permute.xlu1 %4383  ;;  %v4401_v7 = vmul.f32 %v20138_v51, %v4389_v52  ;;  %v4408_v21 = vmul.f32 %v20148_v15, %v4389_v52  ;;  %v4415_v30 = vmul.f32 %v20156_v26, %v4389_v52  ;;  %v4428_v52 = vld [vmem:[%s22017_s15] sm:$0xff]  ;;  %v19022_v28 = vld [vmem:[%s22018_s16 + $0x8] sm:$0xff]  }
 0x914   :  { %v4393_v2 = vmul.f32 %v20132_v42, %v4384_v58  ;;  %16976 = vmatprep.subr.bf16.mxu1 %v4420_v54  ;;  %v4400_v8 = vmul.f32 %v20138_v51, %v4384_v58  ;;  %v4407_v22 = vmul.f32 %v20148_v15, %v4384_v58  ;;  %v4414_v31 = vmul.f32 %v20156_v26, %v4384_v58  ;;  %v19021_v27 = vld [vmem:[%s22018_s16] sm:$0xff]  }
 0x915   :  { %16977 = vmatpush3.bf16.msra.mxu1 %v4420_v54 }
 0x916   :  { %v4421_v6 = vpack.c.bf16 %v4394_v55, %v4393_v2  ;;  %v4423_v17 = vpack.c.bf16 %v4401_v7, %v4400_v8  ;;  %v4425_v29 = vpack.c.bf16 %v4408_v21, %v4407_v22  ;;  %v4427_v33 = vpack.c.bf16 %v4415_v30, %v4414_v31  ;;  %v4431_v55 = vld [vmem:[%s22017_s15 + $0x18] sm:$0xff]  ;;  %v19025_v31 = vld [vmem:[%s22018_s16 + $0x20] sm:$0xff]  }
 0x917   :  { %v19024_v30 = vld [vmem:[%s22018_s16 + $0x18] sm:$0xff]  }
 0x918   :  { %16978 = vmatprep.subr.bf16.mxu1 %v4421_v6 }
 0x919   :  { %16979 = vmatpush3.bf16.msra.mxu1 %v4421_v6 }
 0x91a   :  { %16980 = vmatprep.subr.bf16.mxu1 %v4422_v12 }
 0x91d   :  { %16981 = vmatpush3.bf16.msra.mxu1 %v4422_v12 }
 0x91e   :  { %16982 = vmatprep.subr.bf16.mxu1 %v4423_v17 }
 0x921   :  { %16983 = vmatpush3.bf16.msra.mxu1 %v4423_v17 }
 0x922   :  { %16984 = vmatprep.subr.bf16.mxu1 %v4424_v23 }
 0x925   :  { %16985 = vmatpush3.bf16.msra.mxu1 %v4424_v23 }
 0x926   :  { %16986 = vmatprep.subr.bf16.mxu1 %v4425_v29 }
 0x929   :  { %16987 = vmatpush3.bf16.msra.mxu1 %v4425_v29  ;;  %v19023_v29 = vld [vmem:[%s22018_s16 + $0x10] sm:$0xff]  }
 0x92a   :  { %16988 = vmatprep.subr.bf16.mxu1 %v4426_v32 }
 0x92d   :  { %16989 = vmatpush3.bf16.msra.mxu1 %v4426_v32  ;;  %v19026_v32 = vld [vmem:[%s22018_s16 + $0x28] sm:$0xff]  }
 0x92e   :  { %16990 = vmatprep.subr.bf16.mxu1 %v4427_v33 }
 0x931   :  { %16991 = vmatpush3.bf16.msra.mxu1 %v4427_v33  ;;  %v19027_v33 = vld [vmem:[%s22018_s16 + $0x30] sm:$0xff]  }
 0x932   :  { %16996 = vmatprep.subr.bf16.mxu1 %v22079_v41 }
 0x934   :  { %16993 = vmatmul.mubr.bf16.vlgmr.msra.gmra.mrb[112].mxu1 %v19011_v36  ;;  %v19028_v36 = vld [vmem:[%s22018_s16 + $0x38] sm:$0xff]  }
 0x935   :  { %16997 = vmatpush3.bf16.msra.mxu1 %v19946_v11  ;;  %17000 = vmatprep.mubr.msk.bf16.mxu1 %vm19198_vm10, %v22079_v41  ;;  %v19013_v11 = vld [vmem:[%s22019_s17 + $0x8] sm:$0xff]  }
 0x936   :  { %16998 = vmatprep.subr.bf16.mxu1 %v22079_v41 }
 0x939   :  { %16999 = vmatpush3.bf16.msra.mxu1 %v19950_v16  ;;  %v19014_v16 = vld [vmem:[%s22019_s17 + $0x10] sm:$0xff]  }
 0x93a   :  { %17036 = vmatprep.subr.bf16.mxu1 %v22079_v41 }
 0x93c   :  { %17001 = vmatmul.mubr.msk.bf16.vlgmr.msra.gmra.mrb[116].mxu1 %vm3165_vm13, %v19012_v37  ;;  %v19029_v37 = vld [vmem:[%s22018_s16 + $0x40] sm:$0xff]  }
 0x93d   :  { %17004 = vmatprep.mubr.msk.bf16.mxu1 %vm19198_vm10, %v22079_v41 }
 0x944   :  { %17005 = vmatmul.mubr.msk.bf16.gmra.mrb[120].mxu1 %vm3165_vm13, %v19013_v11  ;;  %v4901_v11 = vld [vmem:[%s22021_s19] sm:$0x3] }
 0x945   :  { %17008 = vmatprep.mubr.msk.bf16.mxu1 %vm19198_vm10, %v22079_v41 }
 0x94c   :  { %17009 = vmatmul.mubr.msk.bf16.gmra.mrb[124].mxu1 %vm3165_vm13, %v19014_v16  ;;  %v4902_v16 = vunpack.c.l.bf16 %v4901_v11 }
 0x94d   :  { %17012 = vmatprep.mubr.msk.bf16.mxu1 %vm19198_vm10, %v22079_v41 }
 0x94e   :  { %17076 = vmatprep.subr.msk.mxu0 %vm145_vm0, %v4902_v16 }
 0x94f   :  { %17077 = vmatpush3.msk.msra.mxu0 %vm145_vm0, %v4902_v16 }
 0x954   :  { %17013 = vmatmul.mubr.msk.bf16.gmra.mrb[128].mxu1 %vm3165_vm13, %v19015_v38  ;;  %v14518_v38 = vld [vmem:[%s22021_s19 + $0x2] sm:$0x3] }
 0x955   :  { %17016 = vmatprep.mubr.msk.bf16.mxu1 %vm19198_vm10, %v22079_v41 }
 0x95c   :  { %17017 = vmatmul.mubr.msk.bf16.gmra.mrb[132].mxu1 %vm3165_vm13, %v19016_v39  ;;  %v4991_v39 = vunpack.c.l.bf16 %v14518_v38 }
 0x95d   :  { %17020 = vmatprep.mubr.msk.bf16.mxu1 %vm19198_vm10, %v22079_v41 }
 0x95e   :  { %17081 = vmatprep.subr.msk.mxu0 %vm145_vm0, %v4991_v39 }
 0x964   :  { %17021 = vmatmul.mubr.msk.bf16.gmra.mrb[136].mxu1 %vm3165_vm13, %v19017_v40  ;;  %v14522_v40 = vld [vmem:[%s22021_s19 + $0x4] sm:$0x3] }
 0x965   :  { %17024 = vmatprep.mubr.msk.bf16.mxu1 %vm19198_vm10, %v22079_v41 }
 0x96c   :  { %17025 = vmatmul.mubr.msk.bf16.gmra.mrb[140].mxu1 %vm3165_vm13, %v19018_v46 }
 0x96d   :  { %17028 = vmatprep.mubr.msk.bf16.mxu1 %vm19198_vm10, %v22079_v41 }
 0x974   :  { %17029 = vmatmul.mubr.msk.bf16.gmra.mrb[144].mxu1 %vm3165_vm13, %v19019_v47 }
 0x975   :  { %17032 = vmatprep.mubr.msk.bf16.mxu1 %vm19198_vm10, %v22079_v41 }
 0x97c   :  { %17033 = vmatmul.mubr.msk.bf16.gmra.mrb[148].mxu1 %vm3165_vm13, %v19020_v49  ;;  %v5080_v49 = vunpack.c.l.bf16 %v14522_v40 }
 0x97d   :  { %17040 = vmatprep.mubr.msk.bf16.mxu1 %vm19198_vm10, %v22079_v41 }
 0xa07   :  { %v16994_v54 = vpop.f32.mrb[112].mxu1 }
 0xa08   :  { %v4487_v58 = vadd.f32 %v16994_v54, %v4430_v50  ;;  %v4478_v60 = vpop.f32.mrb[113].mxu1  ;;  %v14526_v54 = vld [vmem:[%s22021_s19 + $0x6] sm:$0x3] }
 0xa09   :  { %v4479_v2 = vadd.f32 %v4478_v60, %v4428_v52  ;;  %v16995_v6 = vpop.f32.mrb[114].mxu1  ;;  %v5169_v60 = vunpack.c.l.bf16 %v14526_v54 }
 0xa0a   :  { %v4490_v7 = vadd.f32 %v16995_v6, %v4431_v55  ;;  %v4481_v8 = vpop.f32.mrb[115].mxu1  ;;  %v4495_v34 = vmax.f32 %v4487_v58, 0.0  ;;  %v14530_v6 = vld [vmem:[%s22021_s19 + $0x8] sm:$0x3] }
 0xa0b   :  { %v4482_v12 = vadd.f32 %v4481_v8, %v4429_v1  ;;  %v4493_v17 = vmax.f32 %v4479_v2, 0.0 }
 0xa0c   :  { %v4496_v35 = vmax.f32 %v4490_v7, 0.0 }
 0xa0d   :  { %v4494_v21 = vmax.f32 %v4482_v12, 0.0  ;;  %v5258_v12 = vunpack.c.l.bf16 %v14530_v6 }
 0xa0e   :  { %v4516_v22 = vpack.c.bf16 %v4496_v35, %v4495_v34 }
 0xa0f   :  { %v4515_v23 = vpack.c.bf16 %v4494_v21, %v4493_v17  ;;  %v14534_v17 = vld [vmem:[%s22021_s19 + $0xa] sm:$0x3] }
 0xa11   :  { %17037 = vmatpush3.bf16.msra.mxu1 %v4515_v23  ;;  %v5347_v23 = vunpack.c.l.bf16 %v14534_v17  ;;  %v19034_v17 = vld [vmem:[%s22023_s21 + $0x20] ss:$0 sps:$4 sm:$0xff]  }
 0xa12   :  { %17038 = vmatprep.subr.bf16.mxu1 %v22079_v41 }
 0xa15   :  { %17039 = vmatpush3.bf16.msra.mxu1 %v4516_v22 }
 0xa18   :  { %17041 = vmatmul.mubr.msk.bf16.vlgmr.msra.gmra.mrb[116].mxu1 %vm3165_vm13, %v19021_v27 }
 0xa19   :  { %17044 = vmatprep.mubr.msk.bf16.mxu1 %vm19198_vm10, %v22079_v41 }
 0xa20   :  { %17045 = vmatmul.mubr.msk.bf16.gmra.mrb[120].mxu1 %vm3165_vm13, %v19022_v28 }
 0xa21   :  { %17048 = vmatprep.mubr.msk.bf16.mxu1 %vm19198_vm10, %v22079_v41 }
 0xa28   :  { %17049 = vmatmul.mubr.msk.bf16.gmra.mrb[124].mxu1 %vm3165_vm13, %v19023_v29  ;;  %v14538_v29 = vld [vmem:[%s22021_s19 + $0xc] sm:$0x3] }
 0xa29   :  { %17052 = vmatprep.mubr.msk.bf16.mxu1 %vm19198_vm10, %v22079_v41 }
 0xa30   :  { %17053 = vmatmul.mubr.msk.bf16.gmra.mrb[128].mxu1 %vm3165_vm13, %v19024_v30 }
 0xa31   :  { %17056 = vmatprep.mubr.msk.bf16.mxu1 %vm19198_vm10, %v22079_v41 }
 0xa38   :  { %17057 = vmatmul.mubr.msk.bf16.gmra.mrb[132].mxu1 %vm3165_vm13, %v19025_v31 }
 0xa39   :  { %17060 = vmatprep.mubr.msk.bf16.mxu1 %vm19198_vm10, %v22079_v41 }
 0xa40   :  { %17061 = vmatmul.mubr.msk.bf16.gmra.mrb[136].mxu1 %vm3165_vm13, %v19026_v32  ;;  %v5436_v32 = vunpack.c.l.bf16 %v14538_v29 }
 0xa41   :  { %17064 = vmatprep.mubr.msk.bf16.mxu1 %vm19198_vm10, %v22079_v41 }
 0xa48   :  { %17065 = vmatmul.mubr.msk.bf16.gmra.mrb[140].mxu1 %vm3165_vm13, %v19027_v33 }
 0xa49   :  { %17068 = vmatprep.mubr.msk.bf16.mxu1 %vm19198_vm10, %v22079_v41 }
 0xa50   :  { %17069 = vmatmul.mubr.msk.bf16.gmra.mrb[144].mxu1 %vm3165_vm13, %v19028_v36 }
 0xa51   :  { %17072 = vmatprep.mubr.msk.bf16.mxu1 %vm19198_vm10, %v22079_v41 }
 0xa58   :  { %17073 = vmatmul.mubr.msk.bf16.gmra.mrb[148].mxu1 %vm3165_vm13, %v19029_v37  ;;  %v14542_v37 = vld [vmem:[%s22021_s19 + $0xe] sm:$0x3] }
 0xa59   :  { %17176 = vmatprep.mubr.msk.f32.mxu1 %vm19198_vm10, %v22079_v41  ;;  %v5525_v38 = vunpack.c.l.bf16 %v14542_v37  ;;  %v15314_v37 = vld [vmem:[%s22025_s23] sm:$0xff]  }
 0xaeb   :  { %v4818_v46 = vpop.f32.mrb[116].mxu1 }
 0xaec   :  { %v17042_v47 = vpop.f32.mrb[117].mxu1  ;;  %17078 = vmatprep.mubr.msk.f32.mxu0 %vm3403_vm14, %v4818_v46  ;;  %v14546_v46 = vld [vmem:[%s22021_s19 + $0x10] sm:$0x3] }
 0xaed   :  { %v4821_v50 = vpop.f32.mrb[118].mxu1 }
 0xaee   :  { %v17043_v52 = vpop.f32.mrb[119].mxu1  ;;  %17079 = vmatmul.mubr.msk.f32.vlgmr.msra.gmra.mrb[30].mxu0 %vm3403_vm14, %v4821_v50  ;;  %v5614_v50 = vunpack.c.l.bf16 %v14546_v46 }
 0xaef   :  { %17082 = vmatpush3.msk.msra.mxu0 %vm145_vm0, %v4991_v39 }
 0xaf0   :  { %17086 = vmatprep.subr.msk.mxu0 %vm145_vm0, %v5080_v49 }
 0xaf3   :  { %v4826_v55 = vpop.f32.mrb[120].mxu1 }
 0xaf4   :  { %v17046_v58 = vpop.f32.mrb[121].mxu1  ;;  %17083 = vmatprep.mubr.msk.f32.mxu0 %vm3403_vm14, %v4826_v55 }
 0xaf5   :  { %v4829_v1 = vpop.f32.mrb[122].mxu1 }
 0xaf6   :  { %v17047_v2 = vpop.f32.mrb[123].mxu1  ;;  %17084 = vmatmul.mubr.msk.f32.vlgmr.msra.gmra.mrb[30].mxu0 %vm3403_vm14, %v4829_v1 }
 0xaf7   :  { %17087 = vmatpush3.msk.msra.mxu0 %vm145_vm0, %v5080_v49 }
 0xaf8   :  { %17091 = vmatprep.subr.msk.mxu0 %vm145_vm0, %v5169_v60 }
 0xafb   :  { %v4834_v7 = vpop.f32.mrb[124].mxu1 }
 0xafc   :  { %v17050_v8 = vpop.f32.mrb[125].mxu1  ;;  %17088 = vmatprep.mubr.msk.f32.mxu0 %vm3403_vm14, %v4834_v7 }
 0xafd   :  { %v4837_v34 = vpop.f32.mrb[126].mxu1 }
 0xafe   :  { %v17051_v35 = vpop.f32.mrb[127].mxu1  ;;  %17089 = vmatmul.mubr.msk.f32.vlgmr.msra.gmra.mrb[30].mxu0 %vm3403_vm14, %v4837_v34  ;;  %v19031_v34 = vld [vmem:[%s22023_s21 + $0x8] sm:$0xff]  }
 0xaff   :  { %17092 = vmatpush3.msk.msra.mxu0 %vm145_vm0, %v5169_v60  ;;  %v19033_v35 = vld [vmem:[%s22023_s21 + $0x18] sm:$0xff]  }
 0xb00   :  { %17096 = vmatprep.subr.msk.mxu0 %vm145_vm0, %v5258_v12 }
 0xb03   :  { %v4842_v21 = vpop.f32.mrb[128].mxu1 }
 0xb04   :  { %v17054_v22 = vpop.f32.mrb[129].mxu1  ;;  %17093 = vmatprep.mubr.msk.f32.mxu0 %vm3403_vm14, %v4842_v21  ;;  %v22077_v21 = vmov 0.0|0.0  }
 0xb05   :  { %v4845_v27 = vpop.f32.mrb[130].mxu1  ;;  %18232 = vmatprep.subr.bf16.mxu1 %v22077_v21  ;;  %v4899_v22 = vpop.permute.xlu0 %4898 }
 0xb06   :  { %v17055_v28 = vpop.f32.mrb[131].mxu1  ;;  %17094 = vmatmul.mubr.msk.f32.vlgmr.msra.gmra.mrb[30].mxu0 %vm3403_vm14, %v4845_v27  ;;  %v4894_v27 = vpop.permute.xlu1 %4893 }
 0xb07   :  { %17097 = vmatpush3.msk.msra.mxu0 %vm145_vm0, %v5258_v12  ;;  %v19030_v12 = vld [vmem:[%s22023_s21] sm:$0xff]  }
 0xb08   :  { %17101 = vmatprep.subr.msk.mxu0 %vm145_vm0, %v5347_v23 }
 0xb0b   :  { %v4850_v30 = vpop.f32.mrb[132].mxu1 }
 0xb0c   :  { %v17058_v31 = vpop.f32.mrb[133].mxu1  ;;  %17098 = vmatprep.mubr.msk.f32.mxu0 %vm3403_vm14, %v4850_v30 }
 0xb0d   :  { %v4853_v33 = vpop.f32.mrb[134].mxu1 }
 0xb0e   :  { %v17059_v36 = vpop.f32.mrb[135].mxu1  ;;  %17099 = vmatmul.mubr.msk.f32.vlgmr.msra.gmra.mrb[30].mxu0 %vm3403_vm14, %v4853_v33 }
 0xb0f   :  { %17102 = vmatpush3.msk.msra.mxu0 %vm145_vm0, %v5347_v23  ;;  %v19035_v36 = vld [vmem:[%s22022_s20] sm:$0xff]  }
 0xb10   :  { %17106 = vmatprep.subr.msk.mxu0 %vm145_vm0, %v5436_v32 }
 0xb13   :  { %v4858_v11 = vpop.f32.mrb[136].mxu1 }
 0xb14   :  { %v17062_v16 = vpop.f32.mrb[137].mxu1  ;;  %17103 = vmatprep.mubr.msk.f32.mxu0 %vm3403_vm14, %v4858_v11  ;;  %v19036_v11 = vld [vmem:[%s22022_s20 + $0x8] sm:$0xff]  }
 0xb15   :  { %v4861_v39 = vpop.f32.mrb[138].mxu1  ;;  %v19037_v16 = vld [vmem:[%s22022_s20 + $0x10] sm:$0xff]  }
 0xb16   :  { %v17063_v40 = vpop.f32.mrb[139].mxu1  ;;  %17104 = vmatmul.mubr.msk.f32.vlgmr.msra.gmra.mrb[30].mxu0 %vm3403_vm14, %v4861_v39  ;;  %v19039_v39 = vld [vmem:[%s22022_s20 + $0x20] ss:$0 sps:$4 sm:$0xff]  }
 0xb17   :  { %17107 = vmatpush3.msk.msra.mxu0 %vm145_vm0, %v5436_v32  ;;  %v15687_v40 = vld [vmem:[%s22025_s23 + $0x8] sm:$0xff]  }
 0xb18   :  { %17111 = vmatprep.subr.msk.mxu0 %vm145_vm0, %v5525_v38  ;;  %18234 = vmatpush3.bf16.msra.mxu1 %v15687_v40  ;;  %v19055_v40 = vld [vmem:[%s22029_s27 + $0x10] ss:$8 sps:$4 sm:$0xff]  }
 0xb19   :  { %18235 = vmatprep.subr.bf16.mxu1 %v22077_v21 }
 0xb1b   :  { %v4866_v47 = vpop.f32.mrb[140].mxu1 }
 0xb1c   :  { %v17066_v49 = vpop.f32.mrb[141].mxu1  ;;  %17108 = vmatprep.mubr.msk.f32.mxu0 %vm3403_vm14, %v4866_v47 }
 0xb1d   :  { %v4869_v52 = vpop.f32.mrb[142].mxu1  ;;  %v15688_v49 = vld [vmem:[%s22025_s23 + $0x10] sm:$0xff]  }
 0xb1e   :  { %v17067_v54 = vpop.f32.mrb[143].mxu1  ;;  %17109 = vmatmul.mubr.msk.f32.vlgmr.msra.gmra.mrb[30].mxu0 %vm3403_vm14, %v4869_v52 }
 0xb1f   :  { %17112 = vmatpush3.msk.msra.mxu0 %vm145_vm0, %v5525_v38  ;;  %v19038_v38 = vld [vmem:[%s22022_s20 + $0x18] sm:$0xff]  }
 0xb20   :  { %17116 = vmatprep.subr.msk.mxu0 %vm145_vm0, %v5614_v50 }
 0xb23   :  { %v4874_v55 = vpop.f32.mrb[144].mxu1 }
 0xb24   :  { %v17070_v58 = vpop.f32.mrb[145].mxu1  ;;  %17113 = vmatprep.mubr.msk.f32.mxu0 %vm3403_vm14, %v4874_v55 }
 0xb25   :  { %v4877_v60 = vpop.f32.mrb[146].mxu1 }
 0xb26   :  { %v17071_v1 = vpop.f32.mrb[147].mxu1  ;;  %17114 = vmatmul.mubr.msk.f32.vlgmr.msra.gmra.mrb[30].mxu0 %vm3403_vm14, %v4877_v60 }
 0xb27   :  { %17117 = vmatpush3.msk.msra.mxu0 %vm145_vm0, %v5614_v50 }
 0xb28   :  { %17121 = vmatprep.subr.bf16.mxu0 %v22079_v41 }
 0xb2b   :  { %v4882_v2 = vpop.f32.mrb[148].mxu1 }
 0xb2c   :  { %v17074_v6 = vpop.f32.mrb[149].mxu1  ;;  %17118 = vmatprep.mubr.msk.f32.mxu0 %vm3403_vm14, %v4882_v2 }
 0xb2d   :  { %v4885_v7 = vpop.f32.mrb[150].mxu1  ;;  %v15690_v6 = vld [vmem:[%s22025_s23 + $0x20] sm:$0xff]  }
 0xb2e   :  { %v17075_v8 = vpop.f32.mrb[151].mxu1  ;;  %17119 = vmatmul.mubr.msk.f32.vlgmr.msra.gmra.mrb[30].mxu0 %vm3403_vm14, %v4885_v7 }
 0xb2f   :  { %17122 = vmatpush3.bf16.msra.mxu0 %v19807_v14  ;;  %17123 = vmatprep.mubr.msk.bf16.mxu0 %vm19198_vm10, %v22079_v41  ;;  %v19032_v14 = vld [vmem:[%s22023_s21 + $0x10] sm:$0xff]  }
 0xb30   :  { %17143 = vmatprep.subr.bf16.mxu0 %v22079_v41 }
 0xb32   :  { %17124 = vmatmul.mubr.msk.bf16.vlgmr.msra.gmra.mrb[32].mxu0 %vm1824_vm12, %v19030_v12 }
 0xb33   :  { %17127 = vmatprep.mubr.msk.bf16.mxu0 %vm19198_vm10, %v22079_v41 }
 0xb3a   :  { %17128 = vmatmul.mubr.msk.bf16.gmra.mrb[36].mxu0 %vm1824_vm12, %v19031_v34 }
 0xb3b   :  { %17131 = vmatprep.mubr.msk.bf16.mxu0 %vm19198_vm10, %v22079_v41 }
 0xb42   :  { %17132 = vmatmul.mubr.msk.bf16.gmra.mrb[40].mxu0 %vm1824_vm12, %v19032_v14  ;;  %v15691_v14 = vld [vmem:[%s22025_s23 + $0x28] sm:$0xff]  }
 0xb43   :  { %17135 = vmatprep.mubr.msk.bf16.mxu0 %vm19198_vm10, %v22079_v41 }
 0xb4a   :  { %17136 = vmatmul.mubr.msk.bf16.gmra.mrb[44].mxu0 %vm1824_vm12, %v19033_v35 }
 0xb4b   :  { %17139 = vmatprep.mubr.msk.bf16.mxu0 %vm19198_vm10, %v22079_v41 }
 0xb52   :  { %17140 = vmatmul.mubr.msk.bf16.gmra.mrb[48].mxu0 %vm1824_vm12, %v19034_v17 }
 0xb53   :  { %17145 = vmatprep.mubr.msk.bf16.mxu0 %vm19198_vm10, %v22079_v41 }
 0xc01   :  { %v17120_v23 = vpop.f32.mrb[30].mxu0 }
 0xc02   :  { %v18537_v28 = vadd.f32 %v17120_v23, %v4899_v22  ;;  %v5690_v29 = vpop.f32.mrb[31].mxu0 }
 0xc03   :  { %v18538_v30 = vadd.f32 %v5690_v29, %v4894_v27  ;;  %v15692_v27 = vld [vmem:[%s22025_s23 + $0x30] sm:$0xff]  }
 0xc04   :  { %v5702_v31 = vmax.f32 %v18537_v28, 0.0 }
 0xc05   :  { %v5701_v32 = vmax.f32 %v18538_v30, 0.0  ;;  %v15693_v30 = vld [vmem:[%s22025_s23 + $0x38] sm:$0xff]  }
 0xc07   :  { %v5712_v33 = vpack.c.bf16 %v5702_v31, %v5701_v32  ;;  %v15694_v31 = vld [vmem:[%s22025_s23 + $0x40] sm:$0xff]  }
 0xc08   :  { %v19040_v32 = vld [vmem:[%s22027_s25] sm:$0xff]  }
 0xc09   :  { %17144 = vmatpush3.bf16.msra.mxu0 %v5712_v33  ;;  %v19041_v33 = vld [vmem:[%s22027_s25 + $0x8] sm:$0xff]  }
 0xc0a   :  { %18229 = vmatprep.subr.bf16.mxu0 %v22077_v21 }
 0xc0c   :  { %17146 = vmatmul.mubr.msk.bf16.vlgmr.msra.gmra.mrb[32].mxu0 %vm1824_vm12, %v19035_v36  ;;  %v19042_v36 = vld [vmem:[%s22027_s25 + $0x10] sm:$0xff]  }
 0xc0d   :  { %17149 = vmatprep.mubr.msk.bf16.mxu0 %vm19198_vm10, %v22079_v41  ;;  %18231 = vmatpush3.bf16.msra.mxu0 %v15314_v37  ;;  %v19043_v37 = vld [vmem:[%s22027_s25 + $0x18] sm:$0xff]  }
 0xc0e   :  { %17228 = vmatprep.subr.bf16.mxu0 %v22079_v41 }
 0xc14   :  { %17150 = vmatmul.mubr.msk.bf16.gmra.mrb[36].mxu0 %vm1824_vm12, %v19036_v11  ;;  %v19044_v11 = vld [vmem:[%s22027_s25 + $0x20] ss:$0 sps:$4 sm:$0xff]  }
 0xc15   :  { %17153 = vmatprep.mubr.msk.bf16.mxu0 %vm19198_vm10, %v22079_v41 }
 0xc1c   :  { %17154 = vmatmul.mubr.msk.bf16.gmra.mrb[40].mxu0 %vm1824_vm12, %v19037_v16  ;;  %v19050_v16 = vld [vmem:[%s22029_s27 + $0x4] ss:$8 sps:$4 sm:$0xff]  }
 0xc1d   :  { %17157 = vmatprep.mubr.msk.bf16.mxu0 %vm19198_vm10, %v22079_v41 }
 0xc24   :  { %17158 = vmatmul.mubr.msk.bf16.gmra.mrb[44].mxu0 %vm1824_vm12, %v19038_v38  ;;  %v19052_v38 = vld [vmem:[%s22029_s27] ss:$8 sps:$4 sm:$0xff]  }
 0xc25   :  { %17161 = vmatprep.mubr.msk.bf16.mxu0 %vm19198_vm10, %v22079_v41 }
 0xc2c   :  { %17162 = vmatmul.mubr.msk.bf16.gmra.mrb[48].mxu0 %vm1824_vm12, %v19039_v39  ;;  %v19053_v39 = vld [vmem:[%s22029_s27 + $0x14] ss:$8 sps:$4 sm:$0xff]  }
 0xc2d   :  { %17169 = vmatprep.mubr.msk.f32.mxu0 %vm19198_vm10, %v22079_v41 }
 0xcdf   :  { %v5904_v46 = vpop.f32.mrb[32].mxu0 }
 0xce0   :  { %v17147_v47 = vpop.f32.mrb[33].mxu0  ;;  %17170 = vmatmul.mubr.msk.f32.vlgmr.msra.gmra.mrb[52].mxu0 %vm1824_vm12, %v5904_v46  ;;  %v19056_v46 = vld [vmem:[%s22029_s27 + $0x24] ss:$8 sps:$4 sm:$0xff]  }
 0xce1   :  { %17229 = vmatpush3.bf16.msra.mxu0 %v19625_v57  ;;  %v5907_v50 = vpop.f32.mrb[34].mxu0  ;;  %17230 = vmatprep.mubr.msk.bf16.mxu0 %vm19198_vm10, %v22079_v41  ;;  %v15689_v57 = vld [vmem:[%s22025_s23 + $0x18] sm:$0xff]   ;;  %v19058_v47 = vld [vmem:[%s22029_s27 + $0x20] ss:$8 sps:$4 sm:$0xff]  }
 0xce2   :  { %v17148_v52 = vpop.f32.mrb[35].mxu0  ;;  %17177 = vmatmul.mubr.msk.f32.vlgmr.msra.gmra.mrb[2].mxu1 %vm1824_vm12, %v5907_v50  ;;  %17250 = vmatprep.subr.bf16.mxu0 %v22079_v41  ;;  %v19061_v50 = vld [vmem:[%s22029_s27 + $0x30] ss:$8 sps:$4 sm:$0xff]  }
 0xce3   :  { %18237 = vmatpush3.bf16.msra.mxu1 %v15688_v49  ;;  %17183 = vmatprep.mubr.msk.f32.mxu1 %vm19198_vm10, %v22079_v41  ;;  %v19059_v49 = vld [vmem:[%s22029_s27 + $0x34] ss:$8 sps:$4 sm:$0xff]   ;;  %s22160_s27 = sld [smem:[#allocation27_spill]] }
 0xce4   :  { %18238 = vmatprep.subr.bf16.mxu1 %v22077_v21  ;;  %17231 = vmatmul.mubr.msk.bf16.vlgmr.msra.gmra.mrb[56].mxu0 %vm129_vm1, %v19040_v32 }
 0xce5   :  { %17234 = vmatprep.mubr.msk.bf16.mxu0 %vm19198_vm10, %v22079_v41 }
 0xce7   :  { %v5912_v54 = vpop.f32.mrb[36].mxu0 }
 0xce8   :  { %v17151_v55 = vpop.f32.mrb[37].mxu0 }
 0xce9   :  { %v5915_v58 = vpop.f32.mrb[38].mxu0  ;;  %v5946_v55 = vpop.permute.xlu1 %5945 }
 0xcea   :  { %v17152_v60 = vpop.f32.mrb[39].mxu0  ;;  %17184 = vmatmul.mubr.msk.f32.vlgmr.msra.gmra.mrb[2].mxu1 %vm1824_vm12, %v5912_v54 }
 0xceb   :  { %18240 = vmatpush3.bf16.msra.mxu1 %v15689_v57  ;;  %17190 = vmatprep.mubr.msk.f32.mxu1 %vm19198_vm10, %v22079_v41 }
 0xcec   :  { %18241 = vmatprep.subr.bf16.mxu1 %v22077_v21  ;;  %17235 = vmatmul.mubr.msk.bf16.gmra.mrb[60].mxu0 %vm129_vm1, %v19041_v33 }
 0xced   :  { %17238 = vmatprep.mubr.msk.bf16.mxu0 %vm19198_vm10, %v22079_v41 }
 0xcef   :  { %v5920_v1 = vpop.f32.mrb[40].mxu0 }
 0xcf0   :  { %v17155_v2 = vpop.f32.mrb[41].mxu0 }
 0xcf1   :  { %v5923_v7 = vpop.f32.mrb[42].mxu0 }
 0xcf2   :  { %v17156_v8 = vpop.f32.mrb[43].mxu0  ;;  %17191 = vmatmul.mubr.msk.f32.vlgmr.msra.gmra.mrb[2].mxu1 %vm1824_vm12, %v5915_v58 }
 0xcf3   :  { %18243 = vmatpush3.bf16.msra.mxu1 %v15690_v6  ;;  %17197 = vmatprep.mubr.msk.f32.mxu1 %vm19198_vm10, %v22079_v41  ;;  %v19045_v8 = vld [vmem:[%s22026_s24] sm:$0xff]  }
 0xcf4   :  { %18244 = vmatprep.subr.bf16.mxu1 %v22077_v21  ;;  %17239 = vmatmul.mubr.msk.bf16.gmra.mrb[64].mxu0 %vm129_vm1, %v19042_v36 }
 0xcf5   :  { %17242 = vmatprep.mubr.msk.bf16.mxu0 %vm19198_vm10, %v22079_v41 }
 0xcf7   :  { %v5928_v12 = vpop.f32.mrb[44].mxu0 }
 0xcf8   :  { %v17159_v34 = vpop.f32.mrb[45].mxu0 }
 0xcf9   :  { %v5931_v35 = vpop.f32.mrb[46].mxu0  ;;  %v19047_v34 = vld [vmem:[%s22026_s24 + $0x10] sm:$0xff]  }
 0xcfa   :  { %v17160_v17 = vpop.f32.mrb[47].mxu0  ;;  %17198 = vmatmul.mubr.msk.f32.vlgmr.msra.gmra.mrb[2].mxu1 %vm1824_vm12, %v5920_v1 }
 0xcfb   :  { %18246 = vmatpush3.bf16.msra.mxu1 %v15691_v14  ;;  %17204 = vmatprep.mubr.msk.f32.mxu1 %vm19198_vm10, %v22079_v41  ;;  %v19048_v14 = vld [vmem:[%s22026_s24 + $0x18] sm:$0xff]  }
 0xcfc   :  { %18247 = vmatprep.subr.bf16.mxu1 %v22077_v21  ;;  %17243 = vmatmul.mubr.msk.bf16.gmra.mrb[68].mxu0 %vm129_vm1, %v19043_v37  ;;  %v14625_v17 = vld [vmem:[%s22118_s9 + $0x18] sm:$0xff] }
 0xcfd   :  { %17246 = vmatprep.mubr.msk.bf16.mxu0 %vm19198_vm10, %v22079_v41 }
 0xcff   :  { %v5936_v22 = vpop.f32.mrb[48].mxu0 }
 0xd00   :  { %v17163_v23 = vpop.f32.mrb[49].mxu0 }
 0xd01   :  { %v5939_v28 = vpop.f32.mrb[50].mxu0 }
 0xd02   :  { %v17164_v29 = vpop.f32.mrb[51].mxu0  ;;  %17205 = vmatmul.mubr.msk.f32.vlgmr.msra.gmra.mrb[2].mxu1 %vm1824_vm12, %v5923_v7 }
 0xd03   :  { %18249 = vmatpush3.bf16.msra.mxu1 %v15692_v27  ;;  %17211 = vmatprep.mubr.msk.f32.mxu1 %vm19198_vm10, %v22079_v41  ;;  %v14624_v27 = vld [vmem:[%s22118_s9 + $0x10] sm:$0xff] }
 0xd04   :  { %18250 = vmatprep.subr.bf16.mxu1 %v22077_v21  ;;  %17247 = vmatmul.mubr.msk.bf16.gmra.mrb[72].mxu0 %vm129_vm1, %v19044_v11  ;;  %v7166_v28 = vmax.f32 %v14624_v27, 0.0 }
 0xd05   :  { %17252 = vmatprep.mubr.msk.bf16.mxu0 %vm19198_vm10, %v22079_v41 }
 0xd06   :  { %v7177_v29 = vpack.c.bf16 %v7166_v28, %v7166_v28 }
 0xd0a   :  { %17212 = vmatmul.mubr.msk.f32.vlgmr.msra.gmra.mrb[2].mxu1 %vm1824_vm12, %v5928_v12  ;;  %v19046_v12 = vld [vmem:[%s22026_s24 + $0x8] sm:$0xff]  }
 0xd0b   :  { %18252 = vmatpush3.bf16.msra.mxu1 %v15693_v30  ;;  %17218 = vmatprep.mubr.msk.f32.mxu1 %vm19198_vm10, %v22079_v41  ;;  %v7218_v30 = vsel %vm145_vm0, %v7177_v29, 0 }
 0xd0c   :  { %18253 = vmatprep.subr.bf16.mxu1 %v22077_v21 }
 0xd12   :  { %17219 = vmatmul.mubr.msk.f32.vlgmr.msra.gmra.mrb[2].mxu1 %vm1824_vm12, %v5931_v35  ;;  %v19049_v35 = vld [vmem:[%s22026_s24 + $0x20] ss:$0 sps:$4 sm:$0xff]   ;;  %s22161_s24 = sld [smem:[#allocation32_spill]] }
 0xd13   :  { %18255 = vmatpush3.bf16.msra.mxu1 %v15694_v31  ;;  %17225 = vmatprep.mubr.msk.f32.mxu1 %vm19198_vm10, %v22079_v41 }
 0xd14   :  { %18257 = vmatprep.subr.bf16.mxu1 %v19050_v16 }
 0xd1a   :  { %17226 = vmatmul.mubr.msk.f32.vlgmr.msra.gmra.mrb[2].mxu1 %vm1824_vm12, %v5936_v22  ;;  %v7167_v22 = vmax.f32 %v14625_v17, 0.0 }
 0xd1b   :  { %7016 = vmatprep.mubr.f32.mxu1 %v22079_v41  ;;  %18259 = vmatpush1.bf16.msra.mxu1 %v19052_v38 }
 0xd1c   :  { %18261 = vmatprep.subr.bf16.mxu1 %v19053_v39  ;;  %v7178_v23 = vpack.c.bf16 %v7167_v22, %v7167_v22 }
 0xd1f   :  { %18263 = vmatpush1.bf16.msra.mxu1 %v19055_v40 }
 0xd20   :  { %18265 = vmatprep.subr.bf16.mxu1 %v19056_v46 }
 0xd23   :  { %18267 = vmatpush1.bf16.msra.mxu1 %v19058_v47 }
 0xd24   :  { %18269 = vmatprep.subr.bf16.mxu1 %v19059_v49 }
 0xd27   :  { %18271 = vmatpush1.bf16.msra.mxu1 %v19061_v50 }
 0xd28   :  { %14631 = vmatprep.subr.msk.bf16.mxu1 %vm145_vm0, %v7178_v23 }
 0xdb3   :  { %v6021_v52 = vpop.f32.mrb[52].mxu0 }
 0xdb4   :  { %v17171_v54 = vpop.f32.mrb[53].mxu0  ;;  %v6025_v57 = vadd.f32 %v6021_v52, %v5946_v55 }
 0xded   :  { %v6653_v58 = vpop.f32.mrb[2].mxu1 }
 0xdee   :  { %v18540_v60 = vadd.f32 %v6653_v58, %v6025_v57  ;;  %v17227_v1 = vpop.f32.mrb[3].mxu1  ;;  %v19062_v58 = vld [vmem:[%s22119_s0] sm:$0xff]  }
 0xdf0   :  { %v6658_v2 = vmax.f32 %v18540_v60, 0.0 }
 0xdf2   :  { %v6668_v6 = vpack.c.bf16 %v6658_v2, %v6658_v2  ;;  %v19063_v2 = vld [vmem:[%s22119_s0 + $0x8] sm:$0xff]  }
 0xdf4   :  { %v6827_v7 = vsel %vm145_vm0, %v6668_v6, 0  ;;  %v19064_v6 = vld [vmem:[%s22119_s0 + $0x10] sm:$0xff]  }
 0xdf5   :  { %17251 = vmatpush3.bf16.msra.mxu0 %v6827_v7  ;;  %v19065_v7 = vld [vmem:[%s22119_s0 + $0x18] sm:$0xff]  }
 0xdf8   :  { %17253 = vmatmul.mubr.msk.bf16.vlgmr.msra.gmra.mrb[56].mxu0 %vm129_vm1, %v19045_v8  ;;  %v19066_v8 = vld [vmem:[%s22119_s0 + $0x20] ss:$0 sps:$4 sm:$0xff]   ;;  %s22139_s0 = smov 16  }
 0xdf9   :  { %17256 = vmatprep.mubr.msk.bf16.mxu0 %vm19198_vm10, %v22079_v41 }
 0xe00   :  { %17257 = vmatmul.mubr.msk.bf16.gmra.mrb[60].mxu0 %vm129_vm1, %v19046_v12 }
 0xe01   :  { %17260 = vmatprep.mubr.msk.bf16.mxu0 %vm19198_vm10, %v22079_v41 }
 0xe08   :  { %17261 = vmatmul.mubr.msk.bf16.gmra.mrb[64].mxu0 %vm129_vm1, %v19047_v34 }
 0xe09   :  { %17264 = vmatprep.mubr.msk.bf16.mxu0 %vm19198_vm10, %v22079_v41 }
 0xe10   :  { %17265 = vmatmul.mubr.msk.bf16.gmra.mrb[68].mxu0 %vm129_vm1, %v19048_v14 }
 0xe11   :  { %17268 = vmatprep.mubr.msk.bf16.mxu0 %vm19198_vm10, %v22079_v41 }
 0xe18   :  { %17269 = vmatmul.mubr.msk.bf16.gmra.mrb[72].mxu0 %vm129_vm1, %v19049_v35 }
 0xecb   :  { %v6863_v31 = vpop.f32.mrb[56].mxu0 }
 0xecc   :  { %v17254_v32 = vpop.f32.mrb[57].mxu0  ;;  %14615 = vmatmul.mubr.msk.f32.vlgmr.msra.gmra.mrb[152].mxu1 %vm811_vm11, %v6863_v31 }
 0xecd   :  { %v6866_v33 = vpop.f32.mrb[58].mxu0  ;;  %7022 = vmatprep.mubr.f32.mxu1 %v22079_v41  ;;  %7224 = vmatpush1.bf16.msra.mxu1 %v7218_v30 }
 0xece   :  { %v17255_v36 = vpop.f32.mrb[59].mxu0 }
 0xed0   :  { %14616 = vmatmul.mubr.msk.f32.gmra.mrb[154].mxu1 %vm811_vm11, %v6866_v33 }
 0xed1   :  { %7028 = vmatprep.mubr.f32.mxu1 %v22079_v41 }
 0xed3   :  { %v6871_v37 = vpop.f32.mrb[60].mxu0 }
 0xed4   :  { %v17258_v11 = vpop.f32.mrb[61].mxu0  ;;  %14617 = vmatmul.mubr.msk.f32.gmra.mrb[156].mxu1 %vm811_vm11, %v6871_v37  ;;  %v15702_v37 = vld [vmem:[%s22121_s11 + $0x40] sm:$0xff]  }
 0xed5   :  { %v6874_v16 = vpop.f32.mrb[62].mxu0  ;;  %7034 = vmatprep.mubr.f32.mxu1 %v22079_v41  ;;  %18273 = vmatprep.subr.bf16.mxu0 %v15702_v37 }
 0xed6   :  { %v17259_v38 = vpop.f32.mrb[63].mxu0 }
 0xed8   :  { %14618 = vmatmul.mubr.msk.f32.gmra.mrb[158].mxu1 %vm811_vm11, %v6874_v16  ;;  %v15350_v16 = vld [vmem:[%s22121_s11] sm:$0xff]  }
 0xed9   :  { %7040 = vmatprep.mubr.f32.mxu1 %v22079_v41  ;;  %18275 = vmatpush3.bf16.msra.mxu0 %v15350_v16  ;;  %v15699_v16 = vld [vmem:[%s22121_s11 + $0x28] sm:$0xff]  }
 0xedb   :  { %v6879_v39 = vpop.f32.mrb[64].mxu0 }
 0xedc   :  { %v17262_v40 = vpop.f32.mrb[65].mxu0  ;;  %14619 = vmatmul.mubr.msk.f32.gmra.mrb[160].mxu1 %vm811_vm11, %v6879_v39  ;;  %v15703_v39 = vld [vmem:[%s22121_s11 + $0x48] sm:$0xff]  }
 0xedd   :  { %v6882_v46 = vpop.f32.mrb[66].mxu0  ;;  %7046 = vmatprep.mubr.f32.mxu1 %v22079_v41  ;;  %18277 = vmatprep.subr.bf16.mxu0 %v15703_v39 }
 0xede   :  { %v17263_v47 = vpop.f32.mrb[67].mxu0 }
 0xee0   :  { %14620 = vmatmul.mubr.msk.f32.gmra.mrb[162].mxu1 %vm811_vm11, %v6882_v46  ;;  %v15695_v46 = vld [vmem:[%s22121_s11 + $0x8] sm:$0xff]  }
 0xee1   :  { %7052 = vmatprep.mubr.f32.mxu1 %v22079_v41  ;;  %18279 = vmatpush3.bf16.msra.mxu0 %v15695_v46 }
 0xee3   :  { %v6887_v49 = vpop.f32.mrb[68].mxu0 }
 0xee4   :  { %v17266_v50 = vpop.f32.mrb[69].mxu0  ;;  %14621 = vmatmul.mubr.msk.f32.gmra.mrb[164].mxu1 %vm811_vm11, %v6887_v49 }
 0xee5   :  { %v6890_v52 = vpop.f32.mrb[70].mxu0  ;;  %7058 = vmatprep.mubr.f32.mxu1 %v22079_v41 }
 0xee6   :  { %v17267_v54 = vpop.f32.mrb[71].mxu0 }
 0xee7   :  { %v15696_v54 = vld [vmem:[%s22121_s11 + $0x10] sm:$0xff]  }
 0xee8   :  { %14622 = vmatmul.mubr.msk.f32.gmra.mrb[166].mxu1 %vm811_vm11, %v6890_v52  ;;  %v15704_v52 = vld [vmem:[%s22121_s11 + $0x50] sm:$0xff]  }
 0xee9   :  { %7064 = vmatprep.mubr.f32.mxu1 %v22079_v41  ;;  %18281 = vmatprep.subr.bf16.mxu0 %v15704_v52 }
 0xeea   :  { %18283 = vmatpush3.bf16.msra.mxu0 %v15696_v54  ;;  %v15701_v54 = vld [vmem:[%s22121_s11 + $0x38] sm:$0xff]  }
 0xeeb   :  { %v6895_v55 = vpop.f32.mrb[72].mxu0 }
 0xeec   :  { %v17270_v57 = vpop.f32.mrb[73].mxu0  ;;  %14623 = vmatmul.mubr.msk.f32.gmra.mrb[168].mxu1 %vm811_vm11, %v6895_v55  ;;  %v15705_v55 = vld [vmem:[%s22121_s11 + $0x58] sm:$0xff]  }
 0xeed   :  { %v6898_v60 = vpop.f32.mrb[74].mxu0  ;;  %7255 = vmatprep.mubr.bf16.mxu1 %v19188_v4  ;;  %18285 = vmatprep.subr.bf16.mxu0 %v15705_v55 }
 0xeee   :  { %v17271_v1 = vpop.f32.mrb[75].mxu0 }
 0xef0   :  { %14632 = vmatmul.mubr.msk.bf16.vlgmr.msra.gmra.mrb[172].mxu1 %vm129_vm1, %v19062_v58  ;;  %v15697_v58 = vld [vmem:[%s22121_s11 + $0x18] sm:$0xff]  }
 0xef1   :  { %7265 = vmatprep.mubr.bf16.mxu1 %v19188_v4  ;;  %18287 = vmatpush3.bf16.msra.mxu0 %v15697_v58 }
 0xef8   :  { %14633 = vmatmul.mubr.msk.bf16.gmra.mrb[176].mxu1 %vm129_vm1, %v19063_v2  ;;  %v15706_v2 = vld [vmem:[%s22121_s11 + $0x60] sm:$0xff]  }
 0xef9   :  { %7275 = vmatprep.mubr.bf16.mxu1 %v19188_v4  ;;  %18289 = vmatprep.subr.bf16.mxu0 %v15706_v2 }
 0xf00   :  { %14634 = vmatmul.mubr.msk.bf16.gmra.mrb[180].mxu1 %vm129_vm1, %v19064_v6 }
 0xf01   :  { %7285 = vmatprep.mubr.bf16.mxu1 %v19188_v4 }
 0xf08   :  { %14635 = vmatmul.mubr.msk.bf16.gmra.mrb[184].mxu1 %vm129_vm1, %v19065_v7  ;;  %v15698_v7 = vld [vmem:[%s22121_s11 + $0x20] sm:$0xff]  }
 0xf09   :  { %7295 = vmatprep.mubr.bf16.mxu1 %v19188_v4  ;;  %18291 = vmatpush3.bf16.msra.mxu0 %v15698_v7 }
 0xf10   :  { %14636 = vmatmul.mubr.msk.bf16.gmra.mrb[188].mxu1 %vm129_vm1, %v19066_v8  ;;  %v15707_v8 = vld [vmem:[%s22121_s11 + $0x68] sm:$0xff]  }
 0xf11   :  { %18293 = vmatprep.subr.bf16.mxu0 %v15707_v8  ;;  %v7837_v8 = vld [vmem:[%s22122_s1 + $0x8] sm:$0xff] }
 0xf12   :  { %18295 = vmatpush3.bf16.msra.mxu0 %v15699_v16  ;;  %v9099_v16 = vld [vmem:[%s22123_s3] sm:$0xff] }
 0xf9f   :  { %v20619_v12 = vpop.f32.mrb[152].mxu1 }
 0xfa0   :  { %v20621_v34 = vpop.f32.mrb[153].mxu1 }
 0xfa3   :  { %v20623_v14 = vpop.f32.mrb[154].mxu1 }
 0xfa4   :  { %v20625_v35 = vpop.f32.mrb[155].mxu1 }
 0xfa7   :  { %v20627_v17 = vpop.f32.mrb[156].mxu1 }
 0xfa8   :  { %v20629_v22 = vpop.f32.mrb[157].mxu1 }
 0xfab   :  { %v20631_v23 = vpop.f32.mrb[158].mxu1 }
 0xfac   :  { %v20633_v4 = vpop.f32.mrb[159].mxu1 }
 0xfaf   :  { %v20635_v27 = vpop.f32.mrb[160].mxu1 }
 0xfb0   :  { %v20637_v28 = vpop.f32.mrb[161].mxu1 }
 0xfb3   :  { %v20639_v29 = vpop.f32.mrb[162].mxu1 }
 0xfb4   :  { %v20641_v30 = vpop.f32.mrb[163].mxu1 }
 0xfb7   :  { %v20643_v31 = vpop.f32.mrb[164].mxu1 }
 0xfb8   :  { %v20645_v32 = vpop.f32.mrb[165].mxu1 }
 0xfbb   :  { %v20647_v33 = vpop.f32.mrb[166].mxu1 }
 0xfbc   :  { %v20649_v36 = vpop.f32.mrb[167].mxu1 }
 0xfbf   :  { %v20654_v11 = vpop.f32.mrb[168].mxu1 }
 0xfc0   :  { %v20659_v38 = vpop.f32.mrb[169].mxu1 }
 0xfc3   :  { %v7257_v40 = vpop.f32.mrb[172].mxu1 }
 0xfc4   :  { %7310 = vrot.lane.b32.xlu1 %v7257_v40, %s22138_s29  ;;  %v7259_v47 = vpop.f32.mrb[173].mxu1 }
 0xfc5   :  { %7312 = vrot.lane.b32.xlu0 %v7259_v47, %s22138_s29  ;;  %v7261_v49 = vpop.f32.mrb[174].mxu1  ;;  %v15708_v47 = vld [vmem:[%s22121_s11 + $0x70] sm:$0xff]  }
 0xfc6   :  { %v7263_v50 = vpop.f32.mrb[175].mxu1  ;;  %18297 = vmatprep.subr.bf16.mxu0 %v15708_v47  ;;  %v9102_v47 = vld [vmem:[%s22123_s3 + $0x18] sm:$0xff] }
 0xfc8   :  { %7332 = vrot.lane.b32.xlu1 %v7261_v49, %s22139_s0  ;;  %v15700_v49 = vld [vmem:[%s22121_s11 + $0x30] sm:$0xff]  }
 0xfc9   :  { %7334 = vrot.lane.b32.xlu0 %v7263_v50, %s22139_s0  ;;  %18299 = vmatpush3.bf16.msra.mxu0 %v15700_v49  ;;  %v15709_v50 = vld [vmem:[%s22121_s11 + $0x78] sm:$0xff]   ;;  %v7308_v49 = vpop.permute.xlu0 %7307 }
 0xfca   :  { %18301 = vmatprep.subr.bf16.mxu0 %v15709_v50 }
 0xfcb   :  { %v7267_v57 = vpop.f32.mrb[176].mxu1 }
 0xfcc   :  { %7354 = vrot.lane.b32.xlu1 %v7267_v57, %s22140_s2  ;;  %v7269_v60 = vpop.f32.mrb[177].mxu1 }
 0xfcd   :  { %7356 = vrot.lane.b32.xlu0 %v7269_v60, %s22140_s2  ;;  %v7271_v1 = vpop.f32.mrb[178].mxu1  ;;  %18303 = vmatpush3.bf16.msra.mxu0 %v15701_v54 }
 0xfce   :  { %v7273_v6 = vpop.f32.mrb[179].mxu1  ;;  %17272 = vmatprep.subr.bf16.mxu0 %v22079_v41 }
 0xfd0   :  { %7376 = vrot.lane.b32.xlu1 %v7271_v1, %s22141_s5 }
 0xfd1   :  { %7378 = vrot.lane.b32.xlu0 %v7273_v6, %s22141_s5  ;;  %v7836_v6 = vld [vmem:[%s22122_s1] sm:$0xff] }
 0xfd3   :  { %v20696_v37 = vpop.f32.mrb[180].mxu1 }
 0xfd4   :  { %v20701_v39 = vpop.f32.mrb[181].mxu1 }
 0xfd5   :  { %v7281_v40 = vpop.f32.mrb[182].mxu1 }
 0xfd6   :  { %v7283_v46 = vpop.f32.mrb[183].mxu1  ;;  %7414 = vrot.lane.b32.xlu1 %v7281_v40, %s22142_s8  ;;  %v9100_v40 = vld [vmem:[%s22123_s3 + $0x8] sm:$0xff] }
 0xfd7   :  { %7416 = vrot.lane.b32.xlu0 %v7283_v46, %s22142_s8  ;;  %v9101_v46 = vld [vmem:[%s22123_s3 + $0x10] sm:$0xff]  ;;  %s22162_s3 = sld [smem:[#allocation33_spill]] }
 0xfdb   :  { %v7287_v52 = vpop.f32.mrb[184].mxu1 }
 0xfdc   :  { %7436 = vrot.lane.b32.xlu1 %v7287_v52, %s22143_s7  ;;  %v7289_v55 = vpop.f32.mrb[185].mxu1 }
 0xfdd   :  { %7438 = vrot.lane.b32.xlu0 %v7289_v55, %s22143_s7  ;;  %v7291_v57 = vpop.f32.mrb[186].mxu1 }
 0xfde   :  { %v7293_v58 = vpop.f32.mrb[187].mxu1 }
 0xfe0   :  { %7458 = vrot.lane.b32.xlu1 %v7291_v57, %s22144_s10  ;;  %v7316_v57 = vld [vmem:[%s22124_s12] sm:$0x3] }
 0xfe1   :  { %7460 = vrot.lane.b32.xlu0 %v7293_v58, %s22144_s10 }
 0xfe3   :  { %v7297_v60 = vpop.f32.mrb[188].mxu1 }
 0xfe4   :  { %7480 = vrot.lane.b32.xlu1 %v7297_v60, %s22145_s28  ;;  %v7299_v1 = vpop.f32.mrb[189].mxu1 }
 0xfe5   :  { %7482 = vrot.lane.b32.xlu0 %v7299_v1, %s22145_s28  ;;  %v7301_v2 = vpop.f32.mrb[190].mxu1  ;;  %v14637_v1 = vld [vmem:[%s22124_s12 + $0x2] sm:$0x3] }
 0xfe6   :  { %v7302_v7 = vpop.f32.mrb[191].mxu1  ;;  %v20749_v2 = vrot.slane %v7316_v57, %v19467_v62 }
 0xfe8   :  { %7840 = vperm.xlu1 %18959, %v7836_v6   ;;  %22146 = vst [vmem:[#allocation12_spill] sm:$0xff] %v20749_v2  ;;  %v20752_v6 = vrot.slane %v7316_v57, %v19469_v63 }
 0xfe9   :  { %7845 = vperm.xlu0 %18958, %v7837_v8  }
 0xfea   :  { %22147 = vst [vmem:[#allocation13_spill] sm:$0xff] %v20752_v6 }
 0xfec   :  { %9105 = vperm.xlu1 %18959, %v9099_v16   ;;  %v14638_v16 = vld [vmem:[%s22124_s12 + $0x4] sm:$0x3] }
 0xfed   :  { %9110 = vperm.xlu0 %18958, %v9100_v40   ;;  %v20762_v40 = vrot.slane %v14637_v1, %v19467_v62  ;;  %v20777_v41 = vrot.slane %v14638_v16, %v19467_v62 }
 0xfef   :  { %22148 = vst [vmem:[#allocation14_spill] sm:$0xff] %v20762_v40 }
 0xff0   :  { %9115 = vperm.xlu1 %18959, %v9101_v46   ;;  %v20765_v46 = vrot.slane %v14637_v1, %v19469_v63  ;;  %v20780_v1 = vrot.slane %v14638_v16, %v19469_v63 }
 0xff1   :  { %9120 = vperm.xlu0 %18958, %v9102_v47  }
 0xff2   :  { %22149 = vst [vmem:[#allocation15_spill] sm:$0xff] %v20765_v46 }
0x1036   :  { %v7311_v50 = vpop.permute.xlu1 %7310 }
0x1037   :  { %v7313_v52 = vpop.permute.xlu0 %7312 }
0x1038   :  { %v7314_v7 = vsel %vm245_vm2, %v7311_v50, %v7313_v52  ;;  %v7315_v8 = vsel %vm245_vm2, %v7313_v52, %v7311_v50  ;;  %v14639_v50 = vld [vmem:[%s22124_s12 + $0x6] sm:$0x3] }
0x1039   :  { %v7328_v52 = vmul.f32 %v20749_v2, %v7315_v8  ;;  %v7329_v21 = vmul.f32 %v20752_v6, %v7314_v7  ;;  %v20789_v7 = vrot.slane %v14639_v50, %v19467_v62  ;;  %v20792_v6 = vrot.slane %v14639_v50, %v19469_v63  ;;  %v14641_v50 = vld [vmem:[%s22124_s12 + $0xa] sm:$0x3] }
0x103a   :  { %v7333_v54 = vpop.permute.xlu1 %7332 }
0x103b   :  { %v7335_v55 = vpop.permute.xlu0 %7334  ;;  %22150 = vst [vmem:[#allocation16_spill] sm:$0xff] %v20789_v7  ;;  %22151 = vst [vmem:[#allocation17_spill] sm:$0xff] %v20792_v6 }
0x103c   :  { %v7336_v47 = vsel %vm268_vm3, %v7333_v54, %v7335_v55  ;;  %v7337_v57 = vsel %vm268_vm3, %v7335_v55, %v7333_v54 }
0x103d   :  { %v7350_v55 = vmul.f32 %v20762_v40, %v7337_v57  ;;  %v7351_v8 = vmul.f32 %v20765_v46, %v7336_v47  ;;  %v7331_v57 = vadd.f32 %v7329_v21, %v7308_v49 }
0x103e   :  { %v7355_v58 = vpop.permute.xlu1 %7354 }
0x103f   :  { %v7357_v60 = vpop.permute.xlu0 %7356  ;;  %v7353_v56 = vadd.f32 %v7351_v8, %v7331_v57 }
0x1040   :  { %v7358_v0 = vsel %vm292_vm4, %v7355_v58, %v7357_v60  ;;  %v7359_v54 = vsel %vm292_vm4, %v7357_v60, %v7355_v58  ;;  %v14640_v58 = vld [vmem:[%s22124_s12 + $0x8] sm:$0x3]  ;;  %v7330_v60 = vadd.f32 %v7328_v52, %v7308_v49 }
0x1041   :  { %v7372_v47 = vmul.f32 %v20777_v41, %v7359_v54  ;;  %v7373_v46 = vmul.f32 %v20780_v1, %v7358_v0  ;;  %v20809_v48 = vrot.slane %v14640_v58, %v19467_v62  ;;  %v20812_v21 = vrot.slane %v14640_v58, %v19469_v63  ;;  %v14642_v0 = vld [vmem:[%s22124_s12 + $0xc] sm:$0x3] }
0x1042   :  { %v7377_v20 = vpop.permute.xlu1 %7376  ;;  %v7352_v61 = vadd.f32 %v7350_v55, %v7330_v60  ;;  %v20818_v54 = vrot.slane %v14641_v50, %v19467_v62  ;;  %v14643_v55 = vld [vmem:[%s22124_s12 + $0xe] sm:$0x3] }
0x1043   :  { %v7379_v19 = vpop.permute.xlu0 %7378  ;;  %22152 = vst [vmem:[#allocation18_spill] sm:$0xff] %v20809_v48  ;;  %v7375_v52 = vadd.f32 %v7373_v46, %v7353_v56  ;;  %v20831_v56 = vrot.slane %v14642_v0, %v19467_v62  ;;  %v20834_v46 = vrot.slane %v14642_v0, %v19469_v63  ;;  %v20850_v0 = vrot.slane %v14643_v55, %v19469_v63 }
0x1044   :  { %v7380_v16 = vsel %vm316_vm5, %v7377_v20, %v7379_v19  ;;  %v7381_v2 = vsel %vm316_vm5, %v7379_v19, %v7377_v20  ;;  %v7374_v49 = vadd.f32 %v7372_v47, %v7352_v61  ;;  %v7410_v47 = vmul.f32 %v20809_v48, %v20696_v37  ;;  %v14644_v37 = vld [vmem:[%s22124_s12 + $0x10] sm:$0x3] }
0x1045   :  { %v7394_v53 = vmul.f32 %v20789_v7, %v7381_v2  ;;  %v7395_v19 = vmul.f32 %v20792_v6, %v7380_v16  ;;  %v20821_v2 = vrot.slane %v14641_v50, %v19469_v63  ;;  %22154 = vst [vmem:[#allocation20_spill] sm:$0xff] %v20831_v56  ;;  %22155 = vst [vmem:[#allocation21_spill] sm:$0xff] %v20834_v46 }
0x1047   :  { %22153 = vst [vmem:[#allocation19_spill] sm:$0xff] %v20821_v2  ;;  %v7396_v60 = vadd.f32 %v7394_v53, %v7374_v49  ;;  %v7397_v61 = vadd.f32 %v7395_v19, %v7375_v52  ;;  %v7411_v53 = vmul.f32 %v20812_v21, %v20701_v39 }
0x1048   :  { %v7415_v40 = vpop.permute.xlu1 %7414 }
0x1049   :  { %v7417_v20 = vpop.permute.xlu0 %7416  ;;  %v7412_v52 = vadd.f32 %v7410_v47, %v7396_v60 }
0x104a   :  { %v7418_v8 = vsel %vm357_vm6, %v7415_v40, %v7417_v20  ;;  %v7419_v16 = vsel %vm357_vm6, %v7417_v20, %v7415_v40  ;;  %v20843_v40 = vrot.slane %v14643_v55, %v19467_v62  ;;  %v20862_v55 = vrot.slane %v14644_v37, %v19467_v62 }
0x104b   :  { %v7432_v19 = vmul.f32 %v20818_v54, %v7418_v8  ;;  %v7433_v20 = vmul.f32 %v20821_v2, %v7419_v16  ;;  %v20865_v16 = vrot.slane %v14644_v37, %v19469_v63 }
0x104d   :  { %v7434_v2 = vadd.f32 %v7432_v19, %v7412_v52  ;;  %v22158_v52 = vmov 0.0  }
0x104e   :  { %v7437_v58 = vpop.permute.xlu1 %7436 }
0x104f   :  { %v7439_v57 = vpop.permute.xlu0 %7438 }
0x1050   :  { %v7440_v50 = vsel %vm381_vm7, %v7437_v58, %v7439_v57  ;;  %v7441_v6 = vsel %vm381_vm7, %v7439_v57, %v7437_v58  ;;  %v7413_v58 = vadd.f32 %v7411_v53, %v7397_v61 }
0x1051   :  { %v7454_v57 = vmul.f32 %v20831_v56, %v7440_v50  ;;  %v7455_v48 = vmul.f32 %v20834_v46, %v7441_v6 }
0x1052   :  { %v7459_v49 = vpop.permute.xlu1 %7458  ;;  %v7435_v60 = vadd.f32 %v7433_v20, %v7413_v58 }
0x1053   :  { %v7461_v7 = vpop.permute.xlu0 %7460  ;;  %v7456_v50 = vadd.f32 %v7454_v57, %v7434_v2  ;;  %v15714_v2 = vld [vmem:[%s22159_s4 + $0x28] sm:$0xff]  }
0x1054   :  { %v7462_v39 = vsel %vm405_vm8, %v7459_v49, %v7461_v7  ;;  %v7463_v8 = vsel %vm405_vm8, %v7461_v7, %v7459_v49  ;;  %v7457_v53 = vadd.f32 %v7455_v48, %v7435_v60  ;;  %v15713_v48 = vld [vmem:[%s22159_s4 + $0x20] sm:$0xff]  }
0x1055   :  { %v7476_v61 = vmul.f32 %v20843_v40, %v7462_v39  ;;  %v7477_v47 = vmul.f32 %v20850_v0, %v7463_v8  ;;  %18321 = vmatprep.subr.bf16.mxu1 %v15713_v48  ;;  %v15414_v8 = vld [vmem:[%s22159_s4] sm:$0xff]  }
0x1056   :  { %v7481_v6 = vpop.permute.xlu1 %7480  ;;  %18323 = vmatpush3.bf16.msra.mxu1 %v15713_v48  ;;  %v15715_v48 = vld [vmem:[%s22159_s4 + $0x30] sm:$0xff]  }
0x1057   :  { %v7483_v46 = vpop.permute.xlu0 %7482  ;;  %v7478_v7 = vadd.f32 %v7476_v61, %v7456_v50  ;;  %v7479_v49 = vadd.f32 %v7477_v47, %v7457_v53  ;;  %18325 = vmatprep.subr.bf16.mxu1 %v15714_v2  ;;  %v19067_v61 = vld [vmem:[%s22160_s27] sm:$0xff]   ;;  %v15710_v47 = vld [vmem:[%s22159_s4 + $0x8] sm:$0xff]   ;;  %v15712_v53 = vld [vmem:[%s22159_s4 + $0x18] sm:$0xff]  }
0x1058   :  { %v7484_v56 = vsel %vm22156_vm15, %v7481_v6, %v7483_v46  ;;  %v7485_v62 = vsel %vm22157_vm9, %v7483_v46, %v7481_v6  ;;  %v15711_v6 = vld [vmem:[%s22159_s4 + $0x10] sm:$0xff]   ;;  %v19068_v50 = vld [vmem:[%s22160_s27 + $0x8] sm:$0xff]   ;;  %vm22171_vm15 = vmmov %vm22157_vm9 }
0x1059   :  { %v7498_v63 = vmul.f32 %v20862_v55, %v7484_v56  ;;  %v7499_v19 = vmul.f32 %v20865_v16, %v7485_v62  ;;  %v19069_v62 = vld [vmem:[%s22160_s27 + $0x10] sm:$0xff]  }
0x105a   :  { %18327 = vmatpush3.bf16.msra.mxu1 %v15714_v2  ;;  %v15716_v2 = vld [vmem:[%s22159_s4 + $0x38] sm:$0xff]  }
0x105b   :  { %v7500_v20 = vadd.f32 %v7498_v63, %v7478_v7  ;;  %v7501_v37 = vadd.f32 %v7499_v19, %v7479_v49  ;;  %v19070_v7 = vld [vmem:[%s22160_s27 + $0x18] sm:$0xff]   ;;  %v19071_v49 = vld [vmem:[%s22160_s27 + $0x20] sm:$0xff]   ;;  %v19072_v63 = vld [vmem:[%s22160_s27 + $0x28] sm:$0xff]   ;;  %18329 = vmatprep.subr.bf16.mxu1 %v15715_v48 }
0x105c   :  { %v19073_v19 = vld [vmem:[%s22160_s27 + $0x30] sm:$0xff]  }
0x105d   :  { %7630 = vmatprep.mubr.f32.mxu0 %v7501_v37  ;;  %v19075_v37 = vld [vmem:[%s22160_s27 + $0x40] sm:$0xff]  }
0x105e   :  { %7631 = vmatmul.mubr.f32.vlgmr.msra.gmra.mrb[54].mxu0 %v7500_v20  ;;  %v19074_v20 = vld [vmem:[%s22160_s27 + $0x38] sm:$0xff]   ;;  %18331 = vmatpush3.bf16.msra.mxu1 %v15715_v48  ;;  %s22175_s27 = sld [smem:[#allocation36_spill]] }
0x105f   :  { %17274 = vmatprep.mubr.msk.bf16.mxu0 %vm19198_vm10, %v22158_v52  ;;  %18333 = vmatprep.subr.bf16.mxu1 %v15716_v2 }
0x1062   :  { %18335 = vmatpush3.bf16.msra.mxu1 %v15716_v2  ;;  %v15722_v2 = vld [vmem:[%s22159_s4 + $0x68] sm:$0xff]  }
0x1131   :  { %v16176_v56 = vpop.f32.mrb[54].mxu0 }
0x1132   :  { %v16177_v46 = vpop.f32.mrb[55].mxu0 }
0x1133   :  { %v16178_v58 = vadd.f32 %v16177_v46, %v16176_v56  ;;  %v15717_v56 = vld [vmem:[%s22159_s4 + $0x40] sm:$0xff]  }
0x1134   :  { %18337 = vmatprep.subr.bf16.mxu1 %v15717_v56 }
0x1135   :  { %v7636_v57 = vmax.f32 %v16178_v58, 0.0 }
0x1137   :  { %v7655_v39 = vpack.c.bf16 %v7636_v57, %v7636_v57 }
0x1139   :  { %v20887_v60 = vsel %vm145_vm0, %v7655_v39, 0 }
0x113a   :  { %17273 = vmatpush3.bf16.msra.mxu0 %v20887_v60 }
0x113b   :  { %18305 = vmatprep.subr.bf16.mxu0 %v15414_v8 }
0x113d   :  { %17275 = vmatmul.mubr.msk.bf16.vlgmr.msra.gmra.mrb[76].mxu0 %vm129_vm1, %v19067_v61 }
0x113e   :  { %17278 = vmatprep.mubr.msk.bf16.mxu0 %vm19198_vm10, %v22158_v52  ;;  %18307 = vmatpush3.bf16.msra.mxu0 %v15414_v8 }
0x113f   :  { %18309 = vmatprep.subr.bf16.mxu0 %v15710_v47 }
0x1142   :  { %18311 = vmatpush3.bf16.msra.mxu0 %v15710_v47 }
0x1143   :  { %18313 = vmatprep.subr.bf16.mxu0 %v15711_v6 }
0x1145   :  { %17279 = vmatmul.mubr.msk.bf16.gmra.mrb[80].mxu0 %vm129_vm1, %v19068_v50 }
0x1146   :  { %17282 = vmatprep.mubr.msk.bf16.mxu0 %vm19198_vm10, %v22158_v52  ;;  %18315 = vmatpush3.bf16.msra.mxu0 %v15711_v6  ;;  %v15718_v6 = vld [vmem:[%s22159_s4 + $0x48] sm:$0xff]  }
0x1147   :  { %18317 = vmatprep.subr.bf16.mxu0 %v15712_v53 }
0x114a   :  { %18319 = vmatpush3.bf16.msra.mxu0 %v15712_v53  ;;  %v15719_v53 = vld [vmem:[%s22159_s4 + $0x50] sm:$0xff]  }
0x114d   :  { %17283 = vmatmul.mubr.msk.bf16.gmra.mrb[84].mxu0 %vm129_vm1, %v19069_v62 }
0x114e   :  { %17286 = vmatprep.mubr.msk.bf16.mxu0 %vm19198_vm10, %v22158_v52 }
0x1155   :  { %17287 = vmatmul.mubr.msk.bf16.gmra.mrb[88].mxu0 %vm129_vm1, %v19070_v7 }
0x1156   :  { %17290 = vmatprep.mubr.msk.bf16.mxu0 %vm19198_vm10, %v22158_v52 }
0x115d   :  { %17291 = vmatmul.mubr.msk.bf16.gmra.mrb[92].mxu0 %vm129_vm1, %v19071_v49  ;;  %v15720_v49 = vld [vmem:[%s22159_s4 + $0x58] sm:$0xff]  }
0x115e   :  { %17294 = vmatprep.mubr.msk.bf16.mxu0 %vm19198_vm10, %v22158_v52 }
0x1165   :  { %17295 = vmatmul.mubr.msk.bf16.gmra.mrb[96].mxu0 %vm129_vm1, %v19072_v63 }
0x1166   :  { %17298 = vmatprep.mubr.msk.bf16.mxu0 %vm19198_vm10, %v22158_v52 }
0x116d   :  { %17299 = vmatmul.mubr.msk.bf16.gmra.mrb[100].mxu0 %vm129_vm1, %v19073_v19 }
0x116e   :  { %17302 = vmatprep.mubr.msk.bf16.mxu0 %vm19198_vm10, %v22158_v52 }
0x1175   :  { %17303 = vmatmul.mubr.msk.bf16.gmra.mrb[104].mxu0 %vm129_vm1, %v19074_v20  ;;  %v15721_v20 = vld [vmem:[%s22159_s4 + $0x60] sm:$0xff]  }
0x1176   :  { %17306 = vmatprep.mubr.msk.bf16.mxu0 %vm19198_vm10, %v22158_v52 }
0x117d   :  { %17307 = vmatmul.mubr.msk.bf16.gmra.mrb[108].mxu0 %vm129_vm1, %v19075_v37 }
0x1210   :  { %v7765_v46 = vpop.f32.mrb[76].mxu0 }
0x1211   :  { %v17276_v58 = vpop.f32.mrb[77].mxu0  ;;  %17326 = vmatprep.mubr.msk.f32.mxu0 %vm811_vm11, %v7765_v46 }
0x1212   :  { %v7768_v57 = vpop.f32.mrb[78].mxu0  ;;  %v15723_v58 = vld [vmem:[%s22159_s4 + $0x70] sm:$0xff]  }
0x1213   :  { %17327 = vmatmul.mubr.msk.f32.vlgmr.msra.gmra.mrb[112].mxu0 %vm811_vm11, %v7768_v57  ;;  %v17277_v39 = vpop.f32.mrb[79].mxu0 }
0x1218   :  { %v7773_v8 = vpop.f32.mrb[80].mxu0 }
0x1219   :  { %v17280_v61 = vpop.f32.mrb[81].mxu0  ;;  %17345 = vmatprep.mubr.msk.f32.mxu1 %vm811_vm11, %v7773_v8  ;;  %v15724_v8 = vld [vmem:[%s22159_s4 + $0x78] sm:$0xff]  }
0x121a   :  { %v7776_v47 = vpop.f32.mrb[82].mxu0 }
0x121b   :  { %17346 = vmatmul.mubr.msk.f32.vlgmr.msra.gmra.mrb[170].mxu1 %vm811_vm11, %v7776_v47  ;;  %v17281_v50 = vpop.f32.mrb[83].mxu0 }
0x121c   :  { %18339 = vmatpush3.bf16.msra.mxu1 %v15717_v56 }
0x121d   :  { %18341 = vmatprep.subr.bf16.mxu1 %v15718_v6 }
0x1220   :  { %18343 = vmatpush3.bf16.msra.mxu1 %v15718_v6  ;;  %v7781_v62 = vpop.f32.mrb[84].mxu0  ;;  %v15725_v6 = vld [vmem:[%s22159_s4 + $0x80] sm:$0xff]  }
0x1221   :  { %18345 = vmatprep.subr.bf16.mxu1 %v15719_v53  ;;  %v17284_v7 = vpop.f32.mrb[85].mxu0  ;;  %17364 = vmatprep.mubr.msk.f32.mxu1 %vm811_vm11, %v7781_v62  ;;  %v15726_v62 = vld [vmem:[%s22159_s4 + $0x88] sm:$0xff]  }
0x1222   :  { %v7784_v63 = vpop.f32.mrb[86].mxu0 }
0x1223   :  { %v17285_v19 = vpop.f32.mrb[87].mxu0 }
0x1224   :  { %18347 = vmatpush3.bf16.msra.mxu1 %v15719_v53 }
0x1225   :  { %18349 = vmatprep.subr.bf16.mxu1 %v15720_v49 }
0x1228   :  { %18351 = vmatpush3.bf16.msra.mxu1 %v15720_v49  ;;  %v7789_v37 = vpop.f32.mrb[88].mxu0 }
0x1229   :  { %18353 = vmatprep.subr.bf16.mxu1 %v15721_v20  ;;  %v17288_v48 = vpop.f32.mrb[89].mxu0 }
0x122a   :  { %v7792_v56 = vpop.f32.mrb[90].mxu0 }
0x122b   :  { %17365 = vmatmul.mubr.msk.f32.vlgmr.msra.gmra.mrb[170].mxu1 %vm811_vm11, %v7784_v63  ;;  %v17289_v46 = vpop.f32.mrb[91].mxu0  ;;  %v15727_v63 = vld [vmem:[%s22159_s4 + $0x90] sm:$0xff]  }
0x122c   :  { %18355 = vmatpush3.bf16.msra.mxu1 %v15721_v20  ;;  %17383 = vmatprep.mubr.msk.f32.mxu1 %vm811_vm11, %v7789_v37  ;;  %v15728_v37 = vld [vmem:[%s22159_s4 + $0x98] sm:$0xff]  }
0x122d   :  { %18357 = vmatprep.subr.bf16.mxu1 %v15722_v2 }
0x1230   :  { %18359 = vmatpush3.bf16.msra.mxu1 %v15722_v2  ;;  %v7797_v57 = vpop.f32.mrb[92].mxu0 }
0x1231   :  { %18361 = vmatprep.subr.bf16.mxu1 %v15723_v58  ;;  %v17292_v39 = vpop.f32.mrb[93].mxu0 }
0x1232   :  { %v7800_v61 = vpop.f32.mrb[94].mxu0 }
0x1233   :  { %v17293_v47 = vpop.f32.mrb[95].mxu0 }
0x1234   :  { %18363 = vmatpush3.bf16.msra.mxu1 %v15723_v58  ;;  %v15731_v47 = vld [vmem:[%s22159_s4 + $0xb0] sm:$0xff]  }
0x1235   :  { %18365 = vmatprep.subr.bf16.mxu1 %v15724_v8 }
0x1238   :  { %18367 = vmatpush3.bf16.msra.mxu1 %v15724_v8  ;;  %v7805_v50 = vpop.f32.mrb[96].mxu0 }
0x1239   :  { %18369 = vmatprep.subr.bf16.mxu1 %v15725_v6  ;;  %v17296_v53 = vpop.f32.mrb[97].mxu0 }
0x123a   :  { %v7808_v7 = vpop.f32.mrb[98].mxu0 }
0x123b   :  { %17384 = vmatmul.mubr.msk.f32.vlgmr.msra.gmra.mrb[170].mxu1 %vm811_vm11, %v7792_v56  ;;  %v17297_v49 = vpop.f32.mrb[99].mxu0  ;;  %v15729_v56 = vld [vmem:[%s22159_s4 + $0xa0] sm:$0xff]  }
0x123c   :  { %18371 = vmatpush3.bf16.msra.mxu1 %v15725_v6  ;;  %17402 = vmatprep.mubr.msk.f32.mxu1 %vm811_vm11, %v7797_v57  ;;  %v15730_v57 = vld [vmem:[%s22159_s4 + $0xa8] sm:$0xff]  }
0x123d   :  { %18373 = vmatprep.subr.bf16.mxu1 %v15726_v62 }
0x1240   :  { %18375 = vmatpush3.bf16.msra.mxu1 %v15726_v62  ;;  %v7813_v19 = vpop.f32.mrb[100].mxu0  ;;  %v15732_v62 = vld [vmem:[%s22159_s4 + $0xb8] sm:$0xff]  }
0x1241   :  { %18377 = vmatprep.subr.bf16.mxu1 %v15727_v63  ;;  %v17300_v20 = vpop.f32.mrb[101].mxu0 }
0x1242   :  { %v7816_v48 = vpop.f32.mrb[102].mxu0  ;;  %v15735_v20 = vld [vmem:[%s22159_s4 + $0xd0] sm:$0xff]  }
0x1243   :  { %v17301_v2 = vpop.f32.mrb[103].mxu0 }
0x1244   :  { %18379 = vmatpush3.bf16.msra.mxu1 %v15727_v63  ;;  %v15739_v2 = vld [vmem:[%s22159_s4 + $0xf0] sm:$0xff]  }
0x1245   :  { %18381 = vmatprep.subr.bf16.mxu1 %v15728_v37 }
0x1248   :  { %18383 = vmatpush3.bf16.msra.mxu1 %v15728_v37  ;;  %v7821_v46 = vpop.f32.mrb[104].mxu0  ;;  %v15736_v37 = vld [vmem:[%s22159_s4 + $0xd8] sm:$0xff]  }
0x1249   :  { %18385 = vmatprep.subr.bf16.mxu1 %v15729_v56  ;;  %v17304_v58 = vpop.f32.mrb[105].mxu0 }
0x124a   :  { %v7824_v39 = vpop.f32.mrb[106].mxu0  ;;  %v15743_v58 = vld [vmem:[%s22159_s4 + $0x110] sm:$0xff]  }
0x124b   :  { %17403 = vmatmul.mubr.msk.f32.vlgmr.msra.gmra.mrb[170].mxu1 %vm811_vm11, %v7800_v61  ;;  %v17305_v8 = vpop.f32.mrb[107].mxu0  ;;  %v15733_v61 = vld [vmem:[%s22159_s4 + $0xc0] sm:$0xff]  }
0x124c   :  { %18387 = vmatpush3.bf16.msra.mxu1 %v15729_v56  ;;  %17421 = vmatprep.mubr.msk.f32.mxu1 %vm811_vm11, %v7805_v50  ;;  %v15734_v50 = vld [vmem:[%s22159_s4 + $0xc8] sm:$0xff]   ;;  %v15740_v56 = vld [vmem:[%s22159_s4 + $0xf8] sm:$0xff]  }
0x124d   :  { %18389 = vmatprep.subr.bf16.mxu1 %v15730_v57 }
0x1250   :  { %18391 = vmatpush3.bf16.msra.mxu1 %v15730_v57  ;;  %v7829_v6 = vpop.f32.mrb[108].mxu0  ;;  %v15744_v57 = vld [vmem:[%s22159_s4 + $0x118] sm:$0xff]  }
0x1251   :  { %18393 = vmatprep.subr.bf16.mxu1 %v15731_v47  ;;  %v17308_v53 = vpop.f32.mrb[109].mxu0 }
0x1252   :  { %v7832_v49 = vpop.f32.mrb[110].mxu0  ;;  %v7841_v53 = vpop.permute.xlu1 %7840 }
0x1253   :  { %v17309_v63 = vpop.f32.mrb[111].mxu0 }
0x1254   :  { %18395 = vmatpush3.bf16.msra.mxu1 %v15731_v47  ;;  %v19076_v47 = vld [vmem:[%s22134_s6] sm:$0xff]  }
0x1255   :  { %18397 = vmatprep.subr.bf16.mxu1 %v15732_v62  ;;  %17483 = vmatprep.mubr.msk.bf16.mxu0 %vm1824_vm12, %v19076_v47  ;;  %v19085_v47 = vld [vmem:[%s22134_s6 + $0x48] sm:$0xff]  }
0x1258   :  { %18399 = vmatpush3.bf16.msra.mxu1 %v15732_v62 }
0x1259   :  { %18401 = vmatprep.subr.bf16.mxu1 %v15733_v61 }
0x125b   :  { %17422 = vmatmul.mubr.msk.f32.vlgmr.msra.gmra.mrb[170].mxu1 %vm811_vm11, %v7808_v7  ;;  %v15737_v7 = vld [vmem:[%s22159_s4 + $0xe0] sm:$0xff]  }
0x125c   :  { %18403 = vmatpush3.bf16.msra.mxu1 %v15733_v61  ;;  %17440 = vmatprep.mubr.msk.f32.mxu1 %vm811_vm11, %v7813_v19  ;;  %v15738_v19 = vld [vmem:[%s22159_s4 + $0xe8] sm:$0xff]  }
0x125d   :  { %18405 = vmatprep.subr.bf16.mxu1 %v15734_v50 }
0x1260   :  { %18407 = vmatpush3.bf16.msra.mxu1 %v15734_v50 }
0x1261   :  { %18409 = vmatprep.subr.bf16.mxu1 %v15735_v20 }
0x1264   :  { %18411 = vmatpush3.bf16.msra.mxu1 %v15735_v20 }
0x1265   :  { %18413 = vmatprep.subr.bf16.mxu1 %v15736_v37 }
0x1268   :  { %18415 = vmatpush3.bf16.msra.mxu1 %v15736_v37 }
0x1269   :  { %18417 = vmatprep.subr.bf16.mxu1 %v15737_v7 }
0x126b   :  { %17441 = vmatmul.mubr.msk.f32.vlgmr.msra.gmra.mrb[170].mxu1 %vm811_vm11, %v7816_v48  ;;  %v15741_v48 = vld [vmem:[%s22159_s4 + $0x100] sm:$0xff]  }
0x126c   :  { %18419 = vmatpush3.bf16.msra.mxu1 %v15737_v7  ;;  %17459 = vmatprep.mubr.msk.f32.mxu1 %vm811_vm11, %v7821_v46  ;;  %v15742_v46 = vld [vmem:[%s22159_s4 + $0x108] sm:$0xff]   ;;  %s22176_s4 = sld [smem:[#allocation38_spill]] }
0x126d   :  { %18421 = vmatprep.subr.bf16.mxu1 %v15738_v19 }
0x1270   :  { %18423 = vmatpush3.bf16.msra.mxu1 %v15738_v19 }
0x1271   :  { %18425 = vmatprep.subr.bf16.mxu1 %v15739_v2 }
0x1274   :  { %18427 = vmatpush3.bf16.msra.mxu1 %v15739_v2 }
0x1275   :  { %18429 = vmatprep.subr.bf16.mxu1 %v15740_v56 }
0x1278   :  { %18431 = vmatpush3.bf16.msra.mxu1 %v15740_v56  ;;  %v19078_v56 = vld [vmem:[%s22134_s6 + $0x10] sm:$0xff]  }
0x1279   :  { %18433 = vmatprep.subr.bf16.mxu1 %v15741_v48 }
0x127b   :  { %17460 = vmatmul.mubr.msk.f32.vlgmr.msra.gmra.mrb[170].mxu1 %vm811_vm11, %v7824_v39 }
0x127c   :  { %18435 = vmatpush3.bf16.msra.mxu1 %v15741_v48  ;;  %17478 = vmatprep.mubr.msk.f32.mxu1 %vm811_vm11, %v7829_v6  ;;  %v7846_v6 = vpop.permute.xlu0 %7845  ;;  %v19079_v48 = vld [vmem:[%s22134_s6 + $0x18] sm:$0xff]  }
0x127d   :  { %18437 = vmatprep.subr.bf16.mxu1 %v15742_v46 }
0x1280   :  { %18439 = vmatpush3.bf16.msra.mxu1 %v15742_v46  ;;  %v19080_v46 = vld [vmem:[%s22134_s6 + $0x20] sm:$0xff]  }
0x1281   :  { %18441 = vmatprep.subr.bf16.mxu1 %v15743_v58 }
0x1284   :  { %18443 = vmatpush3.bf16.msra.mxu1 %v15743_v58  ;;  %v19081_v58 = vld [vmem:[%s22134_s6 + $0x28] sm:$0xff]  }
0x1285   :  { %18445 = vmatprep.subr.bf16.mxu1 %v15744_v57 }
0x1288   :  { %18447 = vmatpush3.bf16.msra.mxu1 %v15744_v57  ;;  %v19082_v57 = vld [vmem:[%s22134_s6 + $0x30] sm:$0xff]  }
0x128b   :  { %17479 = vmatmul.mubr.msk.f32.vlgmr.msra.gmra.mrb[170].mxu1 %vm811_vm11, %v7832_v49  ;;  %v19077_v49 = vld [vmem:[%s22134_s6 + $0x8] sm:$0xff]  }
0x12e6   :  { %v17328_v39 = vpop.f32.mrb[112].mxu0 }
0x12e7   :  { %v7936_v8 = vpop.f32.mrb[113].mxu0  ;;  %v7946_v62 = vadd.f32 %v17328_v39, %v7846_v6  ;;  %v19083_v39 = vld [vmem:[%s22134_s6 + $0x38] sm:$0xff]   ;;  %v19086_v6 = vld [vmem:[%s22134_s6 + $0x50] sm:$0xff]  }
0x12e8   :  { %v7945_v63 = vadd.f32 %v7936_v8, %v7841_v53  ;;  %v19084_v8 = vld [vmem:[%s22134_s6 + $0x40] sm:$0xff]   ;;  %v19087_v53 = vld [vmem:[%s22134_s6 + $0x58] sm:$0xff]  }
0x135e   :  { %v17480_v61 = vpop.f32.mrb[170].mxu1 }
0x135f   :  { %v18542_v50 = vadd.f32 %v17480_v61, %v7946_v62  ;;  %v8728_v20 = vpop.f32.mrb[171].mxu1  ;;  %v19088_v62 = vld [vmem:[%s22134_s6 + $0x60] sm:$0xff]   ;;  %v19090_v61 = vld [vmem:[%s22134_s6 + $0x70] sm:$0xff]  }
0x1360   :  { %v18544_v37 = vadd.f32 %v8728_v20, %v7945_v63  ;;  %v19089_v63 = vld [vmem:[%s22134_s6 + $0x68] sm:$0xff]   ;;  %v19092_v20 = vld [vmem:[%s22134_s6 + $0x80] sm:$0xff]  }
0x1361   :  { %v8740_v7 = vmax.f32 %v18542_v50, 0.0  ;;  %v19091_v50 = vld [vmem:[%s22134_s6 + $0x78] sm:$0xff]  }
0x1362   :  { %v8739_v19 = vmax.f32 %v18544_v37, 0.0  ;;  %v19093_v37 = vld [vmem:[%s22134_s6 + $0x88] sm:$0xff]   ;;  %s22163_s6 = sld [smem:[#allocation35_spill]] }
0x1364   :  { %v21063_v2 = vpack.c.bf16 %v8740_v7, %v8739_v19  ;;  %v15558_v7 = vld [vmem:[%s22161_s24] sm:$0xff]   ;;  %v15745_v19 = vld [vmem:[%s22161_s24 + $0x8] sm:$0xff]  }
0x1365   :  { %18449 = vmatprep.subr.bf16.mxu1 %v15558_v7 }
0x1366   :  { %17481 = vmatprep.subr.bf16.mxu0 %v21063_v2  ;;  %18451 = vmatpush3.bf16.msra.mxu1 %v15558_v7 }
0x1367   :  { %17482 = vmatpush3.bf16.msra.mxu0 %v21063_v2  ;;  %18453 = vmatprep.subr.bf16.mxu1 %v15745_v19 }
0x136a   :  { %17484 = vmatmul.mubr.msk.bf16.vlgmr.msra.gmra.mrb[116].mxu0 %vm1824_vm12, %v19077_v49 }
0x136b   :  { %17487 = vmatprep.mubr.msk.bf16.mxu0 %vm1824_vm12, %v19078_v56 }
0x1372   :  { %17488 = vmatmul.mubr.msk.bf16.gmra.mrb[120].mxu0 %vm1824_vm12, %v19079_v48 }
0x1373   :  { %17491 = vmatprep.mubr.msk.bf16.mxu0 %vm1824_vm12, %v19080_v46 }
0x137a   :  { %17492 = vmatmul.mubr.msk.bf16.gmra.mrb[124].mxu0 %vm1824_vm12, %v19081_v58  ;;  %v15746_v58 = vld [vmem:[%s22161_s24 + $0x10] sm:$0xff]  }
0x137b   :  { %17495 = vmatprep.mubr.msk.bf16.mxu0 %vm1824_vm12, %v19082_v57 }
0x1382   :  { %17496 = vmatmul.mubr.msk.bf16.gmra.mrb[128].mxu0 %vm1824_vm12, %v19083_v39 }
0x1383   :  { %17499 = vmatprep.mubr.msk.bf16.mxu0 %vm1824_vm12, %v19084_v8 }
0x138a   :  { %17500 = vmatmul.mubr.msk.bf16.gmra.mrb[132].mxu0 %vm1824_vm12, %v19085_v47 }
0x138b   :  { %17503 = vmatprep.mubr.msk.bf16.mxu0 %vm1824_vm12, %v19086_v6  ;;  %v15747_v6 = vld [vmem:[%s22161_s24 + $0x18] sm:$0xff]  }
0x1392   :  { %17504 = vmatmul.mubr.msk.bf16.gmra.mrb[136].mxu0 %vm1824_vm12, %v19087_v53 }
0x1393   :  { %17507 = vmatprep.mubr.msk.bf16.mxu0 %vm1824_vm12, %v19088_v62 }
0x139a   :  { %17508 = vmatmul.mubr.msk.bf16.gmra.mrb[140].mxu0 %vm1824_vm12, %v19089_v63 }
0x139b   :  { %17511 = vmatprep.mubr.msk.bf16.mxu0 %vm1824_vm12, %v19090_v61 }
0x13a2   :  { %17512 = vmatmul.mubr.msk.bf16.gmra.mrb[144].mxu0 %vm1824_vm12, %v19091_v50  ;;  %v15748_v50 = vld [vmem:[%s22161_s24 + $0x20] sm:$0xff]  }
0x13a3   :  { %17515 = vmatprep.mubr.msk.bf16.mxu0 %vm1824_vm12, %v19092_v20 }
0x13aa   :  { %17516 = vmatmul.mubr.msk.bf16.gmra.mrb[148].mxu0 %vm1824_vm12, %v19093_v37 }
0x143d   :  { %v17485_v49 = vpop.f32.mrb[116].mxu0 }
0x143e   :  { %v8956_v56 = vpop.f32.mrb[117].mxu0 }
0x143f   :  { %v17486_v48 = vpop.f32.mrb[118].mxu0  ;;  %17523 = vmatprep.mubr.msk.f32.mxu1 %vm1824_vm12, %v8956_v56 }
0x1440   :  { %v8959_v46 = vpop.f32.mrb[119].mxu0 }
0x1441   :  { %17524 = vmatmul.mubr.msk.f32.vlgmr.msra.gmra.mrb[192].mxu1 %vm1824_vm12, %v8959_v46 }
0x1442   :  { %17526 = vmatprep.mubr.msk.f32.mxu1 %vm1824_vm12, %v17485_v49  ;;  %18455 = vmatpush3.bf16.msra.mxu1 %v15745_v19  ;;  %v15749_v49 = vld [vmem:[%s22161_s24 + $0x28] sm:$0xff]  }
0x1443   :  { %18457 = vmatprep.subr.bf16.mxu1 %v15746_v58 }
0x1445   :  { %v17489_v57 = vpop.f32.mrb[120].mxu0  ;;  %17527 = vmatmul.mubr.msk.f32.gmra.mrb[194].mxu1 %vm1824_vm12, %v17486_v48 }
0x1446   :  { %v8972_v39 = vpop.f32.mrb[121].mxu0 }
0x1447   :  { %v17490_v8 = vpop.f32.mrb[122].mxu0  ;;  %17533 = vmatprep.mubr.msk.f32.mxu1 %vm1824_vm12, %v8972_v39 }
0x1448   :  { %v8975_v47 = vpop.f32.mrb[123].mxu0 }
0x1449   :  { %17534 = vmatmul.mubr.msk.f32.vlgmr.msra.gmra.mrb[192].mxu1 %vm1824_vm12, %v8975_v47 }
0x144a   :  { %17536 = vmatprep.mubr.msk.f32.mxu1 %vm1824_vm12, %v17489_v57  ;;  %18459 = vmatpush3.bf16.msra.mxu1 %v15746_v58  ;;  %v15750_v57 = vld [vmem:[%s22161_s24 + $0x30] sm:$0xff]  }
0x144b   :  { %18461 = vmatprep.subr.bf16.mxu1 %v15747_v6 }
0x144d   :  { %v17493_v53 = vpop.f32.mrb[124].mxu0  ;;  %17537 = vmatmul.mubr.msk.f32.gmra.mrb[194].mxu1 %vm1824_vm12, %v17490_v8 }
0x144e   :  { %v8988_v62 = vpop.f32.mrb[125].mxu0 }
0x144f   :  { %v17494_v63 = vpop.f32.mrb[126].mxu0  ;;  %17543 = vmatprep.mubr.msk.f32.mxu1 %vm1824_vm12, %v8988_v62 }
0x1450   :  { %v8991_v61 = vpop.f32.mrb[127].mxu0 }
0x1451   :  { %17544 = vmatmul.mubr.msk.f32.vlgmr.msra.gmra.mrb[192].mxu1 %vm1824_vm12, %v8991_v61 }
0x1452   :  { %17546 = vmatprep.mubr.msk.f32.mxu1 %vm1824_vm12, %v17493_v53  ;;  %18463 = vmatpush3.bf16.msra.mxu1 %v15747_v6  ;;  %v15751_v53 = vld [vmem:[%s22161_s24 + $0x38] sm:$0xff]  }
0x1453   :  { %18465 = vmatprep.subr.bf16.mxu1 %v15748_v50 }
0x1455   :  { %v17497_v20 = vpop.f32.mrb[128].mxu0  ;;  %17547 = vmatmul.mubr.msk.f32.gmra.mrb[194].mxu1 %vm1824_vm12, %v17494_v63 }
0x1456   :  { %v9004_v37 = vpop.f32.mrb[129].mxu0 }
0x1457   :  { %v17498_v7 = vpop.f32.mrb[130].mxu0  ;;  %17553 = vmatprep.mubr.msk.f32.mxu1 %vm1824_vm12, %v9004_v37 }
0x1458   :  { %v9007_v19 = vpop.f32.mrb[131].mxu0 }
0x1459   :  { %17554 = vmatmul.mubr.msk.f32.vlgmr.msra.gmra.mrb[192].mxu1 %vm1824_vm12, %v9007_v19 }
0x145a   :  { %17556 = vmatprep.mubr.msk.f32.mxu1 %vm1824_vm12, %v17497_v20  ;;  %18467 = vmatpush3.bf16.msra.mxu1 %v15748_v50  ;;  %v15752_v20 = vld [vmem:[%s22161_s24 + $0x40] sm:$0xff]  }
0x145b   :  { %18469 = vmatprep.subr.bf16.mxu1 %v15749_v49 }
0x145d   :  { %v17501_v56 = vpop.f32.mrb[132].mxu0  ;;  %17557 = vmatmul.mubr.msk.f32.gmra.mrb[194].mxu1 %vm1824_vm12, %v17498_v7 }
0x145e   :  { %v9020_v48 = vpop.f32.mrb[133].mxu0 }
0x145f   :  { %v17502_v46 = vpop.f32.mrb[134].mxu0  ;;  %17563 = vmatprep.mubr.msk.f32.mxu1 %vm1824_vm12, %v9020_v48 }
0x1460   :  { %v9023_v58 = vpop.f32.mrb[135].mxu0 }
0x1461   :  { %17564 = vmatmul.mubr.msk.f32.vlgmr.msra.gmra.mrb[192].mxu1 %vm1824_vm12, %v9023_v58 }
0x1462   :  { %17566 = vmatprep.mubr.msk.f32.mxu1 %vm1824_vm12, %v17501_v56  ;;  %18471 = vmatpush3.bf16.msra.mxu1 %v15749_v49 }
0x1463   :  { %18473 = vmatprep.subr.bf16.mxu1 %v15750_v57 }
0x1465   :  { %v17505_v39 = vpop.f32.mrb[136].mxu0  ;;  %17567 = vmatmul.mubr.msk.f32.gmra.mrb[194].mxu1 %vm1824_vm12, %v17502_v46 }
0x1466   :  { %v9036_v8 = vpop.f32.mrb[137].mxu0 }
0x1467   :  { %v17506_v47 = vpop.f32.mrb[138].mxu0  ;;  %17573 = vmatprep.mubr.msk.f32.mxu1 %vm1824_vm12, %v9036_v8  ;;  %v9106_v8 = vpop.permute.xlu1 %9105 }
0x1468   :  { %v9039_v6 = vpop.f32.mrb[139].mxu0 }
0x1469   :  { %17574 = vmatmul.mubr.msk.f32.vlgmr.msra.gmra.mrb[192].mxu1 %vm1824_vm12, %v9039_v6 }
0x146a   :  { %17576 = vmatprep.mubr.msk.f32.mxu1 %vm1824_vm12, %v17505_v39  ;;  %18475 = vmatpush3.bf16.msra.mxu1 %v15750_v57  ;;  %v19094_v57 = vld [vmem:[%s22162_s3] sm:$0xff]   ;;  %v9111_v39 = vpop.permute.xlu0 %9110 }
0x146b   :  { %18477 = vmatprep.subr.bf16.mxu1 %v15751_v53  ;;  %17613 = vmatprep.mubr.msk.bf16.mxu0 %vm3165_vm13, %v19094_v57  ;;  %v19095_v57 = vld [vmem:[%s22162_s3 + $0x8] sm:$0xff]  }
0x146d   :  { %v17509_v62 = vpop.f32.mrb[140].mxu0  ;;  %17577 = vmatmul.mubr.msk.f32.gmra.mrb[194].mxu1 %vm1824_vm12, %v17506_v47 }
0x146e   :  { %v9052_v63 = vpop.f32.mrb[141].mxu0 }
0x146f   :  { %v17510_v61 = vpop.f32.mrb[142].mxu0  ;;  %17583 = vmatprep.mubr.msk.f32.mxu1 %vm1824_vm12, %v9052_v63 }
0x1470   :  { %v9055_v50 = vpop.f32.mrb[143].mxu0 }
0x1471   :  { %17584 = vmatmul.mubr.msk.f32.vlgmr.msra.gmra.mrb[192].mxu1 %vm1824_vm12, %v9055_v50 }
0x1472   :  { %17586 = vmatprep.mubr.msk.f32.mxu1 %vm1824_vm12, %v17509_v62  ;;  %18479 = vmatpush3.bf16.msra.mxu1 %v15751_v53 }
0x1473   :  { %18481 = vmatprep.subr.bf16.mxu1 %v15752_v20 }
0x1475   :  { %v17513_v37 = vpop.f32.mrb[144].mxu0  ;;  %17587 = vmatmul.mubr.msk.f32.gmra.mrb[194].mxu1 %vm1824_vm12, %v17510_v61  ;;  %v9121_v61 = vpop.permute.xlu0 %9120 }
0x1476   :  { %v9068_v7 = vpop.f32.mrb[145].mxu0 }
0x1477   :  { %v17514_v19 = vpop.f32.mrb[146].mxu0  ;;  %17593 = vmatprep.mubr.msk.f32.mxu1 %vm1824_vm12, %v9068_v7 }
0x1478   :  { %v9071_v49 = vpop.f32.mrb[147].mxu0 }
0x1479   :  { %17594 = vmatmul.mubr.msk.f32.vlgmr.msra.gmra.mrb[192].mxu1 %vm1824_vm12, %v9071_v49 }
0x147a   :  { %17596 = vmatprep.mubr.msk.f32.mxu1 %vm1824_vm12, %v17513_v37  ;;  %18483 = vmatpush3.bf16.msra.mxu1 %v15752_v20  ;;  %v9116_v37 = vpop.permute.xlu1 %9115 }
0x147d   :  { %v17517_v56 = vpop.f32.mrb[148].mxu0  ;;  %17597 = vmatmul.mubr.msk.f32.gmra.mrb[194].mxu1 %vm1824_vm12, %v17514_v19 }
0x147e   :  { %v9084_v48 = vpop.f32.mrb[149].mxu0 }
0x147f   :  { %v17518_v46 = vpop.f32.mrb[150].mxu0  ;;  %17603 = vmatprep.mubr.msk.f32.mxu1 %vm1824_vm12, %v9084_v48 }
0x1480   :  { %v9087_v58 = vpop.f32.mrb[151].mxu0 }
0x1481   :  { %17604 = vmatmul.mubr.msk.f32.vlgmr.msra.gmra.mrb[192].mxu1 %vm1824_vm12, %v9087_v58 }
0x1482   :  { %17606 = vmatprep.mubr.msk.f32.mxu1 %vm1824_vm12, %v17517_v56 }
0x1485   :  { %17607 = vmatmul.mubr.msk.f32.gmra.mrb[194].mxu1 %vm1824_vm12, %v17518_v46 }
0x1554   :  { %v17605_v47 = vpop.f32.mrb[192].mxu1 }
0x1555   :  { %v18545_v6 = vadd.f32 %v17605_v47, %v9111_v39  ;;  %v10045_v53 = vpop.f32.mrb[193].mxu1  ;;  %v19096_v39 = vld [vmem:[%s22162_s3 + $0x10] sm:$0xff]   ;;  %v19098_v47 = vld [vmem:[%s22162_s3 + $0x20] sm:$0xff]  }
0x1556   :  { %v18546_v62 = vadd.f32 %v10045_v53, %v9106_v8  ;;  %v19097_v8 = vld [vmem:[%s22162_s3 + $0x18] sm:$0xff]   ;;  %v19100_v53 = vld [vmem:[%s22162_s3 + $0x30] sm:$0xff]  }
0x1557   :  { %v10069_v63 = vmax.f32 %v18545_v6, 0.0  ;;  %v19099_v6 = vld [vmem:[%s22162_s3 + $0x28] sm:$0xff]  }
0x1558   :  { %v10068_v50 = vmax.f32 %v18546_v62, 0.0  ;;  %v17608_v20 = vpop.f32.mrb[194].mxu1  ;;  %v19101_v62 = vld [vmem:[%s22162_s3 + $0x38] sm:$0xff]  }
0x1559   :  { %v18547_v7 = vadd.f32 %v17608_v20, %v9121_v61  ;;  %v10055_v19 = vpop.f32.mrb[195].mxu1  ;;  %v19103_v61 = vld [vmem:[%s22162_s3 + $0x48] sm:$0xff]   ;;  %v19105_v20 = vld [vmem:[%s22162_s3 + $0x58] sm:$0xff]  }
0x155a   :  { %v21202_v49 = vpack.c.bf16 %v10069_v63, %v10068_v50  ;;  %v18548_v56 = vadd.f32 %v10055_v19, %v9116_v37  ;;  %v19102_v63 = vld [vmem:[%s22162_s3 + $0x40] sm:$0xff]   ;;  %v19104_v50 = vld [vmem:[%s22162_s3 + $0x50] sm:$0xff]  }
0x155b   :  { %v10071_v48 = vmax.f32 %v18547_v7, 0.0  ;;  %v19106_v37 = vld [vmem:[%s22162_s3 + $0x60] sm:$0xff]   ;;  %v19107_v7 = vld [vmem:[%s22162_s3 + $0x68] sm:$0xff]   ;;  %v19108_v19 = vld [vmem:[%s22162_s3 + $0x70] sm:$0xff]  }
0x155c   :  { %v10070_v46 = vmax.f32 %v18548_v56, 0.0  ;;  %17609 = vmatprep.subr.bf16.mxu0 %v21202_v49  ;;  %v19109_v56 = vld [vmem:[%s22162_s3 + $0x78] sm:$0xff]  }
0x155d   :  { %17610 = vmatpush3.bf16.msra.mxu0 %v21202_v49 }
0x155e   :  { %v21206_v58 = vpack.c.bf16 %v10071_v48, %v10070_v46  ;;  %v19110_v48 = vld [vmem:[%s22162_s3 + $0x80] sm:$0xff]   ;;  %v19111_v46 = vld [vmem:[%s22162_s3 + $0x88] sm:$0xff]   ;;  %s22165_s3 = sld [smem:[#allocation39_spill]] }
0x1560   :  { %17611 = vmatprep.subr.bf16.mxu0 %v21206_v58 }
0x1561   :  { %17612 = vmatpush3.bf16.msra.mxu0 %v21206_v58 }
0x1564   :  { %17614 = vmatmul.mubr.msk.bf16.vlgmr.msra.gmra.mrb[152].mxu0 %vm3165_vm13, %v19095_v57  ;;  %v10435_v57 = vld [vmem:[%s22163_s6] sm:$0x3] }
0x1565   :  { %17617 = vmatprep.mubr.msk.bf16.mxu0 %vm3165_vm13, %v19096_v39  ;;  %v10436_v39 = vunpack.c.l.bf16 %v10435_v57 }
0x1567   :  { %17649 = vmatprep.subr.msk.mxu1 %vm145_vm0, %v10436_v39 }
0x1568   :  { %17650 = vmatpush3.msk.msra.mxu1 %vm145_vm0, %v10436_v39 }
0x156c   :  { %17618 = vmatmul.mubr.msk.bf16.gmra.mrb[156].mxu0 %vm3165_vm13, %v19097_v8  ;;  %v14874_v8 = vld [vmem:[%s22163_s6 + $0x2] sm:$0x3] }
0x156d   :  { %17621 = vmatprep.mubr.msk.bf16.mxu0 %vm3165_vm13, %v19098_v47  ;;  %v10542_v47 = vunpack.c.l.bf16 %v14874_v8 }
0x156f   :  { %17657 = vmatprep.subr.msk.mxu1 %vm145_vm0, %v10542_v47 }
0x1574   :  { %17622 = vmatmul.mubr.msk.bf16.gmra.mrb[160].mxu0 %vm3165_vm13, %v19099_v6  ;;  %v14880_v6 = vld [vmem:[%s22163_s6 + $0x4] sm:$0x3] }
0x1575   :  { %17625 = vmatprep.mubr.msk.bf16.mxu0 %vm3165_vm13, %v19100_v53 }
0x157c   :  { %17626 = vmatmul.mubr.msk.bf16.gmra.mrb[164].mxu0 %vm3165_vm13, %v19101_v62 }
0x157d   :  { %17629 = vmatprep.mubr.msk.bf16.mxu0 %vm3165_vm13, %v19102_v63 }
0x1584   :  { %17630 = vmatmul.mubr.msk.bf16.gmra.mrb[168].mxu0 %vm3165_vm13, %v19103_v61  ;;  %v10648_v61 = vunpack.c.l.bf16 %v14880_v6 }
0x1585   :  { %17633 = vmatprep.mubr.msk.bf16.mxu0 %vm3165_vm13, %v19104_v50 }
0x158c   :  { %17634 = vmatmul.mubr.msk.bf16.gmra.mrb[172].mxu0 %vm3165_vm13, %v19105_v20  ;;  %v14886_v20 = vld [vmem:[%s22163_s6 + $0x6] sm:$0x3] }
0x158d   :  { %17637 = vmatprep.mubr.msk.bf16.mxu0 %vm3165_vm13, %v19106_v37 }
0x1594   :  { %17638 = vmatmul.mubr.msk.bf16.gmra.mrb[176].mxu0 %vm3165_vm13, %v19107_v7 }
0x1595   :  { %17641 = vmatprep.mubr.msk.bf16.mxu0 %vm3165_vm13, %v19108_v19 }
0x159c   :  { %17642 = vmatmul.mubr.msk.bf16.gmra.mrb[180].mxu0 %vm3165_vm13, %v19109_v56  ;;  %v10754_v56 = vunpack.c.l.bf16 %v14886_v20 }
0x159d   :  { %17645 = vmatprep.mubr.msk.bf16.mxu0 %vm3165_vm13, %v19110_v48 }
0x15a4   :  { %17646 = vmatmul.mubr.msk.bf16.gmra.mrb[184].mxu0 %vm3165_vm13, %v19111_v46  ;;  %v14892_v46 = vld [vmem:[%s22163_s6 + $0x8] sm:$0x3] }
0x1637   :  { %v17615_v53 = vpop.f32.mrb[152].mxu0 }
0x1638   :  { %v10288_v62 = vpop.f32.mrb[153].mxu0 }
0x1639   :  { %v17616_v63 = vpop.f32.mrb[154].mxu0  ;;  %17651 = vmatprep.mubr.msk.f32.mxu1 %vm3403_vm14, %v10288_v62 }
0x163a   :  { %v10291_v50 = vpop.f32.mrb[155].mxu0 }
0x163b   :  { %17652 = vmatmul.mubr.msk.f32.vlgmr.msra.gmra.mrb[196].mxu1 %vm3403_vm14, %v10291_v50 }
0x163c   :  { %17654 = vmatprep.mubr.msk.f32.mxu1 %vm3403_vm14, %v17615_v53  ;;  %17658 = vmatpush3.msk.msra.mxu1 %vm145_vm0, %v10542_v47  ;;  %v10860_v47 = vunpack.c.l.bf16 %v14892_v46  ;;  %v14898_v53 = vld [vmem:[%s22163_s6 + $0xa] sm:$0x3] }
0x163d   :  { %17665 = vmatprep.subr.msk.mxu1 %vm145_vm0, %v10648_v61  ;;  %v10966_v50 = vunpack.c.l.bf16 %v14898_v53 }
0x163f   :  { %v17619_v37 = vpop.f32.mrb[156].mxu0  ;;  %17655 = vmatmul.mubr.msk.f32.gmra.mrb[198].mxu1 %vm3403_vm14, %v17616_v63 }
0x1640   :  { %v10304_v7 = vpop.f32.mrb[157].mxu0 }
0x1641   :  { %v17620_v19 = vpop.f32.mrb[158].mxu0  ;;  %17659 = vmatprep.mubr.msk.f32.mxu1 %vm3403_vm14, %v10304_v7 }
0x1642   :  { %v10307_v48 = vpop.f32.mrb[159].mxu0 }
0x1643   :  { %17660 = vmatmul.mubr.msk.f32.vlgmr.msra.gmra.mrb[196].mxu1 %vm3403_vm14, %v10307_v48 }
0x1644   :  { %17662 = vmatprep.mubr.msk.f32.mxu1 %vm3403_vm14, %v17619_v37  ;;  %17666 = vmatpush3.msk.msra.mxu1 %vm145_vm0, %v10648_v61  ;;  %v14904_v37 = vld [vmem:[%s22163_s6 + $0xc] sm:$0x3] }
0x1645   :  { %17673 = vmatprep.subr.msk.mxu1 %vm145_vm0, %v10754_v56  ;;  %v11072_v48 = vunpack.c.l.bf16 %v14904_v37 }
0x1647   :  { %v17623_v57 = vpop.f32.mrb[160].mxu0  ;;  %17663 = vmatmul.mubr.msk.f32.gmra.mrb[198].mxu1 %vm3403_vm14, %v17620_v19 }
0x1648   :  { %v10320_v39 = vpop.f32.mrb[161].mxu0 }
0x1649   :  { %v17624_v8 = vpop.f32.mrb[162].mxu0  ;;  %17667 = vmatprep.mubr.msk.f32.mxu1 %vm3403_vm14, %v10320_v39 }
0x164a   :  { %v10323_v6 = vpop.f32.mrb[163].mxu0 }
0x164b   :  { %17668 = vmatmul.mubr.msk.f32.vlgmr.msra.gmra.mrb[196].mxu1 %vm3403_vm14, %v10323_v6 }
0x164c   :  { %17670 = vmatprep.mubr.msk.f32.mxu1 %vm3403_vm14, %v17623_v57  ;;  %17674 = vmatpush3.msk.msra.mxu1 %vm145_vm0, %v10754_v56  ;;  %v14910_v57 = vld [vmem:[%s22163_s6 + $0xe] sm:$0x3] }
0x164d   :  { %17681 = vmatprep.subr.msk.mxu1 %vm145_vm0, %v10860_v47  ;;  %v11178_v6 = vunpack.c.l.bf16 %v14910_v57 }
0x164f   :  { %v17627_v62 = vpop.f32.mrb[164].mxu0  ;;  %17671 = vmatmul.mubr.msk.f32.gmra.mrb[198].mxu1 %vm3403_vm14, %v17624_v8 }
0x1650   :  { %v10336_v63 = vpop.f32.mrb[165].mxu0 }
0x1651   :  { %v17628_v61 = vpop.f32.mrb[166].mxu0  ;;  %17675 = vmatprep.mubr.msk.f32.mxu1 %vm3403_vm14, %v10336_v63 }
0x1652   :  { %v10339_v20 = vpop.f32.mrb[167].mxu0 }
0x1653   :  { %17676 = vmatmul.mubr.msk.f32.vlgmr.msra.gmra.mrb[196].mxu1 %vm3403_vm14, %v10339_v20 }
0x1654   :  { %17678 = vmatprep.mubr.msk.f32.mxu1 %vm3403_vm14, %v17627_v62  ;;  %17682 = vmatpush3.msk.msra.mxu1 %vm145_vm0, %v10860_v47  ;;  %v14916_v62 = vld [vmem:[%s22163_s6 + $0x10] sm:$0x3] }
0x1655   :  { %17689 = vmatprep.subr.msk.mxu1 %vm145_vm0, %v10966_v50  ;;  %v11284_v20 = vunpack.c.l.bf16 %v14916_v62 }
0x1657   :  { %v17631_v7 = vpop.f32.mrb[168].mxu0  ;;  %17679 = vmatmul.mubr.msk.f32.gmra.mrb[198].mxu1 %vm3403_vm14, %v17628_v61 }
0x1658   :  { %v10352_v19 = vpop.f32.mrb[169].mxu0 }
0x1659   :  { %v17632_v56 = vpop.f32.mrb[170].mxu0  ;;  %17683 = vmatprep.mubr.msk.f32.mxu1 %vm3403_vm14, %v10352_v19 }
0x165a   :  { %v10355_v46 = vpop.f32.mrb[171].mxu0 }
0x165b   :  { %17684 = vmatmul.mubr.msk.f32.vlgmr.msra.gmra.mrb[196].mxu1 %vm3403_vm14, %v10355_v46 }
0x165c   :  { %17686 = vmatprep.mubr.msk.f32.mxu1 %vm3403_vm14, %v17631_v7  ;;  %17690 = vmatpush3.msk.msra.mxu1 %vm145_vm0, %v10966_v50 }
0x165d   :  { %17697 = vmatprep.subr.msk.mxu1 %vm145_vm0, %v11072_v48 }
0x165f   :  { %v17635_v39 = vpop.f32.mrb[172].mxu0  ;;  %17687 = vmatmul.mubr.msk.f32.gmra.mrb[198].mxu1 %vm3403_vm14, %v17632_v56 }
0x1660   :  { %v10368_v8 = vpop.f32.mrb[173].mxu0 }
0x1661   :  { %v17636_v47 = vpop.f32.mrb[174].mxu0  ;;  %17691 = vmatprep.mubr.msk.f32.mxu1 %vm3403_vm14, %v10368_v8 }
0x1662   :  { %v10371_v53 = vpop.f32.mrb[175].mxu0 }
0x1663   :  { %17692 = vmatmul.mubr.msk.f32.vlgmr.msra.gmra.mrb[196].mxu1 %vm3403_vm14, %v10371_v53 }
0x1664   :  { %17694 = vmatprep.mubr.msk.f32.mxu1 %vm3403_vm14, %v17635_v39  ;;  %17698 = vmatpush3.msk.msra.mxu1 %vm145_vm0, %v11072_v48 }
0x1665   :  { %17705 = vmatprep.subr.msk.mxu1 %vm145_vm0, %v11178_v6 }
0x1667   :  { %v17639_v63 = vpop.f32.mrb[176].mxu0  ;;  %17695 = vmatmul.mubr.msk.f32.gmra.mrb[198].mxu1 %vm3403_vm14, %v17636_v47  ;;  %v10432_v47 = vld [vmem:[%s22164_s13 + $0x8] sm:$0xff] }
0x1668   :  { %v10384_v61 = vpop.f32.mrb[177].mxu0 }
0x1669   :  { %v17640_v50 = vpop.f32.mrb[178].mxu0  ;;  %17699 = vmatprep.mubr.msk.f32.mxu1 %vm3403_vm14, %v10384_v61 }
0x166a   :  { %v10387_v37 = vpop.f32.mrb[179].mxu0 }
0x166b   :  { %17700 = vmatmul.mubr.msk.f32.vlgmr.msra.gmra.mrb[196].mxu1 %vm3403_vm14, %v10387_v37  ;;  %v10433_v37 = vld [vmem:[%s22164_s13 + $0x10] sm:$0xff] }
0x166c   :  { %17702 = vmatprep.mubr.msk.f32.mxu1 %vm3403_vm14, %v17639_v63  ;;  %17706 = vmatpush3.msk.msra.mxu1 %vm145_vm0, %v11178_v6  ;;  %v10431_v6 = vld [vmem:[%s22164_s13] sm:$0xff] }
0x166d   :  { %17713 = vmatprep.subr.msk.mxu1 %vm145_vm0, %v11284_v20 }
0x166f   :  { %v17643_v7 = vpop.f32.mrb[180].mxu0  ;;  %17703 = vmatmul.mubr.msk.f32.gmra.mrb[198].mxu1 %vm3403_vm14, %v17640_v50  ;;  %v10434_v50 = vld [vmem:[%s22164_s13 + $0x18] sm:$0xff] }
0x1670   :  { %v10400_v19 = vpop.f32.mrb[181].mxu0 }
0x1671   :  { %v17644_v56 = vpop.f32.mrb[182].mxu0  ;;  %17707 = vmatprep.mubr.msk.f32.mxu1 %vm3403_vm14, %v10400_v19 }
0x1672   :  { %v10403_v48 = vpop.f32.mrb[183].mxu0 }
0x1673   :  { %17708 = vmatmul.mubr.msk.f32.vlgmr.msra.gmra.mrb[196].mxu1 %vm3403_vm14, %v10403_v48 }
0x1674   :  { %17710 = vmatprep.mubr.msk.f32.mxu1 %vm3403_vm14, %v17643_v7  ;;  %17714 = vmatpush3.msk.msra.mxu1 %vm145_vm0, %v11284_v20 }
0x1677   :  { %v17647_v46 = vpop.f32.mrb[184].mxu0  ;;  %17711 = vmatmul.mubr.msk.f32.gmra.mrb[198].mxu1 %vm3403_vm14, %v17644_v56 }
0x1678   :  { %v10416_v57 = vpop.f32.mrb[185].mxu0 }
0x1679   :  { %v17648_v39 = vpop.f32.mrb[186].mxu0  ;;  %17715 = vmatprep.mubr.msk.f32.mxu1 %vm3403_vm14, %v10416_v57 }
0x167a   :  { %v10419_v8 = vpop.f32.mrb[187].mxu0 }
0x167b   :  { %17716 = vmatmul.mubr.msk.f32.vlgmr.msra.gmra.mrb[196].mxu1 %vm3403_vm14, %v10419_v8  ;;  %v11903_v8 = vld [vmem:[%s22020_s18 + $0x8] sm:$0xff] }
0x167c   :  { %17718 = vmatprep.mubr.msk.f32.mxu1 %vm3403_vm14, %v17647_v46 }
0x167f   :  { %17719 = vmatmul.mubr.msk.f32.gmra.mrb[198].mxu1 %vm3403_vm14, %v17648_v39 }
0x174e   :  { %v17717_v53 = vpop.f32.mrb[196].mxu1 }
0x174f   :  { %v18549_v62 = vadd.f32 %v17717_v53, %v10432_v47  ;;  %v11366_v63 = vpop.f32.mrb[197].mxu1  ;;  %v11902_v47 = vld [vmem:[%s22020_s18] sm:$0xff] }
0x1750   :  { %v18550_v61 = vadd.f32 %v11366_v63, %v10431_v6  ;;  %v7071_v6 = vld [vmem:[%s22165_s3] sm:$0xff]  ;;  %s22177_s3 = sld [smem:[#allocation40_spill]] }
0x1751   :  { %v11390_v20 = vmax.f32 %v18549_v62, 0.0  ;;  %v12947_v53 = vld [vmem:[%s22024_s22] sm:$0xff] }
0x1752   :  { %v11389_v7 = vmax.f32 %v18550_v61, 0.0  ;;  %v17720_v19 = vpop.f32.mrb[198].mxu1 }
0x1753   :  { %v18551_v56 = vadd.f32 %v17720_v19, %v10434_v50  ;;  %11400 = vperm.xlu0 %18958, %v11390_v20   ;;  %v11376_v48 = vpop.f32.mrb[199].mxu1 }
0x1754   :  { %v18552_v46 = vadd.f32 %v11376_v48, %v10433_v37  ;;  %11395 = vperm.xlu1 %18959, %v11389_v7  }
0x1755   :  { %v11392_v57 = vmax.f32 %v18551_v56, 0.0 }
0x1756   :  { %v11391_v39 = vmax.f32 %v18552_v46, 0.0 }
0x1757   :  { %11410 = vperm.xlu0 %18958, %v11392_v57  }
0x1758   :  { %11405 = vperm.xlu1 %18959, %v11391_v39  }
0x175b   :  { %11911 = vperm.xlu0 %18958, %v11903_v8  }
0x175c   :  { %11906 = vperm.xlu1 %18959, %v11902_v47  }
0x175f   :  { %7074 = vperm.xlu0 %18958, %v7071_v6  }
0x1760   :  { %12950 = vperm.xlu1 %18959, %v12947_v53  }
0x1763   :  { %7077 = vrot.lane.b32.xlu0 %v20619_v12, %s22138_s29  ;;  %v19112_v12 = vld [vmem:[%s22016_s14] sm:$0xff]  }
0x1764   :  { %14071 = vperm.xlu1 %18959, %v7071_v6   ;;  %17737 = vmatprep.mubr.bf16.mxu0 %v19112_v12 }
0x1767   :  { %7087 = vrot.lane.b32.xlu0 %v20623_v14, %s22139_s0 }
0x1768   :  { %7079 = vrot.lane.b32.xlu1 %v20621_v34, %s22138_s29 }
0x176b   :  { %7097 = vrot.lane.b32.xlu0 %v20627_v17, %s22140_s2 }
0x176c   :  { %7089 = vrot.lane.b32.xlu1 %v20625_v35, %s22139_s0 }
0x176f   :  { %7107 = vrot.lane.b32.xlu0 %v20631_v23, %s22141_s5 }
0x1770   :  { %7099 = vrot.lane.b32.xlu1 %v20629_v22, %s22140_s2 }
0x1773   :  { %7121 = vrot.lane.b32.xlu0 %v20639_v29, %s22142_s8 }
0x1774   :  { %7109 = vrot.lane.b32.xlu1 %v20633_v4, %s22141_s5 }
0x1777   :  { %7131 = vrot.lane.b32.xlu0 %v20643_v31, %s22143_s7 }
0x1778   :  { %7123 = vrot.lane.b32.xlu1 %v20641_v30, %s22142_s8 }
0x177b   :  { %7141 = vrot.lane.b32.xlu0 %v20647_v33, %s22144_s10 }
0x177c   :  { %7133 = vrot.lane.b32.xlu1 %v20645_v32, %s22143_s7 }
0x177f   :  { %7151 = vrot.lane.b32.xlu0 %v20654_v11, %s22145_s28 }
0x1780   :  { %7143 = vrot.lane.b32.xlu1 %v20649_v36, %s22144_s10 }
0x1784   :  { %7153 = vrot.lane.b32.xlu1 %v20659_v38, %s22145_s28 }
0x17d2   :  { %v11401_v34 = vpop.permute.xlu0 %11400 }
0x17d3   :  { %v11414_v14 = vmul.f32 %v20132_v42, %v11401_v34  ;;  %v11396_v35 = vpop.permute.xlu1 %11395  ;;  %v11418_v30 = vmul.f32 %v20138_v51, %v11401_v34  ;;  %v11426_v57 = vmul.f32 %v20156_v26, %v11401_v34 }
0x17d4   :  { %v11413_v17 = vmul.f32 %v20132_v42, %v11396_v35  ;;  %v11417_v31 = vmul.f32 %v20138_v51, %v11396_v35  ;;  %v11421_v20 = vmul.f32 %v20148_v15, %v11396_v35  ;;  %v11425_v39 = vmul.f32 %v20156_v26, %v11396_v35 }
0x17d6   :  { %v11411_v22 = vpop.permute.xlu0 %11410  ;;  %v11433_v23 = vpack.c.bf16 %v11414_v14, %v11413_v17  ;;  %v11435_v63 = vpack.c.bf16 %v11418_v30, %v11417_v31  ;;  %v11439_v12 = vpack.c.bf16 %v11426_v57, %v11425_v39 }
0x17d7   :  { %v11416_v4 = vmul.f32 %v20132_v42, %v11411_v22  ;;  %v11406_v29 = vpop.permute.xlu1 %11405  ;;  %v11420_v38 = vmul.f32 %v20138_v51, %v11411_v22  ;;  %v11424_v56 = vmul.f32 %v20148_v15, %v11411_v22  ;;  %v11428_v14 = vmul.f32 %v20156_v26, %v11411_v22 }
0x17d8   :  { %v11415_v32 = vmul.f32 %v20132_v42, %v11406_v29  ;;  %17721 = vmatprep.subr.bf16.mxu0 %v11433_v23  ;;  %v11419_v62 = vmul.f32 %v20138_v51, %v11406_v29  ;;  %v11422_v42 = vmul.f32 %v20148_v15, %v11401_v34  ;;  %v11423_v51 = vmul.f32 %v20148_v15, %v11406_v29 }
0x17d9   :  { %17722 = vmatpush3.bf16.msra.mxu0 %v11433_v23  ;;  %v11427_v17 = vmul.f32 %v20156_v26, %v11406_v29 }
0x17da   :  { %v21424_v33 = vpop.permute.xlu0 %11911  ;;  %v11434_v36 = vpack.c.bf16 %v11416_v4, %v11415_v32  ;;  %v11436_v37 = vpack.c.bf16 %v11420_v38, %v11419_v62  ;;  %v11437_v48 = vpack.c.bf16 %v11422_v42, %v11421_v20  ;;  %v11438_v47 = vpack.c.bf16 %v11424_v56, %v11423_v51 }
0x17db   :  { %v21426_v11 = vpop.permute.xlu1 %11906  ;;  %v11440_v32 = vpack.c.bf16 %v11428_v14, %v11427_v17 }
0x17dc   :  { %17723 = vmatprep.subr.bf16.mxu0 %v11434_v36 }
0x17dd   :  { %17724 = vmatpush3.bf16.msra.mxu0 %v11434_v36 }
0x17de   :  { %v7075_v61 = vpop.permute.xlu0 %7074  ;;  %17725 = vmatprep.subr.bf16.mxu0 %v11435_v63 }
0x17df   :  { %v21430_v50 = vpop.permute.xlu1 %12950 }
0x17e1   :  { %17726 = vmatpush3.bf16.msra.mxu0 %v11435_v63 }
0x17e2   :  { %v7078_v7 = vpop.permute.xlu0 %7077  ;;  %17727 = vmatprep.subr.bf16.mxu0 %v11436_v37 }
0x17e3   :  { %v21434_v19 = vpop.permute.xlu1 %14071 }
0x17e5   :  { %17728 = vmatpush3.bf16.msra.mxu0 %v11436_v37 }
0x17e6   :  { %v7088_v46 = vpop.permute.xlu0 %7087  ;;  %17729 = vmatprep.subr.bf16.mxu0 %v11437_v48 }
0x17e7   :  { %v7080_v8 = vpop.permute.xlu1 %7079 }
0x17e8   :  { %v7081_v15 = vsel %vm245_vm2, %v7078_v7, %v7080_v8  ;;  %v7082_v23 = vsel %vm245_vm2, %v7080_v8, %v7078_v7 }
0x17e9   :  { %17730 = vmatpush3.bf16.msra.mxu0 %v11437_v48  ;;  %v7083_v30 = vmul.f32 %v7082_v23, %v19476_v3  ;;  %v7084_v22 = vmul.f32 %v7081_v15, %v19479_v5  ;;  %v22166_v23 = vld [vmem:[#allocation5_spill] sm:$0xff] }
0x17ea   :  { %v7098_v6 = vpop.permute.xlu0 %7097  ;;  %17731 = vmatprep.subr.bf16.mxu0 %v11438_v47 }
0x17eb   :  { %v7090_v53 = vpop.permute.xlu1 %7089  ;;  %v7085_v63 = vadd.f32 %v7083_v30, %v7075_v61  ;;  %v7086_v42 = vadd.f32 %v7084_v22, %v7075_v61 }
0x17ec   :  { %v7091_v34 = vsel %vm268_vm3, %v7088_v46, %v7090_v53  ;;  %v7092_v35 = vsel %vm268_vm3, %v7090_v53, %v7088_v46 }
0x17ed   :  { %17732 = vmatpush3.bf16.msra.mxu0 %v11438_v47  ;;  %v7093_v36 = vmul.f32 %v7092_v35, %v19490_v9  ;;  %v7094_v38 = vmul.f32 %v7091_v34, %v19493_v10  ;;  %v19113_v9 = vld [vmem:[%s22016_s14 + $0x8] sm:$0xff]   ;;  %v7118_v47 = vmul.f32 %v20637_v28, %v19546_v44  ;;  %v22168_v34 = vld [vmem:[#allocation7_spill] sm:$0xff] }
0x17ee   :  { %v7108_v4 = vpop.permute.xlu0 %7107  ;;  %17733 = vmatprep.subr.bf16.mxu0 %v11439_v12  ;;  %v22167_v44 = vld [vmem:[#allocation6_spill] sm:$0xff] }
0x17ef   :  { %v7100_v26 = vpop.permute.xlu1 %7099  ;;  %v7095_v10 = vadd.f32 %v7093_v36, %v7085_v63  ;;  %v7096_v56 = vadd.f32 %v7094_v38, %v7086_v42 }
0x17f0   :  { %v7101_v29 = vsel %vm292_vm4, %v7098_v6, %v7100_v26  ;;  %v7102_v31 = vsel %vm292_vm4, %v7100_v26, %v7098_v6 }
0x17f1   :  { %17734 = vmatpush3.bf16.msra.mxu0 %v11439_v12  ;;  %v7103_v3 = vmul.f32 %v7102_v31, %v19501_v13  ;;  %v7104_v5 = vmul.f32 %v7101_v29, %v19509_v18  ;;  %v19114_v12 = vld [vmem:[%s22019_s17] sm:$0xff]   ;;  %v22169_v29 = vld [vmem:[#allocation8_spill] sm:$0xff] }
0x17f2   :  { %v7122_v62 = vpop.permute.xlu0 %7121  ;;  %17735 = vmatprep.subr.bf16.mxu0 %v11440_v32 }
0x17f3   :  { %v7110_v20 = vpop.permute.xlu1 %7109  ;;  %v7105_v13 = vadd.f32 %v7103_v3, %v7095_v10  ;;  %v7106_v18 = vadd.f32 %v7104_v5, %v7096_v56  ;;  %v19115_v5 = vld [vmem:[%s22019_s17 + $0x8] sm:$0xff]   ;;  %v22173_v10 = vld [vmem:[#allocation11_spill] sm:$0xff] }
0x17f4   :  { %v7111_v37 = vsel %vm316_vm5, %v7108_v4, %v7110_v20  ;;  %v7112_v7 = vsel %vm316_vm5, %v7110_v20, %v7108_v4 }
0x17f5   :  { %v7113_v51 = vmul.f32 %v7112_v7, %v19519_v24  ;;  %v7114_v61 = vmul.f32 %v7111_v37, %v19522_v25  ;;  %17736 = vmatpush3.bf16.msra.mxu0 %v11440_v32  ;;  %v7117_v25 = vmul.f32 %v20635_v27, %v19543_v43  ;;  %v22172_v7 = vld [vmem:[#allocation10_spill] sm:$0xff] }
0x17f6   :  { %17741 = vmatprep.subr.bf16.mxu0 %v22158_v52  ;;  %v7132_v48 = vpop.permute.xlu0 %7131 }
0x17f7   :  { %v7124_v46 = vpop.permute.xlu1 %7123  ;;  %v7115_v57 = vadd.f32 %v7113_v51, %v7105_v13  ;;  %v7116_v39 = vadd.f32 %v7114_v61, %v7106_v18  ;;  %v19116_v13 = vld [vmem:[%s22019_s17 + $0x10] sm:$0xff]   ;;  %v19117_v18 = vld [vmem:[%s22019_s17 + $0x18] sm:$0xff]  }
0x17f8   :  { %17738 = vmatmul.mubr.bf16.vlgmr.msra.gmra.mrb[188].mxu0 %v19113_v9  ;;  %v7125_v8 = vsel %vm357_vm6, %v7122_v62, %v7124_v46  ;;  %v7126_v24 = vsel %vm357_vm6, %v7124_v46, %v7122_v62  ;;  %v19119_v46 = vld [vmem:[%s22019_s17 + $0x28] sm:$0xff]  }
0x17f9   :  { %17742 = vmatpush3.bf16.msra.mxu0 %v21202_v49  ;;  %17745 = vmatprep.mubr.msk.bf16.mxu0 %vm19198_vm10, %v22158_v52  ;;  %v7119_v14 = vadd.f32 %v7117_v25, %v7115_v57  ;;  %v7120_v17 = vadd.f32 %v7118_v47, %v7116_v39  ;;  %v7127_v15 = vmul.f32 %v7125_v8, %v19549_v45  ;;  %v19120_v57 = vld [vmem:[%s22019_s17 + $0x30] sm:$0xff]   ;;  %v19121_v39 = vld [vmem:[%s22019_s17 + $0x38] sm:$0xff]   ;;  %v19122_v8 = vld [vmem:[%s22019_s17 + $0x40] sm:$0xff]  }
0x17fa   :  { %17743 = vmatprep.subr.bf16.mxu0 %v22158_v52  ;;  %v7128_v43 = vmul.f32 %v7126_v24, %v22166_v23  ;;  %v7142_v27 = vpop.permute.xlu0 %7141  ;;  %v11443_v24 = vld [vmem:[%s22017_s15 + $0x10] sm:$0xff]  ;;  %v11441_v25 = vld [vmem:[%s22017_s15] sm:$0xff] }
0x17fb   :  { %v7134_v6 = vpop.permute.xlu1 %7133  ;;  %v7129_v45 = vadd.f32 %v7127_v15, %v7119_v14 }
0x17fc   :  { %v7135_v49 = vsel %vm381_vm7, %v7132_v48, %v7134_v6  ;;  %v7136_v53 = vsel %vm381_vm7, %v7134_v6, %v7132_v48  ;;  %v7130_v26 = vadd.f32 %v7128_v43, %v7120_v17  ;;  %v19118_v48 = vld [vmem:[%s22019_s17 + $0x20] sm:$0xff]   ;;  %v11444_v6 = vld [vmem:[%s22017_s15 + $0x18] sm:$0xff]  ;;  %s22178_s17 = sld [smem:[#allocation37_spill]] }
0x17fd   :  { %17744 = vmatpush3.bf16.msra.mxu0 %v21206_v58  ;;  %v7137_v28 = vmul.f32 %v7135_v49, %v22167_v44  ;;  %v7138_v35 = vmul.f32 %v7136_v53, %v22168_v34  ;;  %v22170_v58 = vld [vmem:[#allocation9_spill] sm:$0xff] }
0x17fe   :  { %17781 = vmatprep.subr.bf16.mxu0 %v22158_v52  ;;  %v7152_v62 = vpop.permute.xlu0 %7151 }
0x17ff   :  { %v7144_v4 = vpop.permute.xlu1 %7143  ;;  %v7139_v36 = vadd.f32 %v7137_v28, %v7129_v45  ;;  %v7140_v38 = vadd.f32 %v7138_v35, %v7130_v26  ;;  %v19124_v45 = vld [vmem:[%s22018_s16 + $0x8] sm:$0xff]   ;;  %v19125_v26 = vld [vmem:[%s22018_s16 + $0x10] sm:$0xff]  }
0x1800   :  { %v7145_v30 = vsel %vm405_vm8, %v7142_v27, %v7144_v4  ;;  %v7146_v22 = vsel %vm405_vm8, %v7144_v4, %v7142_v27  ;;  %17746 = vmatmul.mubr.msk.bf16.vlgmr.msra.gmra.mrb[192].mxu0 %vm3165_vm13, %v19114_v12  ;;  %v11442_v12 = vld [vmem:[%s22017_s15 + $0x8] sm:$0xff] }
0x1801   :  { %v7147_v31 = vmul.f32 %v7145_v30, %v22169_v29  ;;  %v7148_v32 = vmul.f32 %v7146_v22, %v22170_v58  ;;  %17749 = vmatprep.mubr.msk.bf16.mxu0 %vm19198_vm10, %v22158_v52  ;;  %v19123_v30 = vld [vmem:[%s22018_s16] sm:$0xff]   ;;  %v22174_v22 = vmov 0.0|0.0   ;;  %v19126_v29 = vld [vmem:[%s22018_s16 + $0x18] sm:$0xff]   ;;  %v19128_v58 = vld [vmem:[%s22018_s16 + $0x28] sm:$0xff]  }
0x1803   :  { %v7154_v63 = vpop.permute.xlu1 %7153  ;;  %v7149_v20 = vadd.f32 %v7147_v31, %v7139_v36  ;;  %v7150_v37 = vadd.f32 %v7148_v32, %v7140_v38  ;;  %v19127_v31 = vld [vmem:[%s22018_s16 + $0x20] sm:$0xff]   ;;  %v19129_v32 = vld [vmem:[%s22018_s16 + $0x30] sm:$0xff]   ;;  %v19130_v36 = vld [vmem:[%s22018_s16 + $0x38] sm:$0xff]  }
0x1804   :  { %v7155_v42 = vsel %vm22171_vm15, %v7152_v62, %v7154_v63  ;;  %v7156_v3 = vsel %vm22157_vm9, %v7154_v63, %v7152_v62  ;;  %v19131_v38 = vld [vmem:[%s22018_s16 + $0x40] sm:$0xff]  }
0x1805   :  { %v7157_v9 = vmul.f32 %v7155_v42, %v22172_v7  ;;  %v7158_v56 = vmul.f32 %v7156_v3, %v22173_v10  ;;  %v11914_v62 = vld [vmem:[%s22021_s19] sm:$0x3]  ;;  %v14963_v42 = vld [vmem:[%s22021_s19 + $0x2] sm:$0x3] }
0x1806   :  { %v11915_v63 = vunpack.c.l.bf16 %v11914_v62  ;;  %v12003_v3 = vunpack.c.l.bf16 %v14963_v42 }
0x1807   :  { %v7159_v51 = vadd.f32 %v7157_v9, %v7149_v20  ;;  %v7160_v61 = vadd.f32 %v7158_v56, %v7150_v37  ;;  %v14971_v56 = vld [vmem:[%s22021_s19 + $0x6] sm:$0x3] }
0x1808   :  { %17750 = vmatmul.mubr.msk.bf16.gmra.mrb[196].mxu0 %vm3165_vm13, %v19115_v5  ;;  %17821 = vmatprep.subr.msk.mxu1 %vm145_vm0, %v11915_v63  ;;  %v14967_v5 = vld [vmem:[%s22021_s19 + $0x4] sm:$0x3] }
0x1809   :  { %7161 = vst [vmem:[#allocation2] sm:$0xff] %v7159_v51  ;;  %7162 = vst [vmem:[#allocation2 + $0x8] sm:$0xff] %v7160_v61  ;;  %17753 = vmatprep.mubr.msk.bf16.mxu0 %vm19198_vm10, %v22158_v52  ;;  %17822 = vmatpush3.msk.msra.mxu1 %vm145_vm0, %v11915_v63  ;;  %v12091_v7 = vunpack.c.l.bf16 %v14967_v5 }
0x180a   :  { %17826 = vmatprep.subr.msk.mxu1 %vm145_vm0, %v12003_v3 }
0x1810   :  { %17754 = vmatmul.mubr.msk.bf16.gmra.mrb[200].mxu0 %vm3165_vm13, %v19116_v13  ;;  %v12179_v13 = vunpack.c.l.bf16 %v14971_v56  ;;  %v19136_v56 = vld [vmem:[%s22023_s21 + $0x20] ss:$0 sps:$4 sm:$0xff]  }
0x1811   :  { %17757 = vmatprep.mubr.msk.bf16.mxu0 %vm19198_vm10, %v22158_v52 }
0x1818   :  { %17758 = vmatmul.mubr.msk.bf16.gmra.mrb[204].mxu0 %vm3165_vm13, %v19117_v18 }
0x1819   :  { %17761 = vmatprep.mubr.msk.bf16.mxu0 %vm19198_vm10, %v22158_v52 }
0x1820   :  { %17762 = vmatmul.mubr.msk.bf16.gmra.mrb[208].mxu0 %vm3165_vm13, %v19118_v48 }
0x1821   :  { %17765 = vmatprep.mubr.msk.bf16.mxu0 %vm19198_vm10, %v22158_v52 }
0x1828   :  { %17766 = vmatmul.mubr.msk.bf16.gmra.mrb[212].mxu0 %vm3165_vm13, %v19119_v46  ;;  %v14975_v46 = vld [vmem:[%s22021_s19 + $0x8] sm:$0x3] }
0x1829   :  { %17769 = vmatprep.mubr.msk.bf16.mxu0 %vm19198_vm10, %v22158_v52 }
0x1830   :  { %17770 = vmatmul.mubr.msk.bf16.gmra.mrb[216].mxu0 %vm3165_vm13, %v19120_v57 }
0x1831   :  { %17773 = vmatprep.mubr.msk.bf16.mxu0 %vm19198_vm10, %v22158_v52 }
0x1838   :  { %17774 = vmatmul.mubr.msk.bf16.gmra.mrb[220].mxu0 %vm3165_vm13, %v19121_v39 }
0x1839   :  { %17777 = vmatprep.mubr.msk.bf16.mxu0 %vm19198_vm10, %v22158_v52 }
0x1840   :  { %17778 = vmatmul.mubr.msk.bf16.gmra.mrb[224].mxu0 %vm3165_vm13, %v19122_v8  ;;  %v12267_v8 = vunpack.c.l.bf16 %v14975_v46 }
0x1841   :  { %17785 = vmatprep.mubr.msk.bf16.mxu0 %vm19198_vm10, %v22158_v52 }
0x18cb   :  { %v17739_v47 = vpop.f32.mrb[188].mxu0 }
0x18cc   :  { %v11500_v49 = vadd.f32 %v17739_v47, %v11443_v24  ;;  %v11491_v53 = vpop.f32.mrb[189].mxu0  ;;  %v14979_v47 = vld [vmem:[%s22021_s19 + $0xa] sm:$0x3] }
0x18cd   :  { %v11492_v14 = vadd.f32 %v11491_v53, %v11441_v25  ;;  %v17740_v17 = vpop.f32.mrb[190].mxu0  ;;  %v12355_v53 = vunpack.c.l.bf16 %v14979_v47  ;;  %v19143_v47 = vld [vmem:[%s22176_s4 + $0x8] sm:$0xff]  }
0x18ce   :  { %v11503_v15 = vadd.f32 %v17740_v17, %v11444_v6  ;;  %v11494_v23 = vpop.f32.mrb[191].mxu0  ;;  %v11508_v27 = vmax.f32 %v11500_v49, 0.0  ;;  %v14983_v17 = vld [vmem:[%s22021_s19 + $0xc] sm:$0x3] }
0x18cf   :  { %v11495_v43 = vadd.f32 %v11494_v23, %v11442_v12  ;;  %v11506_v28 = vmax.f32 %v11492_v14, 0.0 }
0x18d0   :  { %v11509_v44 = vmax.f32 %v11503_v15, 0.0 }
0x18d1   :  { %v11507_v34 = vmax.f32 %v11495_v43, 0.0  ;;  %v12443_v43 = vunpack.c.l.bf16 %v14983_v17 }
0x18d2   :  { %v11529_v35 = vpack.c.bf16 %v11509_v44, %v11508_v27 }
0x18d3   :  { %v11528_v4 = vpack.c.bf16 %v11507_v34, %v11506_v28  ;;  %v14987_v28 = vld [vmem:[%s22021_s19 + $0xe] sm:$0x3] }
0x18d5   :  { %17782 = vmatpush3.bf16.msra.mxu0 %v11528_v4  ;;  %v12531_v4 = vunpack.c.l.bf16 %v14987_v28 }
0x18d6   :  { %17783 = vmatprep.subr.bf16.mxu0 %v22158_v52 }
0x18d9   :  { %17784 = vmatpush3.bf16.msra.mxu0 %v11529_v35 }
0x18da   :  { %18484 = vmatprep.subr.bf16.mxu0 %v22174_v22 }
0x18dc   :  { %17786 = vmatmul.mubr.msk.bf16.vlgmr.msra.gmra.mrb[192].mxu0 %vm3165_vm13, %v19123_v30 }
0x18dd   :  { %17789 = vmatprep.mubr.msk.bf16.mxu0 %vm19198_vm10, %v22158_v52 }
0x18e4   :  { %17790 = vmatmul.mubr.msk.bf16.gmra.mrb[196].mxu0 %vm3165_vm13, %v19124_v45 }
0x18e5   :  { %17793 = vmatprep.mubr.msk.bf16.mxu0 %vm19198_vm10, %v22158_v52 }
0x18ec   :  { %17794 = vmatmul.mubr.msk.bf16.gmra.mrb[200].mxu0 %vm3165_vm13, %v19125_v26  ;;  %v14991_v26 = vld [vmem:[%s22021_s19 + $0x10] sm:$0x3] }
0x18ed   :  { %17797 = vmatprep.mubr.msk.bf16.mxu0 %vm19198_vm10, %v22158_v52 }
0x18f4   :  { %17798 = vmatmul.mubr.msk.bf16.gmra.mrb[204].mxu0 %vm3165_vm13, %v19126_v29 }
0x18f5   :  { %17801 = vmatprep.mubr.msk.bf16.mxu0 %vm19198_vm10, %v22158_v52 }
0x18fc   :  { %17802 = vmatmul.mubr.msk.bf16.gmra.mrb[208].mxu0 %vm3165_vm13, %v19127_v31 }
0x18fd   :  { %17805 = vmatprep.mubr.msk.bf16.mxu0 %vm19198_vm10, %v22158_v52 }
0x1904   :  { %17806 = vmatmul.mubr.msk.bf16.gmra.mrb[212].mxu0 %vm3165_vm13, %v19128_v58  ;;  %v12619_v58 = vunpack.c.l.bf16 %v14991_v26  ;;  %v15756_v26 = vld [vmem:[%s22025_s23 + $0x20] sm:$0xff]  }
0x1905   :  { %17809 = vmatprep.mubr.msk.bf16.mxu0 %vm19198_vm10, %v22158_v52 }
0x190c   :  { %17810 = vmatmul.mubr.msk.bf16.gmra.mrb[216].mxu0 %vm3165_vm13, %v19129_v32 }
0x190d   :  { %17813 = vmatprep.mubr.msk.bf16.mxu0 %vm19198_vm10, %v22158_v52 }
0x1914   :  { %17814 = vmatmul.mubr.msk.bf16.gmra.mrb[220].mxu0 %vm3165_vm13, %v19130_v36 }
0x1915   :  { %17817 = vmatprep.mubr.msk.bf16.mxu0 %vm19198_vm10, %v22158_v52 }
0x191c   :  { %17818 = vmatmul.mubr.msk.bf16.gmra.mrb[224].mxu0 %vm3165_vm13, %v19131_v38 }
0x191d   :  { %17914 = vmatprep.mubr.msk.f32.mxu0 %vm19198_vm10, %v22158_v52 }
0x19af   :  { %v11831_v20 = vpop.f32.mrb[192].mxu0 }
0x19b0   :  { %v17787_v37 = vpop.f32.mrb[193].mxu0  ;;  %17823 = vmatprep.mubr.msk.f32.mxu1 %vm3403_vm14, %v11831_v20 }
0x19b1   :  { %v11834_v9 = vpop.f32.mrb[194].mxu0 }
0x19b2   :  { %v17788_v10 = vpop.f32.mrb[195].mxu0  ;;  %17824 = vmatmul.mubr.msk.f32.vlgmr.msra.gmra.mrb[200].mxu1 %vm3403_vm14, %v11834_v9  ;;  %v19133_v9 = vld [vmem:[%s22023_s21 + $0x8] sm:$0xff]  }
0x19b3   :  { %17827 = vmatpush3.msk.msra.mxu1 %vm145_vm0, %v12003_v3  ;;  %v19135_v10 = vld [vmem:[%s22023_s21 + $0x18] sm:$0xff]  }
0x19b4   :  { %17831 = vmatprep.subr.msk.mxu1 %vm145_vm0, %v12091_v7 }
0x19b7   :  { %v11839_v51 = vpop.f32.mrb[196].mxu0 }
0x19b8   :  { %v17791_v61 = vpop.f32.mrb[197].mxu0  ;;  %17828 = vmatprep.mubr.msk.f32.mxu1 %vm3403_vm14, %v11839_v51  ;;  %v15594_v51 = vld [vmem:[%s22025_s23] sm:$0xff]  }
0x19b9   :  { %v11842_v18 = vpop.f32.mrb[198].mxu0  ;;  %18486 = vmatpush3.bf16.msra.mxu0 %v15594_v51  ;;  %v19161_v51 = vld [vmem:[%s22177_s3 + $0x34] ss:$8 sps:$4 sm:$0xff]  }
0x19ba   :  { %v17792_v48 = vpop.f32.mrb[199].mxu0  ;;  %17829 = vmatmul.mubr.msk.f32.vlgmr.msra.gmra.mrb[200].mxu1 %vm3403_vm14, %v11842_v18  ;;  %18487 = vmatprep.subr.bf16.mxu0 %v22174_v22 }
0x19bb   :  { %17832 = vmatpush3.msk.msra.mxu1 %vm145_vm0, %v12091_v7  ;;  %v19132_v7 = vld [vmem:[%s22023_s21] sm:$0xff]  }
0x19bc   :  { %17836 = vmatprep.subr.msk.mxu1 %vm145_vm0, %v12179_v13 }
0x19bf   :  { %v11847_v57 = vpop.f32.mrb[200].mxu0 }
0x19c0   :  { %v17795_v39 = vpop.f32.mrb[201].mxu0  ;;  %17833 = vmatprep.mubr.msk.f32.mxu1 %vm3403_vm14, %v11847_v57 }
0x19c1   :  { %v11850_v24 = vpop.f32.mrb[202].mxu0 }
0x19c2   :  { %v17796_v25 = vpop.f32.mrb[203].mxu0  ;;  %17834 = vmatmul.mubr.msk.f32.vlgmr.msra.gmra.mrb[200].mxu1 %vm3403_vm14, %v11850_v24  ;;  %v19141_v24 = vld [vmem:[%s22175_s27 + $0x20] ss:$0 sps:$4 sm:$0xff]  }
0x19c3   :  { %17837 = vmatpush3.msk.msra.mxu1 %vm145_vm0, %v12179_v13  ;;  %v19142_v25 = vld [vmem:[%s22176_s4] sm:$0xff]  }
0x19c4   :  { %17841 = vmatprep.subr.msk.mxu1 %vm145_vm0, %v12267_v8 }
0x19c7   :  { %v11855_v6 = vpop.f32.mrb[204].mxu0 }
0x19c8   :  { %v17799_v49 = vpop.f32.mrb[205].mxu0  ;;  %17838 = vmatprep.mubr.msk.f32.mxu1 %vm3403_vm14, %v11855_v6  ;;  %v19144_v6 = vld [vmem:[%s22176_s4 + $0x10] sm:$0xff]  }
0x19c9   :  { %v11858_v12 = vpop.f32.mrb[206].mxu0  ;;  %v19145_v49 = vld [vmem:[%s22176_s4 + $0x18] sm:$0xff]  }
0x19ca   :  { %v17800_v14 = vpop.f32.mrb[207].mxu0  ;;  %17839 = vmatmul.mubr.msk.f32.vlgmr.msra.gmra.mrb[200].mxu1 %vm3403_vm14, %v11858_v12 }
0x19cb   :  { %17842 = vmatpush3.msk.msra.mxu1 %vm145_vm0, %v12267_v8  ;;  %v19137_v8 = vld [vmem:[%s22175_s27] sm:$0xff]  }
0x19cc   :  { %17846 = vmatprep.subr.msk.mxu1 %vm145_vm0, %v12355_v53 }
0x19cf   :  { %v11863_v15 = vpop.f32.mrb[208].mxu0 }
0x19d0   :  { %v17803_v23 = vpop.f32.mrb[209].mxu0  ;;  %17843 = vmatprep.mubr.msk.f32.mxu1 %vm3403_vm14, %v11863_v15 }
0x19d1   :  { %v11866_v27 = vpop.f32.mrb[210].mxu0  ;;  %v15754_v23 = vld [vmem:[%s22025_s23 + $0x10] sm:$0xff]  }
0x19d2   :  { %v17804_v44 = vpop.f32.mrb[211].mxu0  ;;  %17844 = vmatmul.mubr.msk.f32.vlgmr.msra.gmra.mrb[200].mxu1 %vm3403_vm14, %v11866_v27 }
0x19d3   :  { %17847 = vmatpush3.msk.msra.mxu1 %vm145_vm0, %v12355_v53  ;;  %v15753_v53 = vld [vmem:[%s22025_s23 + $0x8] sm:$0xff]  }
0x19d4   :  { %17851 = vmatprep.subr.msk.mxu1 %vm145_vm0, %v12443_v43 }
0x19d7   :  { %v11871_v34 = vpop.f32.mrb[212].mxu0 }
0x19d8   :  { %v17807_v35 = vpop.f32.mrb[213].mxu0  ;;  %17848 = vmatprep.mubr.msk.f32.mxu1 %vm3403_vm14, %v11871_v34  ;;  %v15755_v34 = vld [vmem:[%s22025_s23 + $0x18] sm:$0xff]  }
0x19d9   :  { %v11874_v30 = vpop.f32.mrb[214].mxu0 }
0x19da   :  { %v17808_v45 = vpop.f32.mrb[215].mxu0  ;;  %17849 = vmatmul.mubr.msk.f32.vlgmr.msra.gmra.mrb[200].mxu1 %vm3403_vm14, %v11874_v30 }
0x19db   :  { %17852 = vmatpush3.msk.msra.mxu1 %vm145_vm0, %v12443_v43 }
0x19dc   :  { %17856 = vmatprep.subr.msk.mxu1 %vm145_vm0, %v12531_v4 }
0x19df   :  { %v11879_v29 = vpop.f32.mrb[216].mxu0 }
0x19e0   :  { %v17811_v31 = vpop.f32.mrb[217].mxu0  ;;  %17853 = vmatprep.mubr.msk.f32.mxu1 %vm3403_vm14, %v11879_v29 }
0x19e1   :  { %v11882_v32 = vpop.f32.mrb[218].mxu0 }
0x19e2   :  { %v17812_v36 = vpop.f32.mrb[219].mxu0  ;;  %17854 = vmatmul.mubr.msk.f32.vlgmr.msra.gmra.mrb[200].mxu1 %vm3403_vm14, %v11882_v32 }
0x19e3   :  { %17857 = vmatpush3.msk.msra.mxu1 %vm145_vm0, %v12531_v4  ;;  %v15757_v36 = vld [vmem:[%s22025_s23 + $0x28] sm:$0xff]  }
0x19e4   :  { %17861 = vmatprep.subr.msk.mxu1 %vm145_vm0, %v12619_v58 }
0x19e7   :  { %v11887_v38 = vpop.f32.mrb[220].mxu0 }
0x19e8   :  { %v17815_v62 = vpop.f32.mrb[221].mxu0  ;;  %17858 = vmatprep.mubr.msk.f32.mxu1 %vm3403_vm14, %v11887_v38 }
0x19e9   :  { %v11890_v63 = vpop.f32.mrb[222].mxu0 }
0x19ea   :  { %v17816_v42 = vpop.f32.mrb[223].mxu0  ;;  %17859 = vmatmul.mubr.msk.f32.vlgmr.msra.gmra.mrb[200].mxu1 %vm3403_vm14, %v11890_v63 }
0x19eb   :  { %17862 = vmatpush3.msk.msra.mxu1 %vm145_vm0, %v12619_v58 }
0x19ec   :  { %17866 = vmatprep.subr.bf16.mxu1 %v22158_v52 }
0x19ef   :  { %v11895_v3 = vpop.f32.mrb[224].mxu0 }
0x19f0   :  { %v17819_v5 = vpop.f32.mrb[225].mxu0  ;;  %17863 = vmatprep.mubr.msk.f32.mxu1 %vm3403_vm14, %v11895_v3  ;;  %v15758_v3 = vld [vmem:[%s22025_s23 + $0x30] sm:$0xff]  }
0x19f1   :  { %v11898_v20 = vpop.f32.mrb[226].mxu0  ;;  %v15759_v5 = vld [vmem:[%s22025_s23 + $0x38] sm:$0xff]  }
0x19f2   :  { %v17820_v37 = vpop.f32.mrb[227].mxu0  ;;  %17864 = vmatmul.mubr.msk.f32.vlgmr.msra.gmra.mrb[200].mxu1 %vm3403_vm14, %v11898_v20  ;;  %v15760_v20 = vld [vmem:[%s22025_s23 + $0x40] sm:$0xff]  }
0x19f3   :  { %17867 = vmatpush3.bf16.msra.mxu1 %v21063_v2  ;;  %17868 = vmatprep.mubr.msk.bf16.mxu1 %vm19198_vm10, %v22158_v52  ;;  %v19134_v2 = vld [vmem:[%s22023_s21 + $0x10] sm:$0xff]   ;;  %v19146_v37 = vld [vmem:[%s22176_s4 + $0x20] ss:$0 sps:$4 sm:$0xff]  }
0x19f4   :  { %17888 = vmatprep.subr.bf16.mxu1 %v22158_v52 }
0x19f6   :  { %17869 = vmatmul.mubr.msk.bf16.vlgmr.msra.gmra.mrb[204].mxu1 %vm1824_vm12, %v19132_v7  ;;  %v19154_v7 = vld [vmem:[%s22177_s3] ss:$8 sps:$4 sm:$0xff]  }
0x19f7   :  { %17872 = vmatprep.mubr.msk.bf16.mxu1 %vm19198_vm10, %v22158_v52 }
0x19fe   :  { %17873 = vmatmul.mubr.msk.bf16.gmra.mrb[208].mxu1 %vm1824_vm12, %v19133_v9  ;;  %v19155_v9 = vld [vmem:[%s22177_s3 + $0x14] ss:$8 sps:$4 sm:$0xff]  }
0x19ff   :  { %17876 = vmatprep.mubr.msk.bf16.mxu1 %vm19198_vm10, %v22158_v52 }
0x1a06   :  { %17877 = vmatmul.mubr.msk.bf16.gmra.mrb[212].mxu1 %vm1824_vm12, %v19134_v2  ;;  %v19157_v2 = vld [vmem:[%s22177_s3 + $0x10] ss:$8 sps:$4 sm:$0xff]  }
0x1a07   :  { %17880 = vmatprep.mubr.msk.bf16.mxu1 %vm19198_vm10, %v22158_v52 }
0x1a0e   :  { %17881 = vmatmul.mubr.msk.bf16.gmra.mrb[216].mxu1 %vm1824_vm12, %v19135_v10  ;;  %v19158_v10 = vld [vmem:[%s22177_s3 + $0x24] ss:$8 sps:$4 sm:$0xff]  }
0x1a0f   :  { %17884 = vmatprep.mubr.msk.bf16.mxu1 %vm19198_vm10, %v22158_v52 }
0x1a16   :  { %17885 = vmatmul.mubr.msk.bf16.gmra.mrb[220].mxu1 %vm1824_vm12, %v19136_v56  ;;  %v19160_v56 = vld [vmem:[%s22177_s3 + $0x20] ss:$8 sps:$4 sm:$0xff]  }
0x1a17   :  { %17890 = vmatprep.mubr.msk.bf16.mxu1 %vm19198_vm10, %v22158_v52 }
0x1ac5   :  { %v17865_v61 = vpop.f32.mrb[200].mxu1 }
0x1ac6   :  { %v18553_v13 = vadd.f32 %v17865_v61, %v21424_v33  ;;  %v12695_v18 = vpop.f32.mrb[201].mxu1  ;;  %v19138_v33 = vld [vmem:[%s22175_s27 + $0x8] sm:$0xff]   ;;  %v19163_v61 = vld [vmem:[%s22177_s3 + $0x30] ss:$8 sps:$4 sm:$0xff]  }
0x1ac7   :  { %v18554_v48 = vadd.f32 %v12695_v18, %v21426_v11  ;;  %v19139_v11 = vld [vmem:[%s22175_s27 + $0x10] sm:$0xff]  }
0x1ac8   :  { %v12707_v46 = vmax.f32 %v18553_v13, 0.0 }
0x1ac9   :  { %v12706_v57 = vmax.f32 %v18554_v48, 0.0 }
0x1acb   :  { %v12717_v39 = vpack.c.bf16 %v12707_v46, %v12706_v57 }
0x1acd   :  { %17889 = vmatpush3.bf16.msra.mxu1 %v12717_v39 }
0x1ace   :  { %17973 = vmatprep.subr.bf16.mxu1 %v22158_v52 }
0x1ad0   :  { %17891 = vmatmul.mubr.msk.bf16.vlgmr.msra.gmra.mrb[204].mxu1 %vm1824_vm12, %v19137_v8  ;;  %v19147_v8 = vld [vmem:[%s22178_s17] sm:$0xff]  }
0x1ad1   :  { %17974 = vmatpush3.bf16.msra.mxu1 %v20887_v60  ;;  %17894 = vmatprep.mubr.msk.bf16.mxu1 %vm19198_vm10, %v22158_v52  ;;  %v19140_v60 = vld [vmem:[%s22175_s27 + $0x18] sm:$0xff]  }
0x1ad2   :  { %17995 = vmatprep.subr.bf16.mxu1 %v22158_v52 }
0x1ad8   :  { %17895 = vmatmul.mubr.msk.bf16.gmra.mrb[208].mxu1 %vm1824_vm12, %v19138_v33  ;;  %v19148_v33 = vld [vmem:[%s22178_s17 + $0x8] sm:$0xff]  }
0x1ad9   :  { %17898 = vmatprep.mubr.msk.bf16.mxu1 %vm19198_vm10, %v22158_v52 }
0x1ae0   :  { %17899 = vmatmul.mubr.msk.bf16.gmra.mrb[212].mxu1 %vm1824_vm12, %v19139_v11  ;;  %v19150_v11 = vld [vmem:[%s22178_s17 + $0x18] sm:$0xff]  }
0x1ae1   :  { %17902 = vmatprep.mubr.msk.bf16.mxu1 %vm19198_vm10, %v22158_v52 }
0x1ae8   :  { %17903 = vmatmul.mubr.msk.bf16.gmra.mrb[216].mxu1 %vm1824_vm12, %v19140_v60  ;;  %v19151_v60 = vld [vmem:[%s22178_s17 + $0x20] ss:$0 sps:$4 sm:$0xff]  }
0x1ae9   :  { %17906 = vmatprep.mubr.msk.bf16.mxu1 %vm19198_vm10, %v22158_v52 }
0x1af0   :  { %17907 = vmatmul.mubr.msk.bf16.gmra.mrb[220].mxu1 %vm1824_vm12, %v19141_v24 }
0x1af1   :  { %17975 = vmatprep.mubr.msk.bf16.mxu1 %vm19198_vm10, %v22158_v52 }
0x1af8   :  { %17976 = vmatmul.mubr.msk.bf16.vlgmr.msra.gmra.mrb[224].mxu1 %vm129_vm1, %v19142_v25 }
0x1af9   :  { %17979 = vmatprep.mubr.msk.bf16.mxu1 %vm19198_vm10, %v22158_v52 }
0x1b00   :  { %17980 = vmatmul.mubr.msk.bf16.gmra.mrb[228].mxu1 %vm129_vm1, %v19143_v47 }
0x1b01   :  { %17983 = vmatprep.mubr.msk.bf16.mxu1 %vm19198_vm10, %v22158_v52 }
0x1b08   :  { %17984 = vmatmul.mubr.msk.bf16.gmra.mrb[232].mxu1 %vm129_vm1, %v19144_v6 }
0x1b09   :  { %17987 = vmatprep.mubr.msk.bf16.mxu1 %vm19198_vm10, %v22158_v52 }
0x1b10   :  { %17988 = vmatmul.mubr.msk.bf16.gmra.mrb[236].mxu1 %vm129_vm1, %v19145_v49 }
0x1b11   :  { %17991 = vmatprep.mubr.msk.bf16.mxu1 %vm19198_vm10, %v22158_v52 }
0x1b18   :  { %17992 = vmatmul.mubr.msk.bf16.gmra.mrb[240].mxu1 %vm129_vm1, %v19146_v37 }
0x1b19   :  { %17997 = vmatprep.mubr.msk.bf16.mxu1 %vm19198_vm10, %v22158_v52 }
0x1ba3   :  { %v12909_v12 = vpop.f32.mrb[204].mxu1 }
0x1ba4   :  { %v17892_v14 = vpop.f32.mrb[205].mxu1  ;;  %17915 = vmatmul.mubr.msk.f32.vlgmr.msra.gmra.mrb[114].mxu0 %vm1824_vm12, %v12909_v12 }
0x1ba5   :  { %v12912_v17 = vpop.f32.mrb[206].mxu1  ;;  %18489 = vmatpush3.bf16.msra.mxu0 %v15753_v53  ;;  %17921 = vmatprep.mubr.msk.f32.mxu0 %vm19198_vm10, %v22158_v52 }
0x1ba6   :  { %v17893_v15 = vpop.f32.mrb[207].mxu1  ;;  %18490 = vmatprep.subr.bf16.mxu0 %v22174_v22 }
0x1bab   :  { %v12917_v43 = vpop.f32.mrb[208].mxu1 }
0x1bac   :  { %v17896_v27 = vpop.f32.mrb[209].mxu1  ;;  %17922 = vmatmul.mubr.msk.f32.vlgmr.msra.gmra.mrb[114].mxu0 %vm1824_vm12, %v12912_v17 }
0x1bad   :  { %v12920_v44 = vpop.f32.mrb[210].mxu1  ;;  %18492 = vmatpush3.bf16.msra.mxu0 %v15754_v23  ;;  %17928 = vmatprep.mubr.msk.f32.mxu0 %vm19198_vm10, %v22158_v52 }
0x1bae   :  { %v17897_v28 = vpop.f32.mrb[211].mxu1  ;;  %18493 = vmatprep.subr.bf16.mxu0 %v22174_v22 }
0x1bb3   :  { %v12925_v35 = vpop.f32.mrb[212].mxu1 }
0x1bb4   :  { %v17900_v4 = vpop.f32.mrb[213].mxu1  ;;  %17929 = vmatmul.mubr.msk.f32.vlgmr.msra.gmra.mrb[114].mxu0 %vm1824_vm12, %v12917_v43 }
0x1bb5   :  { %v12928_v30 = vpop.f32.mrb[214].mxu1  ;;  %18495 = vmatpush3.bf16.msra.mxu0 %v15755_v34  ;;  %17935 = vmatprep.mubr.msk.f32.mxu0 %vm19198_vm10, %v22158_v52 }
0x1bb6   :  { %v17901_v45 = vpop.f32.mrb[215].mxu1  ;;  %18496 = vmatprep.subr.bf16.mxu0 %v22174_v22 }
0x1bbb   :  { %v12933_v29 = vpop.f32.mrb[216].mxu1 }
0x1bbc   :  { %v17904_v31 = vpop.f32.mrb[217].mxu1  ;;  %17936 = vmatmul.mubr.msk.f32.vlgmr.msra.gmra.mrb[114].mxu0 %vm1824_vm12, %v12920_v44 }
0x1bbd   :  { %v12936_v58 = vpop.f32.mrb[218].mxu1  ;;  %18498 = vmatpush3.bf16.msra.mxu0 %v15756_v26  ;;  %17942 = vmatprep.mubr.msk.f32.mxu0 %vm19198_vm10, %v22158_v52 }
0x1bbe   :  { %v17905_v32 = vpop.f32.mrb[219].mxu1  ;;  %18499 = vmatprep.subr.bf16.mxu0 %v22174_v22 }
0x1bc3   :  { %v12941_v38 = vpop.f32.mrb[220].mxu1 }
0x1bc4   :  { %v17908_v62 = vpop.f32.mrb[221].mxu1  ;;  %17943 = vmatmul.mubr.msk.f32.vlgmr.msra.gmra.mrb[114].mxu0 %vm1824_vm12, %v12925_v35 }
0x1bc5   :  { %v12944_v63 = vpop.f32.mrb[222].mxu1  ;;  %18501 = vmatpush3.bf16.msra.mxu0 %v15757_v36  ;;  %17949 = vmatprep.mubr.msk.f32.mxu0 %vm19198_vm10, %v22158_v52 }
0x1bc6   :  { %v17909_v42 = vpop.f32.mrb[223].mxu1  ;;  %18502 = vmatprep.subr.bf16.mxu0 %v22174_v22 }
0x1bcc   :  { %17950 = vmatmul.mubr.msk.f32.vlgmr.msra.gmra.mrb[114].mxu0 %vm1824_vm12, %v12928_v30 }
0x1bcd   :  { %18504 = vmatpush3.bf16.msra.mxu0 %v15758_v3  ;;  %17956 = vmatprep.mubr.msk.f32.mxu0 %vm19198_vm10, %v22158_v52 }
0x1bce   :  { %18505 = vmatprep.subr.bf16.mxu0 %v22174_v22 }
0x1bd4   :  { %17957 = vmatmul.mubr.msk.f32.vlgmr.msra.gmra.mrb[114].mxu0 %vm1824_vm12, %v12933_v29 }
0x1bd5   :  { %18507 = vmatpush3.bf16.msra.mxu0 %v15759_v5  ;;  %17963 = vmatprep.mubr.msk.f32.mxu0 %vm19198_vm10, %v22158_v52 }
0x1bd6   :  { %18508 = vmatprep.subr.bf16.mxu0 %v22174_v22  ;;  %v19152_v22 = vld [vmem:[%s22177_s3 + $0x4] ss:$8 sps:$4 sm:$0xff]  }
0x1bdc   :  { %17964 = vmatmul.mubr.msk.f32.vlgmr.msra.gmra.mrb[114].mxu0 %vm1824_vm12, %v12936_v58 }
0x1bdd   :  { %18510 = vmatpush3.bf16.msra.mxu0 %v15760_v20  ;;  %17970 = vmatprep.mubr.msk.f32.mxu0 %vm19198_vm10, %v22158_v52 }
0x1bde   :  { %18512 = vmatprep.subr.bf16.mxu0 %v19152_v22 }
0x1be4   :  { %17971 = vmatmul.mubr.msk.f32.vlgmr.msra.gmra.mrb[114].mxu0 %vm1824_vm12, %v12941_v38 }
0x1be5   :  { %14013 = vmatprep.mubr.f32.mxu0 %v22158_v52  ;;  %18514 = vmatpush1.bf16.msra.mxu0 %v19154_v7 }
0x1be6   :  { %18516 = vmatprep.subr.bf16.mxu0 %v19155_v9 }
0x1be9   :  { %18518 = vmatpush1.bf16.msra.mxu0 %v19157_v2 }
0x1bea   :  { %18520 = vmatprep.subr.bf16.mxu0 %v19158_v10 }
0x1bed   :  { %18522 = vmatpush1.bf16.msra.mxu0 %v19160_v56 }
0x1bee   :  { %18524 = vmatprep.subr.bf16.mxu0 %v19161_v51 }
0x1bf1   :  { %18526 = vmatpush1.bf16.msra.mxu0 %v19163_v61 }
0x1cb7   :  { %v13650_v13 = vpop.f32.mrb[114].mxu0 }
0x1cb8   :  { %v18555_v18 = vadd.f32 %v13650_v13, %v21430_v50  ;;  %v17972_v48 = vpop.f32.mrb[115].mxu0  ;;  %v19149_v50 = vld [vmem:[%s22178_s17 + $0x10] sm:$0xff]  }
0x1cba   :  { %v13655_v46 = vmax.f32 %v18555_v18, 0.0 }
0x1cbc   :  { %v13665_v57 = vpack.c.bf16 %v13655_v46, %v13655_v46 }
0x1cbe   :  { %v13824_v39 = vsel %vm145_vm0, %v13665_v57, 0  ;;  %vm22189_vm0 = vmmov %vm22157_vm9 }
0x1cbf   :  { %17996 = vmatpush3.bf16.msra.mxu1 %v13824_v39  ;;  %v22179_v39 = vld [vmem:[#allocation12_spill] sm:$0xff] }
0x1cc2   :  { %17998 = vmatmul.mubr.msk.bf16.vlgmr.msra.gmra.mrb[224].mxu1 %vm129_vm1, %v19147_v8 }
0x1cc3   :  { %18001 = vmatprep.mubr.msk.bf16.mxu1 %vm19198_vm10, %v22158_v52 }
0x1cca   :  { %18002 = vmatmul.mubr.msk.bf16.gmra.mrb[228].mxu1 %vm129_vm1, %v19148_v33  ;;  %v22180_v33 = vld [vmem:[#allocation13_spill] sm:$0xff] }
0x1ccb   :  { %18005 = vmatprep.mubr.msk.bf16.mxu1 %vm19198_vm10, %v22158_v52 }
0x1cd2   :  { %18006 = vmatmul.mubr.msk.bf16.gmra.mrb[232].mxu1 %vm129_vm1, %v19149_v50 }
0x1cd3   :  { %18009 = vmatprep.mubr.msk.bf16.mxu1 %vm19198_vm10, %v22158_v52 }
0x1cda   :  { %18010 = vmatmul.mubr.msk.bf16.gmra.mrb[236].mxu1 %vm129_vm1, %v19150_v11 }
0x1cdb   :  { %18013 = vmatprep.mubr.msk.bf16.mxu1 %vm19198_vm10, %v22158_v52 }
0x1ce2   :  { %18014 = vmatmul.mubr.msk.bf16.gmra.mrb[240].mxu1 %vm129_vm1, %v19151_v60  ;;  %vm22190_vm1 = vmmov %vm22189_vm0 }
0x1d95   :  { %v13860_v24 = vpop.f32.mrb[224].mxu1 }
0x1d96   :  { %15060 = vmatmul.mubr.msk.f32.vlgmr.msra.gmra.mrb[228].mxu0 %vm811_vm11, %v13860_v24  ;;  %v17999_v25 = vpop.f32.mrb[225].mxu1 }
0x1d97   :  { %v13863_v47 = vpop.f32.mrb[226].mxu1  ;;  %14019 = vmatprep.mubr.f32.mxu0 %v22158_v52 }
0x1d98   :  { %v18000_v6 = vpop.f32.mrb[227].mxu1 }
0x1d9a   :  { %15061 = vmatmul.mubr.msk.f32.gmra.mrb[230].mxu0 %vm811_vm11, %v13863_v47  ;;  %v22181_v47 = vld [vmem:[#allocation14_spill] sm:$0xff] }
0x1d9b   :  { %14025 = vmatprep.mubr.f32.mxu0 %v22158_v52 }
0x1d9d   :  { %v13868_v49 = vpop.f32.mrb[228].mxu1 }
0x1d9e   :  { %15062 = vmatmul.mubr.msk.f32.gmra.mrb[232].mxu0 %vm811_vm11, %v13868_v49  ;;  %v18003_v53 = vpop.f32.mrb[229].mxu1  ;;  %v22182_v49 = vld [vmem:[#allocation15_spill] sm:$0xff] }
0x1d9f   :  { %v13871_v12 = vpop.f32.mrb[230].mxu1  ;;  %14031 = vmatprep.mubr.f32.mxu0 %v22158_v52 }
0x1da0   :  { %v18004_v14 = vpop.f32.mrb[231].mxu1 }
0x1da2   :  { %15063 = vmatmul.mubr.msk.f32.gmra.mrb[234].mxu0 %vm811_vm11, %v13871_v12 }
0x1da3   :  { %14037 = vmatprep.mubr.f32.mxu0 %v22158_v52 }
0x1da5   :  { %v13876_v17 = vpop.f32.mrb[232].mxu1 }
0x1da6   :  { %15064 = vmatmul.mubr.msk.f32.gmra.mrb[236].mxu0 %vm811_vm11, %v13876_v17  ;;  %v18007_v15 = vpop.f32.mrb[233].mxu1 }
0x1da7   :  { %v13879_v23 = vpop.f32.mrb[234].mxu1  ;;  %14043 = vmatprep.mubr.f32.mxu0 %v22158_v52 }
0x1da8   :  { %v18008_v43 = vpop.f32.mrb[235].mxu1 }
0x1daa   :  { %15065 = vmatmul.mubr.msk.f32.gmra.mrb[238].mxu0 %vm811_vm11, %v13879_v23 }
0x1dab   :  { %14049 = vmatprep.mubr.f32.mxu0 %v22158_v52 }
0x1dad   :  { %v13884_v27 = vpop.f32.mrb[236].mxu1 }
0x1dae   :  { %15066 = vmatmul.mubr.msk.f32.gmra.mrb[240].mxu0 %vm811_vm11, %v13884_v27  ;;  %v18011_v44 = vpop.f32.mrb[237].mxu1 }
0x1daf   :  { %v13887_v28 = vpop.f32.mrb[238].mxu1  ;;  %14055 = vmatprep.mubr.f32.mxu0 %v22158_v52 }
0x1db0   :  { %v18012_v34 = vpop.f32.mrb[239].mxu1 }
0x1db1   :  { %v22183_v34 = vld [vmem:[#allocation16_spill] sm:$0xff] }
0x1db2   :  { %15067 = vmatmul.mubr.msk.f32.gmra.mrb[242].mxu0 %vm811_vm11, %v13887_v28 }
0x1db3   :  { %14061 = vmatprep.mubr.f32.mxu0 %v22158_v52 }
0x1db5   :  { %v13892_v35 = vpop.f32.mrb[240].mxu1 }
0x1db6   :  { %15068 = vmatmul.mubr.msk.f32.gmra.mrb[244].mxu0 %vm811_vm11, %v13892_v35  ;;  %v18015_v4 = vpop.f32.mrb[241].mxu1 }
0x1db7   :  { %v13895_v30 = vpop.f32.mrb[242].mxu1  ;;  %v22184_v4 = vld [vmem:[#allocation17_spill] sm:$0xff] }
0x1db8   :  { %v18016_v45 = vpop.f32.mrb[243].mxu1 }
0x1e69   :  { %v14015_v26 = vpop.f32.mrb[228].mxu0 }
0x1e6a   :  { %v14017_v29 = vpop.f32.mrb[229].mxu0  ;;  %14074 = vrot.lane.b32.xlu0 %v14015_v26, %s22138_s29 }
0x1e6b   :  { %14076 = vrot.lane.b32.xlu1 %v14017_v29, %s22138_s29  ;;  %s19200_s29 = smov [#allocation2]  }
0x1e6d   :  { %v14021_v31 = vpop.f32.mrb[230].mxu0 }
0x1e6e   :  { %v14023_v58 = vpop.f32.mrb[231].mxu0  ;;  %14084 = vrot.lane.b32.xlu0 %v14021_v31, %s22139_s0 }
0x1e6f   :  { %14086 = vrot.lane.b32.xlu1 %v14023_v58, %s22139_s0 }
0x1e71   :  { %v14027_v32 = vpop.f32.mrb[232].mxu0 }
0x1e72   :  { %v14029_v52 = vpop.f32.mrb[233].mxu0  ;;  %14094 = vrot.lane.b32.xlu0 %v14027_v32, %s22140_s2 }
0x1e73   :  { %14096 = vrot.lane.b32.xlu1 %v14029_v52, %s22140_s2  ;;  %s14166_s2 = sshll.u32 %s19200_s29, 4  ;;  %s14167_s2 = int_to_ptr.vmem [resolvable:$true] %s14166_s2 }
0x1e74   :  { %p19169_p1 = scmp.lt.s32.totalorder %s14167_s2, %s14167_s2 }
0x1e75   :  { %v14033_v36 = vpop.f32.mrb[234].mxu0 }
0x1e76   :  { %v14035_v38 = vpop.f32.mrb[235].mxu0  ;;  %14104 = vrot.lane.b32.xlu0 %v14033_v36, %s22141_s5 }
0x1e77   :  { %14106 = vrot.lane.b32.xlu1 %v14035_v38, %s22141_s5  ;;  %v22185_v38 = vld [vmem:[#allocation18_spill] sm:$0xff]  ;;  %s19164_s5 = scalar_lea.vmem %s14167_s2, 512 }
0x1e78   :  { %p19165_p0 = scmp.ne.s32.totalorder %s14167_s2, %s19164_s5  ;;  %p19170_p2 = scmp.lt.s32.totalorder %s19164_s5, %s19164_s5 }
0x1e79   :  { %v14039_v62 = vpop.f32.mrb[236].mxu0 }
0x1e7a   :  { %v14041_v63 = vpop.f32.mrb[237].mxu0  ;;  %p19171_p3 = por %p19170_p2, %p19169_p1 }
0x1e7c   :  { %p19172_p4 = pnand %p19171_p3, %p19165_p0 }
0x1e7d   :  { %v14045_v42 = vpop.f32.mrb[238].mxu0 }
0x1e7e   :  { %v14047_v3 = vpop.f32.mrb[239].mxu0  ;;  %14118 = vrot.lane.b32.xlu0 %v14045_v42, %s22142_s8  ;;  %v14114_v42 = vmul.f32 %v14039_v62, %v22185_v38 }
0x1e7f   :  { %14120 = vrot.lane.b32.xlu1 %v14047_v3, %s22142_s8  ;;  %v14115_v3 = vmul.f32 %v14041_v63, %v20812_v21 }
0x1e81   :  { %v14051_v5 = vpop.f32.mrb[240].mxu0 }
0x1e82   :  { %v14053_v20 = vpop.f32.mrb[241].mxu0  ;;  %14128 = vrot.lane.b32.xlu0 %v14051_v5, %s22143_s7 }
0x1e83   :  { %14130 = vrot.lane.b32.xlu1 %v14053_v20, %s22143_s7  ;;  %v22186_v20 = vld [vmem:[#allocation19_spill] sm:$0xff] }
0x1e85   :  { %v14057_v37 = vpop.f32.mrb[242].mxu0 }
0x1e86   :  { %v14059_v22 = vpop.f32.mrb[243].mxu0  ;;  %14138 = vrot.lane.b32.xlu0 %v14057_v37, %s22144_s10 }
0x1e87   :  { %14140 = vrot.lane.b32.xlu1 %v14059_v22, %s22144_s10 }
0x1e89   :  { %v14063_v7 = vpop.f32.mrb[244].mxu0 }
0x1e8a   :  { %v14065_v9 = vpop.f32.mrb[245].mxu0  ;;  %14148 = vrot.lane.b32.xlu0 %v14063_v7, %s22145_s28 }
0x1e8b   :  { %14150 = vrot.lane.b32.xlu1 %v14065_v9, %s22145_s28 }
0x1edc   :  { %v14075_v2 = vpop.permute.xlu0 %14074 }
0x1edd   :  { %v14077_v10 = vpop.permute.xlu1 %14076 }
0x1ede   :  { %v14078_v18 = vsel %vm245_vm2, %v14075_v2, %v14077_v10  ;;  %v14079_v48 = vsel %vm245_vm2, %v14077_v10, %v14075_v2  ;;  %v22187_v2 = vld [vmem:[#allocation20_spill] sm:$0xff] }
0x1edf   :  { %v14080_v8 = vmul.f32 %v14079_v48, %v22179_v39  ;;  %v14081_v50 = vmul.f32 %v14078_v18, %v22180_v33 }
0x1ee0   :  { %v14085_v56 = vpop.permute.xlu0 %14084 }
0x1ee1   :  { %v14087_v51 = vpop.permute.xlu1 %14086  ;;  %v14082_v17 = vadd.f32 %v14080_v8, %v21434_v19  ;;  %v14083_v15 = vadd.f32 %v14081_v50, %v21434_v19 }
0x1ee2   :  { %v14088_v46 = vsel %vm268_vm3, %v14085_v56, %v14087_v51  ;;  %v14089_v57 = vsel %vm268_vm3, %v14087_v51, %v14085_v56  ;;  %v22188_v56 = vld [vmem:[#allocation21_spill] sm:$0xff] }
0x1ee3   :  { %v14090_v6 = vmul.f32 %v14089_v57, %v22181_v47  ;;  %v14091_v53 = vmul.f32 %v14088_v46, %v22182_v49 }
0x1ee4   :  { %v14095_v61 = vpop.permute.xlu0 %14094 }
0x1ee5   :  { %v14097_v13 = vpop.permute.xlu1 %14096  ;;  %v14092_v44 = vadd.f32 %v14090_v6, %v14082_v17  ;;  %v14093_v28 = vadd.f32 %v14091_v53, %v14083_v15 }
0x1ee6   :  { %v14098_v24 = vsel %vm292_vm4, %v14095_v61, %v14097_v13  ;;  %v14099_v25 = vsel %vm292_vm4, %v14097_v13, %v14095_v61 }
0x1ee7   :  { %v14100_v23 = vmul.f32 %v14099_v25, %v20777_v41  ;;  %v14101_v43 = vmul.f32 %v14098_v24, %v20780_v1 }
0x1ee8   :  { %v14105_v11 = vpop.permute.xlu0 %14104 }
0x1ee9   :  { %v14107_v60 = vpop.permute.xlu1 %14106  ;;  %v14102_v26 = vadd.f32 %v14100_v23, %v14092_v44  ;;  %v14103_v29 = vadd.f32 %v14101_v43, %v14093_v28 }
0x1eea   :  { %v14108_v12 = vsel %vm316_vm5, %v14105_v11, %v14107_v60  ;;  %v14109_v14 = vsel %vm316_vm5, %v14107_v60, %v14105_v11 }
0x1eeb   :  { %v14110_v35 = vmul.f32 %v14109_v14, %v22183_v34  ;;  %v14111_v30 = vmul.f32 %v14108_v12, %v22184_v4 }
0x1eed   :  { %v14112_v41 = vadd.f32 %v14110_v35, %v14102_v26  ;;  %v14113_v32 = vadd.f32 %v14111_v30, %v14103_v29 }
0x1eef   :  { %v14116_v7 = vadd.f32 %v14114_v42, %v14112_v41  ;;  %v14117_v9 = vadd.f32 %v14115_v3, %v14113_v32 }
0x1ef0   :  { %v14119_v27 = vpop.permute.xlu0 %14118 }
0x1ef1   :  { %v14121_v45 = vpop.permute.xlu1 %14120 }
0x1ef2   :  { %v14122_v31 = vsel %vm357_vm6, %v14119_v27, %v14121_v45  ;;  %v14123_v19 = vsel %vm357_vm6, %v14121_v45, %v14119_v27 }
0x1ef3   :  { %v14124_v5 = vmul.f32 %v14122_v31, %v20818_v54  ;;  %v14125_v37 = vmul.f32 %v14123_v19, %v22186_v20 }
0x1ef4   :  { %v14129_v58 = vpop.permute.xlu0 %14128 }
0x1ef5   :  { %v14131_v1 = vpop.permute.xlu1 %14130  ;;  %v14126_v18 = vadd.f32 %v14124_v5, %v14116_v7  ;;  %v14127_v21 = vadd.f32 %v14125_v37, %v14117_v9 }
0x1ef6   :  { %v14132_v52 = vsel %vm381_vm7, %v14129_v58, %v14131_v1  ;;  %v14133_v36 = vsel %vm381_vm7, %v14131_v1, %v14129_v58 }
0x1ef7   :  { %v14134_v10 = vmul.f32 %v14132_v52, %v22187_v2  ;;  %v14135_v51 = vmul.f32 %v14133_v36, %v22188_v56 }
0x1ef8   :  { %v14139_v22 = vpop.permute.xlu0 %14138 }
0x1ef9   :  { %v14141_v61 = vpop.permute.xlu1 %14140  ;;  %v14136_v46 = vadd.f32 %v14134_v10, %v14126_v18  ;;  %v14137_v57 = vadd.f32 %v14135_v51, %v14127_v21 }
0x1efa   :  { %v14142_v13 = vsel %vm405_vm8, %v14139_v22, %v14141_v61  ;;  %v14143_v62 = vsel %vm405_vm8, %v14141_v61, %v14139_v22 }
0x1efb   :  { %v14144_v54 = vmul.f32 %v14142_v13, %v20843_v40  ;;  %v14145_v63 = vmul.f32 %v14143_v62, %v20850_v0 }
0x1efc   :  { %v14149_v48 = vpop.permute.xlu0 %14148 }
0x1efd   :  { %v14151_v39 = vpop.permute.xlu1 %14150  ;;  %v14146_v50 = vadd.f32 %v14144_v54, %v14136_v46  ;;  %v14147_v11 = vadd.f32 %v14145_v63, %v14137_v57 }
0x1efe   :  { %v14152_v8 = vsel %vm22189_vm0, %v14149_v48, %v14151_v39  ;;  %v14153_v33 = vsel %vm22190_vm1, %v14151_v39, %v14149_v48 }
0x1eff   :  { %v14154_v60 = vmul.f32 %v14152_v8, %v20862_v55  ;;  %v14155_v40 = vmul.f32 %v14153_v33, %v20865_v16 }
0x1f01   :  { %v14156_v24 = vadd.f32 %v14154_v60, %v14146_v50  ;;  %v14157_v0 = vadd.f32 %v14155_v40, %v14147_v11 }
0x1f03   :  { %14159 = vst [vmem:[#allocation2 + $0x10] sm:$0xff] %v14156_v24  ;;  %14160 = vst [vmem:[#allocation2 + $0x18] sm:$0xff] %v14157_v0 }
0x1f04   :  { %19175 = shalt.err (!%p19172_p4)
}
0x1f05   :  { %s22191_s10 = sld [smem:[#allocation41_spill]] }
0x1f0b   :  { %s19176_s28 = scalar_lea.hbm %s22191_s10, 512 }
0x1f0c   :  { %p19177_p5 = scmp.ne.s32.totalorder %s22191_s10, %s19176_s28  ;;  %p19180_p6 = scmp.lt.u32.totalorder %s19176_s28, %s22191_s10 }
0x1f0e   :  { %p19182_p7 = pnand %p19180_p6, %p19177_p5 }
0x1f10   :  { %19185 = shalt.err (!%p19182_p7)
}
0x1f11   :  { %s19201_s27 = smov 256  }
0x1f12   :  { %14172 = dma.vmem_to_hbm [thread:$0]  %s14167_s2, 512, %s22191_s10, [#allocation3], %s19201_s27, %s19201_s27, %s22139_s0  }
0x1f13   :  { %19186 = dma.done.wait [#allocation3], 512  }
0x1f14   :  { %19187 = vsyncadd [#allocation3], 4294966784 }
0x1f15   :  { %14176 = vsyncpa [#allocation3], 1 }

</bundles_post_ra>
